<compile_context>
chip_gen: v7x
topology: tpu7x:2x2x1
jax: 0.10.0
libtpu: 0.0.40
codegen_flags: <defaults>
</compile_context>

<pallas_src>
import jax
import jax.numpy as jnp
from jax import lax
from jax.experimental import pallas as pl
from jax.experimental.pallas import tpu as pltpu


def _round_up(x, m):
    return ((x + m - 1) // m) * m


# ---------------------------------------------------------------------------
# Kernels
# ---------------------------------------------------------------------------

def conv_relu_pool_kernel(p_ref, w_ref, b_ref, o_ref):
    """Fused conv (patch matmul) + 2x2 maxpool + bias + ReLU.

    p_ref: (Nb, 4, S, K) bf16  -- 4 = pool offsets, S = padded pooled H*W
    w_ref: (K, C)         bf16
    b_ref: (1, C)         f32
    o_ref: (Nb, S, C)     f32
    """
    nb, four, s, k = p_ref.shape
    c = w_ref.shape[1]
    # One big MXU call: fold (Nb, 4, S) into M.  S % 8 == 0 -> free reshape.
    p = p_ref[...].reshape(nb * four * s, k)
    z = jnp.dot(p, w_ref[...], preferred_element_type=jnp.float32)   # (M, C) f32
    z = jnp.max(z.reshape(nb, four, s, c), axis=1)                    # MaxPool2d(2,2)
    z = jnp.maximum(z + b_ref[...], 0.0)                              # bias + ReLU (hoisted)
    o_ref[...] = z.astype(o_ref.dtype)


def mlp_logsoftmax_kernel(x_ref, w1_ref, b1_ref, w2_ref, b2_ref, o_ref):
    """Linear(1600,256) -> ReLU -> Linear(256,10) -> LogSoftmax(dim=1)."""
    h = jnp.dot(x_ref[...], w1_ref[...], preferred_element_type=jnp.float32)
    h = jnp.maximum(h + b1_ref[...], 0.0)
    logits = jnp.dot(h, w2_ref[...], preferred_element_type=jnp.float32) + b2_ref[...]
    m = jnp.max(logits, axis=-1, keepdims=True)
    lse = jnp.log(jnp.sum(jnp.exp(logits - m), axis=-1, keepdims=True)) + m
    o_ref[...] = (logits - lse).astype(o_ref.dtype)


# ---------------------------------------------------------------------------
# Pallas wrappers (batch-tiled grids)
# ---------------------------------------------------------------------------

def conv_relu_pool(patches, w, b, nb):
    """patches: (N, 4, S, K) bf16; w: (K, C) bf16; b: (1, C) f32 -> (N, S, C) f32."""
    n, four, s, k = patches.shape
    c = w.shape[1]
    return pl.pallas_call(
        conv_relu_pool_kernel,
        out_shape=jax.ShapeDtypeStruct((n, s, c), jnp.float32),
        grid=(n // nb,),
        in_specs=[
            pl.BlockSpec((nb, four, s, k), lambda i: (i, 0, 0, 0)),
            pl.BlockSpec((k, c), lambda i: (0, 0)),
            pl.BlockSpec((1, c), lambda i: (0, 0)),
        ],
        out_specs=pl.BlockSpec((nb, s, c), lambda i: (i, 0, 0)),
        compiler_params=pltpu.CompilerParams(dimension_semantics=("parallel",)),
    )(patches, w, b)


def mlp_logsoftmax(x, w1, b1, w2, b2, nb):
    n, d = x.shape
    h = w1.shape[1]
    o = w2.shape[1]
    return pl.pallas_call(
        mlp_logsoftmax_kernel,
        out_shape=jax.ShapeDtypeStruct((n, o), jnp.float32),
        grid=(n // nb,),
        in_specs=[
            pl.BlockSpec((nb, d), lambda i: (i, 0)),
            pl.BlockSpec((d, h), lambda i: (0, 0)),
            pl.BlockSpec((1, h), lambda i: (0, 0)),
            pl.BlockSpec((h, o), lambda i: (0, 0)),
            pl.BlockSpec((1, o), lambda i: (0, 0)),
        ],
        out_specs=pl.BlockSpec((nb, o), lambda i: (i, 0)),
        compiler_params=pltpu.CompilerParams(dimension_semantics=("parallel",)),
    )(x, w1, b1, w2, b2)


# ---------------------------------------------------------------------------
# Glue (pure data rearrangement, zero FLOPs)
# ---------------------------------------------------------------------------

def im2col_pool(x, k, pool_out, s_pad):
    """3x3 conv patches for every position covered by a 2x2 maxpool.

    x: (N, H, W, C) NHWC, f32.
    Returns (N, 4, s_pad, k*k*C) bf16; patch element order is (kh, kw, cin),
    matching weights reshaped as (kh, kw, cin, cout).  Rows [pool_out^2, s_pad)
    are zero padding (sublane alignment); they are sliced off downstream.
    """
    n, _, _, c = x.shape
    s = pool_out * pool_out
    groups = []
    for di in range(2):
        for dj in range(2):
            elems = []
            for ky in range(k):
                for kx in range(k):
                    sub = x[:, di + ky: di + ky + 2 * pool_out: 2,
                              dj + kx: dj + kx + 2 * pool_out: 2, :]   # (N,P,P,C)
                    elems.append(sub)
            p = jnp.stack(elems, axis=3).reshape(n, s, k * k * c)      # (N,S,k*k*C)
            if s_pad > s:
                p = jnp.pad(p, ((0, 0), (0, s_pad - s), (0, 0)))
            groups.append(p)
    return jnp.stack(groups, axis=1).astype(jnp.bfloat16)              # (N,4,s_pad,K)


def init_params(key):
    ks = jax.random.split(key, 8)
    # PyTorch-layout parameters (deterministic synthetic init).
    raw = {
        "conv1_w": jax.random.normal(ks[0], (32, 1, 3, 3), jnp.float32) * 0.3,   # OIHW
        "conv1_b": jax.random.normal(ks[1], (32,), jnp.float32) * 0.3,
        "conv2_w": jax.random.normal(ks[2], (64, 32, 3, 3), jnp.float32) * 0.06,
        "conv2_b": jax.random.normal(ks[3], (64,), jnp.float32) * 0.06,
        "fc1_w": jax.random.normal(ks[4], (256, 64 * 5 * 5), jnp.float32) * 0.03,  # (out,in)
        "fc1_b": jax.random.normal(ks[5], (256,), jnp.float32) * 0.03,
        "fc2_w": jax.random.normal(ks[6], (10, 256), jnp.float32) * 0.1,
        "fc2_b": jax.random.normal(ks[7], (10,), jnp.float32) * 0.1,
    }

    # fc1 rows permuted from PyTorch (c,h,w)-flatten order to the kernel's
    # (h,w,c)-flatten order, so no runtime transpose of the conv2 output.
    fw1 = raw["fc1_w"].T.reshape(64, 5, 5, 256).transpose(1, 2, 0, 3).reshape(1600, 256)

    params = {
        "w1": jnp.transpose(raw["conv1_w"], (2, 3, 1, 0)).reshape(9, 32).astype(jnp.bfloat16),
        "b1": raw["conv1_b"].reshape(1, 32),
        "w2": jnp.transpose(raw["conv2_w"], (2, 3, 1, 0)).reshape(288, 64).astype(jnp.bfloat16),
        "b2": raw["conv2_b"].reshape(1, 64),
        "fw1": fw1.astype(jnp.bfloat16),                               # (1600, 256)
        "fb1": raw["fc1_b"].reshape(1, 256),
        "fw2": raw["fc2_w"].T,                                         # (256, 10) f32 (tiny)
        "fb2": raw["fc2_b"].reshape(1, 10),
    }
    return params, raw


def forward(x_nchw, params, nb=32):
    """x_nchw: (N, 1, 28, 28) float32 -> (N, 10) log-probabilities."""
    n = x_nchw.shape[0]
    nb = max(8, (nb // 8) * 8)                 # sublane-aligned batch tile
    n_pad = _round_up(n, nb)
    if n_pad != n:
        x_nchw = jnp.pad(x_nchw, ((0, n_pad - n), (0, 0), (0, 0), (0, 0)))
    x = jnp.transpose(x_nchw, (0, 2, 3, 1))    # NCHW -> NHWC (Np,28,28,1)

    # layer1: Conv2d(1,32,3,1) + ReLU + MaxPool2d(2,2)  [+ Dropout(0.1) == identity]
    p1 = im2col_pool(x, k=3, pool_out=13, s_pad=176)            # (Np,4,176,9)
    y1 = conv_relu_pool(p1, params["w1"], params["b1"], nb)     # (Np,176,32)
    y1 = y1[:, :169, :].reshape(n_pad, 13, 13, 32)

    # layer2: Conv2d(32,64,3,1) + ReLU + MaxPool2d(2,2)  [+ Dropout(0.1) == identity]
    p2 = im2col_pool(y1, k=3, pool_out=5, s_pad=32)             # (Np,4,32,288)
    y2 = conv_relu_pool(p2, params["w2"], params["b2"], nb)     # (Np,32,64)

    # layer3: Flatten (permutation folded into fc1 rows) + MLP + LogSoftmax
    y2f = y2[:, :25, :].reshape(n_pad, 64 * 5 * 5).astype(jnp.bfloat16)
    out = mlp_logsoftmax(y2f, params["fw1"], params["fb1"],
                         params["fw2"], params["fb2"], nb)      # (Np,10)
    return out[:n]


# ---------------------------------------------------------------------------
# Pure-JAX reference (f32) for correctness checking
# ---------------------------------------------------------------------------

def reference_forward(x_nchw, raw):
    dn = ("NCHW", "OIHW", "NCHW")
    y = lax.conv_general_dilated(x_nchw, raw["conv1_w"], (1, 1), "VALID",
                                 dimension_numbers=dn)
    y = jnp.maximum(y + raw["conv1_b"][None, :, None, None], 0.0)
    y = lax.reduce_window(y, -jnp.inf, lax.max, (1, 1, 2, 2), (1, 1, 2, 2), "VALID")
    y = lax.conv_general_dilated(y, raw["conv2_w"], (1, 1), "VALID",
                                 dimension_numbers=dn)
    y = jnp.maximum(y + raw["conv2_b"][None, :, None, None], 0.0)
    y = lax.reduce_window(y, -jnp.inf, lax.max, (1, 1, 2, 2), (1, 1, 2, 2), "VALID")
    y = y.reshape(y.shape[0], -1)                                  # NCHW flatten
    h = jnp.maximum(y @ raw["fc1_w"].T + raw["fc1_b"], 0.0)
    logits = h @ raw["fc2_w"].T + raw["fc2_b"]
    return jax.nn.log_softmax(logits, axis=1)


if __name__ == "__main__":
    key = jax.random.PRNGKey(0)
    k_x, k_p = jax.random.split(key)
    # MNIST-shaped input (28x28 is fixed by the 64*5*5 Linear in layer3).
    N = 16
    x = jax.random.normal(k_x, (N, 1, 28, 28), jnp.float32)
    params, raw = init_params(k_p)

    fwd = jax.jit(lambda xx: forward(xx, params, nb=8))    # grid=(2,) per pallas_call
    out = jax.block_until_ready(fwd(x))

    assert out.shape == (N, 10), out.shape
    # log-softmax rows sum to 1 in probability space
    assert jnp.allclose(jnp.sum(jnp.exp(out), axis=1), 1.0, atol=1e-4)
    # compare against the f32 pure-JAX reference (kernel uses bf16 MXU operands)
    ref = reference_forward(x, raw)
    max_err = float(jnp.max(jnp.abs(out - ref)))
    assert max_err < 0.15, f"max |kernel - reference| = {max_err}"
    print("KERNEL_OK")
</pallas_src>

<mosaic_0001>
module attributes {stable_mosaic.version = 11 : i64} {
  func.func @conv_relu_pool_kernel(%arg0: i32, %arg1: memref<8x4x176x9xbf16, #tpu.memory_space<vmem>>, %arg2: memref<9x32xbf16, #tpu.memory_space<vmem>>, %arg3: memref<1x32xf32, #tpu.memory_space<vmem>>, %arg4: memref<8x176x32xf32, #tpu.memory_space<vmem>>) attributes {dimension_semantics = [#tpu.dimension_semantics<parallel>], iteration_bounds = array<i64: 2>, scalar_prefetch = 0 : i64, scratch_operands = 0 : i64, tpu.core_type = #tpu.core_type<tc>, window_params = [{transform_indices = @transform_0, window_bounds = array<i64: 8, 4, 176, 9>}, {pipeline_mode = #tpu.pipeline_mode<synchronous>, transform_indices = @transform_1, window_bounds = array<i64: 9, 32>}, {pipeline_mode = #tpu.pipeline_mode<synchronous>, transform_indices = @transform_2, window_bounds = array<i64: 1, 32>}, {transform_indices = @transform_3, window_bounds = array<i64: 8, 176, 32>}]} {
    %c0 = arith.constant 0 : index
    %c0_0 = arith.constant 0 : index
    %c0_1 = arith.constant 0 : index
    %c0_2 = arith.constant 0 : index
    %0 = vector.load %arg1[%c0, %c0_0, %c0_1, %c0_2] : memref<8x4x176x9xbf16, #tpu.memory_space<vmem>>, vector<8x4x176x9xbf16>
    %1 = vector.shape_cast %0 : vector<8x4x176x9xbf16> to vector<5632x9xbf16>
    %c0_3 = arith.constant 0 : index
    %c0_4 = arith.constant 0 : index
    %2 = vector.load %arg2[%c0_3, %c0_4] : memref<9x32xbf16, #tpu.memory_space<vmem>>, vector<9x32xbf16>
    %cst = arith.constant dense<0.000000e+00> : vector<5632x32xf32>
    %3 = tpu.matmul %1, %2, %cst {dimension_numbers = #tpu.dot_dimension_numbers<[1], [0], [0], [1], [0, 0, 1, 1], [], []>} : vector<5632x9xbf16>, vector<9x32xbf16>, vector<5632x32xf32> -> vector<5632x32xf32>
    %4 = vector.shape_cast %3 : vector<5632x32xf32> to vector<8x4x176x32xf32>
    %cst_5 = arith.constant dense<0xFF800000> : vector<8x176x32xf32>
    %5 = vector.multi_reduction <maximumf>, %4, %cst_5 [1] : vector<8x4x176x32xf32> to vector<8x176x32xf32>
    %c0_6 = arith.constant 0 : index
    %c0_7 = arith.constant 0 : index
    %6 = vector.load %arg3[%c0_6, %c0_7] : memref<1x32xf32, #tpu.memory_space<vmem>>, vector<1x32xf32>
    %7 = vector.shape_cast %6 : vector<1x32xf32> to vector<1x1x32xf32>
    %8 = vector.broadcast %7 : vector<1x1x32xf32> to vector<8x176x32xf32>
    %9 = arith.addf %5, %8 : vector<8x176x32xf32>
    %cst_8 = arith.constant 0.000000e+00 : f32
    %10 = vector.broadcast %cst_8 : f32 to vector<8x176x32xf32>
    %11 = arith.maximumf %9, %10 : vector<8x176x32xf32>
    %c0_9 = arith.constant 0 : index
    %c0_10 = arith.constant 0 : index
    %c0_11 = arith.constant 0 : index
    %12 = vector.load %arg4[%c0_9, %c0_10, %c0_11] : memref<8x176x32xf32, #tpu.memory_space<vmem>>, vector<8x176x32xf32>
    tpu.vector_store %arg4[%c0_9, %c0_10, %c0_11], %11 {strides = array<i32>} : memref<8x176x32xf32, #tpu.memory_space<vmem>>, vector<8x176x32xf32>,
    return
  }
  func.func @transform_0(%arg0: i32) -> (i32, i32, i32, i32) {
    %c0_i32 = arith.constant 0 : i32
    %c0_i32_0 = arith.constant 0 : i32
    %c0_i32_1 = arith.constant 0 : i32
    %c0_i32_2 = arith.constant 0 : i32
    return %arg0, %c0_i32, %c0_i32_0, %c0_i32_1 : i32, i32, i32, i32
  }
  func.func @transform_1(%arg0: i32) -> (i32, i32) {
    %c0_i32 = arith.constant 0 : i32
    %c0_i32_0 = arith.constant 0 : i32
    %c0_i32_1 = arith.constant 0 : i32
    return %c0_i32, %c0_i32_0 : i32, i32
  }
  func.func @transform_2(%arg0: i32) -> (i32, i32) {
    %c0_i32 = arith.constant 0 : i32
    %c0_i32_0 = arith.constant 0 : i32
    %c0_i32_1 = arith.constant 0 : i32
    return %c0_i32, %c0_i32_0 : i32, i32
  }
  func.func @transform_3(%arg0: i32) -> (i32, i32, i32) {
    %c0_i32 = arith.constant 0 : i32
    %c0_i32_0 = arith.constant 0 : i32
    %c0_i32_1 = arith.constant 0 : i32
    return %arg0, %c0_i32, %c0_i32_0 : i32, i32, i32
  }
}

module attributes {stable_mosaic.version = 11 : i64} {
  func.func @conv_relu_pool_kernel(%arg0: i32, %arg1: memref<8x4x32x288xbf16, #tpu.memory_space<vmem>>, %arg2: memref<288x64xbf16, #tpu.memory_space<vmem>>, %arg3: memref<1x64xf32, #tpu.memory_space<vmem>>, %arg4: memref<8x32x64xf32, #tpu.memory_space<vmem>>) attributes {dimension_semantics = [#tpu.dimension_semantics<parallel>], iteration_bounds = array<i64: 2>, scalar_prefetch = 0 : i64, scratch_operands = 0 : i64, tpu.core_type = #tpu.core_type<tc>, window_params = [{transform_indices = @transform_0, window_bounds = array<i64: 8, 4, 32, 288>}, {pipeline_mode = #tpu.pipeline_mode<synchronous>, transform_indices = @transform_1, window_bounds = array<i64: 288, 64>}, {pipeline_mode = #tpu.pipeline_mode<synchronous>, transform_indices = @transform_2, window_bounds = array<i64: 1, 64>}, {transform_indices = @transform_3, window_bounds = array<i64: 8, 32, 64>}]} {
    %c0 = arith.constant 0 : index
    %c0_0 = arith.constant 0 : index
    %c0_1 = arith.constant 0 : index
    %c0_2 = arith.constant 0 : index
    %0 = vector.load %arg1[%c0, %c0_0, %c0_1, %c0_2] : memref<8x4x32x288xbf16, #tpu.memory_space<vmem>>, vector<8x4x32x288xbf16>
    %1 = vector.shape_cast %0 : vector<8x4x32x288xbf16> to vector<1024x288xbf16>
    %c0_3 = arith.constant 0 : index
    %c0_4 = arith.constant 0 : index
    %2 = vector.load %arg2[%c0_3, %c0_4] : memref<288x64xbf16, #tpu.memory_space<vmem>>, vector<288x64xbf16>
    %cst = arith.constant dense<0.000000e+00> : vector<1024x64xf32>
    %3 = tpu.matmul %1, %2, %cst {dimension_numbers = #tpu.dot_dimension_numbers<[1], [0], [0], [1], [0, 0, 1, 1], [], []>} : vector<1024x288xbf16>, vector<288x64xbf16>, vector<1024x64xf32> -> vector<1024x64xf32>
    %4 = vector.shape_cast %3 : vector<1024x64xf32> to vector<8x4x32x64xf32>
    %cst_5 = arith.constant dense<0xFF800000> : vector<8x32x64xf32>
    %5 = vector.multi_reduction <maximumf>, %4, %cst_5 [1] : vector<8x4x32x64xf32> to vector<8x32x64xf32>
    %c0_6 = arith.constant 0 : index
    %c0_7 = arith.constant 0 : index
    %6 = vector.load %arg3[%c0_6, %c0_7] : memref<1x64xf32, #tpu.memory_space<vmem>>, vector<1x64xf32>
    %7 = vector.shape_cast %6 : vector<1x64xf32> to vector<1x1x64xf32>
    %8 = vector.broadcast %7 : vector<1x1x64xf32> to vector<8x32x64xf32>
    %9 = arith.addf %5, %8 : vector<8x32x64xf32>
    %cst_8 = arith.constant 0.000000e+00 : f32
    %10 = vector.broadcast %cst_8 : f32 to vector<8x32x64xf32>
    %11 = arith.maximumf %9, %10 : vector<8x32x64xf32>
    %c0_9 = arith.constant 0 : index
    %c0_10 = arith.constant 0 : index
    %c0_11 = arith.constant 0 : index
    %12 = vector.load %arg4[%c0_9, %c0_10, %c0_11] : memref<8x32x64xf32, #tpu.memory_space<vmem>>, vector<8x32x64xf32>
    tpu.vector_store %arg4[%c0_9, %c0_10, %c0_11], %11 {strides = array<i32>} : memref<8x32x64xf32, #tpu.memory_space<vmem>>, vector<8x32x64xf32>,
    return
  }
  func.func @transform_0(%arg0: i32) -> (i32, i32, i32, i32) {
    %c0_i32 = arith.constant 0 : i32
    %c0_i32_0 = arith.constant 0 : i32
    %c0_i32_1 = arith.constant 0 : i32
    %c0_i32_2 = arith.constant 0 : i32
    return %arg0, %c0_i32, %c0_i32_0, %c0_i32_1 : i32, i32, i32, i32
  }
  func.func @transform_1(%arg0: i32) -> (i32, i32) {
    %c0_i32 = arith.constant 0 : i32
    %c0_i32_0 = arith.constant 0 : i32
    %c0_i32_1 = arith.constant 0 : i32
    return %c0_i32, %c0_i32_0 : i32, i32
  }
  func.func @transform_2(%arg0: i32) -> (i32, i32) {
    %c0_i32 = arith.constant 0 : i32
    %c0_i32_0 = arith.constant 0 : i32
    %c0_i32_1 = arith.constant 0 : i32
    return %c0_i32, %c0_i32_0 : i32, i32
  }
  func.func @transform_3(%arg0: i32) -> (i32, i32, i32) {
    %c0_i32 = arith.constant 0 : i32
    %c0_i32_0 = arith.constant 0 : i32
    %c0_i32_1 = arith.constant 0 : i32
    return %arg0, %c0_i32, %c0_i32_0 : i32, i32, i32
  }
}

module attributes {stable_mosaic.version = 11 : i64} {
  func.func @mlp_logsoftmax_kernel(%arg0: i32, %arg1: memref<8x1600xbf16, #tpu.memory_space<vmem>>, %arg2: memref<1600x256xbf16, #tpu.memory_space<vmem>>, %arg3: memref<1x256xf32, #tpu.memory_space<vmem>>, %arg4: memref<256x10xf32, #tpu.memory_space<vmem>>, %arg5: memref<1x10xf32, #tpu.memory_space<vmem>>, %arg6: memref<8x10xf32, #tpu.memory_space<vmem>>) attributes {dimension_semantics = [#tpu.dimension_semantics<parallel>], iteration_bounds = array<i64: 2>, scalar_prefetch = 0 : i64, scratch_operands = 0 : i64, tpu.core_type = #tpu.core_type<tc>, window_params = [{transform_indices = @transform_0, window_bounds = array<i64: 8, 1600>}, {pipeline_mode = #tpu.pipeline_mode<synchronous>, transform_indices = @transform_1, window_bounds = array<i64: 1600, 256>}, {pipeline_mode = #tpu.pipeline_mode<synchronous>, transform_indices = @transform_2, window_bounds = array<i64: 1, 256>}, {pipeline_mode = #tpu.pipeline_mode<synchronous>, transform_indices = @transform_3, window_bounds = array<i64: 256, 10>}, {pipeline_mode = #tpu.pipeline_mode<synchronous>, transform_indices = @transform_4, window_bounds = array<i64: 1, 10>}, {transform_indices = @transform_5, window_bounds = array<i64: 8, 10>}]} {
    %c0 = arith.constant 0 : index
    %c0_0 = arith.constant 0 : index
    %0 = vector.load %arg1[%c0, %c0_0] : memref<8x1600xbf16, #tpu.memory_space<vmem>>, vector<8x1600xbf16>
    %c0_1 = arith.constant 0 : index
    %c0_2 = arith.constant 0 : index
    %1 = vector.load %arg2[%c0_1, %c0_2] : memref<1600x256xbf16, #tpu.memory_space<vmem>>, vector<1600x256xbf16>
    %cst = arith.constant dense<0.000000e+00> : vector<8x256xf32>
    %2 = tpu.matmul %0, %1, %cst {dimension_numbers = #tpu.dot_dimension_numbers<[1], [0], [0], [1], [0, 0, 1, 1], [], []>} : vector<8x1600xbf16>, vector<1600x256xbf16>, vector<8x256xf32> -> vector<8x256xf32>
    %c0_3 = arith.constant 0 : index
    %c0_4 = arith.constant 0 : index
    %3 = vector.load %arg3[%c0_3, %c0_4] : memref<1x256xf32, #tpu.memory_space<vmem>>, vector<1x256xf32>
    %4 = vector.broadcast %3 : vector<1x256xf32> to vector<8x256xf32>
    %5 = arith.addf %2, %4 : vector<8x256xf32>
    %cst_5 = arith.constant 0.000000e+00 : f32
    %6 = vector.broadcast %cst_5 : f32 to vector<8x256xf32>
    %7 = arith.maximumf %5, %6 : vector<8x256xf32>
    %c0_6 = arith.constant 0 : index
    %c0_7 = arith.constant 0 : index
    %8 = vector.load %arg4[%c0_6, %c0_7] : memref<256x10xf32, #tpu.memory_space<vmem>>, vector<256x10xf32>
    %cst_8 = arith.constant dense<0.000000e+00> : vector<8x10xf32>
    %9 = tpu.matmul %7, %8, %cst_8 {dimension_numbers = #tpu.dot_dimension_numbers<[1], [0], [0], [1], [0, 0, 1, 1], [], []>} : vector<8x256xf32>, vector<256x10xf32>, vector<8x10xf32> -> vector<8x10xf32>
    %c0_9 = arith.constant 0 : index
    %c0_10 = arith.constant 0 : index
    %10 = vector.load %arg5[%c0_9, %c0_10] : memref<1x10xf32, #tpu.memory_space<vmem>>, vector<1x10xf32>
    %11 = vector.broadcast %10 : vector<1x10xf32> to vector<8x10xf32>
    %12 = arith.addf %9, %11 : vector<8x10xf32>
    %cst_11 = arith.constant dense<0xFF800000> : vector<8xf32>
    %13 = vector.multi_reduction <maximumf>, %12, %cst_11 [1] : vector<8x10xf32> to vector<8xf32>
    %14 = vector.shape_cast %13 : vector<8xf32> to vector<8x1xf32>
    %15 = vector.broadcast %14 : vector<8x1xf32> to vector<8x10xf32>
    %16 = arith.subf %12, %15 : vector<8x10xf32>
    %17 = math.exp %16 : vector<8x10xf32>
    %cst_12 = arith.constant dense<0.000000e+00> : vector<8xf32>
    %18 = vector.multi_reduction <add>, %17, %cst_12 [1] : vector<8x10xf32> to vector<8xf32>
    %19 = vector.shape_cast %18 : vector<8xf32> to vector<8x1xf32>
    %20 = math.log %19 : vector<8x1xf32>
    %21 = arith.addf %20, %14 : vector<8x1xf32>
    %22 = vector.broadcast %21 : vector<8x1xf32> to vector<8x10xf32>
    %23 = arith.subf %12, %22 : vector<8x10xf32>
    %c0_13 = arith.constant 0 : index
    %c0_14 = arith.constant 0 : index
    %24 = vector.load %arg6[%c0_13, %c0_14] : memref<8x10xf32, #tpu.memory_space<vmem>>, vector<8x10xf32>
    tpu.vector_store %arg6[%c0_13, %c0_14], %23 {strides = array<i32>} : memref<8x10xf32, #tpu.memory_space<vmem>>, vector<8x10xf32>,
    return
  }
  func.func @transform_0(%arg0: i32) -> (i32, i32) {
    %c0_i32 = arith.constant 0 : i32
    %c0_i32_0 = arith.constant 0 : i32
    return %arg0, %c0_i32 : i32, i32
  }
  func.func @transform_1(%arg0: i32) -> (i32, i32) {
    %c0_i32 = arith.constant 0 : i32
    %c0_i32_0 = arith.constant 0 : i32
    %c0_i32_1 = arith.constant 0 : i32
    return %c0_i32, %c0_i32_0 : i32, i32
  }
  func.func @transform_2(%arg0: i32) -> (i32, i32) {
    %c0_i32 = arith.constant 0 : i32
    %c0_i32_0 = arith.constant 0 : i32
    %c0_i32_1 = arith.constant 0 : i32
    return %c0_i32, %c0_i32_0 : i32, i32
  }
  func.func @transform_3(%arg0: i32) -> (i32, i32) {
    %c0_i32 = arith.constant 0 : i32
    %c0_i32_0 = arith.constant 0 : i32
    %c0_i32_1 = arith.constant 0 : i32
    return %c0_i32, %c0_i32_0 : i32, i32
  }
  func.func @transform_4(%arg0: i32) -> (i32, i32) {
    %c0_i32 = arith.constant 0 : i32
    %c0_i32_0 = arith.constant 0 : i32
    %c0_i32_1 = arith.constant 0 : i32
    return %c0_i32, %c0_i32_0 : i32, i32
  }
  func.func @transform_5(%arg0: i32) -> (i32, i32) {
    %c0_i32 = arith.constant 0 : i32
    %c0_i32_0 = arith.constant 0 : i32
    return %arg0, %c0_i32 : i32, i32
  }
}

</mosaic_0001>

<bundles_post_ra>
// kernel: _lambda_.3
= control target key start
LH: loop header
LB: loop body
LE: loop exit
PB: predicated region body
PF: predicated region fallthrough
CT: control target
= control target key end

     0   :  { %s10564_s12 = smov 0   ;;  %s15164_s0 = inlined_call_operand.vmem [shape: bf16[16,4,176,9], index: 0, kind: input, shape index: {}]   ;;  %s15165_s1 = inlined_call_operand.vmem [shape: bf16[9,32], index: 1, kind: input, shape index: {}]   ;;  %s15166_s2 = inlined_call_operand.vmem [shape: f32[1,32], index: 2, kind: input, shape index: {}]   ;;  %s15167_s3 = inlined_call_operand.vmem [shape: f32[16,176,32], index: 3, kind: output, shape index: {}]  }
   0x1 LB: > { %s8390_s13 = sadd.s32 4294967295, %s10541_s12   ;;  %p8394_p0 = scmp.ge.s32.totalorder %s10541_s12, 1  ;;  %s10541_s12 = sphi %s10564_s12, %s13_s12  }
   0x2   : > { %p139_p1 = scmp.lt.s32.totalorder %s10541_s12, 3 }
   0x4   : > { %p140_p2 = pnand %p8394_p0, %p139_p1 }
   0x6   : > { %143 = sbr.rel (%p140_p2) target bundleno = 945 (0x3b1), region = 32 }
   0xd   : > { %v10179_v0 = vld [vmem:[%s15165_s1] sm:$0x1f]   ;;  %vm3708_vm0 = vcmask 1043456   ;;  %vm3709_vm1 = vcmask 1044480   ;;  %s8395_s16 = sshll.u32 %s8390_s13, 3  ;;  %v10543_v1 = vmov 65535  }
   0xe   : > { %v3710_v2 = vsel %vm3708_vm0, 4294967295, %v10543_v1  ;;  %p166_p3 = scmp.lt.s32.totalorder %s8395_s16, 15  ;;  %vm2651_vm2 = vcmask 72704   ;;  %vm6564_vm3 = vcmask 261120  }
   0xf   : > { %v3711_v3 = vsel %vm3709_vm1, %v3710_v2, 0 }
  0x10   : > { %v3713_v4 = vand.u32 %v10179_v0, %v3711_v3  ;;  %s15823_s16 = smov (!%p166_p3, %s8395_s16), 15 }
  0x11   : > { %s10168_s17 = smul.u32 352, %s15823_s16 }
  0x12   : > { %9460 = vmatprep.subr.bf16.mxu0 %v3713_v4  ;;  %10166 = vmatprep.subr.bf16.mxu1 %v3713_v4  ;;  %s10169_s21 = smul.u32 176, %s15823_s16 }
  0x13   : > { %9461 = vmatpush3.bf16.msra.mxu0 %v3713_v4  ;;  %10167 = vmatpush3.bf16.msra.mxu1 %v3713_v4  ;;  %s10581_s20 = scalar_lea.vmem %s15164_s0, %s10168_s17 }
  0x14   : > { %v10180_v5 = vld [vmem:[%s10581_s20] sm:$0xff]   ;;  %v10182_v7 = vld [vmem:[%s10581_s20 + $0x8] sm:$0xff]   ;;  %v10184_v9 = vld [vmem:[%s10581_s20 + $0x10] sm:$0xff]   ;;  %s11688_s26 = scalar_lea.vmem %s15167_s3, %s10169_s21 }
  0x15   : > { %v10181_v6 = vld [vmem:[%s10581_s20 + $0x580] sm:$0xff]   ;;  %9462 = vmatprep.mubr.msk.bf16.mxu0 %vm2651_vm2, %v10180_v5  ;;  %v10183_v8 = vld [vmem:[%s10581_s20 + $0x588] sm:$0xff]   ;;  %v10185_v10 = vld [vmem:[%s10581_s20 + $0x590] sm:$0xff]  }
  0x16   : > { %9814 = vmatprep.mubr.msk.bf16.mxu1 %vm2651_vm2, %v10181_v6  ;;  %9463 = vmatmul.mubr.msk.bf16.vlgmr.msra.gmra.mrb[0].mxu0 %vm2651_vm2, %v10182_v7  ;;  %v10186_v11 = vld [vmem:[%s10581_s20 + $0x18] sm:$0xff]   ;;  %v10188_v13 = vld [vmem:[%s10581_s20 + $0x20] sm:$0xff]   ;;  %v10190_v15 = vld [vmem:[%s10581_s20 + $0x28] sm:$0xff]  }
  0x17   : > { %9815 = vmatmul.mubr.msk.bf16.vlgmr.msra.gmra.mrb[0].mxu1 %vm2651_vm2, %v10183_v8  ;;  %9466 = vmatprep.mubr.msk.bf16.mxu0 %vm2651_vm2, %v10184_v9  ;;  %v10187_v12 = vld [vmem:[%s10581_s20 + $0x598] sm:$0xff]   ;;  %v10189_v14 = vld [vmem:[%s10581_s20 + $0x5a0] sm:$0xff]   ;;  %v10191_v16 = vld [vmem:[%s10581_s20 + $0x5a8] sm:$0xff]  }
  0x18   : > { %9818 = vmatprep.mubr.msk.bf16.mxu1 %vm2651_vm2, %v10185_v10  ;;  %v10192_v17 = vld [vmem:[%s10581_s20 + $0x30] sm:$0xff]   ;;  %v10194_v19 = vld [vmem:[%s10581_s20 + $0x38] sm:$0xff]   ;;  %v10196_v21 = vld [vmem:[%s10581_s20 + $0x40] sm:$0xff]  }
  0x19   : > { %v10193_v18 = vld [vmem:[%s10581_s20 + $0x5b0] sm:$0xff]   ;;  %v10195_v20 = vld [vmem:[%s10581_s20 + $0x5b8] sm:$0xff]   ;;  %v10197_v22 = vld [vmem:[%s10581_s20 + $0x5c0] sm:$0xff]  }
  0x1a   : > { %v10198_v23 = vld [vmem:[%s10581_s20 + $0x48] sm:$0xff]   ;;  %v10200_v25 = vld [vmem:[%s10581_s20 + $0x50] sm:$0xff]   ;;  %v10202_v27 = vld [vmem:[%s10581_s20 + $0x58] sm:$0xff]  }
  0x1b   : > { %v10199_v24 = vld [vmem:[%s10581_s20 + $0x5c8] sm:$0xff]   ;;  %v10201_v26 = vld [vmem:[%s10581_s20 + $0x5d0] sm:$0xff]   ;;  %v10203_v28 = vld [vmem:[%s10581_s20 + $0x5d8] sm:$0xff]  }
  0x1c   : > { %v10204_v29 = vld [vmem:[%s10581_s20 + $0x60] sm:$0xff]   ;;  %v10206_v31 = vld [vmem:[%s10581_s20 + $0x68] sm:$0xff]   ;;  %v10208_v33 = vld [vmem:[%s10581_s20 + $0x70] sm:$0xff]  }
  0x1d   : > { %v10205_v30 = vld [vmem:[%s10581_s20 + $0x5e0] sm:$0xff]   ;;  %v10207_v32 = vld [vmem:[%s10581_s20 + $0x5e8] sm:$0xff]   ;;  %v10209_v34 = vld [vmem:[%s10581_s20 + $0x5f0] sm:$0xff]  }
  0x1e   : > { %9467 = vmatmul.mubr.msk.bf16.gmra.mrb[4].mxu0 %vm2651_vm2, %v10186_v11  ;;  %v10210_v35 = vld [vmem:[%s10581_s20 + $0x78] sm:$0xff]   ;;  %v10212_v37 = vld [vmem:[%s10581_s20 + $0x80] sm:$0xff]   ;;  %v10214_v39 = vld [vmem:[%s10581_s20 + $0x88] sm:$0xff]  }
  0x1f   : > { %9819 = vmatmul.mubr.msk.bf16.gmra.mrb[4].mxu1 %vm2651_vm2, %v10187_v12  ;;  %9470 = vmatprep.mubr.msk.bf16.mxu0 %vm2651_vm2, %v10188_v13  ;;  %v10211_v36 = vld [vmem:[%s10581_s20 + $0x5f8] sm:$0xff]   ;;  %v10213_v38 = vld [vmem:[%s10581_s20 + $0x600] sm:$0xff]   ;;  %v10215_v40 = vld [vmem:[%s10581_s20 + $0x608] sm:$0xff]  }
  0x20   : > { %9822 = vmatprep.mubr.msk.bf16.mxu1 %vm2651_vm2, %v10189_v14  ;;  %v10216_v41 = vld [vmem:[%s10581_s20 + $0x90] sm:$0xff]   ;;  %v10218_v43 = vld [vmem:[%s10581_s20 + $0x98] sm:$0xff]   ;;  %v10220_v45 = vld [vmem:[%s10581_s20 + $0xa0] sm:$0xff]  }
  0x21   : > { %v10217_v42 = vld [vmem:[%s10581_s20 + $0x610] sm:$0xff]   ;;  %v10219_v44 = vld [vmem:[%s10581_s20 + $0x618] sm:$0xff]   ;;  %v10221_v46 = vld [vmem:[%s10581_s20 + $0x620] sm:$0xff]  }
  0x22   : > { %v10222_v47 = vld [vmem:[%s10581_s20 + $0xa8] sm:$0xff]   ;;  %v10224_v49 = vld [vmem:[%s10581_s20 + $0xb0] sm:$0xff]   ;;  %v10226_v51 = vld [vmem:[%s10581_s20 + $0xb8] sm:$0xff]  }
  0x23   : > { %v10223_v48 = vld [vmem:[%s10581_s20 + $0x628] sm:$0xff]   ;;  %v10225_v50 = vld [vmem:[%s10581_s20 + $0x630] sm:$0xff]   ;;  %v10227_v52 = vld [vmem:[%s10581_s20 + $0x638] sm:$0xff]  }
  0x24   : > { %v10228_v53 = vld [vmem:[%s10581_s20 + $0xc0] sm:$0xff]   ;;  %v10230_v55 = vld [vmem:[%s10581_s20 + $0xc8] sm:$0xff]   ;;  %v10232_v57 = vld [vmem:[%s10581_s20 + $0xd0] sm:$0xff]  }
  0x25   : > { %v10229_v54 = vld [vmem:[%s10581_s20 + $0x640] sm:$0xff]   ;;  %v10231_v56 = vld [vmem:[%s10581_s20 + $0x648] sm:$0xff]   ;;  %v10233_v58 = vld [vmem:[%s10581_s20 + $0x650] sm:$0xff]  }
  0x26   : > { %9471 = vmatmul.mubr.msk.bf16.gmra.mrb[8].mxu0 %vm2651_vm2, %v10190_v15  ;;  %v10234_v59 = vld [vmem:[%s10581_s20 + $0xd8] sm:$0xff]   ;;  %v10236_v61 = vld [vmem:[%s10581_s20 + $0xe0] sm:$0xff]   ;;  %v10238_v63 = vld [vmem:[%s10581_s20 + $0xe8] sm:$0xff]  }
  0x27   : > { %9823 = vmatmul.mubr.msk.bf16.gmra.mrb[8].mxu1 %vm2651_vm2, %v10191_v16  ;;  %9474 = vmatprep.mubr.msk.bf16.mxu0 %vm2651_vm2, %v10192_v17  ;;  %v10235_v60 = vld [vmem:[%s10581_s20 + $0x658] sm:$0xff]   ;;  %v10237_v62 = vld [vmem:[%s10581_s20 + $0x660] sm:$0xff]   ;;  %v10239_v0 = vld [vmem:[%s10581_s20 + $0x668] sm:$0xff]  }
  0x28   : > { %9826 = vmatprep.mubr.msk.bf16.mxu1 %vm2651_vm2, %v10193_v18  ;;  %v10240_v1 = vld [vmem:[%s10581_s20 + $0xf0] sm:$0xff]   ;;  %v10242_v3 = vld [vmem:[%s10581_s20 + $0xf8] sm:$0xff]   ;;  %v10244_v5 = vld [vmem:[%s10581_s20 + $0x100] sm:$0xff]  }
  0x29   : > { %v10241_v2 = vld [vmem:[%s10581_s20 + $0x670] sm:$0xff]   ;;  %v10243_v4 = vld [vmem:[%s10581_s20 + $0x678] sm:$0xff]   ;;  %v10245_v6 = vld [vmem:[%s10581_s20 + $0x680] sm:$0xff]  }
  0x2a   : > { %v10246_v7 = vld [vmem:[%s10581_s20 + $0x108] sm:$0xff]   ;;  %v10248_v9 = vld [vmem:[%s10581_s20 + $0x110] sm:$0xff]   ;;  %v10250_v11 = vld [vmem:[%s10581_s20 + $0x118] sm:$0xff]  }
  0x2b   : > { %v10247_v8 = vld [vmem:[%s10581_s20 + $0x688] sm:$0xff]   ;;  %v10249_v10 = vld [vmem:[%s10581_s20 + $0x690] sm:$0xff]   ;;  %v10251_v12 = vld [vmem:[%s10581_s20 + $0x698] sm:$0xff]  }
  0x2c   : > { %v10252_v13 = vld [vmem:[%s10581_s20 + $0x120] sm:$0xff]   ;;  %v10254_v15 = vld [vmem:[%s10581_s20 + $0x128] sm:$0xff]   ;;  %v10256_v17 = vld [vmem:[%s10581_s20 + $0x130] sm:$0xff]  }
  0x2d   : > { %v10253_v14 = vld [vmem:[%s10581_s20 + $0x6a0] sm:$0xff]   ;;  %v10255_v16 = vld [vmem:[%s10581_s20 + $0x6a8] sm:$0xff]   ;;  %v10257_v18 = vld [vmem:[%s10581_s20 + $0x6b0] sm:$0xff]  }
  0x2e   : > { %9475 = vmatmul.mubr.msk.bf16.gmra.mrb[12].mxu0 %vm2651_vm2, %v10194_v19  ;;  %v10258_v19 = vld [vmem:[%s10581_s20 + $0x138] sm:$0xff]  }
  0x2f   : > { %9827 = vmatmul.mubr.msk.bf16.gmra.mrb[12].mxu1 %vm2651_vm2, %v10195_v20  ;;  %9478 = vmatprep.mubr.msk.bf16.mxu0 %vm2651_vm2, %v10196_v21  ;;  %v10259_v20 = vld [vmem:[%s10581_s20 + $0x6b8] sm:$0xff]   ;;  %v10260_v21 = vld [vmem:[%s10581_s20 + $0x140] sm:$0xff]  }
  0x30   : > { %9830 = vmatprep.mubr.msk.bf16.mxu1 %vm2651_vm2, %v10197_v22  ;;  %v10261_v22 = vld [vmem:[%s10581_s20 + $0x6c0] sm:$0xff]  }
  0x36   : > { %9479 = vmatmul.mubr.msk.bf16.gmra.mrb[16].mxu0 %vm2651_vm2, %v10198_v23  ;;  %v10262_v23 = vld [vmem:[%s10581_s20 + $0x148] sm:$0xff]  }
  0x37   : > { %9831 = vmatmul.mubr.msk.bf16.gmra.mrb[16].mxu1 %vm2651_vm2, %v10199_v24  ;;  %9482 = vmatprep.mubr.msk.bf16.mxu0 %vm2651_vm2, %v10200_v25  ;;  %v10263_v24 = vld [vmem:[%s10581_s20 + $0x6c8] sm:$0xff]   ;;  %v10264_v25 = vld [vmem:[%s10581_s20 + $0x150] sm:$0xff]  }
  0x38   : > { %9834 = vmatprep.mubr.msk.bf16.mxu1 %vm2651_vm2, %v10201_v26  ;;  %v10265_v26 = vld [vmem:[%s10581_s20 + $0x6d0] sm:$0xff]  }
  0x3e   : > { %9483 = vmatmul.mubr.msk.bf16.gmra.mrb[20].mxu0 %vm2651_vm2, %v10202_v27  ;;  %v10266_v27 = vld [vmem:[%s10581_s20 + $0x158] sm:$0xff]  }
  0x3f   : > { %9835 = vmatmul.mubr.msk.bf16.gmra.mrb[20].mxu1 %vm2651_vm2, %v10203_v28  ;;  %9486 = vmatprep.mubr.msk.bf16.mxu0 %vm2651_vm2, %v10204_v29  ;;  %v10267_v28 = vld [vmem:[%s10581_s20 + $0x6d8] sm:$0xff]   ;;  %v10268_v29 = vld [vmem:[%s10581_s20 + $0x160] sm:$0xff]  }
  0x40   : > { %9838 = vmatprep.mubr.msk.bf16.mxu1 %vm2651_vm2, %v10205_v30  ;;  %v10269_v30 = vld [vmem:[%s10581_s20 + $0x6e0] sm:$0xff]  }
  0x46   : > { %9487 = vmatmul.mubr.msk.bf16.gmra.mrb[24].mxu0 %vm2651_vm2, %v10206_v31  ;;  %v10270_v31 = vld [vmem:[%s10581_s20 + $0x168] sm:$0xff]  }
  0x47   : > { %9839 = vmatmul.mubr.msk.bf16.gmra.mrb[24].mxu1 %vm2651_vm2, %v10207_v32  ;;  %9490 = vmatprep.mubr.msk.bf16.mxu0 %vm2651_vm2, %v10208_v33  ;;  %v10271_v32 = vld [vmem:[%s10581_s20 + $0x6e8] sm:$0xff]   ;;  %v10272_v33 = vld [vmem:[%s10581_s20 + $0x170] sm:$0xff]  }
  0x48   : > { %9842 = vmatprep.mubr.msk.bf16.mxu1 %vm2651_vm2, %v10209_v34  ;;  %v10273_v34 = vld [vmem:[%s10581_s20 + $0x6f0] sm:$0xff]  }
  0x4e   : > { %9491 = vmatmul.mubr.msk.bf16.gmra.mrb[28].mxu0 %vm2651_vm2, %v10210_v35  ;;  %v10274_v35 = vld [vmem:[%s10581_s20 + $0x178] sm:$0xff]  }
  0x4f   : > { %9843 = vmatmul.mubr.msk.bf16.gmra.mrb[28].mxu1 %vm2651_vm2, %v10211_v36  ;;  %9494 = vmatprep.mubr.msk.bf16.mxu0 %vm2651_vm2, %v10212_v37  ;;  %v10275_v36 = vld [vmem:[%s10581_s20 + $0x6f8] sm:$0xff]   ;;  %v10276_v37 = vld [vmem:[%s10581_s20 + $0x180] sm:$0xff]  }
  0x50   : > { %9846 = vmatprep.mubr.msk.bf16.mxu1 %vm2651_vm2, %v10213_v38  ;;  %v10277_v38 = vld [vmem:[%s10581_s20 + $0x700] sm:$0xff]  }
  0x56   : > { %9495 = vmatmul.mubr.msk.bf16.gmra.mrb[32].mxu0 %vm2651_vm2, %v10214_v39  ;;  %v10278_v39 = vld [vmem:[%s10581_s20 + $0x188] sm:$0xff]  }
  0x57   : > { %9847 = vmatmul.mubr.msk.bf16.gmra.mrb[32].mxu1 %vm2651_vm2, %v10215_v40  ;;  %9498 = vmatprep.mubr.msk.bf16.mxu0 %vm2651_vm2, %v10216_v41  ;;  %v10279_v40 = vld [vmem:[%s10581_s20 + $0x708] sm:$0xff]   ;;  %v10280_v41 = vld [vmem:[%s10581_s20 + $0x190] sm:$0xff]  }
  0x58   : > { %9850 = vmatprep.mubr.msk.bf16.mxu1 %vm2651_vm2, %v10217_v42  ;;  %v10281_v42 = vld [vmem:[%s10581_s20 + $0x710] sm:$0xff]  }
  0x5e   : > { %9499 = vmatmul.mubr.msk.bf16.gmra.mrb[36].mxu0 %vm2651_vm2, %v10218_v43  ;;  %v10282_v43 = vld [vmem:[%s10581_s20 + $0x198] sm:$0xff]  }
  0x5f   : > { %9851 = vmatmul.mubr.msk.bf16.gmra.mrb[36].mxu1 %vm2651_vm2, %v10219_v44  ;;  %9502 = vmatprep.mubr.msk.bf16.mxu0 %vm2651_vm2, %v10220_v45  ;;  %v10283_v44 = vld [vmem:[%s10581_s20 + $0x718] sm:$0xff]   ;;  %v10284_v45 = vld [vmem:[%s10581_s20 + $0x1a0] sm:$0xff]  }
  0x60   : > { %9854 = vmatprep.mubr.msk.bf16.mxu1 %vm2651_vm2, %v10221_v46  ;;  %v10285_v46 = vld [vmem:[%s10581_s20 + $0x720] sm:$0xff]  }
  0x66   : > { %9503 = vmatmul.mubr.msk.bf16.gmra.mrb[40].mxu0 %vm2651_vm2, %v10222_v47  ;;  %v10286_v47 = vld [vmem:[%s10581_s20 + $0x1a8] sm:$0xff]  }
  0x67   : > { %9855 = vmatmul.mubr.msk.bf16.gmra.mrb[40].mxu1 %vm2651_vm2, %v10223_v48  ;;  %9506 = vmatprep.mubr.msk.bf16.mxu0 %vm2651_vm2, %v10224_v49  ;;  %v10287_v48 = vld [vmem:[%s10581_s20 + $0x728] sm:$0xff]   ;;  %v10288_v49 = vld [vmem:[%s10581_s20 + $0x1b0] sm:$0xff]  }
  0x68   : > { %9858 = vmatprep.mubr.msk.bf16.mxu1 %vm2651_vm2, %v10225_v50  ;;  %v10289_v50 = vld [vmem:[%s10581_s20 + $0x730] sm:$0xff]  }
  0x6e   : > { %9507 = vmatmul.mubr.msk.bf16.gmra.mrb[44].mxu0 %vm2651_vm2, %v10226_v51 }
  0x6f   : > { %9859 = vmatmul.mubr.msk.bf16.gmra.mrb[44].mxu1 %vm2651_vm2, %v10227_v52  ;;  %9510 = vmatprep.mubr.msk.bf16.mxu0 %vm2651_vm2, %v10228_v53 }
  0x70   : > { %9862 = vmatprep.mubr.msk.bf16.mxu1 %vm2651_vm2, %v10229_v54  ;;  %v10290_v54 = vld [vmem:[%s10581_s20 + $0x1b8] sm:$0xff]  }
  0x76   : > { %9511 = vmatmul.mubr.msk.bf16.gmra.mrb[48].mxu0 %vm2651_vm2, %v10230_v55 }
  0x77   : > { %9863 = vmatmul.mubr.msk.bf16.gmra.mrb[48].mxu1 %vm2651_vm2, %v10231_v56  ;;  %9514 = vmatprep.mubr.msk.bf16.mxu0 %vm2651_vm2, %v10232_v57  ;;  %v10291_v57 = vld [vmem:[%s10581_s20 + $0x738] sm:$0xff]  }
  0x78   : > { %9866 = vmatprep.mubr.msk.bf16.mxu1 %vm2651_vm2, %v10233_v58  ;;  %v10292_v58 = vld [vmem:[%s10581_s20 + $0x1c0] sm:$0xff]  }
  0x7e   : > { %9515 = vmatmul.mubr.msk.bf16.gmra.mrb[52].mxu0 %vm2651_vm2, %v10234_v59 }
  0x7f   : > { %9867 = vmatmul.mubr.msk.bf16.gmra.mrb[52].mxu1 %vm2651_vm2, %v10235_v60  ;;  %9518 = vmatprep.mubr.msk.bf16.mxu0 %vm2651_vm2, %v10236_v61  ;;  %v10293_v61 = vld [vmem:[%s10581_s20 + $0x740] sm:$0xff]  }
  0x80   : > { %9870 = vmatprep.mubr.msk.bf16.mxu1 %vm2651_vm2, %v10237_v62 }
  0x86   : > { %9519 = vmatmul.mubr.msk.bf16.gmra.mrb[56].mxu0 %vm2651_vm2, %v10238_v63 }
  0x87   : > { %9871 = vmatmul.mubr.msk.bf16.gmra.mrb[56].mxu1 %vm2651_vm2, %v10239_v0  ;;  %9522 = vmatprep.mubr.msk.bf16.mxu0 %vm2651_vm2, %v10240_v1 }
  0x88   : > { %9874 = vmatprep.mubr.msk.bf16.mxu1 %vm2651_vm2, %v10241_v2  ;;  %v10294_v2 = vld [vmem:[%s10581_s20 + $0x1c8] sm:$0xff]  }
  0x8e   : > { %9523 = vmatmul.mubr.msk.bf16.gmra.mrb[60].mxu0 %vm2651_vm2, %v10242_v3 }
  0x8f   : > { %9875 = vmatmul.mubr.msk.bf16.gmra.mrb[60].mxu1 %vm2651_vm2, %v10243_v4  ;;  %9526 = vmatprep.mubr.msk.bf16.mxu0 %vm2651_vm2, %v10244_v5  ;;  %v10295_v5 = vld [vmem:[%s10581_s20 + $0x748] sm:$0xff]  }
  0x90   : > { %9878 = vmatprep.mubr.msk.bf16.mxu1 %vm2651_vm2, %v10245_v6  ;;  %v10296_v6 = vld [vmem:[%s10581_s20 + $0x1d0] sm:$0xff]  }
  0x96   : > { %9527 = vmatmul.mubr.msk.bf16.gmra.mrb[64].mxu0 %vm2651_vm2, %v10246_v7 }
  0x97   : > { %9879 = vmatmul.mubr.msk.bf16.gmra.mrb[64].mxu1 %vm2651_vm2, %v10247_v8  ;;  %9530 = vmatprep.mubr.msk.bf16.mxu0 %vm2651_vm2, %v10248_v9  ;;  %v10297_v9 = vld [vmem:[%s10581_s20 + $0x750] sm:$0xff]  }
  0x98   : > { %9882 = vmatprep.mubr.msk.bf16.mxu1 %vm2651_vm2, %v10249_v10 }
  0x9e   : > { %9531 = vmatmul.mubr.msk.bf16.gmra.mrb[68].mxu0 %vm2651_vm2, %v10250_v11 }
  0x9f   : > { %9883 = vmatmul.mubr.msk.bf16.gmra.mrb[68].mxu1 %vm2651_vm2, %v10251_v12  ;;  %9534 = vmatprep.mubr.msk.bf16.mxu0 %vm2651_vm2, %v10252_v13 }
  0xa0   : > { %9886 = vmatprep.mubr.msk.bf16.mxu1 %vm2651_vm2, %v10253_v14  ;;  %v10298_v14 = vld [vmem:[%s10581_s20 + $0x1d8] sm:$0xff]  }
  0xa6   : > { %9535 = vmatmul.mubr.msk.bf16.gmra.mrb[72].mxu0 %vm2651_vm2, %v10254_v15 }
  0xa7   : > { %9887 = vmatmul.mubr.msk.bf16.gmra.mrb[72].mxu1 %vm2651_vm2, %v10255_v16  ;;  %9538 = vmatprep.mubr.msk.bf16.mxu0 %vm2651_vm2, %v10256_v17  ;;  %v10299_v17 = vld [vmem:[%s10581_s20 + $0x758] sm:$0xff]  }
  0xa8   : > { %9890 = vmatprep.mubr.msk.bf16.mxu1 %vm2651_vm2, %v10257_v18  ;;  %v10300_v18 = vld [vmem:[%s10581_s20 + $0x1e0] sm:$0xff]  }
  0xae   : > { %9539 = vmatmul.mubr.msk.bf16.gmra.mrb[76].mxu0 %vm2651_vm2, %v10258_v19 }
  0xaf   : > { %9891 = vmatmul.mubr.msk.bf16.gmra.mrb[76].mxu1 %vm2651_vm2, %v10259_v20  ;;  %9542 = vmatprep.mubr.msk.bf16.mxu0 %vm2651_vm2, %v10260_v21  ;;  %v10301_v21 = vld [vmem:[%s10581_s20 + $0x760] sm:$0xff]  }
  0xb0   : > { %9894 = vmatprep.mubr.msk.bf16.mxu1 %vm2651_vm2, %v10261_v22 }
  0xb6   : > { %9543 = vmatmul.mubr.msk.bf16.gmra.mrb[80].mxu0 %vm2651_vm2, %v10262_v23 }
  0xb7   : > { %9895 = vmatmul.mubr.msk.bf16.gmra.mrb[80].mxu1 %vm2651_vm2, %v10263_v24  ;;  %9546 = vmatprep.mubr.msk.bf16.mxu0 %vm2651_vm2, %v10264_v25 }
  0xb8   : > { %9898 = vmatprep.mubr.msk.bf16.mxu1 %vm2651_vm2, %v10265_v26  ;;  %v10302_v26 = vld [vmem:[%s10581_s20 + $0x1e8] sm:$0xff]  }
  0xbe   : > { %9547 = vmatmul.mubr.msk.bf16.gmra.mrb[84].mxu0 %vm2651_vm2, %v10266_v27 }
  0xbf   : > { %9899 = vmatmul.mubr.msk.bf16.gmra.mrb[84].mxu1 %vm2651_vm2, %v10267_v28  ;;  %9550 = vmatprep.mubr.msk.bf16.mxu0 %vm2651_vm2, %v10268_v29  ;;  %v10303_v29 = vld [vmem:[%s10581_s20 + $0x768] sm:$0xff]  }
  0xc0   : > { %9902 = vmatprep.mubr.msk.bf16.mxu1 %vm2651_vm2, %v10269_v30  ;;  %v10304_v30 = vld [vmem:[%s10581_s20 + $0x1f0] sm:$0xff]  }
  0xc6   : > { %9551 = vmatmul.mubr.msk.bf16.gmra.mrb[88].mxu0 %vm2651_vm2, %v10270_v31 }
  0xc7   : > { %9903 = vmatmul.mubr.msk.bf16.gmra.mrb[88].mxu1 %vm2651_vm2, %v10271_v32  ;;  %9554 = vmatprep.mubr.msk.bf16.mxu0 %vm2651_vm2, %v10272_v33  ;;  %v10305_v33 = vld [vmem:[%s10581_s20 + $0x770] sm:$0xff]  }
  0xc8   : > { %9906 = vmatprep.mubr.msk.bf16.mxu1 %vm2651_vm2, %v10273_v34 }
  0xce   : > { %9555 = vmatmul.mubr.msk.bf16.gmra.mrb[92].mxu0 %vm2651_vm2, %v10274_v35 }
  0xcf   : > { %9907 = vmatmul.mubr.msk.bf16.gmra.mrb[92].mxu1 %vm2651_vm2, %v10275_v36  ;;  %9558 = vmatprep.mubr.msk.bf16.mxu0 %vm2651_vm2, %v10276_v37 }
  0xd0   : > { %9910 = vmatprep.mubr.msk.bf16.mxu1 %vm2651_vm2, %v10277_v38  ;;  %v10306_v38 = vld [vmem:[%s10581_s20 + $0x1f8] sm:$0xff]  }
  0xd6   : > { %9559 = vmatmul.mubr.msk.bf16.gmra.mrb[96].mxu0 %vm2651_vm2, %v10278_v39 }
  0xd7   : > { %9911 = vmatmul.mubr.msk.bf16.gmra.mrb[96].mxu1 %vm2651_vm2, %v10279_v40  ;;  %9562 = vmatprep.mubr.msk.bf16.mxu0 %vm2651_vm2, %v10280_v41  ;;  %v10307_v41 = vld [vmem:[%s10581_s20 + $0x778] sm:$0xff]  }
  0xd8   : > { %9914 = vmatprep.mubr.msk.bf16.mxu1 %vm2651_vm2, %v10281_v42  ;;  %v10308_v42 = vld [vmem:[%s10581_s20 + $0x200] sm:$0xff]  }
  0xde   : > { %9563 = vmatmul.mubr.msk.bf16.gmra.mrb[100].mxu0 %vm2651_vm2, %v10282_v43 }
  0xdf   : > { %9915 = vmatmul.mubr.msk.bf16.gmra.mrb[100].mxu1 %vm2651_vm2, %v10283_v44  ;;  %9566 = vmatprep.mubr.msk.bf16.mxu0 %vm2651_vm2, %v10284_v45  ;;  %v10309_v45 = vld [vmem:[%s10581_s20 + $0x780] sm:$0xff]  }
  0xe0   : > { %9918 = vmatprep.mubr.msk.bf16.mxu1 %vm2651_vm2, %v10285_v46 }
  0xe6   : > { %9567 = vmatmul.mubr.msk.bf16.gmra.mrb[104].mxu0 %vm2651_vm2, %v10286_v47 }
  0xe7   : > { %9919 = vmatmul.mubr.msk.bf16.gmra.mrb[104].mxu1 %vm2651_vm2, %v10287_v48  ;;  %9570 = vmatprep.mubr.msk.bf16.mxu0 %vm2651_vm2, %v10288_v49  ;;  %v10310_v49 = vld [vmem:[%s10581_s20 + $0x208] sm:$0xff]  }
  0xe8   : > { %9922 = vmatprep.mubr.msk.bf16.mxu1 %vm2651_vm2, %v10289_v50 }
  0xe9   : > { %v10803_v51 = vpop.f32.mrb[0].mxu0 }
  0xea   : > { %v10805_v52 = vpop.f32.mrb[0].mxu1  ;;  %v10807_v53 = vpop.f32.mrb[1].mxu0  ;;  %v10924_v47 = vsel %vm6564_vm3, %v10803_v51, -inf }
  0xeb   : > { %v10810_v55 = vpop.f32.mrb[1].mxu1  ;;  %v10812_v56 = vpop.f32.mrb[2].mxu0  ;;  %v10928_v48 = vsel %vm6564_vm3, %v10805_v52, -inf  ;;  %v10934_v50 = vsel %vm6564_vm3, %v10807_v53, -inf }
  0xec   : > { %v10816_v59 = vpop.f32.mrb[2].mxu1  ;;  %v10818_v60 = vpop.f32.mrb[3].mxu0 }
  0xed   : > { %v10821_v62 = vpop.f32.mrb[3].mxu1 }
  0xee   : > { %9571 = vmatmul.mubr.msk.bf16.gmra.mrb[108].mxu0 %vm2651_vm2, %v10290_v54 }
  0xef   : > { %9923 = vmatmul.mubr.msk.bf16.gmra.mrb[108].mxu1 %vm2651_vm2, %v10291_v57  ;;  %9574 = vmatprep.mubr.msk.bf16.mxu0 %vm2651_vm2, %v10292_v58  ;;  %v10311_v57 = vld [vmem:[%s10581_s20 + $0x788] sm:$0xff]   ;;  %v10312_v58 = vld [vmem:[%s10581_s20 + $0x210] sm:$0xff]  }
  0xf0   : > { %9926 = vmatprep.mubr.msk.bf16.mxu1 %vm2651_vm2, %v10293_v61  ;;  %v10940_v61 = vsel %vm6564_vm3, %v10810_v55, -inf }
  0xf1   : > { %v10827_v63 = vpop.f32.mrb[4].mxu0 }
  0xf2   : > { %v10829_v0 = vpop.f32.mrb[4].mxu1  ;;  %v10831_v1 = vpop.f32.mrb[5].mxu0 }
  0xf3   : > { %v10834_v3 = vpop.f32.mrb[5].mxu1  ;;  %v10836_v4 = vpop.f32.mrb[6].mxu0 }
  0xf4   : > { %v10840_v7 = vpop.f32.mrb[6].mxu1  ;;  %v10842_v8 = vpop.f32.mrb[7].mxu0 }
  0xf5   : > { %v10845_v10 = vpop.f32.mrb[7].mxu1 }
  0xf6   : > { %9575 = vmatmul.mubr.msk.bf16.gmra.mrb[112].mxu0 %vm2651_vm2, %v10294_v2 }
  0xf7   : > { %9927 = vmatmul.mubr.msk.bf16.gmra.mrb[112].mxu1 %vm2651_vm2, %v10295_v5  ;;  %9578 = vmatprep.mubr.msk.bf16.mxu0 %vm2651_vm2, %v10296_v6  ;;  %v10313_v5 = vld [vmem:[%s10581_s20 + $0x790] sm:$0xff]   ;;  %v10950_v6 = vsel %vm6564_vm3, %v10812_v56, -inf }
  0xf8   : > { %9930 = vmatprep.mubr.msk.bf16.mxu1 %vm2651_vm2, %v10297_v9 }
  0xf9   : > { %v10851_v11 = vpop.f32.mrb[8].mxu0 }
  0xfa   : > { %v10853_v12 = vpop.f32.mrb[8].mxu1  ;;  %v10855_v13 = vpop.f32.mrb[9].mxu0 }
  0xfb   : > { %v10858_v15 = vpop.f32.mrb[9].mxu1  ;;  %v10860_v16 = vpop.f32.mrb[10].mxu0 }
  0xfc   : > { %v10864_v19 = vpop.f32.mrb[10].mxu1  ;;  %v10866_v20 = vpop.f32.mrb[11].mxu0 }
  0xfd   : > { %v10869_v22 = vpop.f32.mrb[11].mxu1 }
  0xfe   : > { %9579 = vmatmul.mubr.msk.bf16.gmra.mrb[116].mxu0 %vm2651_vm2, %v10298_v14 }
  0xff   : > { %9931 = vmatmul.mubr.msk.bf16.gmra.mrb[116].mxu1 %vm2651_vm2, %v10299_v17  ;;  %9582 = vmatprep.mubr.msk.bf16.mxu0 %vm2651_vm2, %v10300_v18  ;;  %v10961_v17 = vsel %vm6564_vm3, %v10818_v60, -inf }
 0x100   : > { %9934 = vmatprep.mubr.msk.bf16.mxu1 %vm2651_vm2, %v10301_v21 }
 0x101   : > { %v10875_v23 = vpop.f32.mrb[12].mxu0 }
 0x102   : > { %v10877_v24 = vpop.f32.mrb[12].mxu1  ;;  %v10879_v25 = vpop.f32.mrb[13].mxu0 }
 0x103   : > { %v10882_v27 = vpop.f32.mrb[13].mxu1  ;;  %v10884_v28 = vpop.f32.mrb[14].mxu0 }
 0x104   : > { %v10888_v31 = vpop.f32.mrb[14].mxu1  ;;  %v10890_v32 = vpop.f32.mrb[15].mxu0 }
 0x105   : > { %v10893_v34 = vpop.f32.mrb[15].mxu1 }
 0x106   : > { %9583 = vmatmul.mubr.msk.bf16.gmra.mrb[120].mxu0 %vm2651_vm2, %v10302_v26 }
 0x107   : > { %9935 = vmatmul.mubr.msk.bf16.gmra.mrb[120].mxu1 %vm2651_vm2, %v10303_v29  ;;  %9586 = vmatprep.mubr.msk.bf16.mxu0 %vm2651_vm2, %v10304_v30  ;;  %v10972_v29 = vsel %vm6564_vm3, %v10816_v59, -inf  ;;  %v10976_v30 = vsel %vm6564_vm3, %v10821_v62, -inf  ;;  %v10991_v59 = vsel %vm6564_vm3, %v10829_v0, -inf  ;;  %v11010_v0 = vsel %vm6564_vm3, %v10840_v7, -inf }
 0x108   : > { %9938 = vmatprep.mubr.msk.bf16.mxu1 %vm2651_vm2, %v10305_v33  ;;  %v11028_v7 = vsel %vm6564_vm3, %v10853_v12, -inf }
 0x109   : > { %v10899_v35 = vpop.f32.mrb[16].mxu0 }
 0x10a   : > { %v10901_v36 = vpop.f32.mrb[16].mxu1  ;;  %v10903_v37 = vpop.f32.mrb[17].mxu0 }
 0x10b   : > { %v10906_v39 = vpop.f32.mrb[17].mxu1  ;;  %v10908_v40 = vpop.f32.mrb[18].mxu0 }
 0x10c   : > { %v10912_v43 = vpop.f32.mrb[18].mxu1  ;;  %v10914_v44 = vpop.f32.mrb[19].mxu0 }
 0x10d   : > { %v10917_v46 = vpop.f32.mrb[19].mxu1 }
 0x10e   : > { %9587 = vmatmul.mubr.msk.bf16.gmra.mrb[124].mxu0 %vm2651_vm2, %v10306_v38 }
 0x10f   : > { %9939 = vmatmul.mubr.msk.bf16.gmra.mrb[124].mxu1 %vm2651_vm2, %v10307_v41  ;;  %9590 = vmatprep.mubr.msk.bf16.mxu0 %vm2651_vm2, %v10308_v42  ;;  %v10987_v41 = vsel %vm6564_vm3, %v10827_v63, -inf  ;;  %v10998_v42 = vsel %vm6564_vm3, %v10831_v1, -inf  ;;  %v11006_v63 = vsel %vm6564_vm3, %v10836_v4, -inf  ;;  %v11016_v1 = vsel %vm6564_vm3, %v10842_v8, -inf }
 0x110   : > { %9942 = vmatprep.mubr.msk.bf16.mxu1 %vm2651_vm2, %v10309_v45  ;;  %15326 = vst [vmem:[#allocation2_spill] sm:$0xff] %v10998_v42  ;;  %v11002_v45 = vsel %vm6564_vm3, %v10834_v3, -inf  ;;  %15328 = vst [vmem:[#allocation4_spill] sm:$0xff] %v11016_v1  ;;  %v11020_v3 = vsel %vm6564_vm3, %v10845_v10, -inf  ;;  %v11024_v4 = vsel %vm6564_vm3, %v10851_v11, -inf  ;;  %v11040_v10 = vsel %vm6564_vm3, %v10858_v15, -inf }
 0x111   : > { %v9484_v54 = vpop.f32.mrb[20].mxu0  ;;  %15327 = vst [vmem:[#allocation3_spill] sm:$0xff] %v11002_v45  ;;  %15329 = vst [vmem:[#allocation5_spill] sm:$0xff] %v11020_v3 }
 0x112   : > { %v10943_v51 = vsel %vm6564_vm3, %v9484_v54, -inf  ;;  %v9836_v2 = vpop.f32.mrb[20].mxu1  ;;  %v10945_v52 = vpop.f32.mrb[21].mxu0  ;;  %v11034_v54 = vsel %vm6564_vm3, %v10855_v13, -inf  ;;  %15331 = vst [vmem:[#allocation7_spill] sm:$0xff] %v11040_v10 }
 0x113   : > { %v10955_v9 = vsel %vm6564_vm3, %v9836_v2, -inf  ;;  %v10957_v14 = vpop.f32.mrb[21].mxu1  ;;  %v9485_v55 = vpop.f32.mrb[22].mxu0  ;;  %15330 = vst [vmem:[#allocation6_spill] sm:$0xff] %v11034_v54 }
 0x114   : > { %v10966_v21 = vsel %vm6564_vm3, %v9485_v55, -inf  ;;  %v9837_v56 = vpop.f32.mrb[22].mxu1  ;;  %v10968_v26 = vpop.f32.mrb[23].mxu0  ;;  %v10317_v55 = vld [vmem:[%s10581_s20 + $0x7a0] sm:$0xff]  }
 0x115   : > { %v10981_v33 = vsel %vm6564_vm3, %v9837_v56, -inf  ;;  %v10983_v38 = vpop.f32.mrb[23].mxu1 }
 0x116   : > { %9591 = vmatmul.mubr.msk.bf16.gmra.mrb[128].mxu0 %vm2651_vm2, %v10310_v49  ;;  %v10314_v49 = vld [vmem:[%s10581_s20 + $0x218] sm:$0xff]  }
 0x117   : > { %9943 = vmatmul.mubr.msk.bf16.gmra.mrb[128].mxu1 %vm2651_vm2, %v10311_v57  ;;  %9594 = vmatprep.mubr.msk.bf16.mxu0 %vm2651_vm2, %v10312_v58  ;;  %v10315_v57 = vld [vmem:[%s10581_s20 + $0x798] sm:$0xff]   ;;  %v10316_v58 = vld [vmem:[%s10581_s20 + $0x220] sm:$0xff]  }
 0x118   : > { %9946 = vmatprep.mubr.msk.bf16.mxu1 %vm2651_vm2, %v10313_v5 }
 0x119   : > { %v9488_v8 = vpop.f32.mrb[24].mxu0 }
 0x11a   : > { %v11043_v11 = vsel %vm6564_vm3, %v9488_v8, -inf  ;;  %v9840_v2 = vpop.f32.mrb[24].mxu1  ;;  %v3845_v12 = vpop.f32.mrb[25].mxu0 }
 0x11b   : > { %15332 = vst [vmem:[#allocation8_spill] sm:$0xff] %v11043_v11  ;;  %v11049_v56 = vsel %vm6564_vm3, %v9840_v2, -inf  ;;  %v11052_v13 = vsel %vm6564_vm3, %v3845_v12, -inf  ;;  %v5253_v62 = vpop.f32.mrb[25].mxu1  ;;  %v9489_v60 = vpop.f32.mrb[26].mxu0 }
 0x11c   : > { %15333 = vst [vmem:[#allocation9_spill] sm:$0xff] %v11049_v56  ;;  %v11059_v18 = vsel %vm6564_vm3, %v5253_v62, -inf  ;;  %v11062_v53 = vsel %vm6564_vm3, %v9489_v60, -inf  ;;  %v9841_v5 = vpop.f32.mrb[26].mxu1  ;;  %v3848_v2 = vpop.f32.mrb[27].mxu0  ;;  %v11076_v62 = vsel %vm6564_vm3, %v10860_v16, -inf }
 0x11d   : > { %15334 = vst [vmem:[#allocation10_spill] sm:$0xff] %v11062_v53  ;;  %v11069_v42 = vsel %vm6564_vm3, %v9841_v5, -inf  ;;  %v11072_v15 = vsel %vm6564_vm3, %v3848_v2, -inf  ;;  %v5256_v8 = vpop.f32.mrb[27].mxu1  ;;  %v11088_v5 = vsel %vm6564_vm3, %v10864_v19, -inf  ;;  %v11092_v16 = vsel %vm6564_vm3, %v10866_v20, -inf }
 0x11e   : > { %15335 = vst [vmem:[#allocation11_spill] sm:$0xff] %v11069_v42  ;;  %v11083_v11 = vsel %vm6564_vm3, %v5256_v8, -inf  ;;  %9595 = vmatmul.mubr.msk.bf16.gmra.mrb[132].mxu0 %vm2651_vm2, %v10314_v49  ;;  %15336 = vst [vmem:[#allocation12_spill] sm:$0xff] %v11092_v16  ;;  %v11096_v2 = vsel %vm6564_vm3, %v10869_v22, -inf  ;;  %v11104_v19 = vsel %vm6564_vm3, %v10875_v23, -inf  ;;  %v11108_v20 = vsel %vm6564_vm3, %v10877_v24, -inf }
 0x11f   : > { %15337 = vst [vmem:[#allocation13_spill] sm:$0xff] %v11096_v2  ;;  %9947 = vmatmul.mubr.msk.bf16.gmra.mrb[132].mxu1 %vm2651_vm2, %v10315_v57  ;;  %9598 = vmatprep.mubr.msk.bf16.mxu0 %vm2651_vm2, %v10316_v58  ;;  %v11112_v22 = vsel %vm6564_vm3, %v10879_v25, -inf  ;;  %v11116_v49 = vsel %vm6564_vm3, %v10882_v27, -inf  ;;  %v10318_v57 = vld [vmem:[%s10581_s20 + $0x228] sm:$0xff]   ;;  %v11122_v58 = vsel %vm6564_vm3, %v10884_v28, -inf  ;;  %v10320_v8 = vld [vmem:[%s10581_s20 + $0x230] sm:$0xff]  }
 0x120   : > { %15338 = vst [vmem:[#allocation14_spill] sm:$0xff] %v11112_v22  ;;  %15339 = vst [vmem:[#allocation15_spill] sm:$0xff] %v11116_v49  ;;  %9950 = vmatprep.mubr.msk.bf16.mxu1 %vm2651_vm2, %v10317_v55  ;;  %v10319_v60 = vld [vmem:[%s10581_s20 + $0x7a8] sm:$0xff]   ;;  %v11128_v24 = vsel %vm6564_vm3, %v10888_v31, -inf  ;;  %v10321_v42 = vld [vmem:[%s10581_s20 + $0x7b0] sm:$0xff]  }
 0x121   : > { %v9492_v23 = vpop.f32.mrb[28].mxu0 }
 0x122   : > { %v11131_v25 = vsel %vm6564_vm3, %v9492_v23, -inf  ;;  %v9844_v12 = vpop.f32.mrb[28].mxu1  ;;  %v3861_v27 = vpop.f32.mrb[29].mxu0 }
 0x123   : > { %15340 = vst [vmem:[#allocation16_spill] sm:$0xff] %v11131_v25  ;;  %v11137_v3 = vsel %vm6564_vm3, %v9844_v12, -inf  ;;  %v11140_v28 = vsel %vm6564_vm3, %v3861_v27, -inf  ;;  %v5269_v53 = vpop.f32.mrb[29].mxu1  ;;  %v9493_v1 = vpop.f32.mrb[30].mxu0  ;;  %v10323_v27 = vld [vmem:[%s10581_s20 + $0x7b8] sm:$0xff]  }
 0x124   : > { %15341 = vst [vmem:[#allocation17_spill] sm:$0xff] %v11137_v3  ;;  %v11147_v56 = vsel %vm6564_vm3, %v5269_v53, -inf  ;;  %v11150_v45 = vsel %vm6564_vm3, %v9493_v1, -inf  ;;  %v9845_v55 = vpop.f32.mrb[30].mxu1  ;;  %v3864_v12 = vpop.f32.mrb[31].mxu0  ;;  %v11164_v1 = vsel %vm6564_vm3, %v10890_v32, -inf }
 0x125   : > { %15342 = vst [vmem:[#allocation18_spill] sm:$0xff] %v11150_v45  ;;  %v11157_v31 = vsel %vm6564_vm3, %v9845_v55, -inf  ;;  %v11160_v53 = vsel %vm6564_vm3, %v3864_v12, -inf  ;;  %v5272_v23 = vpop.f32.mrb[31].mxu1  ;;  %15344 = vst [vmem:[#allocation20_spill] sm:$0xff] %v11164_v1  ;;  %v10322_v32 = vld [vmem:[%s10581_s20 + $0x238] sm:$0xff]  }
 0x126   : > { %15343 = vst [vmem:[#allocation19_spill] sm:$0xff] %v11157_v31  ;;  %v11171_v25 = vsel %vm6564_vm3, %v5272_v23, -inf  ;;  %9599 = vmatmul.mubr.msk.bf16.gmra.mrb[136].mxu0 %vm2651_vm2, %v10318_v57  ;;  %v11182_v12 = vsel %vm6564_vm3, %v10893_v34, -inf  ;;  %v10324_v23 = vld [vmem:[%s10581_s20 + $0x240] sm:$0xff]   ;;  %v11188_v57 = vsel %vm6564_vm3, %v10899_v35, -inf }
 0x127   : > { %9951 = vmatmul.mubr.msk.bf16.gmra.mrb[136].mxu1 %vm2651_vm2, %v10319_v60  ;;  %9602 = vmatprep.mubr.msk.bf16.mxu0 %vm2651_vm2, %v10320_v8  ;;  %15345 = vst [vmem:[#allocation21_spill] sm:$0xff] %v11182_v12  ;;  %v10325_v8 = vld [vmem:[%s10581_s20 + $0x7c0] sm:$0xff]  }
 0x128   : > { %9954 = vmatprep.mubr.msk.bf16.mxu1 %vm2651_vm2, %v10321_v42 }
 0x129   : > { %v9496_v3 = vpop.f32.mrb[32].mxu0 }
 0x12a   : > { %v11191_v55 = vsel %vm6564_vm3, %v9496_v3, -inf  ;;  %v9848_v60 = vpop.f32.mrb[32].mxu1  ;;  %v3877_v31 = vpop.f32.mrb[33].mxu0 }
 0x12b   : > { %15346 = vst [vmem:[#allocation22_spill] sm:$0xff] %v11191_v55  ;;  %v11197_v2 = vsel %vm6564_vm3, %v9848_v60, -inf  ;;  %v11200_v34 = vsel %vm6564_vm3, %v3877_v31, -inf  ;;  %v5285_v45 = vpop.f32.mrb[33].mxu1  ;;  %v9497_v16 = vpop.f32.mrb[34].mxu0  ;;  %v10327_v31 = vld [vmem:[%s10581_s20 + $0x7c8] sm:$0xff]  }
 0x12c   : > { %15347 = vst [vmem:[#allocation23_spill] sm:$0xff] %v11197_v2  ;;  %v11207_v10 = vsel %vm6564_vm3, %v5285_v45, -inf  ;;  %v11210_v54 = vsel %vm6564_vm3, %v9497_v16, -inf  ;;  %v9849_v42 = vpop.f32.mrb[34].mxu1  ;;  %v3880_v60 = vpop.f32.mrb[35].mxu0  ;;  %v11224_v16 = vsel %vm6564_vm3, %v10901_v36, -inf }
 0x12d   : > { %15348 = vst [vmem:[#allocation24_spill] sm:$0xff] %v11210_v54  ;;  %v11217_v35 = vsel %vm6564_vm3, %v9849_v42, -inf  ;;  %v11220_v3 = vsel %vm6564_vm3, %v3880_v60, -inf  ;;  %v5288_v45 = vpop.f32.mrb[35].mxu1  ;;  %v11236_v42 = vsel %vm6564_vm3, %v10903_v37, -inf  ;;  %v11240_v36 = vsel %vm6564_vm3, %v10906_v39, -inf }
 0x12e   : > { %15349 = vst [vmem:[#allocation25_spill] sm:$0xff] %v11217_v35  ;;  %v11231_v55 = vsel %vm6564_vm3, %v5288_v45, -inf  ;;  %9603 = vmatmul.mubr.msk.bf16.gmra.mrb[140].mxu0 %vm2651_vm2, %v10322_v32  ;;  %15350 = vst [vmem:[#allocation26_spill] sm:$0xff] %v11236_v42  ;;  %v10326_v45 = vld [vmem:[%s10581_s20 + $0x248] sm:$0xff]   ;;  %v11250_v32 = vsel %vm6564_vm3, %v10914_v44, -inf  ;;  %v10328_v2 = vld [vmem:[%s10581_s20 + $0x250] sm:$0xff]  }
 0x12f   : > { %15351 = vst [vmem:[#allocation27_spill] sm:$0xff] %v11240_v36  ;;  %9955 = vmatmul.mubr.msk.bf16.gmra.mrb[140].mxu1 %vm2651_vm2, %v10323_v27  ;;  %9606 = vmatprep.mubr.msk.bf16.mxu0 %vm2651_vm2, %v10324_v23  ;;  %15352 = vst [vmem:[#allocation28_spill] sm:$0xff] %v11250_v32  ;;  %v11256_v39 = vsel %vm6564_vm3, %v10917_v46, -inf  ;;  %v10329_v23 = vld [vmem:[%s10581_s20 + $0x7d0] sm:$0xff]  }
 0x130   : > { %9958 = vmatprep.mubr.msk.bf16.mxu1 %vm2651_vm2, %v10325_v8  ;;  %15353 = vst [vmem:[#allocation29_spill] sm:$0xff] %v11256_v39 }
 0x131   : > { %v9500_v37 = vpop.f32.mrb[36].mxu0 }
 0x132   : > { %v11259_v60 = vsel %vm6564_vm3, %v9500_v37, -inf  ;;  %v9852_v27 = vpop.f32.mrb[36].mxu1  ;;  %v3893_v35 = vpop.f32.mrb[37].mxu0 }
 0x133   : > { %15354 = vst [vmem:[#allocation30_spill] sm:$0xff] %v11259_v60  ;;  %v11265_v12 = vsel %vm6564_vm3, %v9852_v27, -inf  ;;  %v11268_v44 = vsel %vm6564_vm3, %v3893_v35, -inf  ;;  %v5301_v54 = vpop.f32.mrb[37].mxu1  ;;  %v9501_v1 = vpop.f32.mrb[38].mxu0  ;;  %v10331_v35 = vld [vmem:[%s10581_s20 + $0x7d8] sm:$0xff]  }
 0x134   : > { %15355 = vst [vmem:[#allocation31_spill] sm:$0xff] %v11265_v12  ;;  %v11275_v49 = vsel %vm6564_vm3, %v5301_v54, -inf  ;;  %v11278_v22 = vsel %vm6564_vm3, %v9501_v1, -inf  ;;  %v9853_v8 = vpop.f32.mrb[38].mxu1  ;;  %v3896_v27 = vpop.f32.mrb[39].mxu0  ;;  %v11292_v1 = vsel %vm6564_vm3, %v10908_v40, -inf }
 0x135   : > { %15356 = vst [vmem:[#allocation32_spill] sm:$0xff] %v11278_v22  ;;  %v11285_v46 = vsel %vm6564_vm3, %v9853_v8, -inf  ;;  %v11288_v37 = vsel %vm6564_vm3, %v3896_v27, -inf  ;;  %v5304_v54 = vpop.f32.mrb[39].mxu1  ;;  %v11304_v8 = vsel %vm6564_vm3, %v10945_v52, -inf  ;;  %v11308_v40 = vsel %vm6564_vm3, %v10957_v14, -inf }
 0x136   : > { %15357 = vst [vmem:[#allocation33_spill] sm:$0xff] %v11285_v46  ;;  %v11299_v60 = vsel %vm6564_vm3, %v5304_v54, -inf  ;;  %9607 = vmatmul.mubr.msk.bf16.gmra.mrb[144].mxu0 %vm2651_vm2, %v10326_v45  ;;  %15358 = vst [vmem:[#allocation34_spill] sm:$0xff] %v11304_v8  ;;  %v10330_v54 = vld [vmem:[%s10581_s20 + $0x258] sm:$0xff]   ;;  %v11318_v45 = vsel %vm6564_vm3, %v10968_v26, -inf  ;;  %v10332_v12 = vld [vmem:[%s10581_s20 + $0x260] sm:$0xff]  }
 0x137   : > { %15359 = vst [vmem:[#allocation35_spill] sm:$0xff] %v11308_v40  ;;  %9959 = vmatmul.mubr.msk.bf16.gmra.mrb[144].mxu1 %vm2651_vm2, %v10327_v31  ;;  %9610 = vmatprep.mubr.msk.bf16.mxu0 %vm2651_vm2, %v10328_v2  ;;  %15360 = vst [vmem:[#allocation36_spill] sm:$0xff] %v11318_v45  ;;  %v11324_v14 = vsel %vm6564_vm3, %v10983_v38, -inf  ;;  %v10333_v2 = vld [vmem:[%s10581_s20 + $0x7e0] sm:$0xff]   ;;  %v15368_v40 = vmax.f32 %v10928_v48, %v11059_v18  ;;  %v15371_v48 = vmax.f32 %v10950_v6, %v11072_v15 }
 0x138   : > { %9962 = vmatprep.mubr.msk.bf16.mxu1 %vm2651_vm2, %v10329_v23  ;;  %15361 = vst [vmem:[#allocation37_spill] sm:$0xff] %v11324_v14  ;;  %v15374_v15 = vmax.f32 %v10976_v30, %v10981_v33  ;;  %v15375_v30 = vmax.f32 %v10987_v41, %v11140_v28 }
 0x139   : > { %v9504_v52 = vpop.f32.mrb[40].mxu0 }
 0x13a   : > { %v11327_v27 = vsel %vm6564_vm3, %v9504_v52, -inf  ;;  %v9856_v31 = vpop.f32.mrb[40].mxu1  ;;  %v3909_v46 = vpop.f32.mrb[41].mxu0 }
 0x13b   : > { %15362 = vst [vmem:[#allocation38_spill] sm:$0xff] %v11327_v27  ;;  %v11333_v39 = vsel %vm6564_vm3, %v9856_v31, -inf  ;;  %v11336_v26 = vsel %vm6564_vm3, %v3909_v46, -inf  ;;  %v5317_v22 = vpop.f32.mrb[41].mxu1  ;;  %v9505_v32 = vpop.f32.mrb[42].mxu0  ;;  %v10335_v46 = vld [vmem:[%s10581_s20 + $0x7e8] sm:$0xff]  }
 0x13c   : > { %15363 = vst [vmem:[#allocation39_spill] sm:$0xff] %v11333_v39  ;;  %v11343_v36 = vsel %vm6564_vm3, %v5317_v22, -inf  ;;  %v11346_v42 = vsel %vm6564_vm3, %v9505_v32, -inf  ;;  %v9857_v23 = vpop.f32.mrb[42].mxu1  ;;  %v3912_v31 = vpop.f32.mrb[43].mxu0  ;;  %v11360_v32 = vsel %vm6564_vm3, %v10912_v43, -inf }
 0x13d   : > { %15364 = vst [vmem:[#allocation40_spill] sm:$0xff] %v11346_v42  ;;  %v11353_v38 = vsel %vm6564_vm3, %v9857_v23, -inf  ;;  %v11356_v22 = vsel %vm6564_vm3, %v3912_v31, -inf  ;;  %v5320_v52 = vpop.f32.mrb[43].mxu1  ;;  %v10334_v43 = vld [vmem:[%s10581_s20 + $0x268] sm:$0xff]   ;;  %v10337_v42 = vld [vmem:[%s10581_s20 + $0x7f0] sm:$0xff]  }
 0x13e   : > { %15365 = vst [vmem:[#allocation41_spill] sm:$0xff] %v11353_v38  ;;  %v11367_v27 = vsel %vm6564_vm3, %v5320_v52, -inf  ;;  %9611 = vmatmul.mubr.msk.bf16.gmra.mrb[148].mxu0 %vm2651_vm2, %v10330_v54  ;;  %v10336_v38 = vld [vmem:[%s10581_s20 + $0x270] sm:$0xff]   ;;  %v15367_v54 = vmax.f32 %v10924_v47, %v11052_v13 }
 0x13f   : > { %15366 = vst [vmem:[#allocation42_spill] sm:$0xff] %v11367_v27  ;;  %9963 = vmatmul.mubr.msk.bf16.gmra.mrb[148].mxu1 %vm2651_vm2, %v10331_v35  ;;  %9614 = vmatprep.mubr.msk.bf16.mxu0 %vm2651_vm2, %v10332_v12 }
 0x140   : > { %9966 = vmatprep.mubr.msk.bf16.mxu1 %vm2651_vm2, %v10333_v2 }
 0x141   : > { %v9508_v31 = vpop.f32.mrb[44].mxu0 }
 0x142   : > { %v6582_v39 = vsel %vm6564_vm3, %v9508_v31, -inf  ;;  %v9860_v14 = vpop.f32.mrb[44].mxu1  ;;  %v3925_v52 = vpop.f32.mrb[45].mxu0  ;;  %v15369_v31 = vmax.f32 %v10934_v50, %v10943_v51 }
 0x143   : > { %v11383_v45 = vmax.f32 %v15367_v54, %v6582_v39  ;;  %v7198_v35 = vsel %vm6564_vm3, %v9860_v14, -inf  ;;  %v6568_v12 = vsel %vm6564_vm3, %v3925_v52, -inf  ;;  %v5333_v23 = vpop.f32.mrb[45].mxu1  ;;  %v9509_v2 = vpop.f32.mrb[46].mxu0  ;;  %v15370_v52 = vmax.f32 %v10940_v61, %v10955_v9 }
 0x144   : > { %v11390_v8 = vmax.f32 %v15368_v40, %v7198_v35  ;;  %v11395_v27 = vmax.f32 %v15369_v31, %v6568_v12  ;;  %v7184_v47 = vsel %vm6564_vm3, %v5333_v23, -inf  ;;  %v6589_v13 = vsel %vm6564_vm3, %v9509_v2, -inf  ;;  %v9861_v39 = vpop.f32.mrb[46].mxu1  ;;  %v3928_v14 = vpop.f32.mrb[47].mxu0 }
 0x145   : > { %v11402_v54 = vmax.f32 %v15370_v52, %v7184_v47  ;;  %v11407_v50 = vmax.f32 %v15371_v48, %v6589_v13  ;;  %v7205_v51 = vsel %vm6564_vm3, %v9861_v39, -inf  ;;  %v6575_v18 = vsel %vm6564_vm3, %v3928_v14, -inf  ;;  %v5336_v40 = vpop.f32.mrb[47].mxu1  ;;  %v15377_v52 = vld [vmem:[#allocation2_spill] sm:$0xff]  ;;  %v15378_v48 = vld [vmem:[#allocation8_spill] sm:$0xff] }
 0x146   : > { %v15372_v23 = vmax.f32 %v10972_v29, %v11083_v11  ;;  %v15373_v61 = vmax.f32 %v10961_v17, %v10966_v21  ;;  %v7191_v6 = vsel %vm6564_vm3, %v5336_v40, -inf  ;;  %9615 = vmatmul.mubr.msk.bf16.gmra.mrb[152].mxu0 %vm2651_vm2, %v10334_v43  ;;  %v10338_v29 = vld [vmem:[%s10581_s20 + $0x278] sm:$0xff]   ;;  %v10340_v21 = vld [vmem:[%s10581_s20 + $0x280] sm:$0xff]   ;;  %v15376_v39 = vmax.f32 %v10991_v59, %v11147_v56 }
 0x147   : > { %v11426_v12 = vmax.f32 %v15374_v15, %v7191_v6  ;;  %9967 = vmatmul.mubr.msk.bf16.gmra.mrb[152].mxu1 %vm2651_vm2, %v10335_v46  ;;  %9618 = vmatprep.mubr.msk.bf16.mxu0 %vm2651_vm2, %v10336_v38  ;;  %v10339_v17 = vld [vmem:[%s10581_s20 + $0x7f8] sm:$0xff]   ;;  %v10341_v43 = vld [vmem:[%s10581_s20 + $0x800] sm:$0xff]   ;;  %v15383_v59 = vmax.f32 %v11006_v63, %v11160_v53 }
 0x148   : > { %v11414_v35 = vmax.f32 %v15372_v23, %v7205_v51  ;;  %v11419_v9 = vmax.f32 %v15373_v61, %v6575_v18  ;;  %9970 = vmatprep.mubr.msk.bf16.mxu1 %vm2651_vm2, %v10337_v42  ;;  %v15379_v51 = vmax.f32 %v15377_v52, %v15378_v48  ;;  %v15380_v61 = vld [vmem:[#allocation3_spill] sm:$0xff]  ;;  %v15381_v6 = vld [vmem:[#allocation9_spill] sm:$0xff] }
 0x149   : > { %v9512_v11 = vpop.f32.mrb[48].mxu0  ;;  %v15382_v15 = vmax.f32 %v15380_v61, %v15381_v6  ;;  %v15388_v53 = vld [vmem:[#allocation5_spill] sm:$0xff]  ;;  %v15389_v52 = vld [vmem:[#allocation11_spill] sm:$0xff]  ;;  %v15391_v6 = vmax.f32 %v11024_v4, %v11200_v34 }
 0x14a   : > { %v6610_v2 = vsel %vm6564_vm3, %v9512_v11, -inf  ;;  %v9864_v31 = vpop.f32.mrb[48].mxu1  ;;  %v3941_v47 = vpop.f32.mrb[49].mxu0  ;;  %v15390_v48 = vmax.f32 %v15388_v53, %v15389_v52  ;;  %v15396_v53 = vld [vmem:[#allocation7_spill] sm:$0xff]  ;;  %v15397_v52 = vld [vmem:[#allocation17_spill] sm:$0xff] }
 0x14b   : > { %v11439_v33 = vmax.f32 %v15375_v30, %v6610_v2  ;;  %v7226_v46 = vsel %vm6564_vm3, %v9864_v31, -inf  ;;  %v6596_v38 = vsel %vm6564_vm3, %v3941_v47, -inf  ;;  %v5349_v13 = vpop.f32.mrb[49].mxu1  ;;  %v9513_v42 = vpop.f32.mrb[50].mxu0  ;;  %v15384_v30 = vmax.f32 %v11010_v0, %v11171_v25  ;;  %v10342_v0 = vld [vmem:[%s10581_s20 + $0x288] sm:$0xff]  }
 0x14c   : > { %v11446_v14 = vmax.f32 %v15376_v39, %v7226_v46  ;;  %v11451_v18 = vmax.f32 %v15379_v51, %v6596_v38  ;;  %v7212_v41 = vsel %vm6564_vm3, %v5349_v13, -inf  ;;  %v6617_v28 = vsel %vm6564_vm3, %v9513_v42, -inf  ;;  %v9865_v40 = vpop.f32.mrb[50].mxu1  ;;  %v3944_v23 = vpop.f32.mrb[51].mxu0  ;;  %v15385_v38 = vld [vmem:[#allocation4_spill] sm:$0xff]  ;;  %v15386_v13 = vld [vmem:[#allocation10_spill] sm:$0xff] }
 0x14d   : > { %v11458_v11 = vmax.f32 %v15382_v15, %v7212_v41  ;;  %v11463_v56 = vmax.f32 %v15383_v59, %v6617_v28  ;;  %v7233_v2 = vsel %vm6564_vm3, %v9865_v40, -inf  ;;  %v6603_v31 = vsel %vm6564_vm3, %v3944_v23, -inf  ;;  %v5352_v47 = vpop.f32.mrb[51].mxu1  ;;  %v10343_v41 = vld [vmem:[%s10581_s20 + $0x808] sm:$0xff]   ;;  %v10344_v28 = vld [vmem:[%s10581_s20 + $0x290] sm:$0xff]  }
 0x14e   : > { %v11470_v46 = vmax.f32 %v15384_v30, %v7233_v2  ;;  %v15387_v42 = vmax.f32 %v15385_v38, %v15386_v13  ;;  %v7219_v63 = vsel %vm6564_vm3, %v5352_v47, -inf  ;;  %9619 = vmatmul.mubr.msk.bf16.gmra.mrb[156].mxu0 %vm2651_vm2, %v10338_v29  ;;  %v10345_v29 = vld [vmem:[%s10581_s20 + $0x810] sm:$0xff]   ;;  %v15392_v2 = vmax.f32 %v11028_v7, %v11207_v10  ;;  %v15393_v47 = vld [vmem:[#allocation6_spill] sm:$0xff] }
 0x14f   : > { %v11482_v51 = vmax.f32 %v15390_v48, %v7219_v63  ;;  %9971 = vmatmul.mubr.msk.bf16.gmra.mrb[156].mxu1 %vm2651_vm2, %v10339_v17  ;;  %9622 = vmatprep.mubr.msk.bf16.mxu0 %vm2651_vm2, %v10340_v21  ;;  %v15394_v30 = vld [vmem:[#allocation16_spill] sm:$0xff]  ;;  %v15398_v48 = vmax.f32 %v15396_v53, %v15397_v52  ;;  %v15399_v7 = vmax.f32 %v11076_v62, %v11220_v3  ;;  %v15404_v3 = vld [vmem:[#allocation13_spill] sm:$0xff] }
 0x150   : > { %v11475_v39 = vmax.f32 %v15387_v42, %v6603_v31  ;;  %9974 = vmatprep.mubr.msk.bf16.mxu1 %vm2651_vm2, %v10341_v43  ;;  %v15395_v38 = vmax.f32 %v15393_v47, %v15394_v30  ;;  %v15405_v47 = vld [vmem:[#allocation19_spill] sm:$0xff]  ;;  %v15407_v52 = vmax.f32 %v11104_v19, %v11268_v44 }
 0x151   : > { %v9516_v25 = vpop.f32.mrb[52].mxu0  ;;  %v15406_v30 = vmax.f32 %v15404_v3, %v15405_v47  ;;  %v15412_v3 = vld [vmem:[#allocation15_spill] sm:$0xff] }
 0x152   : > { %v6638_v40 = vsel %vm6564_vm3, %v9516_v25, -inf  ;;  %v9868_v23 = vpop.f32.mrb[52].mxu1  ;;  %v3957_v61 = vpop.f32.mrb[53].mxu0  ;;  %v15413_v47 = vld [vmem:[#allocation23_spill] sm:$0xff] }
 0x153   : > { %v11495_v15 = vmax.f32 %v15391_v6, %v6638_v40  ;;  %v7254_v17 = vsel %vm6564_vm3, %v9868_v23, -inf  ;;  %v6624_v21 = vsel %vm6564_vm3, %v3957_v61, -inf  ;;  %v5365_v59 = vpop.f32.mrb[53].mxu1  ;;  %v9517_v43 = vpop.f32.mrb[54].mxu0  ;;  %v15400_v6 = vmax.f32 %v11088_v5, %v11231_v55  ;;  %v10346_v5 = vld [vmem:[%s10581_s20 + $0x298] sm:$0xff]  }
 0x154   : > { %v11502_v31 = vmax.f32 %v15392_v2, %v7254_v17  ;;  %v11507_v13 = vmax.f32 %v15395_v38, %v6624_v21  ;;  %v7240_v4 = vsel %vm6564_vm3, %v5365_v59, -inf  ;;  %v6645_v34 = vsel %vm6564_vm3, %v9517_v43, -inf  ;;  %v9869_v42 = vpop.f32.mrb[54].mxu1  ;;  %v3960_v63 = vpop.f32.mrb[55].mxu0  ;;  %v15401_v21 = vld [vmem:[#allocation12_spill] sm:$0xff]  ;;  %v15402_v59 = vld [vmem:[#allocation18_spill] sm:$0xff] }
 0x155   : > { %v11514_v25 = vmax.f32 %v15398_v48, %v7240_v4  ;;  %v11519_v10 = vmax.f32 %v15399_v7, %v6645_v34  ;;  %v7261_v40 = vsel %vm6564_vm3, %v9869_v42, -inf  ;;  %v6631_v23 = vsel %vm6564_vm3, %v3960_v63, -inf  ;;  %v5368_v61 = vpop.f32.mrb[55].mxu1  ;;  %v10347_v4 = vld [vmem:[%s10581_s20 + $0x818] sm:$0xff]   ;;  %v10348_v34 = vld [vmem:[%s10581_s20 + $0x2a0] sm:$0xff]  }
 0x156   : > { %v11526_v17 = vmax.f32 %v15400_v6, %v7261_v40  ;;  %v15403_v43 = vmax.f32 %v15401_v21, %v15402_v59  ;;  %v7247_v62 = vsel %vm6564_vm3, %v5368_v61, -inf  ;;  %9623 = vmatmul.mubr.msk.bf16.gmra.mrb[160].mxu0 %vm2651_vm2, %v10342_v0  ;;  %v10349_v0 = vld [vmem:[%s10581_s20 + $0x820] sm:$0xff]   ;;  %v15408_v40 = vmax.f32 %v11108_v20, %v11275_v49 }
 0x157   : > { %v11538_v38 = vmax.f32 %v15406_v30, %v7247_v62  ;;  %9975 = vmatmul.mubr.msk.bf16.gmra.mrb[160].mxu1 %vm2651_vm2, %v10343_v41  ;;  %9626 = vmatprep.mubr.msk.bf16.mxu0 %vm2651_vm2, %v10344_v28  ;;  %v15409_v61 = vld [vmem:[#allocation14_spill] sm:$0xff]  ;;  %v15414_v30 = vmax.f32 %v15412_v3, %v15413_v47  ;;  %v15415_v20 = vmax.f32 %v11122_v58, %v11288_v37  ;;  %v15420_v37 = vld [vmem:[#allocation21_spill] sm:$0xff] }
 0x158   : > { %v11531_v2 = vmax.f32 %v15403_v43, %v6631_v23  ;;  %9978 = vmatprep.mubr.msk.bf16.mxu1 %vm2651_vm2, %v10345_v29  ;;  %v15410_v6 = vld [vmem:[#allocation22_spill] sm:$0xff]  ;;  %v15423_v47 = vmax.f32 %v11188_v57, %v11336_v26 }
 0x159   : > { %v9520_v55 = vpop.f32.mrb[56].mxu0  ;;  %v15411_v21 = vmax.f32 %v15409_v61, %v15410_v6  ;;  %v15421_v61 = vld [vmem:[#allocation25_spill] sm:$0xff] }
 0x15a   : > { %v6666_v42 = vsel %vm6564_vm3, %v9520_v55, -inf  ;;  %v9872_v63 = vpop.f32.mrb[56].mxu1  ;;  %v3973_v53 = vpop.f32.mrb[57].mxu0  ;;  %v15422_v6 = vmax.f32 %v15420_v37, %v15421_v61  ;;  %v15428_v37 = vld [vmem:[#allocation27_spill] sm:$0xff] }
 0x15b   : > { %v11551_v48 = vmax.f32 %v15407_v52, %v6666_v42  ;;  %v7282_v41 = vsel %vm6564_vm3, %v9872_v63, -inf  ;;  %v6652_v28 = vsel %vm6564_vm3, %v3973_v53, -inf  ;;  %v5381_v7 = vpop.f32.mrb[57].mxu1  ;;  %v9521_v29 = vpop.f32.mrb[58].mxu0  ;;  %v15416_v52 = vmax.f32 %v11128_v24, %v11299_v60  ;;  %v10350_v24 = vld [vmem:[%s10581_s20 + $0x2a8] sm:$0xff]  }
 0x15c   : > { %v11558_v23 = vmax.f32 %v15408_v40, %v7282_v41  ;;  %v11563_v59 = vmax.f32 %v15411_v21, %v6652_v28  ;;  %v7268_v19 = vsel %vm6564_vm3, %v5381_v7, -inf  ;;  %v6673_v44 = vsel %vm6564_vm3, %v9521_v29, -inf  ;;  %v9873_v43 = vpop.f32.mrb[58].mxu1  ;;  %v3976_v62 = vpop.f32.mrb[59].mxu0  ;;  %v15417_v28 = vld [vmem:[#allocation20_spill] sm:$0xff]  ;;  %v15429_v61 = vld [vmem:[#allocation31_spill] sm:$0xff] }
 0x15d   : > { %v11570_v55 = vmax.f32 %v15414_v30, %v7268_v19  ;;  %v11575_v49 = vmax.f32 %v15415_v20, %v6673_v44  ;;  %v7289_v42 = vsel %vm6564_vm3, %v9873_v43, -inf  ;;  %v6659_v63 = vsel %vm6564_vm3, %v3976_v62, -inf  ;;  %v5384_v53 = vpop.f32.mrb[59].mxu1  ;;  %v15418_v7 = vld [vmem:[#allocation24_spill] sm:$0xff]  ;;  %v10351_v19 = vld [vmem:[%s10581_s20 + $0x828] sm:$0xff]  }
 0x15e   : > { %v11582_v41 = vmax.f32 %v15416_v52, %v7289_v42  ;;  %v15419_v29 = vmax.f32 %v15417_v28, %v15418_v7  ;;  %v7275_v58 = vsel %vm6564_vm3, %v5384_v53, -inf  ;;  %9627 = vmatmul.mubr.msk.bf16.gmra.mrb[164].mxu0 %vm2651_vm2, %v10346_v5  ;;  %v10352_v44 = vld [vmem:[%s10581_s20 + $0x2b0] sm:$0xff]   ;;  %v15424_v42 = vmax.f32 %v11224_v16, %v11343_v36  ;;  %v15425_v53 = vld [vmem:[#allocation26_spill] sm:$0xff] }
 0x15f   : > { %v11594_v21 = vmax.f32 %v15422_v6, %v7275_v58  ;;  %9979 = vmatmul.mubr.msk.bf16.gmra.mrb[164].mxu1 %vm2651_vm2, %v10347_v4  ;;  %9630 = vmatprep.mubr.msk.bf16.mxu0 %vm2651_vm2, %v10348_v34  ;;  %v10353_v5 = vld [vmem:[%s10581_s20 + $0x830] sm:$0xff]   ;;  %v15426_v52 = vld [vmem:[#allocation30_spill] sm:$0xff]  ;;  %v15430_v6 = vmax.f32 %v15428_v37, %v15429_v61  ;;  %v15431_v16 = vmax.f32 %v11292_v1, %v11356_v22  ;;  %v15437_v22 = vld [vmem:[#allocation29_spill] sm:$0xff] }
 0x160   : > { %v11587_v40 = vmax.f32 %v15419_v29, %v6659_v63  ;;  %9982 = vmatprep.mubr.msk.bf16.mxu1 %vm2651_vm2, %v10349_v0  ;;  %v15427_v28 = vmax.f32 %v15425_v53, %v15426_v52  ;;  %v15438_v52 = vld [vmem:[#allocation33_spill] sm:$0xff] }
 0x161   : > { %v9524_v60 = vpop.f32.mrb[60].mxu0 }
 0x162   : > { %v6694_v43 = vsel %vm6564_vm3, %v9524_v60, -inf  ;;  %v9876_v62 = vpop.f32.mrb[60].mxu1  ;;  %v3989_v3 = vpop.f32.mrb[61].mxu0 }
 0x163   : > { %v11607_v30 = vmax.f32 %v15423_v47, %v6694_v43  ;;  %v7310_v4 = vsel %vm6564_vm3, %v9876_v62, -inf  ;;  %v6680_v34 = vsel %vm6564_vm3, %v3989_v3, -inf  ;;  %v5397_v20 = vpop.f32.mrb[61].mxu1  ;;  %v9525_v0 = vpop.f32.mrb[62].mxu0  ;;  %v15432_v47 = vld [vmem:[#allocation42_spill] sm:$0xff] }
 0x164   : > { %v11614_v63 = vmax.f32 %v15424_v42, %v7310_v4  ;;  %v11619_v7 = vmax.f32 %v15427_v28, %v6680_v34  ;;  %v7296_v57 = vsel %vm6564_vm3, %v5397_v20, -inf  ;;  %v6701_v26 = vsel %vm6564_vm3, %v9525_v0, -inf  ;;  %v9877_v29 = vpop.f32.mrb[62].mxu1  ;;  %v3992_v58 = vpop.f32.mrb[63].mxu0  ;;  %v15434_v20 = vld [vmem:[#allocation28_spill] sm:$0xff] }
 0x165   : > { %v11626_v60 = vmax.f32 %v15430_v6, %v7296_v57  ;;  %v11631_v36 = vmax.f32 %v15431_v16, %v6701_v26  ;;  %v7317_v43 = vsel %vm6564_vm3, %v9877_v29, -inf  ;;  %v6687_v62 = vsel %vm6564_vm3, %v3992_v58, -inf  ;;  %v5400_v3 = vpop.f32.mrb[63].mxu1  ;;  %v15435_v0 = vld [vmem:[#allocation32_spill] sm:$0xff]  ;;  %v10354_v26 = vld [vmem:[%s10581_s20 + $0x2b8] sm:$0xff]   ;;  %v10356_v58 = vld [vmem:[%s10581_s20 + $0x2c0] sm:$0xff]  }
 0x166   : > { %v15433_v4 = vmax.f32 %v11360_v32, %v15432_v47  ;;  %v15436_v42 = vmax.f32 %v15434_v20, %v15435_v0  ;;  %v7303_v1 = vsel %vm6564_vm3, %v5400_v3, -inf  ;;  %9631 = vmatmul.mubr.msk.bf16.gmra.mrb[168].mxu0 %vm2651_vm2, %v10350_v24  ;;  %v15439_v28 = vmax.f32 %v15437_v22, %v15438_v52  ;;  %v11658_v32 = vld [vmem:[%s15166_s2] ss:$0 sm:$0xff]  ;;  %v10355_v24 = vld [vmem:[%s10581_s20 + $0x838] sm:$0xff]  }
 0x167   : > { %9983 = vmatmul.mubr.msk.bf16.gmra.mrb[168].mxu1 %vm2651_vm2, %v10351_v19  ;;  %9634 = vmatprep.mubr.msk.bf16.mxu0 %vm2651_vm2, %v10352_v44  ;;  %v10357_v16 = vld [vmem:[%s10581_s20 + $0x840] sm:$0xff]  }
 0x168   : > { %v11638_v34 = vmax.f32 %v15433_v4, %v7317_v43  ;;  %v11643_v53 = vmax.f32 %v15436_v42, %v6687_v62  ;;  %v11650_v57 = vmax.f32 %v15439_v28, %v7303_v1  ;;  %9986 = vmatprep.mubr.msk.bf16.mxu1 %vm2651_vm2, %v10353_v5  ;;  %v15440_v5 = vld [vmem:[#allocation34_spill] sm:$0xff]  ;;  %v15443_v28 = vld [vmem:[#allocation35_spill] sm:$0xff] }
 0x169   : > { %v9528_v29 = vpop.f32.mrb[64].mxu0  ;;  %v15441_v4 = vld [vmem:[#allocation38_spill] sm:$0xff] }
 0x16a   : > { %v6570_v37 = vsel %vm6564_vm3, %v9528_v29, -inf  ;;  %v9880_v61 = vpop.f32.mrb[64].mxu1  ;;  %v4005_v6 = vpop.f32.mrb[65].mxu0  ;;  %v15442_v20 = vmax.f32 %v15440_v5, %v15441_v4  ;;  %v15444_v29 = vld [vmem:[#allocation39_spill] sm:$0xff]  ;;  %v15446_v4 = vld [vmem:[#allocation36_spill] sm:$0xff] }
 0x16b   : > { %v6571_v19 = vmax.f32 %v11395_v27, %v6570_v37  ;;  %v7186_v44 = vsel %vm6564_vm3, %v9880_v61, -inf  ;;  %v6708_v43 = vsel %vm6564_vm3, %v4005_v6, -inf  ;;  %v5413_v62 = vpop.f32.mrb[65].mxu1  ;;  %v9529_v3 = vpop.f32.mrb[66].mxu0  ;;  %v15445_v37 = vmax.f32 %v15443_v28, %v15444_v29 }
 0x16c   : > { %v7187_v47 = vmax.f32 %v11402_v54, %v7186_v44  ;;  %v11673_v0 = vmax.f32 %v15442_v20, %v6708_v43  ;;  %v7324_v42 = vsel %vm6564_vm3, %v5413_v62, -inf  ;;  %v6577_v1 = vsel %vm6564_vm3, %v9529_v3, -inf  ;;  %v9881_v22 = vpop.f32.mrb[66].mxu1  ;;  %v4008_v52 = vpop.f32.mrb[67].mxu0  ;;  %v15447_v20 = vld [vmem:[#allocation40_spill] sm:$0xff] }
 0x16d   : > { %v7804_v27 = vadd.f32 %v11658_v32, %v6571_v19  ;;  %v11681_v61 = vmax.f32 %v15445_v37, %v7324_v42  ;;  %v6578_v54 = vmax.f32 %v11419_v9, %v6577_v1  ;;  %v7193_v6 = vsel %vm6564_vm3, %v9881_v22, -inf  ;;  %v5416_v44 = vpop.f32.mrb[67].mxu1  ;;  %v15450_v22 = vld [vmem:[#allocation41_spill] sm:$0xff] }
 0x16e   : > { %v7892_v43 = vadd.f32 %v11658_v32, %v7187_v47  ;;  %v7194_v19 = vmax.f32 %v11426_v12, %v7193_v6  ;;  %v6715_v62 = vsel %vm6564_vm3, %v4008_v52, -inf  ;;  %v7331_v3 = vsel %vm6564_vm3, %v5416_v44, -inf  ;;  %9635 = vmatmul.mubr.msk.bf16.gmra.mrb[172].mxu0 %vm2651_vm2, %v10354_v26  ;;  %v15449_v47 = vld [vmem:[#allocation37_spill] sm:$0xff]  ;;  %v10360_v6 = vld [vmem:[%s10581_s20 + $0x2d0] sm:$0xff]  }
 0x16f   : > { %v7980_v9 = vmax.f32 %v7804_v27, 0.0  ;;  %v7805_v5 = vadd.f32 %v11658_v32, %v6578_v54  ;;  %v15448_v42 = vmax.f32 %v15446_v4, %v15447_v20  ;;  %v15451_v12 = vmax.f32 %v15449_v47, %v15450_v22  ;;  %9987 = vmatmul.mubr.msk.bf16.gmra.mrb[172].mxu1 %vm2651_vm2, %v10355_v24  ;;  %9638 = vmatprep.mubr.msk.bf16.mxu0 %vm2651_vm2, %v10356_v58  ;;  %v10358_v27 = vld [vmem:[%s10581_s20 + $0x2c8] sm:$0xff]  }
 0x170   : > { %v8068_v26 = vmax.f32 %v7892_v43, 0.0  ;;  %v7893_v52 = vadd.f32 %v11658_v32, %v7194_v19  ;;  %9990 = vmatprep.mubr.msk.bf16.mxu1 %vm2651_vm2, %v10357_v16  ;;  %v10359_v54 = vld [vmem:[%s10581_s20 + $0x848] sm:$0xff]   ;;  %v10361_v43 = vld [vmem:[%s10581_s20 + $0x850] sm:$0xff]  }
 0x171   : > { %v11699_v1 = vmax.f32 %v15448_v42, %v6715_v62  ;;  %v11704_v28 = vmax.f32 %v15451_v12, %v7331_v3  ;;  %8156 = vst.msk [vmem:[%s11688_s26] sm:$0xff] %vm6564_vm3, %v7980_v9  ;;  %v7981_v29 = vmax.f32 %v7805_v5, 0.0  ;;  %v9532_v37 = vpop.f32.mrb[68].mxu0 }
 0x172   : > { %8244 = vst.msk [vmem:[%s11688_s26 + $0x2c0] sm:$0xff] %vm6564_vm3, %v8068_v26  ;;  %v8069_v24 = vmax.f32 %v7893_v52, 0.0  ;;  %v6598_v44 = vsel %vm6564_vm3, %v9532_v37, -inf  ;;  %v9884_v58 = vpop.f32.mrb[68].mxu1  ;;  %v4021_v62 = vpop.f32.mrb[69].mxu0 }
 0x173   : > { %8157 = vst.msk [vmem:[%s11688_s26 + $0x8] sm:$0xff] %vm6564_vm3, %v7981_v29  ;;  %v6599_v16 = vmax.f32 %v11451_v18, %v6598_v44  ;;  %v7214_v19 = vsel %vm6564_vm3, %v9884_v58, -inf  ;;  %v6584_v3 = vsel %vm6564_vm3, %v4021_v62, -inf  ;;  %v5429_v9 = vpop.f32.mrb[69].mxu1  ;;  %v9533_v5 = vpop.f32.mrb[70].mxu0 }
 0x174   : > { %8245 = vst.msk [vmem:[%s11688_s26 + $0x2c8] sm:$0xff] %vm6564_vm3, %v8069_v24  ;;  %v7215_v4 = vmax.f32 %v11458_v11, %v7214_v19  ;;  %v6585_v20 = vmax.f32 %v11383_v45, %v6584_v3  ;;  %v7200_v42 = vsel %vm6564_vm3, %v5429_v9, -inf  ;;  %v6605_v47 = vsel %vm6564_vm3, %v9533_v5, -inf  ;;  %v9885_v22 = vpop.f32.mrb[70].mxu1  ;;  %v4024_v12 = vpop.f32.mrb[71].mxu0  ;;  %v10362_v3 = vld [vmem:[%s10581_s20 + $0x2d8] sm:$0xff]  }
 0x175   : > { %v7808_v18 = vadd.f32 %v11658_v32, %v6599_v16  ;;  %v7201_v26 = vmax.f32 %v11390_v8, %v7200_v42  ;;  %v6606_v52 = vmax.f32 %v11475_v39, %v6605_v47  ;;  %v7221_v29 = vsel %vm6564_vm3, %v9885_v22, -inf  ;;  %v5432_v37 = vpop.f32.mrb[71].mxu1 }
 0x176   : > { %v7896_v24 = vadd.f32 %v11658_v32, %v7215_v4  ;;  %v7806_v45 = vadd.f32 %v11658_v32, %v6585_v20  ;;  %v7222_v11 = vmax.f32 %v11482_v51, %v7221_v29  ;;  %v6591_v44 = vsel %vm6564_vm3, %v4024_v12, -inf  ;;  %9639 = vmatmul.mubr.msk.bf16.gmra.mrb[176].mxu0 %vm2651_vm2, %v10358_v27  ;;  %v10363_v4 = vld [vmem:[%s10581_s20 + $0x858] sm:$0xff]   ;;  %v10364_v20 = vld [vmem:[%s10581_s20 + $0x2e0] sm:$0xff]  }
 0x177   : > { %v7984_v58 = vmax.f32 %v7808_v18, 0.0  ;;  %v7894_v8 = vadd.f32 %v11658_v32, %v7201_v26  ;;  %v7809_v39 = vadd.f32 %v11658_v32, %v6606_v52  ;;  %v6592_v62 = vmax.f32 %v11407_v50, %v6591_v44  ;;  %9991 = vmatmul.mubr.msk.bf16.gmra.mrb[176].mxu1 %vm2651_vm2, %v10359_v54  ;;  %9642 = vmatprep.mubr.msk.bf16.mxu0 %vm2651_vm2, %v10360_v6 }
 0x178   : > { %v8072_v51 = vmax.f32 %v7896_v24, 0.0  ;;  %v7982_v16 = vmax.f32 %v7806_v45, 0.0  ;;  %v7897_v19 = vadd.f32 %v11658_v32, %v7222_v11  ;;  %v7207_v27 = vsel %vm6564_vm3, %v5432_v37, -inf  ;;  %9994 = vmatprep.mubr.msk.bf16.mxu1 %vm2651_vm2, %v10361_v43 }
 0x179   : > { %8160 = vst.msk [vmem:[%s11688_s26 + $0x20] sm:$0xff] %vm6564_vm3, %v7984_v58  ;;  %v8070_v50 = vmax.f32 %v7894_v8, 0.0  ;;  %v7985_v9 = vmax.f32 %v7809_v39, 0.0  ;;  %v7807_v54 = vadd.f32 %v11658_v32, %v6592_v62  ;;  %v7208_v6 = vmax.f32 %v11414_v35, %v7207_v27  ;;  %v9536_v5 = vpop.f32.mrb[72].mxu0  ;;  %v10365_v8 = vld [vmem:[%s10581_s20 + $0x860] sm:$0xff]  }
 0x17a   : > { %8248 = vst.msk [vmem:[%s11688_s26 + $0x2e0] sm:$0xff] %vm6564_vm3, %v8072_v51  ;;  %8158 = vst.msk [vmem:[%s11688_s26 + $0x10] sm:$0xff] %vm6564_vm3, %v7982_v16  ;;  %v8073_v43 = vmax.f32 %v7897_v19, 0.0  ;;  %v6626_v42 = vsel %vm6564_vm3, %v9536_v5, -inf  ;;  %v9888_v47 = vpop.f32.mrb[72].mxu1  ;;  %v4037_v22 = vpop.f32.mrb[73].mxu0 }
 0x17b   : > { %8246 = vst.msk [vmem:[%s11688_s26 + $0x2d0] sm:$0xff] %vm6564_vm3, %v8070_v50  ;;  %8161 = vst.msk [vmem:[%s11688_s26 + $0x28] sm:$0xff] %vm6564_vm3, %v7985_v9  ;;  %v7983_v35 = vmax.f32 %v7807_v54, 0.0  ;;  %v7895_v12 = vadd.f32 %v11658_v32, %v7208_v6  ;;  %v6627_v18 = vmax.f32 %v11507_v13, %v6626_v42  ;;  %v7242_v26 = vsel %vm6564_vm3, %v9888_v47, -inf  ;;  %v5445_v52 = vpop.f32.mrb[73].mxu1  ;;  %v9537_v29 = vpop.f32.mrb[74].mxu0 }
 0x17c   : > { %8249 = vst.msk [vmem:[%s11688_s26 + $0x2e8] sm:$0xff] %vm6564_vm3, %v8073_v43  ;;  %v7243_v37 = vmax.f32 %v11514_v25, %v7242_v26  ;;  %v6612_v24 = vsel %vm6564_vm3, %v4037_v22, -inf  ;;  %v7228_v45 = vsel %vm6564_vm3, %v5445_v52, -inf  ;;  %v6633_v11 = vsel %vm6564_vm3, %v9537_v29, -inf  ;;  %v9889_v44 = vpop.f32.mrb[74].mxu1  ;;  %v4040_v58 = vpop.f32.mrb[75].mxu0 }
 0x17d   : > { %8159 = vst.msk [vmem:[%s11688_s26 + $0x18] sm:$0xff] %vm6564_vm3, %v7983_v35  ;;  %v8071_v13 = vmax.f32 %v7895_v12, 0.0  ;;  %v7812_v39 = vadd.f32 %v11658_v32, %v6627_v18  ;;  %v6613_v62 = vmax.f32 %v11439_v33, %v6612_v24  ;;  %v7229_v51 = vmax.f32 %v11446_v14, %v7228_v45  ;;  %v5448_v25 = vpop.f32.mrb[75].mxu1  ;;  %v10366_v43 = vld [vmem:[%s10581_s20 + $0x2e8] sm:$0xff]   ;;  %v10368_v35 = vld [vmem:[%s10581_s20 + $0x2f0] sm:$0xff]  }
 0x17e   : > { %v7900_v16 = vadd.f32 %v11658_v32, %v7243_v37  ;;  %v6634_v19 = vmax.f32 %v11531_v2, %v6633_v11  ;;  %v7249_v27 = vsel %vm6564_vm3, %v9889_v44, -inf  ;;  %v6619_v50 = vsel %vm6564_vm3, %v4040_v58, -inf  ;;  %9643 = vmatmul.mubr.msk.bf16.gmra.mrb[180].mxu0 %vm2651_vm2, %v10362_v3  ;;  %v10367_v22 = vld [vmem:[%s10581_s20 + $0x868] sm:$0xff]  }
 0x17f   : > { %8247 = vst.msk [vmem:[%s11688_s26 + $0x2d8] sm:$0xff] %vm6564_vm3, %v8071_v13  ;;  %v7988_v9 = vmax.f32 %v7812_v39, 0.0  ;;  %v7810_v33 = vadd.f32 %v11658_v32, %v6613_v62  ;;  %v7898_v14 = vadd.f32 %v11658_v32, %v7229_v51  ;;  %v7250_v54 = vmax.f32 %v11538_v38, %v7249_v27  ;;  %9995 = vmatmul.mubr.msk.bf16.gmra.mrb[180].mxu1 %vm2651_vm2, %v10363_v4  ;;  %v10369_v51 = vld [vmem:[%s10581_s20 + $0x870] sm:$0xff]  }
 0x180   : > { %9646 = vmatprep.mubr.msk.bf16.mxu0 %vm2651_vm2, %v10364_v20  ;;  %v8076_v2 = vmax.f32 %v7900_v16, 0.0  ;;  %v7813_v6 = vadd.f32 %v11658_v32, %v6634_v19  ;;  %v6620_v3 = vmax.f32 %v11463_v56, %v6619_v50  ;;  %v7235_v5 = vsel %vm6564_vm3, %v5448_v25, -inf  ;;  %9998 = vmatprep.mubr.msk.bf16.mxu1 %vm2651_vm2, %v10365_v8 }
 0x181   : > { %8164 = vst.msk [vmem:[%s11688_s26 + $0x40] sm:$0xff] %vm6564_vm3, %v7988_v9  ;;  %v7986_v38 = vmax.f32 %v7810_v33, 0.0  ;;  %v8074_v42 = vmax.f32 %v7898_v14, 0.0  ;;  %v7901_v4 = vadd.f32 %v11658_v32, %v7250_v54  ;;  %v7236_v20 = vmax.f32 %v11470_v46, %v7235_v5  ;;  %v9540_v47 = vpop.f32.mrb[76].mxu0 }
 0x182   : > { %8252 = vst.msk [vmem:[%s11688_s26 + $0x300] sm:$0xff] %vm6564_vm3, %v8076_v2  ;;  %v7989_v56 = vmax.f32 %v7813_v6, 0.0  ;;  %v7811_v12 = vadd.f32 %v11658_v32, %v6620_v3  ;;  %v6654_v18 = vsel %vm6564_vm3, %v9540_v47, -inf  ;;  %v9892_v26 = vpop.f32.mrb[76].mxu1  ;;  %v4053_v52 = vpop.f32.mrb[77].mxu0 }
 0x183   : > { %8162 = vst.msk [vmem:[%s11688_s26 + $0x30] sm:$0xff] %vm6564_vm3, %v7986_v38  ;;  %8250 = vst.msk [vmem:[%s11688_s26 + $0x2f0] sm:$0xff] %vm6564_vm3, %v8074_v42  ;;  %v8077_v46 = vmax.f32 %v7901_v4, 0.0  ;;  %v7899_v29 = vadd.f32 %v11658_v32, %v7236_v20  ;;  %v6655_v37 = vmax.f32 %v11563_v59, %v6654_v18  ;;  %v7270_v24 = vsel %vm6564_vm3, %v9892_v26, -inf  ;;  %v5461_v45 = vpop.f32.mrb[77].mxu1  ;;  %v9541_v11 = vpop.f32.mrb[78].mxu0 }
 0x184   : > { %8165 = vst.msk [vmem:[%s11688_s26 + $0x48] sm:$0xff] %vm6564_vm3, %v7989_v56  ;;  %v7987_v44 = vmax.f32 %v7811_v12, 0.0  ;;  %v7271_v58 = vmax.f32 %v11570_v55, %v7270_v24  ;;  %v6640_v8 = vsel %vm6564_vm3, %v4053_v52, -inf  ;;  %v7256_v13 = vsel %vm6564_vm3, %v5461_v45, -inf  ;;  %v9893_v39 = vpop.f32.mrb[78].mxu1  ;;  %v4056_v62 = vpop.f32.mrb[79].mxu0 }
 0x185   : > { %8253 = vst.msk [vmem:[%s11688_s26 + $0x308] sm:$0xff] %vm6564_vm3, %v8077_v46  ;;  %v8075_v59 = vmax.f32 %v7899_v29, 0.0  ;;  %v7816_v25 = vadd.f32 %v11658_v32, %v6655_v37  ;;  %v6641_v16 = vmax.f32 %v11495_v15, %v6640_v8  ;;  %v7257_v19 = vmax.f32 %v11502_v31, %v7256_v13  ;;  %v5464_v27 = vpop.f32.mrb[79].mxu1  ;;  %v10372_v12 = vld [vmem:[%s10581_s20 + $0x300] sm:$0xff]  }
 0x186   : > { %8163 = vst.msk [vmem:[%s11688_s26 + $0x38] sm:$0xff] %vm6564_vm3, %v7987_v44  ;;  %v7904_v55 = vadd.f32 %v11658_v32, %v7271_v58  ;;  %v6661_v50 = vsel %vm6564_vm3, %v9541_v11, -inf  ;;  %v7277_v9 = vsel %vm6564_vm3, %v9893_v39, -inf  ;;  %v6647_v33 = vsel %vm6564_vm3, %v4056_v62, -inf  ;;  %9647 = vmatmul.mubr.msk.bf16.gmra.mrb[184].mxu0 %vm2651_vm2, %v10366_v43  ;;  %v10370_v43 = vld [vmem:[%s10581_s20 + $0x2f8] sm:$0xff]   ;;  %v10373_v8 = vld [vmem:[%s10581_s20 + $0x880] sm:$0xff]  }
 0x187   : > { %8251 = vst.msk [vmem:[%s11688_s26 + $0x2f8] sm:$0xff] %vm6564_vm3, %v8075_v59  ;;  %v7992_v15 = vmax.f32 %v7816_v25, 0.0  ;;  %v7814_v31 = vadd.f32 %v11658_v32, %v6641_v16  ;;  %v7902_v14 = vadd.f32 %v11658_v32, %v7257_v19  ;;  %v6662_v54 = vmax.f32 %v11587_v40, %v6661_v50  ;;  %9999 = vmatmul.mubr.msk.bf16.gmra.mrb[184].mxu1 %vm2651_vm2, %v10367_v22 }
 0x188   : > { %9650 = vmatprep.mubr.msk.bf16.mxu0 %vm2651_vm2, %v10368_v35  ;;  %v8080_v2 = vmax.f32 %v7904_v55, 0.0  ;;  %v7278_v6 = vmax.f32 %v11594_v21, %v7277_v9  ;;  %v6648_v3 = vmax.f32 %v11519_v10, %v6647_v33  ;;  %v7263_v5 = vsel %vm6564_vm3, %v5464_v27, -inf  ;;  %10002 = vmatprep.mubr.msk.bf16.mxu1 %vm2651_vm2, %v10369_v51  ;;  %v10371_v21 = vld [vmem:[%s10581_s20 + $0x878] sm:$0xff]  }
 0x189   : > { %8168 = vst.msk [vmem:[%s11688_s26 + $0x60] sm:$0xff] %vm6564_vm3, %v7992_v15  ;;  %v7990_v40 = vmax.f32 %v7814_v31, 0.0  ;;  %v8078_v38 = vmax.f32 %v7902_v14, 0.0  ;;  %v7817_v42 = vadd.f32 %v11658_v32, %v6662_v54  ;;  %v7264_v4 = vmax.f32 %v11526_v17, %v7263_v5  ;;  %v9544_v20 = vpop.f32.mrb[80].mxu0 }
 0x18a   : > { %8256 = vst.msk [vmem:[%s11688_s26 + $0x320] sm:$0xff] %vm6564_vm3, %v8080_v2  ;;  %v7905_v10 = vadd.f32 %v11658_v32, %v7278_v6  ;;  %v7815_v47 = vadd.f32 %v11658_v32, %v6648_v3  ;;  %v6682_v22 = vsel %vm6564_vm3, %v9544_v20, -inf  ;;  %v9896_v35 = vpop.f32.mrb[80].mxu1  ;;  %v4069_v56 = vpop.f32.mrb[81].mxu0  ;;  %v10375_v2 = vld [vmem:[%s10581_s20 + $0x888] sm:$0xff]   ;;  %v10376_v6 = vld [vmem:[%s10581_s20 + $0x310] sm:$0xff]  }
 0x18b   : > { %8166 = vst.msk [vmem:[%s11688_s26 + $0x50] sm:$0xff] %vm6564_vm3, %v7990_v40  ;;  %8254 = vst.msk [vmem:[%s11688_s26 + $0x310] sm:$0xff] %vm6564_vm3, %v8078_v38  ;;  %v7993_v17 = vmax.f32 %v7817_v42, 0.0  ;;  %v7903_v18 = vadd.f32 %v11658_v32, %v7264_v4  ;;  %v6683_v26 = vmax.f32 %v11619_v7, %v6682_v22  ;;  %v7298_v52 = vsel %vm6564_vm3, %v9896_v35, -inf  ;;  %v5477_v46 = vpop.f32.mrb[81].mxu1  ;;  %v9545_v29 = vpop.f32.mrb[82].mxu0 }
 0x18c   : > { %v8081_v37 = vmax.f32 %v7905_v10, 0.0  ;;  %v7991_v24 = vmax.f32 %v7815_v47, 0.0  ;;  %v7299_v45 = vmax.f32 %v11626_v60, %v7298_v52  ;;  %v6668_v11 = vsel %vm6564_vm3, %v4069_v56, -inf  ;;  %v9897_v44 = vpop.f32.mrb[82].mxu1  ;;  %v4072_v58 = vpop.f32.mrb[83].mxu0 }
 0x18d   : > { %8169 = vst.msk [vmem:[%s11688_s26 + $0x68] sm:$0xff] %vm6564_vm3, %v7993_v17  ;;  %v8079_v13 = vmax.f32 %v7903_v18, 0.0  ;;  %v7820_v7 = vadd.f32 %v11658_v32, %v6683_v26  ;;  %v6669_v39 = vmax.f32 %v11551_v48, %v6668_v11  ;;  %v7284_v62 = vsel %vm6564_vm3, %v5477_v46, -inf  ;;  %v5480_v51 = vpop.f32.mrb[83].mxu1  ;;  %v10377_v17 = vld [vmem:[%s10581_s20 + $0x890] sm:$0xff]  }
 0x18e   : > { %8257 = vst.msk [vmem:[%s11688_s26 + $0x328] sm:$0xff] %vm6564_vm3, %v8081_v37  ;;  %8167 = vst.msk [vmem:[%s11688_s26 + $0x58] sm:$0xff] %vm6564_vm3, %v7991_v24  ;;  %v7908_v60 = vadd.f32 %v11658_v32, %v7299_v45  ;;  %v7285_v59 = vmax.f32 %v11558_v23, %v7284_v62  ;;  %v6689_v25 = vsel %vm6564_vm3, %v9545_v29, -inf  ;;  %v7305_v16 = vsel %vm6564_vm3, %v9897_v44, -inf  ;;  %9651 = vmatmul.mubr.msk.bf16.gmra.mrb[188].mxu0 %vm2651_vm2, %v10370_v43 }
 0x18f   : > { %8255 = vst.msk [vmem:[%s11688_s26 + $0x318] sm:$0xff] %vm6564_vm3, %v8079_v13  ;;  %v7996_v48 = vmax.f32 %v7820_v7, 0.0  ;;  %v7818_v19 = vadd.f32 %v11658_v32, %v6669_v39  ;;  %v6690_v27 = vmax.f32 %v11643_v53, %v6689_v25  ;;  %v7306_v55 = vmax.f32 %v11650_v57, %v7305_v16  ;;  %10003 = vmatmul.mubr.msk.bf16.gmra.mrb[188].mxu1 %vm2651_vm2, %v10371_v21  ;;  %v10374_v53 = vld [vmem:[%s10581_s20 + $0x308] sm:$0xff]  }
 0x190   : > { %9654 = vmatprep.mubr.msk.bf16.mxu0 %vm2651_vm2, %v10372_v12  ;;  %v8084_v23 = vmax.f32 %v7908_v60, 0.0  ;;  %v7906_v50 = vadd.f32 %v11658_v32, %v7285_v59  ;;  %v6675_v9 = vsel %vm6564_vm3, %v4072_v58, -inf  ;;  %v7291_v33 = vsel %vm6564_vm3, %v5480_v51, -inf  ;;  %10006 = vmatprep.mubr.msk.bf16.mxu1 %vm2651_vm2, %v10373_v8 }
 0x191   : > { %8172 = vst.msk [vmem:[%s11688_s26 + $0x80] sm:$0xff] %vm6564_vm3, %v7996_v48  ;;  %v7994_v57 = vmax.f32 %v7818_v19, 0.0  ;;  %v7821_v15 = vadd.f32 %v11658_v32, %v6690_v27  ;;  %v7909_v31 = vadd.f32 %v11658_v32, %v7306_v55  ;;  %v6676_v14 = vmax.f32 %v11575_v49, %v6675_v9  ;;  %v9548_v54 = vpop.f32.mrb[84].mxu0  ;;  %v10378_v48 = vld [vmem:[%s10581_s20 + $0x318] sm:$0xff]  }
 0x192   : > { %8260 = vst.msk [vmem:[%s11688_s26 + $0x340] sm:$0xff] %vm6564_vm3, %v8084_v23  ;;  %v8082_v3 = vmax.f32 %v7906_v50, 0.0  ;;  %v7292_v5 = vmax.f32 %v11582_v41, %v7291_v33  ;;  %v6710_v43 = vsel %vm6564_vm3, %v9548_v54, -inf  ;;  %v9900_v40 = vpop.f32.mrb[84].mxu1  ;;  %v4085_v38 = vpop.f32.mrb[85].mxu0  ;;  %v10380_v23 = vld [vmem:[%s10581_s20 + $0x320] sm:$0xff]  }
 0x193   : > { %8170 = vst.msk [vmem:[%s11688_s26 + $0x70] sm:$0xff] %vm6564_vm3, %v7994_v57  ;;  %v7997_v42 = vmax.f32 %v7821_v15, 0.0  ;;  %v8085_v49 = vmax.f32 %v7909_v31, 0.0  ;;  %v7819_v4 = vadd.f32 %v11658_v32, %v6676_v14  ;;  %v6711_v20 = vmax.f32 %v11673_v0, %v6710_v43  ;;  %v5493_v21 = vpop.f32.mrb[85].mxu1  ;;  %v9549_v10 = vpop.f32.mrb[86].mxu0  ;;  %v10381_v57 = vld [vmem:[%s10581_s20 + $0x8a0] sm:$0xff]  }
 0x194   : > { %8258 = vst.msk [vmem:[%s11688_s26 + $0x330] sm:$0xff] %vm6564_vm3, %v8082_v3  ;;  %v7907_v41 = vadd.f32 %v11658_v32, %v7292_v5  ;;  %v7326_v47 = vsel %vm6564_vm3, %v9900_v40, -inf  ;;  %v6696_v22 = vsel %vm6564_vm3, %v4085_v38, -inf  ;;  %v7312_v35 = vsel %vm6564_vm3, %v5493_v21, -inf  ;;  %v9901_v56 = vpop.f32.mrb[86].mxu1  ;;  %v4088_v12 = vpop.f32.mrb[87].mxu0 }
 0x195   : > { %8173 = vst.msk [vmem:[%s11688_s26 + $0x88] sm:$0xff] %vm6564_vm3, %v7997_v42  ;;  %8261 = vst.msk [vmem:[%s11688_s26 + $0x348] sm:$0xff] %vm6564_vm3, %v8085_v49  ;;  %v7995_v0 = vmax.f32 %v7819_v4, 0.0  ;;  %v7824_v18 = vadd.f32 %v11658_v32, %v6711_v20  ;;  %v7327_v26 = vmax.f32 %v11681_v61, %v7326_v47  ;;  %v6697_v52 = vmax.f32 %v11607_v30, %v6696_v22  ;;  %v5496_v46 = vpop.f32.mrb[87].mxu1  ;;  %v10383_v43 = vld [vmem:[%s10581_s20 + $0x8a8] sm:$0xff]   ;;  %v10384_v40 = vld [vmem:[%s10581_s20 + $0x330] sm:$0xff]  }
 0x196   : > { %v8083_v29 = vmax.f32 %v7907_v41, 0.0  ;;  %v7313_v37 = vmax.f32 %v11614_v63, %v7312_v35  ;;  %v6717_v24 = vsel %vm6564_vm3, %v9549_v10, -inf  ;;  %v7333_v45 = vsel %vm6564_vm3, %v9901_v56, -inf  ;;  %9655 = vmatmul.mubr.msk.bf16.gmra.mrb[192].mxu0 %vm2651_vm2, %v10374_v53  ;;  %v10385_v49 = vld [vmem:[%s10581_s20 + $0x8b0] sm:$0xff]   ;;  %v10386_v41 = vld [vmem:[%s10581_s20 + $0x338] sm:$0xff]   ;;  %v10388_v56 = vld [vmem:[%s10581_s20 + $0x340] sm:$0xff]  }
 0x197   : > { %8171 = vst.msk [vmem:[%s11688_s26 + $0x78] sm:$0xff] %vm6564_vm3, %v7995_v0  ;;  %v8000_v11 = vmax.f32 %v7824_v18, 0.0  ;;  %v7912_v44 = vadd.f32 %v11658_v32, %v7327_v26  ;;  %v7822_v61 = vadd.f32 %v11658_v32, %v6697_v52  ;;  %v6718_v30 = vmax.f32 %v11699_v1, %v6717_v24  ;;  %10007 = vmatmul.mubr.msk.bf16.gmra.mrb[192].mxu1 %vm2651_vm2, %v10375_v2  ;;  %v10387_v35 = vld [vmem:[%s10581_s20 + $0x8b8] sm:$0xff]   ;;  %v10389_v0 = vld [vmem:[%s10581_s20 + $0x8c0] sm:$0xff]  }
 0x198   : > { %9658 = vmatprep.mubr.msk.bf16.mxu0 %vm2651_vm2, %v10376_v6  ;;  %8259 = vst.msk [vmem:[%s11688_s26 + $0x338] sm:$0xff] %vm6564_vm3, %v8083_v29  ;;  %v7910_v63 = vadd.f32 %v11658_v32, %v7313_v37  ;;  %v7334_v58 = vmax.f32 %v11704_v28, %v7333_v45  ;;  %v6703_v8 = vsel %vm6564_vm3, %v4088_v12, -inf  ;;  %v7319_v13 = vsel %vm6564_vm3, %v5496_v46, -inf  ;;  %10010 = vmatprep.mubr.msk.bf16.mxu1 %vm2651_vm2, %v10377_v17  ;;  %v10382_v6 = vld [vmem:[%s10581_s20 + $0x328] sm:$0xff]  }
 0x199   : > { %8176 = vst.msk [vmem:[%s11688_s26 + $0xa0] sm:$0xff] %vm6564_vm3, %v8000_v11  ;;  %v8088_v1 = vmax.f32 %v7912_v44, 0.0  ;;  %v7998_v7 = vmax.f32 %v7822_v61, 0.0  ;;  %v7825_v39 = vadd.f32 %v11658_v32, %v6718_v30  ;;  %v6704_v62 = vmax.f32 %v11631_v36, %v6703_v8  ;;  %v11940_v28 = vpop.f32.mrb[88].mxu0  ;;  %v10390_v29 = vld [vmem:[%s10581_s20 + $0x348] sm:$0xff]   ;;  %v10392_v11 = vld [vmem:[%s10581_s20 + $0x350] sm:$0xff]  }
 0x19a   : > { %v8086_v51 = vmax.f32 %v7910_v63, 0.0  ;;  %v7913_v60 = vadd.f32 %v11658_v32, %v7334_v58  ;;  %v7320_v59 = vmax.f32 %v11638_v34, %v7319_v13  ;;  %v11944_v25 = vpop.f32.mrb[88].mxu1  ;;  %v11946_v16 = vpop.f32.mrb[89].mxu0  ;;  %v10379_v34 = vld [vmem:[%s10581_s20 + $0x898] sm:$0xff]   ;;  %v10391_v45 = vld [vmem:[%s10581_s20 + $0x8c8] sm:$0xff]   ;;  %v10393_v30 = vld [vmem:[%s10581_s20 + $0x8d0] sm:$0xff]  }
 0x19b   : > { %8264 = vst.msk [vmem:[%s11688_s26 + $0x360] sm:$0xff] %vm6564_vm3, %v8088_v1  ;;  %8174 = vst.msk [vmem:[%s11688_s26 + $0x90] sm:$0xff] %vm6564_vm3, %v7998_v7  ;;  %v8001_v36 = vmax.f32 %v7825_v39, 0.0  ;;  %v7823_v19 = vadd.f32 %v11658_v32, %v6704_v62  ;;  %v11954_v27 = vpop.f32.mrb[89].mxu1  ;;  %v11956_v55 = vpop.f32.mrb[90].mxu0  ;;  %v10394_v1 = vld [vmem:[%s10581_s20 + $0x358] sm:$0xff]  }
 0x19c   : > { %8262 = vst.msk [vmem:[%s11688_s26 + $0x350] sm:$0xff] %vm6564_vm3, %v8086_v51  ;;  %v8089_v50 = vmax.f32 %v7913_v60, 0.0  ;;  %v7911_v9 = vadd.f32 %v11658_v32, %v7320_v59  ;;  %v11963_v33 = vpop.f32.mrb[90].mxu1  ;;  %v11965_v53 = vpop.f32.mrb[91].mxu0  ;;  %v10395_v62 = vld [vmem:[%s10581_s20 + $0x8d8] sm:$0xff]   ;;  %v10396_v51 = vld [vmem:[%s10581_s20 + $0x360] sm:$0xff]  }
 0x19d   : > { %8177 = vst.msk [vmem:[%s11688_s26 + $0xa8] sm:$0xff] %vm6564_vm3, %v8001_v36  ;;  %v7999_v15 = vmax.f32 %v7823_v19, 0.0  ;;  %v11970_v31 = vpop.f32.mrb[91].mxu1 }
 0x19e   : > { %8265 = vst.msk [vmem:[%s11688_s26 + $0x368] sm:$0xff] %vm6564_vm3, %v8089_v50  ;;  %v8087_v14 = vmax.f32 %v7911_v9, 0.0  ;;  %9659 = vmatmul.mubr.msk.bf16.gmra.mrb[196].mxu0 %vm2651_vm2, %v10378_v48  ;;  %v10397_v48 = vld [vmem:[%s10581_s20 + $0x8e0] sm:$0xff]  }
 0x19f   : > { %8175 = vst.msk [vmem:[%s11688_s26 + $0x98] sm:$0xff] %vm6564_vm3, %v7999_v15  ;;  %10011 = vmatmul.mubr.msk.bf16.gmra.mrb[196].mxu1 %vm2651_vm2, %v10379_v34  ;;  %9662 = vmatprep.mubr.msk.bf16.mxu0 %vm2651_vm2, %v10380_v23  ;;  %v12080_v34 = vsel %vm6564_vm3, %v11946_v16, -inf  ;;  %v10405_v15 = vld [vmem:[%s10581_s20 + $0x900] sm:$0xff]  }
 0x1a0   : > { %8263 = vst.msk [vmem:[%s11688_s26 + $0x358] sm:$0xff] %vm6564_vm3, %v8087_v14  ;;  %10014 = vmatprep.mubr.msk.bf16.mxu1 %vm2651_vm2, %v10381_v57  ;;  %v10398_v57 = vld [vmem:[%s10581_s20 + $0x368] sm:$0xff]   ;;  %v12092_v14 = vsel %vm6564_vm3, %v11954_v27, -inf }
 0x1a1   : > { %v11982_v32 = vpop.f32.mrb[92].mxu0 }
 0x1a2   : > { %v11984_v54 = vpop.f32.mrb[92].mxu1  ;;  %v11986_v2 = vpop.f32.mrb[93].mxu0 }
 0x1a3   : > { %v11989_v3 = vpop.f32.mrb[93].mxu1  ;;  %v11991_v5 = vpop.f32.mrb[94].mxu0 }
 0x1a4   : > { %v11995_v38 = vpop.f32.mrb[94].mxu1  ;;  %v11997_v42 = vpop.f32.mrb[95].mxu0 }
 0x1a5   : > { %v12000_v4 = vpop.f32.mrb[95].mxu1 }
 0x1a6   : > { %9663 = vmatmul.mubr.msk.bf16.gmra.mrb[200].mxu0 %vm2651_vm2, %v10382_v6 }
 0x1a7   : > { %10015 = vmatmul.mubr.msk.bf16.gmra.mrb[200].mxu1 %vm2651_vm2, %v10383_v43  ;;  %9666 = vmatprep.mubr.msk.bf16.mxu0 %vm2651_vm2, %v10384_v40  ;;  %v10399_v40 = vld [vmem:[%s10581_s20 + $0x8e8] sm:$0xff]  }
 0x1a8   : > { %10018 = vmatprep.mubr.msk.bf16.mxu1 %vm2651_vm2, %v10385_v49  ;;  %v10400_v49 = vld [vmem:[%s10581_s20 + $0x370] sm:$0xff]  }
 0x1a9   : > { %v12006_v20 = vpop.f32.mrb[96].mxu0 }
 0x1aa   : > { %v12008_v21 = vpop.f32.mrb[96].mxu1  ;;  %v12010_v10 = vpop.f32.mrb[97].mxu0 }
 0x1ab   : > { %v12013_v47 = vpop.f32.mrb[97].mxu1  ;;  %v12015_v22 = vpop.f32.mrb[98].mxu0 }
 0x1ac   : > { %v12019_v12 = vpop.f32.mrb[98].mxu1  ;;  %v12021_v17 = vpop.f32.mrb[99].mxu0 }
 0x1ad   : > { %v12024_v18 = vpop.f32.mrb[99].mxu1 }
 0x1ae   : > { %9667 = vmatmul.mubr.msk.bf16.gmra.mrb[204].mxu0 %vm2651_vm2, %v10386_v41 }
 0x1af   : > { %10019 = vmatmul.mubr.msk.bf16.gmra.mrb[204].mxu1 %vm2651_vm2, %v10387_v35  ;;  %9670 = vmatprep.mubr.msk.bf16.mxu0 %vm2651_vm2, %v10388_v56  ;;  %v12105_v35 = vsel %vm6564_vm3, %v11965_v53, -inf }
 0x1b0   : > { %10022 = vmatprep.mubr.msk.bf16.mxu1 %vm2651_vm2, %v10389_v0 }
 0x1b1   : > { %v12030_v26 = vpop.f32.mrb[100].mxu0 }
 0x1b2   : > { %v12032_v52 = vpop.f32.mrb[100].mxu1  ;;  %v12034_v46 = vpop.f32.mrb[101].mxu0 }
 0x1b3   : > { %v12037_v37 = vpop.f32.mrb[101].mxu1  ;;  %v12039_v24 = vpop.f32.mrb[102].mxu0 }
 0x1b4   : > { %v12043_v44 = vpop.f32.mrb[102].mxu1  ;;  %v12045_v61 = vpop.f32.mrb[103].mxu0 }
 0x1b5   : > { %v12048_v63 = vpop.f32.mrb[103].mxu1 }
 0x1b6   : > { %9671 = vmatmul.mubr.msk.bf16.gmra.mrb[208].mxu0 %vm2651_vm2, %v10390_v29  ;;  %v10401_v29 = vld [vmem:[%s10581_s20 + $0x8f0] sm:$0xff]  }
 0x1b7   : > { %10023 = vmatmul.mubr.msk.bf16.gmra.mrb[208].mxu1 %vm2651_vm2, %v10391_v45  ;;  %9674 = vmatprep.mubr.msk.bf16.mxu0 %vm2651_vm2, %v10392_v11  ;;  %v12117_v11 = vsel %vm6564_vm3, %v11970_v31, -inf  ;;  %v12132_v31 = vsel %vm6564_vm3, %v11940_v28, -inf }
 0x1b8   : > { %10026 = vmatprep.mubr.msk.bf16.mxu1 %vm2651_vm2, %v10393_v30 }
 0x1b9   : > { %v12054_v58 = vpop.f32.mrb[104].mxu0 }
 0x1ba   : > { %v12056_v8 = vpop.f32.mrb[104].mxu1  ;;  %v12058_v13 = vpop.f32.mrb[105].mxu0 }
 0x1bb   : > { %v12061_v7 = vpop.f32.mrb[105].mxu1  ;;  %v12063_v39 = vpop.f32.mrb[106].mxu0 }
 0x1bc   : > { %v12067_v60 = vpop.f32.mrb[106].mxu1  ;;  %v12069_v59 = vpop.f32.mrb[107].mxu0 }
 0x1bd   : > { %v12072_v36 = vpop.f32.mrb[107].mxu1 }
 0x1be   : > { %9675 = vmatmul.mubr.msk.bf16.gmra.mrb[212].mxu0 %vm2651_vm2, %v10394_v1  ;;  %v10404_v1 = vld [vmem:[%s10581_s20 + $0x380] sm:$0xff]  }
 0x1bf   : > { %10027 = vmatmul.mubr.msk.bf16.gmra.mrb[212].mxu1 %vm2651_vm2, %v10395_v62  ;;  %9678 = vmatprep.mubr.msk.bf16.mxu0 %vm2651_vm2, %v10396_v51  ;;  %v12136_v51 = vsel %vm6564_vm3, %v11944_v25, -inf }
 0x1c0   : > { %10030 = vmatprep.mubr.msk.bf16.mxu1 %vm2651_vm2, %v10397_v48  ;;  %v12140_v48 = vsel %vm6564_vm3, %v11956_v55, -inf  ;;  %v12157_v55 = vsel %vm6564_vm3, %v11997_v42, -inf }
 0x1c1   : > { %v9572_v19 = vpop.f32.mrb[108].mxu0  ;;  %15454 = vst [vmem:[#allocation3_spill] sm:$0xff] %v12157_v55 }
 0x1c2   : > { %v12083_v23 = vsel %vm6564_vm3, %v9572_v19, -inf  ;;  %v9924_v50 = vpop.f32.mrb[108].mxu1  ;;  %v12085_v9 = vpop.f32.mrb[109].mxu0  ;;  %v10402_v19 = vld [vmem:[%s10581_s20 + $0x378] sm:$0xff]  }
 0x1c3   : > { %v12095_v6 = vsel %vm6564_vm3, %v9924_v50, -inf  ;;  %v12097_v16 = vpop.f32.mrb[109].mxu1  ;;  %v9573_v43 = vpop.f32.mrb[110].mxu0  ;;  %v10403_v50 = vld [vmem:[%s10581_s20 + $0x8f8] sm:$0xff]  }
 0x1c4   : > { %v12108_v56 = vsel %vm6564_vm3, %v9573_v43, -inf  ;;  %v9925_v27 = vpop.f32.mrb[110].mxu1  ;;  %v12110_v0 = vpop.f32.mrb[111].mxu0 }
 0x1c5   : > { %v12120_v30 = vsel %vm6564_vm3, %v9925_v27, -inf  ;;  %v12122_v53 = vpop.f32.mrb[111].mxu1 }
 0x1c6   : > { %9679 = vmatmul.mubr.msk.bf16.gmra.mrb[216].mxu0 %vm2651_vm2, %v10398_v57  ;;  %v12146_v57 = vsel %vm6564_vm3, %v11986_v2, -inf }
 0x1c7   : > { %10031 = vmatmul.mubr.msk.bf16.gmra.mrb[216].mxu1 %vm2651_vm2, %v10399_v40  ;;  %9682 = vmatprep.mubr.msk.bf16.mxu0 %vm2651_vm2, %v10400_v49  ;;  %v12153_v40 = vsel %vm6564_vm3, %v11989_v3, -inf  ;;  %v12169_v3 = vsel %vm6564_vm3, %v12000_v4, -inf  ;;  %v12199_v4 = vsel %vm6564_vm3, %v11963_v33, -inf  ;;  %v12216_v33 = vsel %vm6564_vm3, %v11984_v54, -inf }
 0x1c8   : > { %10034 = vmatprep.mubr.msk.bf16.mxu1 %vm2651_vm2, %v10401_v29  ;;  %15453 = vst [vmem:[#allocation8_spill] sm:$0xff] %v12153_v40  ;;  %15456 = vst [vmem:[#allocation4_spill] sm:$0xff] %v12169_v3 }
 0x1c9   : > { %v9576_v62 = vpop.f32.mrb[112].mxu0 }
 0x1ca   : > { %v12149_v43 = vsel %vm6564_vm3, %v9576_v62, -inf  ;;  %v9928_v28 = vpop.f32.mrb[112].mxu1  ;;  %v4197_v25 = vpop.f32.mrb[113].mxu0 }
 0x1cb   : > { %15452 = vst [vmem:[#allocation2_spill] sm:$0xff] %v12149_v43  ;;  %v12162_v2 = vsel %vm6564_vm3, %v9928_v28, -inf  ;;  %v12165_v27 = vsel %vm6564_vm3, %v4197_v25, -inf  ;;  %v5605_v29 = vpop.f32.mrb[113].mxu1  ;;  %v9577_v62 = vpop.f32.mrb[114].mxu0 }
 0x1cc   : > { %15455 = vst [vmem:[#allocation9_spill] sm:$0xff] %v12162_v2  ;;  %v12177_v49 = vsel %vm6564_vm3, %v5605_v29, -inf  ;;  %v12180_v28 = vsel %vm6564_vm3, %v9577_v62, -inf  ;;  %v9929_v25 = vpop.f32.mrb[114].mxu1  ;;  %v4200_v41 = vpop.f32.mrb[115].mxu0  ;;  %v12212_v62 = vsel %vm6564_vm3, %v11982_v32, -inf }
 0x1cd   : > { %15457 = vst [vmem:[#allocation10_spill] sm:$0xff] %v12180_v28  ;;  %v12188_v42 = vsel %vm6564_vm3, %v9929_v25, -inf  ;;  %v12191_v45 = vsel %vm6564_vm3, %v4200_v41, -inf  ;;  %v5608_v29 = vpop.f32.mrb[115].mxu1  ;;  %v12234_v32 = vsel %vm6564_vm3, %v12021_v17, -inf  ;;  %v12241_v2 = vsel %vm6564_vm3, %v12024_v18, -inf }
 0x1ce   : > { %15458 = vst [vmem:[#allocation5_spill] sm:$0xff] %v12188_v42  ;;  %v12202_v43 = vsel %vm6564_vm3, %v5608_v29, -inf  ;;  %9683 = vmatmul.mubr.msk.bf16.gmra.mrb[220].mxu0 %vm2651_vm2, %v10402_v19  ;;  %v12220_v19 = vsel %vm6564_vm3, %v11991_v5, -inf  ;;  %v10406_v29 = vld [vmem:[%s10581_s20 + $0x388] sm:$0xff]   ;;  %15461 = vst [vmem:[#allocation16_spill] sm:$0xff] %v12234_v32 }
 0x1cf   : > { %10035 = vmatmul.mubr.msk.bf16.gmra.mrb[220].mxu1 %vm2651_vm2, %v10403_v50  ;;  %9686 = vmatprep.mubr.msk.bf16.mxu0 %vm2651_vm2, %v10404_v1  ;;  %v10407_v50 = vld [vmem:[%s10581_s20 + $0x908] sm:$0xff]   ;;  %v12226_v1 = vsel %vm6564_vm3, %v12010_v10, -inf  ;;  %15463 = vst [vmem:[#allocation17_spill] sm:$0xff] %v12241_v2 }
 0x1d0   : > { %10038 = vmatprep.mubr.msk.bf16.mxu1 %vm2651_vm2, %v10405_v15  ;;  %15459 = vst [vmem:[#allocation11_spill] sm:$0xff] %v12226_v1  ;;  %v12230_v15 = vsel %vm6564_vm3, %v12013_v47, -inf  ;;  %v10409_v1 = vld [vmem:[%s10581_s20 + $0x910] sm:$0xff]  }
 0x1d1   : > { %v9580_v25 = vpop.f32.mrb[116].mxu0  ;;  %15460 = vst [vmem:[#allocation6_spill] sm:$0xff] %v12230_v15 }
 0x1d2   : > { %v12237_v54 = vsel %vm6564_vm3, %v9580_v25, -inf  ;;  %v9932_v5 = vpop.f32.mrb[116].mxu1  ;;  %v4213_v41 = vpop.f32.mrb[117].mxu0  ;;  %v10408_v25 = vld [vmem:[%s10581_s20 + $0x390] sm:$0xff]  }
 0x1d3   : > { %15462 = vst [vmem:[#allocation7_spill] sm:$0xff] %v12237_v54  ;;  %v12246_v47 = vsel %vm6564_vm3, %v9932_v5, -inf  ;;  %v12249_v42 = vsel %vm6564_vm3, %v4213_v41, -inf  ;;  %v5621_v17 = vpop.f32.mrb[117].mxu1  ;;  %v9581_v3 = vpop.f32.mrb[118].mxu0  ;;  %v12279_v41 = vsel %vm6564_vm3, %v11995_v38, -inf }
 0x1d4   : > { %15464 = vst [vmem:[#allocation12_spill] sm:$0xff] %v12246_v47  ;;  %v12257_v18 = vsel %vm6564_vm3, %v5621_v17, -inf  ;;  %v12260_v10 = vsel %vm6564_vm3, %v9581_v3, -inf  ;;  %v9933_v5 = vpop.f32.mrb[118].mxu1  ;;  %v4216_v54 = vpop.f32.mrb[119].mxu0  ;;  %v12296_v38 = vsel %vm6564_vm3, %v12008_v21, -inf }
 0x1d5   : > { %15465 = vst [vmem:[#allocation18_spill] sm:$0xff] %v12260_v10  ;;  %v12268_v28 = vsel %vm6564_vm3, %v9933_v5, -inf  ;;  %v12271_v55 = vsel %vm6564_vm3, %v4216_v54, -inf  ;;  %v5624_v17 = vpop.f32.mrb[119].mxu1  ;;  %v12292_v5 = vsel %vm6564_vm3, %v12006_v20, -inf  ;;  %v10410_v3 = vld [vmem:[%s10581_s20 + $0x398] sm:$0xff]  }
 0x1d6   : > { %15466 = vst [vmem:[#allocation13_spill] sm:$0xff] %v12268_v28  ;;  %v12282_v40 = vsel %vm6564_vm3, %v5624_v17, -inf  ;;  %9687 = vmatmul.mubr.msk.bf16.gmra.mrb[224].mxu0 %vm2651_vm2, %v10406_v29  ;;  %v12300_v29 = vsel %vm6564_vm3, %v12015_v22, -inf  ;;  %v12310_v20 = vsel %vm6564_vm3, %v12037_v37, -inf  ;;  %v12314_v21 = vsel %vm6564_vm3, %v12045_v61, -inf }
 0x1d7   : > { %10039 = vmatmul.mubr.msk.bf16.gmra.mrb[224].mxu1 %vm2651_vm2, %v10407_v50  ;;  %9690 = vmatprep.mubr.msk.bf16.mxu0 %vm2651_vm2, %v10408_v25  ;;  %v10411_v50 = vld [vmem:[%s10581_s20 + $0x918] sm:$0xff]   ;;  %v12306_v25 = vsel %vm6564_vm3, %v12034_v46, -inf  ;;  %15468 = vst [vmem:[#allocation14_spill] sm:$0xff] %v12310_v20  ;;  %15469 = vst [vmem:[#allocation22_spill] sm:$0xff] %v12314_v21  ;;  %v12321_v47 = vsel %vm6564_vm3, %v12048_v63, -inf }
 0x1d8   : > { %10042 = vmatprep.mubr.msk.bf16.mxu1 %vm2651_vm2, %v10409_v1  ;;  %15467 = vst [vmem:[#allocation19_spill] sm:$0xff] %v12306_v25  ;;  %15471 = vst [vmem:[#allocation23_spill] sm:$0xff] %v12321_v47  ;;  %v10413_v25 = vld [vmem:[%s10581_s20 + $0x920] sm:$0xff]  }
 0x1d9   : > { %v9584_v17 = vpop.f32.mrb[120].mxu0 }
 0x1da   : > { %v12317_v1 = vsel %vm6564_vm3, %v9584_v17, -inf  ;;  %v9936_v22 = vpop.f32.mrb[120].mxu1  ;;  %v4229_v54 = vpop.f32.mrb[121].mxu0  ;;  %v10412_v17 = vld [vmem:[%s10581_s20 + $0x3a0] sm:$0xff]  }
 0x1db   : > { %15470 = vst [vmem:[#allocation15_spill] sm:$0xff] %v12317_v1  ;;  %v12326_v37 = vsel %vm6564_vm3, %v9936_v22, -inf  ;;  %v12329_v28 = vsel %vm6564_vm3, %v4229_v54, -inf  ;;  %v5637_v61 = vpop.f32.mrb[121].mxu1  ;;  %v9585_v2 = vpop.f32.mrb[122].mxu0  ;;  %v12401_v54 = vsel %vm6564_vm3, %v12072_v36, -inf }
 0x1dc   : > { %15472 = vst [vmem:[#allocation20_spill] sm:$0xff] %v12326_v37  ;;  %v12337_v63 = vsel %vm6564_vm3, %v5637_v61, -inf  ;;  %v12340_v46 = vsel %vm6564_vm3, %v9585_v2, -inf  ;;  %v9937_v22 = vpop.f32.mrb[122].mxu1  ;;  %v4232_v1 = vpop.f32.mrb[123].mxu0  ;;  %v12355_v2 = vsel %vm6564_vm3, %v12019_v12, -inf }
 0x1dd   : > { %15473 = vst [vmem:[#allocation24_spill] sm:$0xff] %v12340_v46  ;;  %v12348_v10 = vsel %vm6564_vm3, %v9937_v22, -inf  ;;  %v12351_v32 = vsel %vm6564_vm3, %v4232_v1, -inf  ;;  %v5640_v61 = vpop.f32.mrb[123].mxu1  ;;  %v12372_v12 = vsel %vm6564_vm3, %v12030_v26, -inf  ;;  %v12376_v22 = vsel %vm6564_vm3, %v12032_v52, -inf }
 0x1de   : > { %15474 = vst [vmem:[#allocation21_spill] sm:$0xff] %v12348_v10  ;;  %v12362_v15 = vsel %vm6564_vm3, %v5640_v61, -inf  ;;  %9691 = vmatmul.mubr.msk.bf16.gmra.mrb[228].mxu0 %vm2651_vm2, %v10410_v3  ;;  %v12380_v3 = vsel %vm6564_vm3, %v12039_v24, -inf  ;;  %v10414_v37 = vld [vmem:[%s10581_s20 + $0x3a8] sm:$0xff]   ;;  %v12390_v26 = vsel %vm6564_vm3, %v12061_v7, -inf  ;;  %v12394_v52 = vsel %vm6564_vm3, %v12069_v59, -inf }
 0x1df   : > { %10043 = vmatmul.mubr.msk.bf16.gmra.mrb[228].mxu1 %vm2651_vm2, %v10411_v50  ;;  %9694 = vmatprep.mubr.msk.bf16.mxu0 %vm2651_vm2, %v10412_v17  ;;  %v10415_v50 = vld [vmem:[%s10581_s20 + $0x928] sm:$0xff]   ;;  %v12386_v17 = vsel %vm6564_vm3, %v12058_v13, -inf  ;;  %15476 = vst [vmem:[#allocation26_spill] sm:$0xff] %v12390_v26  ;;  %15477 = vst [vmem:[#allocation30_spill] sm:$0xff] %v12394_v52 }
 0x1e0   : > { %10046 = vmatprep.mubr.msk.bf16.mxu1 %vm2651_vm2, %v10413_v25  ;;  %15475 = vst [vmem:[#allocation25_spill] sm:$0xff] %v12386_v17  ;;  %15479 = vst [vmem:[#allocation31_spill] sm:$0xff] %v12401_v54  ;;  %v10417_v17 = vld [vmem:[%s10581_s20 + $0x930] sm:$0xff]  }
 0x1e1   : > { %v9588_v61 = vpop.f32.mrb[124].mxu0 }
 0x1e2   : > { %v12397_v25 = vsel %vm6564_vm3, %v9588_v61, -inf  ;;  %v9940_v24 = vpop.f32.mrb[124].mxu1  ;;  %v4245_v1 = vpop.f32.mrb[125].mxu0  ;;  %v10416_v61 = vld [vmem:[%s10581_s20 + $0x3b0] sm:$0xff]  }
 0x1e3   : > { %15478 = vst [vmem:[#allocation27_spill] sm:$0xff] %v12397_v25  ;;  %v12406_v7 = vsel %vm6564_vm3, %v9940_v24, -inf  ;;  %v12409_v10 = vsel %vm6564_vm3, %v4245_v1, -inf  ;;  %v5653_v59 = vpop.f32.mrb[125].mxu1  ;;  %v9589_v47 = vpop.f32.mrb[126].mxu0  ;;  %v12481_v1 = vsel %vm6564_vm3, %v12122_v53, -inf }
 0x1e4   : > { %15480 = vst [vmem:[#allocation42_spill] sm:$0xff] %v12406_v7  ;;  %v12417_v36 = vsel %vm6564_vm3, %v5653_v59, -inf  ;;  %v12420_v13 = vsel %vm6564_vm3, %v9589_v47, -inf  ;;  %v9941_v24 = vpop.f32.mrb[126].mxu1  ;;  %v4248_v25 = vpop.f32.mrb[127].mxu0  ;;  %v12435_v47 = vsel %vm6564_vm3, %v12043_v44, -inf }
 0x1e5   : > { %15481 = vst [vmem:[#allocation28_spill] sm:$0xff] %v12420_v13  ;;  %v12428_v46 = vsel %vm6564_vm3, %v9941_v24, -inf  ;;  %v12431_v21 = vsel %vm6564_vm3, %v4248_v25, -inf  ;;  %v5656_v59 = vpop.f32.mrb[127].mxu1  ;;  %v12452_v44 = vsel %vm6564_vm3, %v12054_v58, -inf  ;;  %v12456_v24 = vsel %vm6564_vm3, %v12056_v8, -inf }
 0x1e6   : > { %15482 = vst [vmem:[#allocation32_spill] sm:$0xff] %v12428_v46  ;;  %v12442_v20 = vsel %vm6564_vm3, %v5656_v59, -inf  ;;  %9695 = vmatmul.mubr.msk.bf16.gmra.mrb[232].mxu0 %vm2651_vm2, %v10414_v37  ;;  %v12460_v37 = vsel %vm6564_vm3, %v12063_v39, -inf  ;;  %v10418_v7 = vld [vmem:[%s10581_s20 + $0x3b8] sm:$0xff]   ;;  %v12470_v58 = vsel %vm6564_vm3, %v12097_v16, -inf  ;;  %v12474_v8 = vsel %vm6564_vm3, %v12110_v0, -inf }
 0x1e7   : > { %10047 = vmatmul.mubr.msk.bf16.gmra.mrb[232].mxu1 %vm2651_vm2, %v10415_v50  ;;  %9698 = vmatprep.mubr.msk.bf16.mxu0 %vm2651_vm2, %v10416_v61  ;;  %v10419_v50 = vld [vmem:[%s10581_s20 + $0x938] sm:$0xff]   ;;  %v12466_v61 = vsel %vm6564_vm3, %v12085_v9, -inf  ;;  %15484 = vst [vmem:[#allocation33_spill] sm:$0xff] %v12470_v58  ;;  %15485 = vst [vmem:[#allocation34_spill] sm:$0xff] %v12474_v8  ;;  %v15495_v58 = vmax.f32 %v12080_v34, %v12083_v23 }
 0x1e8   : > { %10050 = vmatprep.mubr.msk.bf16.mxu1 %vm2651_vm2, %v10417_v17  ;;  %15483 = vst [vmem:[#allocation29_spill] sm:$0xff] %v12466_v61  ;;  %15487 = vst [vmem:[#allocation35_spill] sm:$0xff] %v12481_v1  ;;  %v10421_v61 = vld [vmem:[%s10581_s20 + $0x940] sm:$0xff]  }
 0x1e9   : > { %v9592_v59 = vpop.f32.mrb[128].mxu0 }
 0x1ea   : > { %v12477_v17 = vsel %vm6564_vm3, %v9592_v59, -inf  ;;  %v9944_v39 = vpop.f32.mrb[128].mxu1  ;;  %v4261_v25 = vpop.f32.mrb[129].mxu0  ;;  %v10420_v59 = vld [vmem:[%s10581_s20 + $0x3c0] sm:$0xff]  }
 0x1eb   : > { %15486 = vst [vmem:[#allocation38_spill] sm:$0xff] %v12477_v17  ;;  %v12486_v16 = vsel %vm6564_vm3, %v9944_v39, -inf  ;;  %v12489_v46 = vsel %vm6564_vm3, %v4261_v25, -inf  ;;  %v5669_v0 = vpop.f32.mrb[129].mxu1  ;;  %v9593_v54 = vpop.f32.mrb[130].mxu0  ;;  %v10422_v25 = vld [vmem:[%s10581_s20 + $0x3c8] sm:$0xff]  }
 0x1ec   : > { %15488 = vst [vmem:[#allocation39_spill] sm:$0xff] %v12486_v16  ;;  %v12497_v53 = vsel %vm6564_vm3, %v5669_v0, -inf  ;;  %v12500_v9 = vsel %vm6564_vm3, %v9593_v54, -inf  ;;  %v9945_v39 = vpop.f32.mrb[130].mxu1  ;;  %v4264_v17 = vpop.f32.mrb[131].mxu0  ;;  %v12515_v54 = vsel %vm6564_vm3, %v12067_v60, -inf }
 0x1ed   : > { %15489 = vst [vmem:[#allocation36_spill] sm:$0xff] %v12500_v9  ;;  %v12508_v13 = vsel %vm6564_vm3, %v9945_v39, -inf  ;;  %v12511_v52 = vsel %vm6564_vm3, %v4264_v17, -inf  ;;  %v5672_v0 = vpop.f32.mrb[131].mxu1  ;;  %v10423_v9 = vld [vmem:[%s10581_s20 + $0x948] sm:$0xff]  }
 0x1ee   : > { %15490 = vst [vmem:[#allocation40_spill] sm:$0xff] %v12508_v13  ;;  %v12522_v26 = vsel %vm6564_vm3, %v5672_v0, -inf  ;;  %9699 = vmatmul.mubr.msk.bf16.gmra.mrb[236].mxu0 %vm2651_vm2, %v10418_v7  ;;  %v15492_v7 = vmax.f32 %v12132_v31, %v12165_v27 }
 0x1ef   : > { %15491 = vst [vmem:[#allocation37_spill] sm:$0xff] %v12522_v26  ;;  %10051 = vmatmul.mubr.msk.bf16.gmra.mrb[236].mxu1 %vm2651_vm2, %v10419_v50  ;;  %9702 = vmatprep.mubr.msk.bf16.mxu0 %vm2651_vm2, %v10420_v59 }
 0x1f0   : > { %10054 = vmatprep.mubr.msk.bf16.mxu1 %vm2651_vm2, %v10421_v61  ;;  %v10424_v61 = vld [vmem:[%s10581_s20 + $0x3d0] sm:$0xff]  }
 0x1f1   : > { %v9596_v60 = vpop.f32.mrb[132].mxu0 }
 0x1f2   : > { %v6736_v39 = vsel %vm6564_vm3, %v9596_v60, -inf  ;;  %v9948_v16 = vpop.f32.mrb[132].mxu1  ;;  %v4277_v0 = vpop.f32.mrb[133].mxu0  ;;  %v15494_v60 = vmax.f32 %v12136_v51, %v12177_v49  ;;  %v15497_v51 = vmax.f32 %v12140_v48, %v12191_v45  ;;  %v15500_v48 = vmax.f32 %v12117_v11, %v12120_v30 }
 0x1f3   : > { %v12535_v13 = vmax.f32 %v15492_v7, %v6736_v39  ;;  %v7352_v17 = vsel %vm6564_vm3, %v9948_v16, -inf  ;;  %v6722_v50 = vsel %vm6564_vm3, %v4277_v0, -inf  ;;  %v5685_v1 = vpop.f32.mrb[133].mxu1  ;;  %v9597_v59 = vpop.f32.mrb[134].mxu0  ;;  %v10425_v0 = vld [vmem:[%s10581_s20 + $0x950] sm:$0xff]   ;;  %v15496_v7 = vmax.f32 %v12092_v14, %v12095_v6 }
 0x1f4   : > { %v12544_v8 = vmax.f32 %v15494_v60, %v7352_v17  ;;  %v12549_v26 = vmax.f32 %v15495_v58, %v6722_v50  ;;  %v7338_v31 = vsel %vm6564_vm3, %v5685_v1, -inf  ;;  %v6743_v27 = vsel %vm6564_vm3, %v9597_v59, -inf  ;;  %v9949_v16 = vpop.f32.mrb[134].mxu1  ;;  %v4280_v39 = vpop.f32.mrb[135].mxu0  ;;  %v10426_v59 = vld [vmem:[%s10581_s20 + $0x3d8] sm:$0xff]  }
 0x1f5   : > { %15493 = vst [vmem:[#allocation41_spill] sm:$0xff] %v12535_v13  ;;  %v12557_v13 = vmax.f32 %v15496_v7, %v7338_v31  ;;  %v12562_v49 = vmax.f32 %v15497_v51, %v6743_v27  ;;  %v7359_v34 = vsel %vm6564_vm3, %v9949_v16, -inf  ;;  %v6729_v23 = vsel %vm6564_vm3, %v4280_v39, -inf  ;;  %v5688_v1 = vpop.f32.mrb[135].mxu1  ;;  %v10427_v31 = vld [vmem:[%s10581_s20 + $0x958] sm:$0xff]   ;;  %v10428_v27 = vld [vmem:[%s10581_s20 + $0x3e0] sm:$0xff]  }
 0x1f6   : > { %v15498_v58 = vmax.f32 %v12199_v4, %v12202_v43  ;;  %v15499_v14 = vmax.f32 %v12105_v35, %v12108_v56  ;;  %v7345_v45 = vsel %vm6564_vm3, %v5688_v1, -inf  ;;  %9703 = vmatmul.mubr.msk.bf16.gmra.mrb[240].mxu0 %vm2651_vm2, %v10422_v25  ;;  %v15501_v25 = vmax.f32 %v12212_v62, %v12249_v42  ;;  %v10429_v1 = vld [vmem:[%s10581_s20 + $0x960] sm:$0xff]  }
 0x1f7   : > { %v12581_v50 = vmax.f32 %v15500_v48, %v7345_v45  ;;  %10055 = vmatmul.mubr.msk.bf16.gmra.mrb[240].mxu1 %vm2651_vm2, %v10423_v9  ;;  %9706 = vmatprep.mubr.msk.bf16.mxu0 %vm2651_vm2, %v10424_v61  ;;  %v15502_v16 = vmax.f32 %v12216_v33, %v12257_v18  ;;  %v15508_v33 = vmax.f32 %v12220_v19, %v12271_v55  ;;  %v15513_v19 = vld [vmem:[#allocation4_spill] sm:$0xff] }
 0x1f8   : > { %v12569_v17 = vmax.f32 %v15498_v58, %v7359_v34  ;;  %v12574_v6 = vmax.f32 %v15499_v14, %v6729_v23  ;;  %10058 = vmatprep.mubr.msk.bf16.mxu1 %vm2651_vm2, %v10425_v0  ;;  %v15503_v0 = vld [vmem:[#allocation2_spill] sm:$0xff]  ;;  %v15505_v58 = vld [vmem:[#allocation8_spill] sm:$0xff]  ;;  %v15506_v14 = vld [vmem:[#allocation9_spill] sm:$0xff] }
 0x1f9   : > { %v9600_v35 = vpop.f32.mrb[136].mxu0  ;;  %v15504_v7 = vmax.f32 %v12146_v57, %v15503_v0  ;;  %v15507_v45 = vmax.f32 %v15505_v58, %v15506_v14  ;;  %v10431_v14 = vld [vmem:[%s10581_s20 + $0x968] sm:$0xff]  }
 0x1fa   : > { %v6764_v56 = vsel %vm6564_vm3, %v9600_v35, -inf  ;;  %v9952_v43 = vpop.f32.mrb[136].mxu1  ;;  %v4293_v4 = vpop.f32.mrb[137].mxu0 }
 0x1fb   : > { %v12591_v11 = vmax.f32 %v15501_v25, %v6764_v56  ;;  %v7380_v30 = vsel %vm6564_vm3, %v9952_v43, -inf  ;;  %v6750_v9 = vsel %vm6564_vm3, %v4293_v4, -inf  ;;  %v5701_v60 = vpop.f32.mrb[137].mxu1  ;;  %v9601_v61 = vpop.f32.mrb[138].mxu0  ;;  %v15509_v43 = vmax.f32 %v12279_v41, %v12282_v40  ;;  %v15510_v25 = vld [vmem:[#allocation3_spill] sm:$0xff] }
 0x1fc   : > { %v12600_v39 = vmax.f32 %v15502_v16, %v7380_v30  ;;  %v12605_v51 = vmax.f32 %v15504_v7, %v6750_v9  ;;  %v7366_v42 = vsel %vm6564_vm3, %v5701_v60, -inf  ;;  %v6771_v62 = vsel %vm6564_vm3, %v9601_v61, -inf  ;;  %v9953_v34 = vpop.f32.mrb[138].mxu1  ;;  %v4296_v23 = vpop.f32.mrb[139].mxu0  ;;  %v15511_v30 = vld [vmem:[#allocation10_spill] sm:$0xff]  ;;  %v15514_v61 = vld [vmem:[#allocation5_spill] sm:$0xff] }
 0x1fd   : > { %v12613_v48 = vmax.f32 %v15507_v45, %v7366_v42  ;;  %v12618_v18 = vmax.f32 %v15508_v33, %v6771_v62  ;;  %v7387_v57 = vsel %vm6564_vm3, %v9953_v34, -inf  ;;  %v6757_v35 = vsel %vm6564_vm3, %v4296_v23, -inf  ;;  %v5704_v56 = vpop.f32.mrb[139].mxu1  ;;  %v10430_v62 = vld [vmem:[%s10581_s20 + $0x3e8] sm:$0xff]  }
 0x1fe   : > { %v12625_v4 = vmax.f32 %v15509_v43, %v7387_v57  ;;  %v15512_v9 = vmax.f32 %v15510_v25, %v15511_v30  ;;  %v7373_v55 = vsel %vm6564_vm3, %v5704_v56, -inf  ;;  %9707 = vmatmul.mubr.msk.bf16.gmra.mrb[244].mxu0 %vm2651_vm2, %v10426_v59  ;;  %v15515_v16 = vmax.f32 %v15513_v19, %v15514_v61  ;;  %v15518_v57 = vld [vmem:[#allocation11_spill] sm:$0xff]  ;;  %v15522_v19 = vld [vmem:[#allocation12_spill] sm:$0xff] }
 0x1ff   : > { %10059 = vmatmul.mubr.msk.bf16.gmra.mrb[244].mxu1 %vm2651_vm2, %v10427_v31  ;;  %9710 = vmatprep.mubr.msk.bf16.mxu0 %vm2651_vm2, %v10428_v27  ;;  %v15516_v59 = vmax.f32 %v12292_v5, %v12329_v28  ;;  %v15517_v45 = vmax.f32 %v12296_v38, %v12337_v63  ;;  %v15524_v38 = vmax.f32 %v12300_v29, %v12351_v32  ;;  %v15529_v29 = vld [vmem:[#allocation17_spill] sm:$0xff] }
 0x200   : > { %v12630_v60 = vmax.f32 %v15512_v9, %v6757_v35  ;;  %v12637_v0 = vmax.f32 %v15515_v16, %v7373_v55  ;;  %10062 = vmatprep.mubr.msk.bf16.mxu1 %vm2651_vm2, %v10429_v1  ;;  %v10432_v1 = vld [vmem:[%s10581_s20 + $0x3f0] sm:$0xff]   ;;  %v15519_v35 = vld [vmem:[#allocation7_spill] sm:$0xff]  ;;  %v15521_v55 = vld [vmem:[#allocation6_spill] sm:$0xff] }
 0x201   : > { %v9604_v40 = vpop.f32.mrb[140].mxu0  ;;  %v15520_v56 = vmax.f32 %v15518_v57, %v15519_v35  ;;  %v10433_v9 = vld [vmem:[%s10581_s20 + $0x970] sm:$0xff]   ;;  %v15523_v61 = vmax.f32 %v15521_v55, %v15522_v19  ;;  %v10435_v19 = vld [vmem:[%s10581_s20 + $0x978] sm:$0xff]  }
 0x202   : > { %v6792_v41 = vsel %vm6564_vm3, %v9604_v40, -inf  ;;  %v9956_v7 = vpop.f32.mrb[140].mxu1  ;;  %v4309_v42 = vpop.f32.mrb[141].mxu0 }
 0x203   : > { %v12647_v34 = vmax.f32 %v15516_v59, %v6792_v41  ;;  %v7408_v23 = vsel %vm6564_vm3, %v9956_v7, -inf  ;;  %v6778_v31 = vsel %vm6564_vm3, %v4309_v42, -inf  ;;  %v5717_v58 = vpop.f32.mrb[141].mxu1  ;;  %v9605_v27 = vpop.f32.mrb[142].mxu0  ;;  %v15525_v42 = vmax.f32 %v12355_v2, %v12362_v15 }
 0x204   : > { %v12656_v33 = vmax.f32 %v15517_v45, %v7408_v23  ;;  %v12661_v43 = vmax.f32 %v15520_v56, %v6778_v31  ;;  %v7394_v28 = vsel %vm6564_vm3, %v5717_v58, -inf  ;;  %v6799_v5 = vsel %vm6564_vm3, %v9605_v27, -inf  ;;  %v9957_v25 = vpop.f32.mrb[142].mxu1  ;;  %v4312_v30 = vpop.f32.mrb[143].mxu0  ;;  %v15526_v23 = vld [vmem:[#allocation16_spill] sm:$0xff]  ;;  %v15527_v31 = vld [vmem:[#allocation18_spill] sm:$0xff] }
 0x205   : > { %v12669_v16 = vmax.f32 %v15523_v61, %v7394_v28  ;;  %v12674_v63 = vmax.f32 %v15524_v38, %v6799_v5  ;;  %v7415_v40 = vsel %vm6564_vm3, %v9957_v25, -inf  ;;  %v6785_v41 = vsel %vm6564_vm3, %v4312_v30, -inf  ;;  %v5720_v7 = vpop.f32.mrb[143].mxu1  ;;  %v15530_v45 = vld [vmem:[#allocation13_spill] sm:$0xff] }
 0x206   : > { %v12681_v59 = vmax.f32 %v15525_v42, %v7415_v40  ;;  %v15528_v58 = vmax.f32 %v15526_v23, %v15527_v31  ;;  %v7401_v32 = vsel %vm6564_vm3, %v5720_v7, -inf  ;;  %9711 = vmatmul.mubr.msk.bf16.gmra.mrb[248].mxu0 %vm2651_vm2, %v10430_v62  ;;  %v15531_v57 = vmax.f32 %v15529_v29, %v15530_v45  ;;  %v10434_v5 = vld [vmem:[%s10581_s20 + $0x3f8] sm:$0xff]   ;;  %v15534_v40 = vld [vmem:[#allocation19_spill] sm:$0xff]  ;;  %v15538_v29 = vld [vmem:[#allocation20_spill] sm:$0xff] }
 0x207   : > { %10063 = vmatmul.mubr.msk.bf16.gmra.mrb[248].mxu1 %vm2651_vm2, %v10431_v14  ;;  %9714 = vmatprep.mubr.msk.bf16.mxu0 %vm2651_vm2, %v10432_v1  ;;  %v15532_v62 = vmax.f32 %v12372_v12, %v12409_v10  ;;  %v15533_v61 = vmax.f32 %v12376_v22, %v12417_v36  ;;  %v15540_v22 = vmax.f32 %v12380_v3, %v12431_v21  ;;  %v15545_v3 = vld [vmem:[#allocation23_spill] sm:$0xff] }
 0x208   : > { %v12686_v27 = vmax.f32 %v15528_v58, %v6785_v41  ;;  %v12693_v35 = vmax.f32 %v15531_v57, %v7401_v32  ;;  %10066 = vmatprep.mubr.msk.bf16.mxu1 %vm2651_vm2, %v10433_v9  ;;  %v10436_v9 = vld [vmem:[%s10581_s20 + $0x400] sm:$0xff]   ;;  %v15535_v41 = vld [vmem:[#allocation15_spill] sm:$0xff] }
 0x209   : > { %v9608_v15 = vpop.f32.mrb[144].mxu0  ;;  %v15536_v7 = vmax.f32 %v15534_v40, %v15535_v41  ;;  %v10437_v58 = vld [vmem:[%s10581_s20 + $0x980] sm:$0xff]  }
 0x20a   : > { %v6820_v2 = vsel %vm6564_vm3, %v9608_v15, -inf  ;;  %v9960_v56 = vpop.f32.mrb[144].mxu1  ;;  %v4325_v28 = vpop.f32.mrb[145].mxu0  ;;  %v15537_v32 = vld [vmem:[#allocation14_spill] sm:$0xff] }
 0x20b   : > { %v12703_v25 = vmax.f32 %v15532_v62, %v6820_v2  ;;  %v7436_v30 = vsel %vm6564_vm3, %v9960_v56, -inf  ;;  %v6806_v14 = vsel %vm6564_vm3, %v4325_v28, -inf  ;;  %v5733_v55 = vpop.f32.mrb[145].mxu1  ;;  %v9609_v1 = vpop.f32.mrb[146].mxu0  ;;  %v15539_v45 = vmax.f32 %v15537_v32, %v15538_v29  ;;  %v10439_v29 = vld [vmem:[%s10581_s20 + $0x988] sm:$0xff]  }
 0x20c   : > { %v12712_v38 = vmax.f32 %v15533_v61, %v7436_v30  ;;  %v12717_v42 = vmax.f32 %v15536_v7, %v6806_v14  ;;  %v7422_v10 = vsel %vm6564_vm3, %v5733_v55, -inf  ;;  %v6827_v12 = vsel %vm6564_vm3, %v9609_v1, -inf  ;;  %v9961_v23 = vpop.f32.mrb[146].mxu1  ;;  %v4328_v31 = vpop.f32.mrb[147].mxu0  ;;  %v15542_v30 = vld [vmem:[#allocation22_spill] sm:$0xff]  ;;  %v15543_v14 = vld [vmem:[#allocation24_spill] sm:$0xff] }
 0x20d   : > { %v12725_v57 = vmax.f32 %v15539_v45, %v7422_v10  ;;  %v12730_v36 = vmax.f32 %v15540_v22, %v6827_v12  ;;  %v7443_v15 = vsel %vm6564_vm3, %v9961_v23, -inf  ;;  %v6813_v2 = vsel %vm6564_vm3, %v4328_v31, -inf  ;;  %v5736_v56 = vpop.f32.mrb[147].mxu1  ;;  %v15546_v61 = vld [vmem:[#allocation21_spill] sm:$0xff]  ;;  %v10438_v12 = vld [vmem:[%s10581_s20 + $0x408] sm:$0xff]  }
 0x20e   : > { %v15541_v28 = vmax.f32 %v12435_v47, %v12442_v20  ;;  %v15544_v55 = vmax.f32 %v15542_v30, %v15543_v14  ;;  %v7429_v21 = vsel %vm6564_vm3, %v5736_v56, -inf  ;;  %9715 = vmatmul.mubr.msk.bf16.gmra.mrb[252].mxu0 %vm2651_vm2, %v10434_v5  ;;  %v15547_v40 = vmax.f32 %v15545_v3, %v15546_v61  ;;  %v15554_v3 = vld [vmem:[#allocation42_spill] sm:$0xff] }
 0x20f   : > { %10067 = vmatmul.mubr.msk.bf16.gmra.mrb[252].mxu1 %vm2651_vm2, %v10435_v19  ;;  %9718 = vmatprep.mubr.msk.bf16.mxu0 %vm2651_vm2, %v10436_v9  ;;  %v15548_v5 = vmax.f32 %v12452_v44, %v12489_v46  ;;  %v15549_v45 = vmax.f32 %v12456_v24, %v12497_v53  ;;  %v15556_v24 = vmax.f32 %v12460_v37, %v12511_v52  ;;  %v15562_v37 = vld [vmem:[#allocation31_spill] sm:$0xff] }
 0x210   : > { %v12737_v62 = vmax.f32 %v15541_v28, %v7443_v15  ;;  %v12742_v1 = vmax.f32 %v15544_v55, %v6813_v2  ;;  %v12749_v41 = vmax.f32 %v15547_v40, %v7429_v21  ;;  %10070 = vmatprep.mubr.msk.bf16.mxu1 %vm2651_vm2, %v10437_v58  ;;  %v10440_v58 = vld [vmem:[%s10581_s20 + $0x410] sm:$0xff]   ;;  %v15550_v15 = vld [vmem:[#allocation25_spill] sm:$0xff]  ;;  %v15551_v2 = vld [vmem:[#allocation27_spill] sm:$0xff] }
 0x211   : > { %v9612_v20 = vpop.f32.mrb[148].mxu0  ;;  %v15552_v56 = vmax.f32 %v15550_v15, %v15551_v2  ;;  %v10441_v55 = vld [vmem:[%s10581_s20 + $0x990] sm:$0xff]   ;;  %v15553_v21 = vld [vmem:[#allocation26_spill] sm:$0xff] }
 0x212   : > { %v6848_v47 = vsel %vm6564_vm3, %v9612_v20, -inf  ;;  %v9964_v7 = vpop.f32.mrb[148].mxu1  ;;  %v4341_v10 = vpop.f32.mrb[149].mxu0  ;;  %v15555_v61 = vmax.f32 %v15553_v21, %v15554_v3  ;;  %v15563_v15 = vld [vmem:[#allocation32_spill] sm:$0xff] }
 0x213   : > { %v12759_v23 = vmax.f32 %v15548_v5, %v6848_v47  ;;  %v7464_v31 = vsel %vm6564_vm3, %v9964_v7, -inf  ;;  %v6834_v19 = vsel %vm6564_vm3, %v4341_v10, -inf  ;;  %v5749_v32 = vpop.f32.mrb[149].mxu1  ;;  %v9613_v9 = vpop.f32.mrb[150].mxu0  ;;  %v15557_v10 = vld [vmem:[#allocation37_spill] sm:$0xff]  ;;  %v15564_v2 = vmax.f32 %v15562_v37, %v15563_v15  ;;  %v15569_v15 = vld [vmem:[#allocation39_spill] sm:$0xff] }
 0x214   : > { %v12768_v22 = vmax.f32 %v15549_v45, %v7464_v31  ;;  %v12773_v28 = vmax.f32 %v15552_v56, %v6834_v19  ;;  %v7450_v46 = vsel %vm6564_vm3, %v5749_v32, -inf  ;;  %v6855_v44 = vsel %vm6564_vm3, %v9613_v9, -inf  ;;  %v9965_v30 = vpop.f32.mrb[150].mxu1  ;;  %v4344_v14 = vpop.f32.mrb[151].mxu0  ;;  %v15559_v19 = vld [vmem:[#allocation30_spill] sm:$0xff]  ;;  %v15560_v32 = vld [vmem:[#allocation28_spill] sm:$0xff] }
 0x215   : > { %v12781_v40 = vmax.f32 %v15555_v61, %v7450_v46  ;;  %v12786_v53 = vmax.f32 %v15556_v24, %v6855_v44  ;;  %v7471_v20 = vsel %vm6564_vm3, %v9965_v30, -inf  ;;  %v6841_v47 = vsel %vm6564_vm3, %v4344_v14, -inf  ;;  %v5752_v7 = vpop.f32.mrb[151].mxu1  ;;  %v10442_v14 = vld [vmem:[%s10581_s20 + $0x418] sm:$0xff]  }
 0x216   : > { %v15558_v5 = vmax.f32 %v12515_v54, %v15557_v10  ;;  %v15561_v9 = vmax.f32 %v15559_v19, %v15560_v32  ;;  %v7457_v52 = vsel %vm6564_vm3, %v5752_v7, -inf  ;;  %9719 = vmatmul.mubr.msk.bf16.gmra.mrb[0].mxu0 %vm2651_vm2, %v10438_v12 }
 0x217   : > { %v12805_v56 = vmax.f32 %v15564_v2, %v7457_v52  ;;  %10071 = vmatmul.mubr.msk.bf16.gmra.mrb[0].mxu1 %vm2651_vm2, %v10439_v29  ;;  %9722 = vmatprep.mubr.msk.bf16.mxu0 %vm2651_vm2, %v10440_v58  ;;  %v10443_v29 = vld [vmem:[%s10581_s20 + $0x998] sm:$0xff]   ;;  %v12829_v52 = vld [vmem:[%s15166_s2] ss:$0 sm:$0xff] }
 0x218   : > { %v12793_v31 = vmax.f32 %v15558_v5, %v7471_v20  ;;  %v12798_v45 = vmax.f32 %v15561_v9, %v6841_v47  ;;  %10074 = vmatprep.mubr.msk.bf16.mxu1 %vm2651_vm2, %v10441_v55  ;;  %v10444_v20 = vld [vmem:[%s10581_s20 + $0x420] sm:$0xff]   ;;  %v15565_v55 = vld [vmem:[#allocation29_spill] sm:$0xff] }
 0x219   : > { %v9616_v54 = vpop.f32.mrb[152].mxu0  ;;  %v15566_v47 = vld [vmem:[#allocation38_spill] sm:$0xff] }
 0x21a   : > { %v6724_v46 = vsel %vm6564_vm3, %v9616_v54, -inf  ;;  %v9968_v44 = vpop.f32.mrb[152].mxu1  ;;  %v4357_v30 = vpop.f32.mrb[153].mxu0  ;;  %v15567_v7 = vmax.f32 %v15565_v55, %v15566_v47  ;;  %v10445_v9 = vld [vmem:[%s10581_s20 + $0x9a0] sm:$0xff]  }
 0x21b   : > { %v6725_v12 = vmax.f32 %v12549_v26, %v6724_v46  ;;  %v7340_v21 = vsel %vm6564_vm3, %v9968_v44, -inf  ;;  %v6862_v3 = vsel %vm6564_vm3, %v4357_v30, -inf  ;;  %v5765_v61 = vpop.f32.mrb[153].mxu1  ;;  %v9617_v24 = vpop.f32.mrb[154].mxu0  ;;  %v15571_v47 = vld [vmem:[#allocation34_spill] sm:$0xff] }
 0x21c   : > { %v7341_v58 = vmax.f32 %v12557_v13, %v7340_v21  ;;  %v12821_v10 = vmax.f32 %v15567_v7, %v6862_v3  ;;  %v7478_v5 = vsel %vm6564_vm3, %v5765_v61, -inf  ;;  %v6731_v19 = vsel %vm6564_vm3, %v9617_v24, -inf  ;;  %v9969_v26 = vpop.f32.mrb[154].mxu1  ;;  %v4360_v32 = vpop.f32.mrb[155].mxu0  ;;  %v15568_v13 = vld [vmem:[#allocation33_spill] sm:$0xff] }
 0x21d   : > { %v7826_v37 = vadd.f32 %v12829_v52, %v6725_v12  ;;  %v15570_v2 = vmax.f32 %v15568_v13, %v15569_v15  ;;  %v6732_v46 = vmax.f32 %v12574_v6, %v6731_v19  ;;  %v7347_v44 = vsel %vm6564_vm3, %v9969_v26, -inf  ;;  %v5768_v30 = vpop.f32.mrb[155].mxu1  ;;  %v15572_v6 = vld [vmem:[#allocation36_spill] sm:$0xff]  ;;  %v15574_v19 = vld [vmem:[#allocation35_spill] sm:$0xff] }
 0x21e   : > { %v7914_v21 = vadd.f32 %v12829_v52, %v7341_v58  ;;  %v7348_v3 = vmax.f32 %v12581_v50, %v7347_v44  ;;  %v6869_v61 = vsel %vm6564_vm3, %v4360_v32, -inf  ;;  %v7485_v12 = vsel %vm6564_vm3, %v5768_v30, -inf  ;;  %9723 = vmatmul.mubr.msk.bf16.gmra.mrb[4].mxu0 %vm2651_vm2, %v10442_v14  ;;  %v15575_v58 = vld [vmem:[#allocation40_spill] sm:$0xff] }
 0x21f   : > { %v12835_v54 = vmax.f32 %v15570_v2, %v7478_v5  ;;  %v8002_v24 = vmax.f32 %v7826_v37, 0.0  ;;  %v7827_v55 = vadd.f32 %v12829_v52, %v6732_v46  ;;  %v15573_v7 = vmax.f32 %v15571_v47, %v15572_v6  ;;  %10075 = vmatmul.mubr.msk.bf16.gmra.mrb[4].mxu1 %vm2651_vm2, %v10443_v29  ;;  %9726 = vmatprep.mubr.msk.bf16.mxu0 %vm2651_vm2, %v10444_v20  ;;  %v10446_v20 = vld [vmem:[%s10581_s20 + $0x428] sm:$0xff]  }
 0x220   : > { %v15576_v26 = vmax.f32 %v15574_v19, %v15575_v58  ;;  %v8090_v14 = vmax.f32 %v7914_v21, 0.0  ;;  %v7915_v32 = vadd.f32 %v12829_v52, %v7348_v3  ;;  %10078 = vmatprep.mubr.msk.bf16.mxu1 %vm2651_vm2, %v10445_v9  ;;  %v10449_v58 = vld [vmem:[%s10581_s20 + $0x9b0] sm:$0xff]  }
 0x221   : > { %v12848_v5 = vmax.f32 %v15573_v7, %v6869_v61  ;;  %8178 = vst.msk [vmem:[%s11688_s26 + $0xb0] sm:$0xff] %vm6564_vm3, %v8002_v24  ;;  %v8003_v37 = vmax.f32 %v7827_v55, 0.0  ;;  %v9620_v13 = vpop.f32.mrb[156].mxu0  ;;  %v10447_v61 = vld [vmem:[%s10581_s20 + $0x9a8] sm:$0xff]   ;;  %v15577_v55 = vld [vmem:[#allocation41_spill] sm:$0xff] }
 0x222   : > { %v12853_v50 = vmax.f32 %v15576_v26, %v7485_v12  ;;  %8266 = vst.msk [vmem:[%s11688_s26 + $0x370] sm:$0xff] %vm6564_vm3, %v8090_v14  ;;  %v8091_v15 = vmax.f32 %v7915_v32, 0.0  ;;  %v6752_v2 = vsel %vm6564_vm3, %v9620_v13, -inf  ;;  %v9972_v29 = vpop.f32.mrb[156].mxu1  ;;  %v4373_v46 = vpop.f32.mrb[157].mxu0  ;;  %v10448_v12 = vld [vmem:[%s10581_s20 + $0x430] sm:$0xff]  }
 0x223   : > { %8179 = vst.msk [vmem:[%s11688_s26 + $0xb8] sm:$0xff] %vm6564_vm3, %v8003_v37  ;;  %v6753_v9 = vmax.f32 %v12605_v51, %v6752_v2  ;;  %v7368_v44 = vsel %vm6564_vm3, %v9972_v29, -inf  ;;  %v6738_v30 = vsel %vm6564_vm3, %v4373_v46, -inf  ;;  %v5781_v21 = vpop.f32.mrb[157].mxu1  ;;  %v9621_v3 = vpop.f32.mrb[158].mxu0 }
 0x224   : > { %8267 = vst.msk [vmem:[%s11688_s26 + $0x378] sm:$0xff] %vm6564_vm3, %v8091_v15  ;;  %v7369_v24 = vmax.f32 %v12613_v48, %v7368_v44  ;;  %v6739_v47 = vmax.f32 %v15577_v55, %v6738_v30  ;;  %v7354_v6 = vsel %vm6564_vm3, %v5781_v21, -inf  ;;  %v6759_v7 = vsel %vm6564_vm3, %v9621_v3, -inf  ;;  %v9973_v19 = vpop.f32.mrb[158].mxu1  ;;  %v4376_v51 = vpop.f32.mrb[159].mxu0 }
 0x225   : > { %v7830_v26 = vadd.f32 %v12829_v52, %v6753_v9  ;;  %v7355_v14 = vmax.f32 %v12544_v8, %v7354_v6  ;;  %v6760_v32 = vmax.f32 %v12630_v60, %v6759_v7  ;;  %v7375_v37 = vsel %vm6564_vm3, %v9973_v19, -inf  ;;  %v5784_v13 = vpop.f32.mrb[159].mxu1  ;;  %v10450_v7 = vld [vmem:[%s10581_s20 + $0x438] sm:$0xff]  }
 0x226   : > { %v7918_v48 = vadd.f32 %v12829_v52, %v7369_v24  ;;  %v7828_v15 = vadd.f32 %v12829_v52, %v6739_v47  ;;  %v7376_v2 = vmax.f32 %v12637_v0, %v7375_v37  ;;  %v6745_v29 = vsel %vm6564_vm3, %v4376_v51, -inf  ;;  %9727 = vmatmul.mubr.msk.bf16.gmra.mrb[8].mxu0 %vm2651_vm2, %v10446_v20  ;;  %v10452_v37 = vld [vmem:[%s10581_s20 + $0x440] sm:$0xff]  }
 0x227   : > { %v8006_v46 = vmax.f32 %v7830_v26, 0.0  ;;  %v7916_v9 = vadd.f32 %v12829_v52, %v7355_v14  ;;  %v7831_v8 = vadd.f32 %v12829_v52, %v6760_v32  ;;  %v6746_v60 = vmax.f32 %v12562_v49, %v6745_v29  ;;  %10079 = vmatmul.mubr.msk.bf16.gmra.mrb[8].mxu1 %vm2651_vm2, %v10447_v61  ;;  %9730 = vmatprep.mubr.msk.bf16.mxu0 %vm2651_vm2, %v10448_v12  ;;  %v10451_v32 = vld [vmem:[%s10581_s20 + $0x9b8] sm:$0xff]  }
 0x228   : > { %v8094_v44 = vmax.f32 %v7918_v48, 0.0  ;;  %v8004_v30 = vmax.f32 %v7828_v15, 0.0  ;;  %v7919_v0 = vadd.f32 %v12829_v52, %v7376_v2  ;;  %v7361_v20 = vsel %vm6564_vm3, %v5784_v13, -inf  ;;  %10082 = vmatprep.mubr.msk.bf16.mxu1 %vm2651_vm2, %v10449_v58 }
 0x229   : > { %8182 = vst.msk [vmem:[%s11688_s26 + $0xd0] sm:$0xff] %vm6564_vm3, %v8006_v46  ;;  %v8092_v21 = vmax.f32 %v7916_v9, 0.0  ;;  %v8007_v3 = vmax.f32 %v7831_v8, 0.0  ;;  %v7829_v49 = vadd.f32 %v12829_v52, %v6746_v60  ;;  %v7362_v61 = vmax.f32 %v12569_v17, %v7361_v20  ;;  %v9624_v12 = vpop.f32.mrb[160].mxu0 }
 0x22a   : > { %8270 = vst.msk [vmem:[%s11688_s26 + $0x390] sm:$0xff] %vm6564_vm3, %v8094_v44  ;;  %8180 = vst.msk [vmem:[%s11688_s26 + $0xc0] sm:$0xff] %vm6564_vm3, %v8004_v30  ;;  %v8095_v24 = vmax.f32 %v7919_v0, 0.0  ;;  %v6780_v55 = vsel %vm6564_vm3, %v9624_v12, -inf  ;;  %v9976_v47 = vpop.f32.mrb[160].mxu1  ;;  %v4389_v6 = vpop.f32.mrb[161].mxu0 }
 0x22b   : > { %8268 = vst.msk [vmem:[%s11688_s26 + $0x380] sm:$0xff] %vm6564_vm3, %v8092_v21  ;;  %8183 = vst.msk [vmem:[%s11688_s26 + $0xd8] sm:$0xff] %vm6564_vm3, %v8007_v3  ;;  %v8005_v17 = vmax.f32 %v7829_v49, 0.0  ;;  %v7917_v19 = vadd.f32 %v12829_v52, %v7362_v61  ;;  %v6781_v51 = vmax.f32 %v12661_v43, %v6780_v55  ;;  %v7396_v58 = vsel %vm6564_vm3, %v9976_v47, -inf  ;;  %v5797_v26 = vpop.f32.mrb[161].mxu1  ;;  %v9625_v14 = vpop.f32.mrb[162].mxu0 }
 0x22c   : > { %8271 = vst.msk [vmem:[%s11688_s26 + $0x398] sm:$0xff] %vm6564_vm3, %v8095_v24  ;;  %v7397_v13 = vmax.f32 %v12669_v16, %v7396_v58  ;;  %v6766_v48 = vsel %vm6564_vm3, %v4389_v6, -inf  ;;  %v7382_v15 = vsel %vm6564_vm3, %v5797_v26, -inf  ;;  %v6787_v2 = vsel %vm6564_vm3, %v9625_v14, -inf  ;;  %v9977_v29 = vpop.f32.mrb[162].mxu1  ;;  %v4392_v46 = vpop.f32.mrb[163].mxu0 }
 0x22d   : > { %v10453_v43 = vld [vmem:[%s10581_s20 + $0x9c0] sm:$0xff]   ;;  %8181 = vst.msk [vmem:[%s11688_s26 + $0xc8] sm:$0xff] %vm6564_vm3, %v8005_v17  ;;  %v8093_v9 = vmax.f32 %v7917_v19, 0.0  ;;  %v7834_v8 = vadd.f32 %v12829_v52, %v6781_v51  ;;  %v6767_v60 = vmax.f32 %v12591_v11, %v6766_v48  ;;  %v7383_v44 = vmax.f32 %v12600_v39, %v7382_v15  ;;  %v5800_v16 = vpop.f32.mrb[163].mxu1  ;;  %v10454_v26 = vld [vmem:[%s10581_s20 + $0x448] sm:$0xff]  }
 0x22e   : > { %v7922_v30 = vadd.f32 %v12829_v52, %v7397_v13  ;;  %v6788_v0 = vmax.f32 %v12686_v27, %v6787_v2  ;;  %v7403_v20 = vsel %vm6564_vm3, %v9977_v29, -inf  ;;  %v6773_v21 = vsel %vm6564_vm3, %v4392_v46, -inf  ;;  %9731 = vmatmul.mubr.msk.bf16.gmra.mrb[12].mxu0 %vm2651_vm2, %v10450_v7  ;;  %v10455_v15 = vld [vmem:[%s10581_s20 + $0x9c8] sm:$0xff]   ;;  %v10456_v2 = vld [vmem:[%s10581_s20 + $0x450] sm:$0xff]  }
 0x22f   : > { %8269 = vst.msk [vmem:[%s11688_s26 + $0x388] sm:$0xff] %vm6564_vm3, %v8093_v9  ;;  %v8010_v3 = vmax.f32 %v7834_v8, 0.0  ;;  %v7832_v49 = vadd.f32 %v12829_v52, %v6767_v60  ;;  %v7920_v11 = vadd.f32 %v12829_v52, %v7383_v44  ;;  %v7404_v39 = vmax.f32 %v12693_v35, %v7403_v20  ;;  %10083 = vmatmul.mubr.msk.bf16.gmra.mrb[12].mxu1 %vm2651_vm2, %v10451_v32 }
 0x230   : > { %9734 = vmatprep.mubr.msk.bf16.mxu0 %vm2651_vm2, %v10452_v37  ;;  %v8098_v27 = vmax.f32 %v7922_v30, 0.0  ;;  %v7835_v61 = vadd.f32 %v12829_v52, %v6788_v0  ;;  %v6774_v12 = vmax.f32 %v12618_v18, %v6773_v21  ;;  %v7389_v24 = vsel %vm6564_vm3, %v5800_v16, -inf  ;;  %10086 = vmatprep.mubr.msk.bf16.mxu1 %vm2651_vm2, %v10453_v43 }
 0x231   : > { %8186 = vst.msk [vmem:[%s11688_s26 + $0xf0] sm:$0xff] %vm6564_vm3, %v8010_v3  ;;  %v8008_v55 = vmax.f32 %v7832_v49, 0.0  ;;  %v8096_v35 = vmax.f32 %v7920_v11, 0.0  ;;  %v7923_v47 = vadd.f32 %v12829_v52, %v7404_v39  ;;  %v7390_v6 = vmax.f32 %v12625_v4, %v7389_v24  ;;  %v9628_v7 = vpop.f32.mrb[164].mxu0 }
 0x232   : > { %8274 = vst.msk [vmem:[%s11688_s26 + $0x3b0] sm:$0xff] %vm6564_vm3, %v8098_v27  ;;  %v8011_v18 = vmax.f32 %v7835_v61, 0.0  ;;  %v7833_v17 = vadd.f32 %v12829_v52, %v6774_v12  ;;  %v6808_v19 = vsel %vm6564_vm3, %v9628_v7, -inf  ;;  %v9980_v51 = vpop.f32.mrb[164].mxu1  ;;  %v4405_v58 = vpop.f32.mrb[165].mxu0 }
 0x233   : > { %8184 = vst.msk [vmem:[%s11688_s26 + $0xe0] sm:$0xff] %vm6564_vm3, %v8008_v55  ;;  %8272 = vst.msk [vmem:[%s11688_s26 + $0x3a0] sm:$0xff] %vm6564_vm3, %v8096_v35  ;;  %v8099_v4 = vmax.f32 %v7923_v47, 0.0  ;;  %v7921_v14 = vadd.f32 %v12829_v52, %v7390_v6  ;;  %v6809_v32 = vmax.f32 %v12717_v42, %v6808_v19  ;;  %v7424_v37 = vsel %vm6564_vm3, %v9980_v51, -inf  ;;  %v5813_v13 = vpop.f32.mrb[165].mxu1  ;;  %v9629_v48 = vpop.f32.mrb[166].mxu0 }
 0x234   : > { %8187 = vst.msk [vmem:[%s11688_s26 + $0xf8] sm:$0xff] %vm6564_vm3, %v8011_v18  ;;  %v8009_v29 = vmax.f32 %v7833_v17, 0.0  ;;  %v7425_v46 = vmax.f32 %v12725_v57, %v7424_v37  ;;  %v6794_v43 = vsel %vm6564_vm3, %v4405_v58, -inf  ;;  %v7410_v9 = vsel %vm6564_vm3, %v5813_v13, -inf  ;;  %v9981_v8 = vpop.f32.mrb[166].mxu1  ;;  %v4408_v60 = vpop.f32.mrb[167].mxu0 }
 0x235   : > { %v10457_v42 = vld [vmem:[%s10581_s20 + $0x9d0] sm:$0xff]   ;;  %8275 = vst.msk [vmem:[%s11688_s26 + $0x3b8] sm:$0xff] %vm6564_vm3, %v8099_v4  ;;  %v8097_v44 = vmax.f32 %v7921_v14, 0.0  ;;  %v7838_v16 = vadd.f32 %v12829_v52, %v6809_v32  ;;  %v6795_v30 = vmax.f32 %v12647_v34, %v6794_v43  ;;  %v7411_v0 = vmax.f32 %v12656_v33, %v7410_v9  ;;  %v5816_v20 = vpop.f32.mrb[167].mxu1  ;;  %v10458_v19 = vld [vmem:[%s10581_s20 + $0x458] sm:$0xff]   ;;  %v10460_v37 = vld [vmem:[%s10581_s20 + $0x460] sm:$0xff]  }
 0x236   : > { %8185 = vst.msk [vmem:[%s11688_s26 + $0xe8] sm:$0xff] %vm6564_vm3, %v8009_v29  ;;  %v7926_v57 = vadd.f32 %v12829_v52, %v7425_v46  ;;  %v6815_v21 = vsel %vm6564_vm3, %v9629_v48, -inf  ;;  %v7431_v3 = vsel %vm6564_vm3, %v9981_v8, -inf  ;;  %v6801_v49 = vsel %vm6564_vm3, %v4408_v60, -inf  ;;  %9735 = vmatmul.mubr.msk.bf16.gmra.mrb[16].mxu0 %vm2651_vm2, %v10454_v26  ;;  %v10459_v32 = vld [vmem:[%s10581_s20 + $0x9d8] sm:$0xff]   ;;  %v10461_v43 = vld [vmem:[%s10581_s20 + $0x9e0] sm:$0xff]  }
 0x237   : > { %8273 = vst.msk [vmem:[%s11688_s26 + $0x3a8] sm:$0xff] %vm6564_vm3, %v8097_v44  ;;  %v8014_v11 = vmax.f32 %v7838_v16, 0.0  ;;  %v7836_v34 = vadd.f32 %v12829_v52, %v6795_v30  ;;  %v7924_v33 = vadd.f32 %v12829_v52, %v7411_v0  ;;  %v6816_v39 = vmax.f32 %v12742_v1, %v6815_v21  ;;  %10087 = vmatmul.mubr.msk.bf16.gmra.mrb[16].mxu1 %vm2651_vm2, %v10455_v15 }
 0x238   : > { %9738 = vmatprep.mubr.msk.bf16.mxu0 %vm2651_vm2, %v10456_v2  ;;  %v8102_v27 = vmax.f32 %v7926_v57, 0.0  ;;  %v7432_v61 = vmax.f32 %v12749_v41, %v7431_v3  ;;  %v6802_v12 = vmax.f32 %v12674_v63, %v6801_v49  ;;  %v7417_v24 = vsel %vm6564_vm3, %v5816_v20, -inf  ;;  %10090 = vmatprep.mubr.msk.bf16.mxu1 %vm2651_vm2, %v10457_v42 }
 0x239   : > { %8190 = vst.msk [vmem:[%s11688_s26 + $0x110] sm:$0xff] %vm6564_vm3, %v8014_v11  ;;  %v8012_v55 = vmax.f32 %v7836_v34, 0.0  ;;  %v8100_v1 = vmax.f32 %v7924_v33, 0.0  ;;  %v7839_v35 = vadd.f32 %v12829_v52, %v6816_v39  ;;  %v7418_v47 = vmax.f32 %v12681_v59, %v7417_v24  ;;  %v9632_v6 = vpop.f32.mrb[168].mxu0 }
 0x23a   : > { %8278 = vst.msk [vmem:[%s11688_s26 + $0x3d0] sm:$0xff] %vm6564_vm3, %v8102_v27  ;;  %v7927_v63 = vadd.f32 %v12829_v52, %v7432_v61  ;;  %v7837_v41 = vadd.f32 %v12829_v52, %v6802_v12  ;;  %v6836_v7 = vsel %vm6564_vm3, %v9632_v6, -inf  ;;  %v9984_v18 = vpop.f32.mrb[168].mxu1  ;;  %v4421_v17 = vpop.f32.mrb[169].mxu0 }
 0x23b   : > { %8188 = vst.msk [vmem:[%s11688_s26 + $0x100] sm:$0xff] %vm6564_vm3, %v8012_v55  ;;  %8276 = vst.msk [vmem:[%s11688_s26 + $0x3c0] sm:$0xff] %vm6564_vm3, %v8100_v1  ;;  %v8015_v59 = vmax.f32 %v7839_v35, 0.0  ;;  %v7925_v51 = vadd.f32 %v12829_v52, %v7418_v47  ;;  %v6837_v58 = vmax.f32 %v12773_v28, %v6836_v7  ;;  %v7452_v26 = vsel %vm6564_vm3, %v9984_v18, -inf  ;;  %v5829_v4 = vpop.f32.mrb[169].mxu1  ;;  %v9633_v14 = vpop.f32.mrb[170].mxu0 }
 0x23c   : > { %v8103_v13 = vmax.f32 %v7927_v63, 0.0  ;;  %v8013_v48 = vmax.f32 %v7837_v41, 0.0  ;;  %v7453_v15 = vmax.f32 %v12781_v40, %v7452_v26  ;;  %v6822_v2 = vsel %vm6564_vm3, %v4421_v17, -inf  ;;  %v9985_v29 = vpop.f32.mrb[170].mxu1  ;;  %v4424_v46 = vpop.f32.mrb[171].mxu0  ;;  %v10462_v55 = vld [vmem:[%s10581_s20 + $0x468] sm:$0xff]  }
 0x23d   : > { %8191 = vst.msk [vmem:[%s11688_s26 + $0x118] sm:$0xff] %vm6564_vm3, %v8015_v59  ;;  %v8101_v28 = vmax.f32 %v7925_v51, 0.0  ;;  %v7842_v9 = vadd.f32 %v12829_v52, %v6837_v58  ;;  %v6823_v8 = vmax.f32 %v12703_v25, %v6822_v2  ;;  %v7438_v60 = vsel %vm6564_vm3, %v5829_v4, -inf  ;;  %v5832_v42 = vpop.f32.mrb[171].mxu1  ;;  %v10463_v41 = vld [vmem:[%s10581_s20 + $0x9e8] sm:$0xff]   ;;  %v10465_v58 = vld [vmem:[%s10581_s20 + $0x9f0] sm:$0xff]  }
 0x23e   : > { %8279 = vst.msk [vmem:[%s11688_s26 + $0x3d8] sm:$0xff] %vm6564_vm3, %v8103_v13  ;;  %8189 = vst.msk [vmem:[%s11688_s26 + $0x108] sm:$0xff] %vm6564_vm3, %v8013_v48  ;;  %v7930_v40 = vadd.f32 %v12829_v52, %v7453_v15  ;;  %v7439_v44 = vmax.f32 %v12712_v38, %v7438_v60  ;;  %v6843_v16 = vsel %vm6564_vm3, %v9633_v14, -inf  ;;  %v7459_v30 = vsel %vm6564_vm3, %v9985_v29, -inf  ;;  %9739 = vmatmul.mubr.msk.bf16.gmra.mrb[20].mxu0 %vm2651_vm2, %v10458_v19 }
 0x23f   : > { %8277 = vst.msk [vmem:[%s11688_s26 + $0x3c8] sm:$0xff] %vm6564_vm3, %v8101_v28  ;;  %v8018_v25 = vmax.f32 %v7842_v9, 0.0  ;;  %v7840_v0 = vadd.f32 %v12829_v52, %v6823_v8  ;;  %v6844_v20 = vmax.f32 %v12798_v45, %v6843_v16  ;;  %v7460_v57 = vmax.f32 %v12805_v56, %v7459_v30  ;;  %10091 = vmatmul.mubr.msk.bf16.gmra.mrb[20].mxu1 %vm2651_vm2, %v10459_v32 }
 0x240   : > { %9742 = vmatprep.mubr.msk.bf16.mxu0 %vm2651_vm2, %v10460_v37  ;;  %v8106_v38 = vmax.f32 %v7930_v40, 0.0  ;;  %v7928_v21 = vadd.f32 %v12829_v52, %v7439_v44  ;;  %v6829_v3 = vsel %vm6564_vm3, %v4424_v46, -inf  ;;  %v7445_v49 = vsel %vm6564_vm3, %v5832_v42, -inf  ;;  %10094 = vmatprep.mubr.msk.bf16.mxu1 %vm2651_vm2, %v10461_v43 }
 0x241   : > { %8194 = vst.msk [vmem:[%s11688_s26 + $0x130] sm:$0xff] %vm6564_vm3, %v8018_v25  ;;  %v8016_v45 = vmax.f32 %v7840_v0, 0.0  ;;  %v7843_v56 = vadd.f32 %v12829_v52, %v6844_v20  ;;  %v7931_v11 = vadd.f32 %v12829_v52, %v7460_v57  ;;  %v6830_v34 = vmax.f32 %v12730_v36, %v6829_v3  ;;  %v9636_v33 = vpop.f32.mrb[172].mxu0  ;;  %v10466_v25 = vld [vmem:[%s10581_s20 + $0x478] sm:$0xff]  }
 0x242   : > { %8282 = vst.msk [vmem:[%s11688_s26 + $0x3f0] sm:$0xff] %vm6564_vm3, %v8106_v38  ;;  %v8104_v39 = vmax.f32 %v7928_v21, 0.0  ;;  %v7446_v27 = vmax.f32 %v12737_v62, %v7445_v49  ;;  %v6864_v61 = vsel %vm6564_vm3, %v9636_v33, -inf  ;;  %v9988_v12 = vpop.f32.mrb[172].mxu1  ;;  %v4437_v24 = vpop.f32.mrb[173].mxu0  ;;  %v10464_v62 = vld [vmem:[%s10581_s20 + $0x470] sm:$0xff]  }
 0x243   : > { %8192 = vst.msk [vmem:[%s11688_s26 + $0x120] sm:$0xff] %vm6564_vm3, %v8016_v45  ;;  %v8019_v1 = vmax.f32 %v7843_v56, 0.0  ;;  %v8107_v36 = vmax.f32 %v7931_v11, 0.0  ;;  %v7841_v35 = vadd.f32 %v12829_v52, %v6830_v34  ;;  %v6865_v47 = vmax.f32 %v12821_v10, %v6864_v61  ;;  %v5845_v6 = vpop.f32.mrb[173].mxu1  ;;  %v9637_v63 = vpop.f32.mrb[174].mxu0  ;;  %v10468_v38 = vld [vmem:[%s10581_s20 + $0x480] sm:$0xff]  }
 0x244   : > { %8280 = vst.msk [vmem:[%s11688_s26 + $0x3e0] sm:$0xff] %vm6564_vm3, %v8104_v39  ;;  %v7929_v7 = vadd.f32 %v12829_v52, %v7446_v27  ;;  %v7480_v18 = vsel %vm6564_vm3, %v9988_v12, -inf  ;;  %v6850_v17 = vsel %vm6564_vm3, %v4437_v24, -inf  ;;  %v7466_v19 = vsel %vm6564_vm3, %v5845_v6, -inf  ;;  %v9989_v59 = vpop.f32.mrb[174].mxu1  ;;  %v4440_v51 = vpop.f32.mrb[175].mxu0 }
 0x245   : > { %8195 = vst.msk [vmem:[%s11688_s26 + $0x138] sm:$0xff] %vm6564_vm3, %v8019_v1  ;;  %8283 = vst.msk [vmem:[%s11688_s26 + $0x3f8] sm:$0xff] %vm6564_vm3, %v8107_v36  ;;  %v8017_v10 = vmax.f32 %v7841_v35, 0.0  ;;  %v7846_v26 = vadd.f32 %v12829_v52, %v6865_v47  ;;  %v7481_v4 = vmax.f32 %v12835_v54, %v7480_v18  ;;  %v6851_v14 = vmax.f32 %v12759_v23, %v6850_v17  ;;  %v5848_v32 = vpop.f32.mrb[175].mxu1  ;;  %v10469_v56 = vld [vmem:[%s10581_s20 + $0xa00] sm:$0xff]   ;;  %v10470_v61 = vld [vmem:[%s10581_s20 + $0x488] sm:$0xff]  }
 0x246   : > { %v8105_v37 = vmax.f32 %v7929_v7, 0.0  ;;  %v7467_v13 = vmax.f32 %v12768_v22, %v7466_v19  ;;  %v6871_v48 = vsel %vm6564_vm3, %v9637_v63, -inf  ;;  %v7487_v15 = vsel %vm6564_vm3, %v9989_v59, -inf  ;;  %9743 = vmatmul.mubr.msk.bf16.gmra.mrb[24].mxu0 %vm2651_vm2, %v10462_v55  ;;  %v10471_v55 = vld [vmem:[%s10581_s20 + $0xa08] sm:$0xff]   ;;  %v10472_v1 = vld [vmem:[%s10581_s20 + $0x490] sm:$0xff]   ;;  %v10474_v7 = vld [vmem:[%s10581_s20 + $0x498] sm:$0xff]  }
 0x247   : > { %8193 = vst.msk [vmem:[%s11688_s26 + $0x128] sm:$0xff] %vm6564_vm3, %v8017_v10  ;;  %v8022_v2 = vmax.f32 %v7846_v26, 0.0  ;;  %v7934_v29 = vadd.f32 %v12829_v52, %v7481_v4  ;;  %v7844_v54 = vadd.f32 %v12829_v52, %v6851_v14  ;;  %v6872_v23 = vmax.f32 %v12848_v5, %v6871_v48  ;;  %10095 = vmatmul.mubr.msk.bf16.gmra.mrb[24].mxu1 %vm2651_vm2, %v10463_v41  ;;  %v10473_v47 = vld [vmem:[%s10581_s20 + $0xa10] sm:$0xff]   ;;  %v10475_v19 = vld [vmem:[%s10581_s20 + $0xa18] sm:$0xff]   ;;  %v10476_v59 = vld [vmem:[%s10581_s20 + $0x4a0] sm:$0xff]  }
 0x248   : > { %9746 = vmatprep.mubr.msk.bf16.mxu0 %vm2651_vm2, %v10464_v62  ;;  %8281 = vst.msk [vmem:[%s11688_s26 + $0x3e8] sm:$0xff] %vm6564_vm3, %v8105_v37  ;;  %v7932_v22 = vadd.f32 %v12829_v52, %v7467_v13  ;;  %v7488_v46 = vmax.f32 %v12853_v50, %v7487_v15  ;;  %v6857_v43 = vsel %vm6564_vm3, %v4440_v51, -inf  ;;  %v7473_v28 = vsel %vm6564_vm3, %v5848_v32, -inf  ;;  %10098 = vmatprep.mubr.msk.bf16.mxu1 %vm2651_vm2, %v10465_v58  ;;  %v10477_v10 = vld [vmem:[%s10581_s20 + $0xa20] sm:$0xff]   ;;  %v10478_v37 = vld [vmem:[%s10581_s20 + $0x4a8] sm:$0xff]  }
 0x249   : > { %8198 = vst.msk [vmem:[%s11688_s26 + $0x150] sm:$0xff] %vm6564_vm3, %v8022_v2  ;;  %v8110_v5 = vmax.f32 %v7934_v29, 0.0  ;;  %v8020_v9 = vmax.f32 %v7844_v54, 0.0  ;;  %v7847_v8 = vadd.f32 %v12829_v52, %v6872_v23  ;;  %v6858_v60 = vmax.f32 %v12786_v53, %v6857_v43  ;;  %v13089_v50 = vpop.f32.mrb[176].mxu0  ;;  %v10479_v15 = vld [vmem:[%s10581_s20 + $0xa28] sm:$0xff]   ;;  %v10480_v2 = vld [vmem:[%s10581_s20 + $0x4b0] sm:$0xff]  }
 0x24a   : > { %v8108_v42 = vmax.f32 %v7932_v22, 0.0  ;;  %v7935_v40 = vadd.f32 %v12829_v52, %v7488_v46  ;;  %v7474_v44 = vmax.f32 %v12793_v31, %v7473_v28  ;;  %v13093_v16 = vpop.f32.mrb[176].mxu1  ;;  %v13095_v30 = vpop.f32.mrb[177].mxu0  ;;  %v10467_v31 = vld [vmem:[%s10581_s20 + $0x9f8] sm:$0xff]   ;;  %v10481_v23 = vld [vmem:[%s10581_s20 + $0xa30] sm:$0xff]  }
 0x24b   : > { %8286 = vst.msk [vmem:[%s11688_s26 + $0x410] sm:$0xff] %vm6564_vm3, %v8110_v5  ;;  %8196 = vst.msk [vmem:[%s11688_s26 + $0x140] sm:$0xff] %vm6564_vm3, %v8020_v9  ;;  %v8023_v53 = vmax.f32 %v7847_v8, 0.0  ;;  %v7845_v0 = vadd.f32 %v12829_v52, %v6858_v60  ;;  %v13103_v20 = vpop.f32.mrb[177].mxu1  ;;  %v13105_v57 = vpop.f32.mrb[178].mxu0  ;;  %v10482_v5 = vld [vmem:[%s10581_s20 + $0x4b8] sm:$0xff]  }
 0x24c   : > { %8284 = vst.msk [vmem:[%s11688_s26 + $0x400] sm:$0xff] %vm6564_vm3, %v8108_v42  ;;  %v8111_v21 = vmax.f32 %v7935_v40, 0.0  ;;  %v7933_v3 = vadd.f32 %v12829_v52, %v7474_v44  ;;  %v13112_v49 = vpop.f32.mrb[178].mxu1  ;;  %v13114_v45 = vpop.f32.mrb[179].mxu0  ;;  %v10483_v60 = vld [vmem:[%s10581_s20 + $0xa38] sm:$0xff]   ;;  %v10484_v42 = vld [vmem:[%s10581_s20 + $0x4c0] sm:$0xff]  }
 0x24d   : > { %8199 = vst.msk [vmem:[%s11688_s26 + $0x158] sm:$0xff] %vm6564_vm3, %v8023_v53  ;;  %v8021_v11 = vmax.f32 %v7845_v0, 0.0  ;;  %v13119_v34 = vpop.f32.mrb[179].mxu1 }
 0x24e   : > { %8287 = vst.msk [vmem:[%s11688_s26 + $0x418] sm:$0xff] %vm6564_vm3, %v8111_v21  ;;  %v8109_v33 = vmax.f32 %v7933_v3, 0.0  ;;  %9747 = vmatmul.mubr.msk.bf16.gmra.mrb[28].mxu0 %vm2651_vm2, %v10466_v25  ;;  %v10485_v25 = vld [vmem:[%s10581_s20 + $0xa40] sm:$0xff]  }
 0x24f   : > { %8197 = vst.msk [vmem:[%s11688_s26 + $0x148] sm:$0xff] %vm6564_vm3, %v8021_v11  ;;  %10099 = vmatmul.mubr.msk.bf16.gmra.mrb[28].mxu1 %vm2651_vm2, %v10467_v31  ;;  %9750 = vmatprep.mubr.msk.bf16.mxu0 %vm2651_vm2, %v10468_v38  ;;  %v13229_v31 = vsel %vm6564_vm3, %v13095_v30, -inf  ;;  %v13239_v11 = vsel %vm6564_vm3, %v13103_v20, -inf }
 0x250   : > { %8285 = vst.msk [vmem:[%s11688_s26 + $0x408] sm:$0xff] %vm6564_vm3, %v8109_v33  ;;  %10102 = vmatprep.mubr.msk.bf16.mxu1 %vm2651_vm2, %v10469_v56  ;;  %v10486_v56 = vld [vmem:[%s10581_s20 + $0x4c8] sm:$0xff]   ;;  %v10493_v33 = vld [vmem:[%s10581_s20 + $0xa60] sm:$0xff]  }
 0x251   : > { %v13131_v52 = vpop.f32.mrb[180].mxu0 }
 0x252   : > { %v13133_v39 = vpop.f32.mrb[180].mxu1  ;;  %v13135_v27 = vpop.f32.mrb[181].mxu0 }
 0x253   : > { %v13138_v12 = vpop.f32.mrb[181].mxu1  ;;  %v13140_v24 = vpop.f32.mrb[182].mxu0 }
 0x254   : > { %v13144_v36 = vpop.f32.mrb[182].mxu1  ;;  %v13146_v35 = vpop.f32.mrb[183].mxu0 }
 0x255   : > { %v13149_v6 = vpop.f32.mrb[183].mxu1 }
 0x256   : > { %9751 = vmatmul.mubr.msk.bf16.gmra.mrb[32].mxu0 %vm2651_vm2, %v10470_v61 }
 0x257   : > { %10103 = vmatmul.mubr.msk.bf16.gmra.mrb[32].mxu1 %vm2651_vm2, %v10471_v55  ;;  %9754 = vmatprep.mubr.msk.bf16.mxu0 %vm2651_vm2, %v10472_v1  ;;  %v10487_v1 = vld [vmem:[%s10581_s20 + $0xa48] sm:$0xff]  }
 0x258   : > { %10106 = vmatprep.mubr.msk.bf16.mxu1 %vm2651_vm2, %v10473_v47  ;;  %v10488_v47 = vld [vmem:[%s10581_s20 + $0x4d0] sm:$0xff]  }
 0x259   : > { %v13155_v63 = vpop.f32.mrb[184].mxu0 }
 0x25a   : > { %v13157_v41 = vpop.f32.mrb[184].mxu1  ;;  %v13159_v62 = vpop.f32.mrb[185].mxu0 }
 0x25b   : > { %v13162_v18 = vpop.f32.mrb[185].mxu1  ;;  %v13164_v17 = vpop.f32.mrb[186].mxu0 }
 0x25c   : > { %v13168_v51 = vpop.f32.mrb[186].mxu1  ;;  %v13170_v58 = vpop.f32.mrb[187].mxu0 }
 0x25d   : > { %v13173_v26 = vpop.f32.mrb[187].mxu1 }
 0x25e   : > { %9755 = vmatmul.mubr.msk.bf16.gmra.mrb[36].mxu0 %vm2651_vm2, %v10474_v7  ;;  %v13252_v7 = vsel %vm6564_vm3, %v13114_v45, -inf }
 0x25f   : > { %10107 = vmatmul.mubr.msk.bf16.gmra.mrb[36].mxu1 %vm2651_vm2, %v10475_v19  ;;  %9758 = vmatprep.mubr.msk.bf16.mxu0 %vm2651_vm2, %v10476_v59 }
 0x260   : > { %10110 = vmatprep.mubr.msk.bf16.mxu1 %vm2651_vm2, %v10477_v10 }
 0x261   : > { %v13179_v4 = vpop.f32.mrb[188].mxu0 }
 0x262   : > { %v13181_v14 = vpop.f32.mrb[188].mxu1  ;;  %v13183_v32 = vpop.f32.mrb[189].mxu0 }
 0x263   : > { %v13186_v13 = vpop.f32.mrb[189].mxu1  ;;  %v13188_v48 = vpop.f32.mrb[190].mxu0 }
 0x264   : > { %v13192_v29 = vpop.f32.mrb[190].mxu1  ;;  %v13194_v54 = vpop.f32.mrb[191].mxu0 }
 0x265   : > { %v13197_v22 = vpop.f32.mrb[191].mxu1 }
 0x266   : > { %9759 = vmatmul.mubr.msk.bf16.gmra.mrb[40].mxu0 %vm2651_vm2, %v10478_v37  ;;  %v10489_v37 = vld [vmem:[%s10581_s20 + $0xa50] sm:$0xff]  }
 0x267   : > { %10111 = vmatmul.mubr.msk.bf16.gmra.mrb[40].mxu1 %vm2651_vm2, %v10479_v15  ;;  %9762 = vmatprep.mubr.msk.bf16.mxu0 %vm2651_vm2, %v10480_v2  ;;  %v13264_v15 = vsel %vm6564_vm3, %v13119_v34, -inf  ;;  %v13281_v34 = vsel %vm6564_vm3, %v13089_v50, -inf  ;;  %v13299_v50 = vsel %vm6564_vm3, %v13138_v12, -inf }
 0x268   : > { %10114 = vmatprep.mubr.msk.bf16.mxu1 %vm2651_vm2, %v10481_v23  ;;  %15578 = vst [vmem:[#allocation2_spill] sm:$0xff] %v13299_v50 }
 0x269   : > { %v13203_v46 = vpop.f32.mrb[192].mxu0 }
 0x26a   : > { %v13205_v43 = vpop.f32.mrb[192].mxu1  ;;  %v13207_v28 = vpop.f32.mrb[193].mxu0 }
 0x26b   : > { %v13210_v9 = vpop.f32.mrb[193].mxu1  ;;  %v13212_v8 = vpop.f32.mrb[194].mxu0 }
 0x26c   : > { %v13216_v40 = vpop.f32.mrb[194].mxu1  ;;  %v13218_v44 = vpop.f32.mrb[195].mxu0 }
 0x26d   : > { %v13221_v53 = vpop.f32.mrb[195].mxu1 }
 0x26e   : > { %9763 = vmatmul.mubr.msk.bf16.gmra.mrb[44].mxu0 %vm2651_vm2, %v10482_v5 }
 0x26f   : > { %10115 = vmatmul.mubr.msk.bf16.gmra.mrb[44].mxu1 %vm2651_vm2, %v10483_v60  ;;  %9766 = vmatprep.mubr.msk.bf16.mxu0 %vm2651_vm2, %v10484_v42  ;;  %v13285_v60 = vsel %vm6564_vm3, %v13093_v16, -inf  ;;  %v13289_v42 = vsel %vm6564_vm3, %v13105_v57, -inf  ;;  %v13303_v16 = vsel %vm6564_vm3, %v13146_v35, -inf }
 0x270   : > { %10118 = vmatprep.mubr.msk.bf16.mxu1 %vm2651_vm2, %v10485_v25  ;;  %15579 = vst [vmem:[#allocation8_spill] sm:$0xff] %v13303_v16 }
 0x271   : > { %v9660_v0 = vpop.f32.mrb[196].mxu0 }
 0x272   : > { %v13232_v38 = vsel %vm6564_vm3, %v9660_v0, -inf  ;;  %v10012_v21 = vpop.f32.mrb[196].mxu1  ;;  %v13234_v3 = vpop.f32.mrb[197].mxu0  ;;  %v10490_v0 = vld [vmem:[%s10581_s20 + $0x4d8] sm:$0xff]  }
 0x273   : > { %v13244_v61 = vsel %vm6564_vm3, %v10012_v21, -inf  ;;  %v13246_v30 = vpop.f32.mrb[197].mxu1  ;;  %v9661_v55 = vpop.f32.mrb[198].mxu0  ;;  %v10491_v21 = vld [vmem:[%s10581_s20 + $0xa58] sm:$0xff]  }
 0x274   : > { %v13257_v20 = vsel %vm6564_vm3, %v9661_v55, -inf  ;;  %v10013_v59 = vpop.f32.mrb[198].mxu1  ;;  %v13259_v10 = vpop.f32.mrb[199].mxu0 }
 0x275   : > { %v13269_v2 = vsel %vm6564_vm3, %v10013_v59, -inf  ;;  %v13271_v23 = vpop.f32.mrb[199].mxu1 }
 0x276   : > { %9767 = vmatmul.mubr.msk.bf16.gmra.mrb[48].mxu0 %vm2651_vm2, %v10486_v56  ;;  %v13295_v56 = vsel %vm6564_vm3, %v13135_v27, -inf }
 0x277   : > { %10119 = vmatmul.mubr.msk.bf16.gmra.mrb[48].mxu1 %vm2651_vm2, %v10487_v1  ;;  %9770 = vmatprep.mubr.msk.bf16.mxu0 %vm2651_vm2, %v10488_v47  ;;  %v13310_v47 = vsel %vm6564_vm3, %v13149_v6, -inf }
 0x278   : > { %10122 = vmatprep.mubr.msk.bf16.mxu1 %vm2651_vm2, %v10489_v37  ;;  %15581 = vst [vmem:[#allocation3_spill] sm:$0xff] %v13310_v47 }
 0x279   : > { %v9664_v25 = vpop.f32.mrb[200].mxu0 }
 0x27a   : > { %v13306_v55 = vsel %vm6564_vm3, %v9664_v25, -inf  ;;  %v10016_v57 = vpop.f32.mrb[200].mxu1  ;;  %v4549_v1 = vpop.f32.mrb[201].mxu0  ;;  %v10492_v25 = vld [vmem:[%s10581_s20 + $0x4e0] sm:$0xff]  }
 0x27b   : > { %15580 = vst [vmem:[#allocation9_spill] sm:$0xff] %v13306_v55  ;;  %v13315_v12 = vsel %vm6564_vm3, %v10016_v57, -inf  ;;  %v13318_v59 = vsel %vm6564_vm3, %v4549_v1, -inf  ;;  %v5957_v35 = vpop.f32.mrb[201].mxu1  ;;  %v9665_v37 = vpop.f32.mrb[202].mxu0  ;;  %v13390_v1 = vsel %vm6564_vm3, %v13173_v26, -inf }
 0x27c   : > { %15582 = vst [vmem:[#allocation10_spill] sm:$0xff] %v13315_v12  ;;  %v13326_v6 = vsel %vm6564_vm3, %v5957_v35, -inf  ;;  %v13329_v27 = vsel %vm6564_vm3, %v9665_v37, -inf  ;;  %v10017_v57 = vpop.f32.mrb[202].mxu1  ;;  %v4552_v19 = vpop.f32.mrb[203].mxu0  ;;  %v13344_v37 = vsel %vm6564_vm3, %v13112_v49, -inf }
 0x27d   : > { %15583 = vst [vmem:[#allocation4_spill] sm:$0xff] %v13329_v27  ;;  %v13337_v5 = vsel %vm6564_vm3, %v10017_v57, -inf  ;;  %v13340_v45 = vsel %vm6564_vm3, %v4552_v19, -inf  ;;  %v5960_v35 = vpop.f32.mrb[203].mxu1  ;;  %v13361_v49 = vsel %vm6564_vm3, %v13131_v52, -inf  ;;  %v13365_v57 = vsel %vm6564_vm3, %v13133_v39, -inf }
 0x27e   : > { %15584 = vst [vmem:[#allocation5_spill] sm:$0xff] %v13337_v5  ;;  %v13351_v55 = vsel %vm6564_vm3, %v5960_v35, -inf  ;;  %9771 = vmatmul.mubr.msk.bf16.gmra.mrb[52].mxu0 %vm2651_vm2, %v10490_v0  ;;  %v13369_v0 = vsel %vm6564_vm3, %v13140_v24, -inf  ;;  %v10494_v12 = vld [vmem:[%s10581_s20 + $0x4e8] sm:$0xff]   ;;  %v13379_v52 = vsel %vm6564_vm3, %v13162_v18, -inf  ;;  %v13383_v39 = vsel %vm6564_vm3, %v13170_v58, -inf }
 0x27f   : > { %10123 = vmatmul.mubr.msk.bf16.gmra.mrb[52].mxu1 %vm2651_vm2, %v10491_v21  ;;  %9774 = vmatprep.mubr.msk.bf16.mxu0 %vm2651_vm2, %v10492_v25  ;;  %v10495_v21 = vld [vmem:[%s10581_s20 + $0xa68] sm:$0xff]   ;;  %v13375_v25 = vsel %vm6564_vm3, %v13159_v62, -inf  ;;  %15586 = vst [vmem:[#allocation7_spill] sm:$0xff] %v13379_v52  ;;  %15587 = vst [vmem:[#allocation6_spill] sm:$0xff] %v13383_v39 }
 0x280   : > { %10126 = vmatprep.mubr.msk.bf16.mxu1 %vm2651_vm2, %v10493_v33  ;;  %15585 = vst [vmem:[#allocation11_spill] sm:$0xff] %v13375_v25  ;;  %15589 = vst [vmem:[#allocation16_spill] sm:$0xff] %v13390_v1  ;;  %v10497_v25 = vld [vmem:[%s10581_s20 + $0xa70] sm:$0xff]  }
 0x281   : > { %v9668_v35 = vpop.f32.mrb[204].mxu0 }
 0x282   : > { %v13386_v33 = vsel %vm6564_vm3, %v9668_v35, -inf  ;;  %v10020_v24 = vpop.f32.mrb[204].mxu1  ;;  %v4565_v19 = vpop.f32.mrb[205].mxu0  ;;  %v10496_v35 = vld [vmem:[%s10581_s20 + $0x4f0] sm:$0xff]  }
 0x283   : > { %15588 = vst [vmem:[#allocation12_spill] sm:$0xff] %v13386_v33  ;;  %v13395_v18 = vsel %vm6564_vm3, %v10020_v24, -inf  ;;  %v13398_v5 = vsel %vm6564_vm3, %v4565_v19, -inf  ;;  %v5973_v58 = vpop.f32.mrb[205].mxu1  ;;  %v9669_v47 = vpop.f32.mrb[206].mxu0  ;;  %v13470_v19 = vsel %vm6564_vm3, %v13197_v22, -inf }
 0x284   : > { %15590 = vst [vmem:[#allocation18_spill] sm:$0xff] %v13395_v18  ;;  %v13406_v26 = vsel %vm6564_vm3, %v5973_v58, -inf  ;;  %v13409_v62 = vsel %vm6564_vm3, %v9669_v47, -inf  ;;  %v10021_v24 = vpop.f32.mrb[206].mxu1  ;;  %v4568_v33 = vpop.f32.mrb[207].mxu0  ;;  %v13424_v47 = vsel %vm6564_vm3, %v13144_v36, -inf }
 0x285   : > { %15591 = vst [vmem:[#allocation17_spill] sm:$0xff] %v13409_v62  ;;  %v13417_v27 = vsel %vm6564_vm3, %v10021_v24, -inf  ;;  %v13420_v16 = vsel %vm6564_vm3, %v4568_v33, -inf  ;;  %v5976_v58 = vpop.f32.mrb[207].mxu1  ;;  %v13441_v36 = vsel %vm6564_vm3, %v13155_v63, -inf  ;;  %v13445_v24 = vsel %vm6564_vm3, %v13157_v41, -inf }
 0x286   : > { %15592 = vst [vmem:[#allocation13_spill] sm:$0xff] %v13417_v27  ;;  %v13431_v50 = vsel %vm6564_vm3, %v5976_v58, -inf  ;;  %9775 = vmatmul.mubr.msk.bf16.gmra.mrb[56].mxu0 %vm2651_vm2, %v10494_v12  ;;  %v13449_v12 = vsel %vm6564_vm3, %v13164_v17, -inf  ;;  %v10498_v18 = vld [vmem:[%s10581_s20 + $0x4f8] sm:$0xff]   ;;  %v13459_v63 = vsel %vm6564_vm3, %v13186_v13, -inf  ;;  %v13463_v41 = vsel %vm6564_vm3, %v13194_v54, -inf }
 0x287   : > { %10127 = vmatmul.mubr.msk.bf16.gmra.mrb[56].mxu1 %vm2651_vm2, %v10495_v21  ;;  %9778 = vmatprep.mubr.msk.bf16.mxu0 %vm2651_vm2, %v10496_v35  ;;  %v10499_v21 = vld [vmem:[%s10581_s20 + $0xa78] sm:$0xff]   ;;  %v13455_v35 = vsel %vm6564_vm3, %v13183_v32, -inf  ;;  %15594 = vst [vmem:[#allocation15_spill] sm:$0xff] %v13459_v63  ;;  %15595 = vst [vmem:[#allocation14_spill] sm:$0xff] %v13463_v41 }
 0x288   : > { %10130 = vmatprep.mubr.msk.bf16.mxu1 %vm2651_vm2, %v10497_v25  ;;  %15593 = vst [vmem:[#allocation19_spill] sm:$0xff] %v13455_v35  ;;  %15597 = vst [vmem:[#allocation22_spill] sm:$0xff] %v13470_v19  ;;  %v10501_v35 = vld [vmem:[%s10581_s20 + $0xa80] sm:$0xff]  }
 0x289   : > { %v9672_v58 = vpop.f32.mrb[208].mxu0 }
 0x28a   : > { %v13466_v25 = vsel %vm6564_vm3, %v9672_v58, -inf  ;;  %v10024_v17 = vpop.f32.mrb[208].mxu1  ;;  %v4581_v33 = vpop.f32.mrb[209].mxu0  ;;  %v10500_v58 = vld [vmem:[%s10581_s20 + $0x500] sm:$0xff]  }
 0x28b   : > { %15596 = vst [vmem:[#allocation20_spill] sm:$0xff] %v13466_v25  ;;  %v13475_v13 = vsel %vm6564_vm3, %v10024_v17, -inf  ;;  %v13478_v27 = vsel %vm6564_vm3, %v4581_v33, -inf  ;;  %v5989_v54 = vpop.f32.mrb[209].mxu1  ;;  %v9673_v1 = vpop.f32.mrb[210].mxu0  ;;  %v13550_v33 = vsel %vm6564_vm3, %v13221_v53, -inf }
 0x28c   : > { %15598 = vst [vmem:[#allocation24_spill] sm:$0xff] %v13475_v13  ;;  %v13486_v22 = vsel %vm6564_vm3, %v5989_v54, -inf  ;;  %v13489_v32 = vsel %vm6564_vm3, %v9673_v1, -inf  ;;  %v10025_v17 = vpop.f32.mrb[210].mxu1  ;;  %v4584_v25 = vpop.f32.mrb[211].mxu0  ;;  %v13504_v1 = vsel %vm6564_vm3, %v13168_v51, -inf }
 0x28d   : > { %15599 = vst [vmem:[#allocation23_spill] sm:$0xff] %v13489_v32  ;;  %v13497_v62 = vsel %vm6564_vm3, %v10025_v17, -inf  ;;  %v13500_v39 = vsel %vm6564_vm3, %v4584_v25, -inf  ;;  %v5992_v54 = vpop.f32.mrb[211].mxu1  ;;  %v13521_v51 = vsel %vm6564_vm3, %v13179_v4, -inf  ;;  %v13525_v17 = vsel %vm6564_vm3, %v13181_v14, -inf }
 0x28e   : > { %15600 = vst [vmem:[#allocation21_spill] sm:$0xff] %v13497_v62  ;;  %v13511_v52 = vsel %vm6564_vm3, %v5992_v54, -inf  ;;  %9779 = vmatmul.mubr.msk.bf16.gmra.mrb[60].mxu0 %vm2651_vm2, %v10498_v18  ;;  %v13529_v18 = vsel %vm6564_vm3, %v13188_v48, -inf  ;;  %v10502_v13 = vld [vmem:[%s10581_s20 + $0x508] sm:$0xff]   ;;  %v13539_v4 = vsel %vm6564_vm3, %v13210_v9, -inf  ;;  %v13543_v14 = vsel %vm6564_vm3, %v13218_v44, -inf }
 0x28f   : > { %10131 = vmatmul.mubr.msk.bf16.gmra.mrb[60].mxu1 %vm2651_vm2, %v10499_v21  ;;  %9782 = vmatprep.mubr.msk.bf16.mxu0 %vm2651_vm2, %v10500_v58  ;;  %v10503_v21 = vld [vmem:[%s10581_s20 + $0xa88] sm:$0xff]   ;;  %v13535_v58 = vsel %vm6564_vm3, %v13207_v28, -inf  ;;  %15602 = vst [vmem:[#allocation27_spill] sm:$0xff] %v13539_v4  ;;  %15603 = vst [vmem:[#allocation26_spill] sm:$0xff] %v13543_v14 }
 0x290   : > { %10134 = vmatprep.mubr.msk.bf16.mxu1 %vm2651_vm2, %v10501_v35  ;;  %15601 = vst [vmem:[#allocation25_spill] sm:$0xff] %v13535_v58  ;;  %15605 = vst [vmem:[#allocation37_spill] sm:$0xff] %v13550_v33  ;;  %v10505_v58 = vld [vmem:[%s10581_s20 + $0xa90] sm:$0xff]  }
 0x291   : > { %v9676_v54 = vpop.f32.mrb[212].mxu0 }
 0x292   : > { %v13546_v35 = vsel %vm6564_vm3, %v9676_v54, -inf  ;;  %v10028_v48 = vpop.f32.mrb[212].mxu1  ;;  %v4597_v25 = vpop.f32.mrb[213].mxu0  ;;  %v10504_v54 = vld [vmem:[%s10581_s20 + $0x510] sm:$0xff]  }
 0x293   : > { %15604 = vst [vmem:[#allocation42_spill] sm:$0xff] %v13546_v35  ;;  %v13555_v9 = vsel %vm6564_vm3, %v10028_v48, -inf  ;;  %v13558_v62 = vsel %vm6564_vm3, %v4597_v25, -inf  ;;  %v6005_v44 = vpop.f32.mrb[213].mxu1  ;;  %v9677_v19 = vpop.f32.mrb[214].mxu0  ;;  %v13630_v25 = vsel %vm6564_vm3, %v13271_v23, -inf }
 0x294   : > { %15606 = vst [vmem:[#allocation30_spill] sm:$0xff] %v13555_v9  ;;  %v13566_v53 = vsel %vm6564_vm3, %v6005_v44, -inf  ;;  %v13569_v28 = vsel %vm6564_vm3, %v9677_v19, -inf  ;;  %v10029_v48 = vpop.f32.mrb[214].mxu1  ;;  %v4600_v35 = vpop.f32.mrb[215].mxu0  ;;  %v13584_v19 = vsel %vm6564_vm3, %v13192_v29, -inf }
 0x295   : > { %15607 = vst [vmem:[#allocation28_spill] sm:$0xff] %v13569_v28  ;;  %v13577_v32 = vsel %vm6564_vm3, %v10029_v48, -inf  ;;  %v13580_v41 = vsel %vm6564_vm3, %v4600_v35, -inf  ;;  %v6008_v44 = vpop.f32.mrb[215].mxu1  ;;  %v13601_v29 = vsel %vm6564_vm3, %v13203_v46, -inf  ;;  %v13605_v48 = vsel %vm6564_vm3, %v13205_v43, -inf }
 0x296   : > { %15608 = vst [vmem:[#allocation31_spill] sm:$0xff] %v13577_v32  ;;  %v13591_v63 = vsel %vm6564_vm3, %v6008_v44, -inf  ;;  %9783 = vmatmul.mubr.msk.bf16.gmra.mrb[64].mxu0 %vm2651_vm2, %v10502_v13  ;;  %v13609_v13 = vsel %vm6564_vm3, %v13212_v8, -inf  ;;  %v10506_v9 = vld [vmem:[%s10581_s20 + $0x518] sm:$0xff]   ;;  %v13619_v46 = vsel %vm6564_vm3, %v13246_v30, -inf  ;;  %v13623_v43 = vsel %vm6564_vm3, %v13259_v10, -inf }
 0x297   : > { %10135 = vmatmul.mubr.msk.bf16.gmra.mrb[64].mxu1 %vm2651_vm2, %v10503_v21  ;;  %9786 = vmatprep.mubr.msk.bf16.mxu0 %vm2651_vm2, %v10504_v54  ;;  %v10507_v21 = vld [vmem:[%s10581_s20 + $0xa98] sm:$0xff]   ;;  %v13615_v54 = vsel %vm6564_vm3, %v13234_v3, -inf  ;;  %15610 = vst [vmem:[#allocation29_spill] sm:$0xff] %v13619_v46  ;;  %15611 = vst [vmem:[#allocation38_spill] sm:$0xff] %v13623_v43  ;;  %v15621_v46 = vmax.f32 %v13229_v31, %v13232_v38 }
 0x298   : > { %10138 = vmatprep.mubr.msk.bf16.mxu1 %vm2651_vm2, %v10505_v58  ;;  %15609 = vst [vmem:[#allocation32_spill] sm:$0xff] %v13615_v54  ;;  %15613 = vst [vmem:[#allocation39_spill] sm:$0xff] %v13630_v25  ;;  %v10509_v54 = vld [vmem:[%s10581_s20 + $0xaa0] sm:$0xff]  }
 0x299   : > { %v9680_v44 = vpop.f32.mrb[216].mxu0 }
 0x29a   : > { %v13626_v58 = vsel %vm6564_vm3, %v9680_v44, -inf  ;;  %v10032_v8 = vpop.f32.mrb[216].mxu1  ;;  %v4613_v35 = vpop.f32.mrb[217].mxu0  ;;  %v10508_v44 = vld [vmem:[%s10581_s20 + $0x520] sm:$0xff]  }
 0x29b   : > { %15612 = vst [vmem:[#allocation33_spill] sm:$0xff] %v13626_v58  ;;  %v13635_v30 = vsel %vm6564_vm3, %v10032_v8, -inf  ;;  %v13638_v32 = vsel %vm6564_vm3, %v4613_v35, -inf  ;;  %v6021_v10 = vpop.f32.mrb[217].mxu1  ;;  %v9681_v33 = vpop.f32.mrb[218].mxu0  ;;  %v10510_v35 = vld [vmem:[%s10581_s20 + $0x528] sm:$0xff]  }
 0x29c   : > { %15614 = vst [vmem:[#allocation34_spill] sm:$0xff] %v13635_v30  ;;  %v13646_v23 = vsel %vm6564_vm3, %v6021_v10, -inf  ;;  %v13649_v3 = vsel %vm6564_vm3, %v9681_v33, -inf  ;;  %v10033_v8 = vpop.f32.mrb[218].mxu1  ;;  %v4616_v58 = vpop.f32.mrb[219].mxu0  ;;  %v13664_v33 = vsel %vm6564_vm3, %v13216_v40, -inf }
 0x29d   : > { %15615 = vst [vmem:[#allocation36_spill] sm:$0xff] %v13649_v3  ;;  %v13657_v28 = vsel %vm6564_vm3, %v10033_v8, -inf  ;;  %v13660_v14 = vsel %vm6564_vm3, %v4616_v58, -inf  ;;  %v6024_v10 = vpop.f32.mrb[219].mxu1  ;;  %v10511_v3 = vld [vmem:[%s10581_s20 + $0xaa8] sm:$0xff]  }
 0x29e   : > { %15616 = vst [vmem:[#allocation35_spill] sm:$0xff] %v13657_v28  ;;  %v13671_v4 = vsel %vm6564_vm3, %v6024_v10, -inf  ;;  %9787 = vmatmul.mubr.msk.bf16.gmra.mrb[68].mxu0 %vm2651_vm2, %v10506_v9  ;;  %v15618_v9 = vmax.f32 %v13281_v34, %v13318_v59 }
 0x29f   : > { %15617 = vst [vmem:[#allocation40_spill] sm:$0xff] %v13671_v4  ;;  %10139 = vmatmul.mubr.msk.bf16.gmra.mrb[68].mxu1 %vm2651_vm2, %v10507_v21  ;;  %9790 = vmatprep.mubr.msk.bf16.mxu0 %vm2651_vm2, %v10508_v44 }
 0x2a0   : > { %10142 = vmatprep.mubr.msk.bf16.mxu1 %vm2651_vm2, %v10509_v54  ;;  %v10512_v54 = vld [vmem:[%s10581_s20 + $0x530] sm:$0xff]  }
 0x2a1   : > { %v9684_v40 = vpop.f32.mrb[220].mxu0 }
 0x2a2   : > { %v6890_v8 = vsel %vm6564_vm3, %v9684_v40, -inf  ;;  %v10036_v30 = vpop.f32.mrb[220].mxu1  ;;  %v4629_v10 = vpop.f32.mrb[221].mxu0  ;;  %v15620_v40 = vmax.f32 %v13285_v60, %v13326_v6  ;;  %v15623_v60 = vmax.f32 %v13289_v42, %v13340_v45  ;;  %v15626_v42 = vmax.f32 %v13264_v15, %v13269_v2 }
 0x2a3   : > { %v13684_v28 = vmax.f32 %v15618_v9, %v6890_v8  ;;  %v7506_v58 = vsel %vm6564_vm3, %v10036_v30, -inf  ;;  %v6876_v21 = vsel %vm6564_vm3, %v4629_v10, -inf  ;;  %v6037_v25 = vpop.f32.mrb[221].mxu1  ;;  %v9685_v44 = vpop.f32.mrb[222].mxu0  ;;  %v10513_v10 = vld [vmem:[%s10581_s20 + $0xab0] sm:$0xff]   ;;  %v15622_v9 = vmax.f32 %v13239_v11, %v13244_v61 }
 0x2a4   : > { %v13693_v43 = vmax.f32 %v15620_v40, %v7506_v58  ;;  %v13698_v4 = vmax.f32 %v15621_v46, %v6876_v21  ;;  %v7492_v34 = vsel %vm6564_vm3, %v6037_v25, -inf  ;;  %v6897_v59 = vsel %vm6564_vm3, %v9685_v44, -inf  ;;  %v10037_v30 = vpop.f32.mrb[222].mxu1  ;;  %v4632_v8 = vpop.f32.mrb[223].mxu0  ;;  %v10514_v44 = vld [vmem:[%s10581_s20 + $0x538] sm:$0xff]  }
 0x2a5   : > { %15619 = vst [vmem:[#allocation41_spill] sm:$0xff] %v13684_v28  ;;  %v13706_v28 = vmax.f32 %v15622_v9, %v7492_v34  ;;  %v13711_v6 = vmax.f32 %v15623_v60, %v6897_v59  ;;  %v7513_v31 = vsel %vm6564_vm3, %v10037_v30, -inf  ;;  %v6883_v38 = vsel %vm6564_vm3, %v4632_v8, -inf  ;;  %v6040_v25 = vpop.f32.mrb[223].mxu1  ;;  %v10515_v34 = vld [vmem:[%s10581_s20 + $0xab8] sm:$0xff]   ;;  %v10516_v59 = vld [vmem:[%s10581_s20 + $0x540] sm:$0xff]  }
 0x2a6   : > { %v15624_v46 = vmax.f32 %v13344_v37, %v13351_v55  ;;  %v15625_v11 = vmax.f32 %v13252_v7, %v13257_v20  ;;  %v7499_v45 = vsel %vm6564_vm3, %v6040_v25, -inf  ;;  %9791 = vmatmul.mubr.msk.bf16.gmra.mrb[72].mxu0 %vm2651_vm2, %v10510_v35  ;;  %v15627_v35 = vmax.f32 %v13361_v49, %v13398_v5  ;;  %v10517_v25 = vld [vmem:[%s10581_s20 + $0xac0] sm:$0xff]  }
 0x2a7   : > { %v13730_v21 = vmax.f32 %v15626_v42, %v7499_v45  ;;  %10143 = vmatmul.mubr.msk.bf16.gmra.mrb[72].mxu1 %vm2651_vm2, %v10511_v3  ;;  %9794 = vmatprep.mubr.msk.bf16.mxu0 %vm2651_vm2, %v10512_v54  ;;  %v15628_v30 = vmax.f32 %v13365_v57, %v13406_v26  ;;  %v15634_v57 = vmax.f32 %v13369_v0, %v13420_v16  ;;  %v15639_v0 = vld [vmem:[#allocation3_spill] sm:$0xff] }
 0x2a8   : > { %v13718_v58 = vmax.f32 %v15624_v46, %v7513_v31  ;;  %v13723_v61 = vmax.f32 %v15625_v11, %v6883_v38  ;;  %10146 = vmatprep.mubr.msk.bf16.mxu1 %vm2651_vm2, %v10513_v10  ;;  %v15629_v10 = vld [vmem:[#allocation9_spill] sm:$0xff]  ;;  %v15631_v46 = vld [vmem:[#allocation2_spill] sm:$0xff] }
 0x2a9   : > { %v9688_v7 = vpop.f32.mrb[224].mxu0  ;;  %v15630_v9 = vmax.f32 %v13295_v56, %v15629_v10  ;;  %v15632_v11 = vld [vmem:[#allocation10_spill] sm:$0xff] }
 0x2aa   : > { %v6918_v20 = vsel %vm6564_vm3, %v9688_v7, -inf  ;;  %v10040_v55 = vpop.f32.mrb[224].mxu1  ;;  %v4645_v37 = vpop.f32.mrb[225].mxu0  ;;  %v15633_v45 = vmax.f32 %v15631_v46, %v15632_v11  ;;  %v10519_v11 = vld [vmem:[%s10581_s20 + $0xac8] sm:$0xff]  }
 0x2ab   : > { %v13740_v15 = vmax.f32 %v15627_v35, %v6918_v20  ;;  %v7534_v2 = vsel %vm6564_vm3, %v10040_v55, -inf  ;;  %v6904_v3 = vsel %vm6564_vm3, %v4645_v37, -inf  ;;  %v6053_v40 = vpop.f32.mrb[225].mxu1  ;;  %v9689_v54 = vpop.f32.mrb[226].mxu0  ;;  %v15635_v55 = vmax.f32 %v13424_v47, %v13431_v50  ;;  %v15636_v35 = vld [vmem:[#allocation8_spill] sm:$0xff] }
 0x2ac   : > { %v13749_v8 = vmax.f32 %v15628_v30, %v7534_v2  ;;  %v13754_v60 = vmax.f32 %v15630_v9, %v6904_v3  ;;  %v7520_v5 = vsel %vm6564_vm3, %v6053_v40, -inf  ;;  %v6925_v49 = vsel %vm6564_vm3, %v9689_v54, -inf  ;;  %v10041_v31 = vpop.f32.mrb[226].mxu1  ;;  %v4648_v38 = vpop.f32.mrb[227].mxu0  ;;  %v15637_v2 = vld [vmem:[#allocation4_spill] sm:$0xff]  ;;  %v15640_v54 = vld [vmem:[#allocation5_spill] sm:$0xff] }
 0x2ad   : > { %v13762_v42 = vmax.f32 %v15633_v45, %v7520_v5  ;;  %v13767_v26 = vmax.f32 %v15634_v57, %v6925_v49  ;;  %v7541_v56 = vsel %vm6564_vm3, %v10041_v31, -inf  ;;  %v6911_v7 = vsel %vm6564_vm3, %v4648_v38, -inf  ;;  %v6056_v20 = vpop.f32.mrb[227].mxu1  ;;  %v10518_v49 = vld [vmem:[%s10581_s20 + $0x548] sm:$0xff]  }
 0x2ae   : > { %v13774_v37 = vmax.f32 %v15635_v55, %v7541_v56  ;;  %v15638_v3 = vmax.f32 %v15636_v35, %v15637_v2  ;;  %v7527_v16 = vsel %vm6564_vm3, %v6056_v20, -inf  ;;  %9795 = vmatmul.mubr.msk.bf16.gmra.mrb[76].mxu0 %vm2651_vm2, %v10514_v44  ;;  %v15641_v30 = vmax.f32 %v15639_v0, %v15640_v54  ;;  %v15644_v56 = vld [vmem:[#allocation11_spill] sm:$0xff]  ;;  %v15648_v0 = vld [vmem:[#allocation18_spill] sm:$0xff] }
 0x2af   : > { %10147 = vmatmul.mubr.msk.bf16.gmra.mrb[76].mxu1 %vm2651_vm2, %v10515_v34  ;;  %9798 = vmatprep.mubr.msk.bf16.mxu0 %vm2651_vm2, %v10516_v59  ;;  %v15642_v44 = vmax.f32 %v13441_v36, %v13478_v27  ;;  %v15643_v45 = vmax.f32 %v13445_v24, %v13486_v22  ;;  %v15650_v24 = vmax.f32 %v13449_v12, %v13500_v39  ;;  %v15655_v12 = vld [vmem:[#allocation16_spill] sm:$0xff] }
 0x2b0   : > { %v13779_v40 = vmax.f32 %v15638_v3, %v6911_v7  ;;  %v13786_v10 = vmax.f32 %v15641_v30, %v7527_v16  ;;  %10150 = vmatprep.mubr.msk.bf16.mxu1 %vm2651_vm2, %v10517_v25  ;;  %v10520_v25 = vld [vmem:[%s10581_s20 + $0x550] sm:$0xff]   ;;  %v15647_v16 = vld [vmem:[#allocation7_spill] sm:$0xff] }
 0x2b1   : > { %v9692_v50 = vpop.f32.mrb[228].mxu0  ;;  %v15645_v7 = vld [vmem:[#allocation12_spill] sm:$0xff]  ;;  %v15649_v54 = vmax.f32 %v15647_v16, %v15648_v0  ;;  %v10523_v0 = vld [vmem:[%s10581_s20 + $0xad8] sm:$0xff]  }
 0x2b2   : > { %v6946_v47 = vsel %vm6564_vm3, %v9692_v50, -inf  ;;  %v10044_v9 = vpop.f32.mrb[228].mxu1  ;;  %v4661_v5 = vpop.f32.mrb[229].mxu0  ;;  %v15646_v20 = vmax.f32 %v15644_v56, %v15645_v7  ;;  %v10521_v3 = vld [vmem:[%s10581_s20 + $0xad0] sm:$0xff]  }
 0x2b3   : > { %v13796_v31 = vmax.f32 %v15642_v44, %v6946_v47  ;;  %v7562_v38 = vsel %vm6564_vm3, %v10044_v9, -inf  ;;  %v6932_v34 = vsel %vm6564_vm3, %v4661_v5, -inf  ;;  %v6069_v46 = vpop.f32.mrb[229].mxu1  ;;  %v9693_v59 = vpop.f32.mrb[230].mxu0  ;;  %v15651_v5 = vmax.f32 %v13504_v1, %v13511_v52 }
 0x2b4   : > { %v13805_v57 = vmax.f32 %v15643_v45, %v7562_v38  ;;  %v13810_v55 = vmax.f32 %v15646_v20, %v6932_v34  ;;  %v7548_v27 = vsel %vm6564_vm3, %v6069_v46, -inf  ;;  %v6953_v36 = vsel %vm6564_vm3, %v9693_v59, -inf  ;;  %v10045_v35 = vpop.f32.mrb[230].mxu1  ;;  %v4664_v2 = vpop.f32.mrb[231].mxu0  ;;  %v15652_v38 = vld [vmem:[#allocation6_spill] sm:$0xff]  ;;  %v15653_v34 = vld [vmem:[#allocation17_spill] sm:$0xff] }
 0x2b5   : > { %v13818_v30 = vmax.f32 %v15649_v54, %v7548_v27  ;;  %v13823_v22 = vmax.f32 %v15650_v24, %v6953_v36  ;;  %v7569_v50 = vsel %vm6564_vm3, %v10045_v35, -inf  ;;  %v6939_v47 = vsel %vm6564_vm3, %v4664_v2, -inf  ;;  %v6072_v9 = vpop.f32.mrb[231].mxu1  ;;  %v15656_v45 = vld [vmem:[#allocation13_spill] sm:$0xff] }
 0x2b6   : > { %v13830_v44 = vmax.f32 %v15651_v5, %v7569_v50  ;;  %v15654_v46 = vmax.f32 %v15652_v38, %v15653_v34  ;;  %v7555_v39 = vsel %vm6564_vm3, %v6072_v9, -inf  ;;  %9799 = vmatmul.mubr.msk.bf16.gmra.mrb[80].mxu0 %vm2651_vm2, %v10518_v49  ;;  %v15657_v56 = vmax.f32 %v15655_v12, %v15656_v45  ;;  %v10522_v36 = vld [vmem:[%s10581_s20 + $0x558] sm:$0xff]   ;;  %v15660_v50 = vld [vmem:[#allocation19_spill] sm:$0xff]  ;;  %v15664_v12 = vld [vmem:[#allocation24_spill] sm:$0xff] }
 0x2b7   : > { %10151 = vmatmul.mubr.msk.bf16.gmra.mrb[80].mxu1 %vm2651_vm2, %v10519_v11  ;;  %9802 = vmatprep.mubr.msk.bf16.mxu0 %vm2651_vm2, %v10520_v25  ;;  %v15658_v49 = vmax.f32 %v13521_v51, %v13558_v62  ;;  %v15659_v54 = vmax.f32 %v13525_v17, %v13566_v53  ;;  %v15666_v17 = vmax.f32 %v13529_v18, %v13580_v41  ;;  %v15671_v18 = vld [vmem:[#allocation22_spill] sm:$0xff] }
 0x2b8   : > { %v13835_v59 = vmax.f32 %v15654_v46, %v6939_v47  ;;  %v13842_v7 = vmax.f32 %v15657_v56, %v7555_v39  ;;  %10154 = vmatprep.mubr.msk.bf16.mxu1 %vm2651_vm2, %v10521_v3  ;;  %v10524_v3 = vld [vmem:[%s10581_s20 + $0x560] sm:$0xff]   ;;  %v15661_v47 = vld [vmem:[#allocation20_spill] sm:$0xff]  ;;  %v15663_v39 = vld [vmem:[#allocation15_spill] sm:$0xff] }
 0x2b9   : > { %v9696_v52 = vpop.f32.mrb[232].mxu0  ;;  %v15662_v9 = vmax.f32 %v15660_v50, %v15661_v47  ;;  %v10525_v46 = vld [vmem:[%s10581_s20 + $0xae0] sm:$0xff]   ;;  %v15665_v45 = vmax.f32 %v15663_v39, %v15664_v12  ;;  %v10527_v12 = vld [vmem:[%s10581_s20 + $0xae8] sm:$0xff]  }
 0x2ba   : > { %v6974_v1 = vsel %vm6564_vm3, %v9696_v52, -inf  ;;  %v10048_v20 = vpop.f32.mrb[232].mxu1  ;;  %v4677_v27 = vpop.f32.mrb[233].mxu0 }
 0x2bb   : > { %v13852_v35 = vmax.f32 %v15658_v49, %v6974_v1  ;;  %v7590_v2 = vsel %vm6564_vm3, %v10048_v20, -inf  ;;  %v6960_v11 = vsel %vm6564_vm3, %v4677_v27, -inf  ;;  %v6085_v16 = vpop.f32.mrb[233].mxu1  ;;  %v9697_v25 = vpop.f32.mrb[234].mxu0  ;;  %v15667_v27 = vmax.f32 %v13584_v19, %v13591_v63 }
 0x2bc   : > { %v13861_v24 = vmax.f32 %v15659_v54, %v7590_v2  ;;  %v13866_v5 = vmax.f32 %v15662_v9, %v6960_v11  ;;  %v7576_v62 = vsel %vm6564_vm3, %v6085_v16, -inf  ;;  %v6981_v51 = vsel %vm6564_vm3, %v9697_v25, -inf  ;;  %v10049_v38 = vpop.f32.mrb[234].mxu1  ;;  %v4680_v34 = vpop.f32.mrb[235].mxu0  ;;  %v15668_v2 = vld [vmem:[#allocation14_spill] sm:$0xff]  ;;  %v15669_v11 = vld [vmem:[#allocation23_spill] sm:$0xff] }
 0x2bd   : > { %v13874_v56 = vmax.f32 %v15665_v45, %v7576_v62  ;;  %v13879_v53 = vmax.f32 %v15666_v17, %v6981_v51  ;;  %v7597_v52 = vsel %vm6564_vm3, %v10049_v38, -inf  ;;  %v6967_v1 = vsel %vm6564_vm3, %v4680_v34, -inf  ;;  %v6088_v20 = vpop.f32.mrb[235].mxu1  ;;  %v15672_v54 = vld [vmem:[#allocation21_spill] sm:$0xff]  ;;  %v10526_v51 = vld [vmem:[%s10581_s20 + $0x568] sm:$0xff]  }
 0x2be   : > { %v13886_v49 = vmax.f32 %v15667_v27, %v7597_v52  ;;  %v15670_v16 = vmax.f32 %v15668_v2, %v15669_v11  ;;  %v7583_v41 = vsel %vm6564_vm3, %v6088_v20, -inf  ;;  %9803 = vmatmul.mubr.msk.bf16.gmra.mrb[84].mxu0 %vm2651_vm2, %v10522_v36  ;;  %v15673_v50 = vmax.f32 %v15671_v18, %v15672_v54  ;;  %v15676_v52 = vld [vmem:[#allocation25_spill] sm:$0xff]  ;;  %v15680_v18 = vld [vmem:[#allocation30_spill] sm:$0xff] }
 0x2bf   : > { %10155 = vmatmul.mubr.msk.bf16.gmra.mrb[84].mxu1 %vm2651_vm2, %v10523_v0  ;;  %9806 = vmatprep.mubr.msk.bf16.mxu0 %vm2651_vm2, %v10524_v3  ;;  %v15674_v36 = vmax.f32 %v13601_v29, %v13638_v32  ;;  %v15675_v45 = vmax.f32 %v13605_v48, %v13646_v23  ;;  %v15682_v48 = vmax.f32 %v13609_v13, %v13660_v14  ;;  %v15688_v13 = vld [vmem:[#allocation37_spill] sm:$0xff] }
 0x2c0   : > { %v13891_v25 = vmax.f32 %v15670_v16, %v6967_v1  ;;  %v13898_v47 = vmax.f32 %v15673_v50, %v7583_v41  ;;  %10158 = vmatprep.mubr.msk.bf16.mxu1 %vm2651_vm2, %v10525_v46  ;;  %v10528_v46 = vld [vmem:[%s10581_s20 + $0x570] sm:$0xff]   ;;  %v15677_v1 = vld [vmem:[#allocation42_spill] sm:$0xff]  ;;  %v15679_v41 = vld [vmem:[#allocation27_spill] sm:$0xff] }
 0x2c1   : > { %v9700_v63 = vpop.f32.mrb[236].mxu0  ;;  %v15678_v20 = vmax.f32 %v15676_v52, %v15677_v1  ;;  %v10529_v16 = vld [vmem:[%s10581_s20 + $0xaf0] sm:$0xff]   ;;  %v15681_v54 = vmax.f32 %v15679_v41, %v15680_v18  ;;  %v15689_v52 = vld [vmem:[#allocation31_spill] sm:$0xff] }
 0x2c2   : > { %v7002_v19 = vsel %vm6564_vm3, %v9700_v63, -inf  ;;  %v10052_v9 = vpop.f32.mrb[236].mxu1  ;;  %v4693_v62 = vpop.f32.mrb[237].mxu0  ;;  %v15690_v1 = vmax.f32 %v15688_v13, %v15689_v52 }
 0x2c3   : > { %v13908_v38 = vmax.f32 %v15674_v36, %v7002_v19  ;;  %v7618_v34 = vsel %vm6564_vm3, %v10052_v9, -inf  ;;  %v6988_v0 = vsel %vm6564_vm3, %v4693_v62, -inf  ;;  %v6101_v39 = vpop.f32.mrb[237].mxu1  ;;  %v9701_v3 = vpop.f32.mrb[238].mxu0  ;;  %v15683_v62 = vld [vmem:[#allocation40_spill] sm:$0xff] }
 0x2c4   : > { %v13917_v17 = vmax.f32 %v15675_v45, %v7618_v34  ;;  %v13922_v27 = vmax.f32 %v15678_v20, %v6988_v0  ;;  %v7604_v32 = vsel %vm6564_vm3, %v6101_v39, -inf  ;;  %v7009_v29 = vsel %vm6564_vm3, %v9701_v3, -inf  ;;  %v10053_v2 = vpop.f32.mrb[238].mxu1  ;;  %v4696_v11 = vpop.f32.mrb[239].mxu0  ;;  %v15685_v0 = vld [vmem:[#allocation26_spill] sm:$0xff]  ;;  %v15686_v39 = vld [vmem:[#allocation28_spill] sm:$0xff] }
 0x2c5   : > { %v13930_v50 = vmax.f32 %v15681_v54, %v7604_v32  ;;  %v13935_v23 = vmax.f32 %v15682_v48, %v7009_v29  ;;  %v7625_v63 = vsel %vm6564_vm3, %v10053_v2, -inf  ;;  %v6995_v19 = vsel %vm6564_vm3, %v4696_v11, -inf  ;;  %v6104_v9 = vpop.f32.mrb[239].mxu1  ;;  %v10530_v11 = vld [vmem:[%s10581_s20 + $0x578] sm:$0xff]  }
 0x2c6   : > { %v15684_v36 = vmax.f32 %v13664_v33, %v15683_v62  ;;  %v15687_v3 = vmax.f32 %v15685_v0, %v15686_v39  ;;  %v7611_v14 = vsel %vm6564_vm3, %v6104_v9, -inf  ;;  %9807 = vmatmul.mubr.msk.bf16.gmra.mrb[88].mxu0 %vm2651_vm2, %v10526_v51  ;;  %v13976_v39 = vld [vmem:[%s15166_s2] ss:$0 sm:$0xff] }
 0x2c7   : > { %v13954_v20 = vmax.f32 %v15690_v1, %v7611_v14  ;;  %10159 = vmatmul.mubr.msk.bf16.gmra.mrb[88].mxu1 %vm2651_vm2, %v10527_v12  ;;  %9810 = vmatprep.mubr.msk.bf16.mxu0 %vm2651_vm2, %v10528_v46  ;;  %v15691_v46 = vld [vmem:[#allocation32_spill] sm:$0xff]  ;;  %v15694_v14 = vld [vmem:[#allocation29_spill] sm:$0xff] }
 0x2c8   : > { %v13942_v34 = vmax.f32 %v15684_v36, %v7625_v63  ;;  %v13947_v45 = vmax.f32 %v15687_v3, %v6995_v19  ;;  %10162 = vmatprep.mubr.msk.bf16.mxu1 %vm2651_vm2, %v10529_v16  ;;  %v10531_v63 = vld [vmem:[%s10581_s20 + $0xaf8] sm:$0xff]  }
 0x2c9   : > { %v9704_v33 = vpop.f32.mrb[240].mxu0  ;;  %v15692_v19 = vld [vmem:[#allocation33_spill] sm:$0xff] }
 0x2ca   : > { %v6878_v32 = vsel %vm6564_vm3, %v9704_v33, -inf  ;;  %v10056_v29 = vpop.f32.mrb[240].mxu1  ;;  %v4709_v2 = vpop.f32.mrb[241].mxu0  ;;  %v15693_v16 = vmax.f32 %v15691_v46, %v15692_v19 }
 0x2cb   : > { %v6879_v41 = vmax.f32 %v13698_v4, %v6878_v32  ;;  %v7494_v51 = vsel %vm6564_vm3, %v10056_v29, -inf  ;;  %v7016_v18 = vsel %vm6564_vm3, %v4709_v2, -inf  ;;  %v6117_v54 = vpop.f32.mrb[241].mxu1  ;;  %v9705_v48 = vpop.f32.mrb[242].mxu0 }
 0x2cc   : > { %v7495_v12 = vmax.f32 %v13706_v28, %v7494_v51  ;;  %v13969_v9 = vmax.f32 %v15693_v16, %v7016_v18  ;;  %v7632_v62 = vsel %vm6564_vm3, %v6117_v54, -inf  ;;  %v6885_v36 = vsel %vm6564_vm3, %v9705_v48, -inf  ;;  %v10057_v0 = vpop.f32.mrb[242].mxu1  ;;  %v4712_v4 = vpop.f32.mrb[243].mxu0  ;;  %v15695_v28 = vld [vmem:[#allocation34_spill] sm:$0xff]  ;;  %v15700_v16 = vld [vmem:[#allocation39_spill] sm:$0xff] }
 0x2cd   : > { %v7848_v3 = vadd.f32 %v13976_v39, %v6879_v41  ;;  %v15696_v13 = vmax.f32 %v15694_v14, %v15695_v28  ;;  %v6886_v1 = vmax.f32 %v13723_v61, %v6885_v36  ;;  %v7501_v33 = vsel %vm6564_vm3, %v10057_v0, -inf  ;;  %v6120_v32 = vpop.f32.mrb[243].mxu1  ;;  %v15697_v48 = vld [vmem:[#allocation38_spill] sm:$0xff]  ;;  %v15698_v61 = vld [vmem:[#allocation36_spill] sm:$0xff] }
 0x2ce   : > { %v7936_v29 = vadd.f32 %v13976_v39, %v7495_v12  ;;  %v7502_v2 = vmax.f32 %v13730_v21, %v7501_v33  ;;  %v7023_v51 = vsel %vm6564_vm3, %v4712_v4, -inf  ;;  %v7639_v41 = vsel %vm6564_vm3, %v6120_v32, -inf  ;;  %9811 = vmatmul.mubr.msk.bf16.gmra.mrb[92].mxu0 %vm2651_vm2, %v10530_v11 }
 0x2cf   : > { %v13982_v52 = vmax.f32 %v15696_v13, %v7632_v62  ;;  %v8024_v18 = vmax.f32 %v7848_v3, 0.0  ;;  %v7849_v54 = vadd.f32 %v13976_v39, %v6886_v1  ;;  %v15699_v46 = vmax.f32 %v15697_v48, %v15698_v61  ;;  %v15701_v62 = vld [vmem:[#allocation35_spill] sm:$0xff]  ;;  %10163 = vmatmul.mubr.msk.bf16.gmra.mrb[92].mxu1 %vm2651_vm2, %v10531_v63 }
 0x2d0   : > { %v15702_v12 = vmax.f32 %v15700_v16, %v15701_v62  ;;  %v8112_v21 = vmax.f32 %v7936_v29, 0.0  ;;  %v7937_v11 = vadd.f32 %v13976_v39, %v7502_v2 }
 0x2d1   : > { %v13995_v19 = vmax.f32 %v15699_v46, %v7023_v51  ;;  %8200 = vst.msk [vmem:[%s11688_s26 + $0x160] sm:$0xff] %vm6564_vm3, %v8024_v18  ;;  %v8025_v0 = vmax.f32 %v7849_v54, 0.0  ;;  %v9708_v4 = vpop.f32.mrb[244].mxu0  ;;  %v15703_v51 = vld [vmem:[#allocation41_spill] sm:$0xff] }
 0x2d2   : > { %v14000_v36 = vmax.f32 %v15702_v12, %v7639_v41  ;;  %8288 = vst.msk [vmem:[%s11688_s26 + $0x420] sm:$0xff] %vm6564_vm3, %v8112_v21  ;;  %v8113_v3 = vmax.f32 %v7937_v11, 0.0  ;;  %v6906_v14 = vsel %vm6564_vm3, %v9708_v4, -inf  ;;  %v10060_v28 = vpop.f32.mrb[244].mxu1  ;;  %v4725_v13 = vpop.f32.mrb[245].mxu0 }
 0x2d3   : > { %8201 = vst.msk [vmem:[%s11688_s26 + $0x168] sm:$0xff] %vm6564_vm3, %v8025_v0  ;;  %v6907_v1 = vmax.f32 %v13754_v60, %v6906_v14  ;;  %v7522_v63 = vsel %vm6564_vm3, %v10060_v28, -inf  ;;  %v6892_v33 = vsel %vm6564_vm3, %v4725_v13, -inf  ;;  %v6133_v32 = vpop.f32.mrb[245].mxu1  ;;  %v9709_v29 = vpop.f32.mrb[246].mxu0 }
 0x2d4   : > { %8289 = vst.msk [vmem:[%s11688_s26 + $0x428] sm:$0xff] %vm6564_vm3, %v8113_v3  ;;  %v7523_v2 = vmax.f32 %v13762_v42, %v7522_v63  ;;  %v6893_v41 = vmax.f32 %v15703_v51, %v6892_v33  ;;  %v7508_v18 = vsel %vm6564_vm3, %v6133_v32, -inf  ;;  %v6913_v54 = vsel %vm6564_vm3, %v9709_v29, -inf  ;;  %v10061_v48 = vpop.f32.mrb[246].mxu1  ;;  %v4728_v61 = vpop.f32.mrb[247].mxu0 }
 0x2d5   : > { %v7852_v60 = vadd.f32 %v13976_v39, %v6907_v1  ;;  %v7509_v46 = vmax.f32 %v13693_v43, %v7508_v18  ;;  %v6914_v16 = vmax.f32 %v13779_v40, %v6913_v54  ;;  %v7529_v62 = vsel %vm6564_vm3, %v10061_v48, -inf  ;;  %v6136_v12 = vpop.f32.mrb[247].mxu1 }
 0x2d6   : > { %v7940_v42 = vadd.f32 %v13976_v39, %v7523_v2  ;;  %v7850_v21 = vadd.f32 %v13976_v39, %v6893_v41  ;;  %v7530_v11 = vmax.f32 %v13786_v10, %v7529_v62  ;;  %v6899_v0 = vsel %vm6564_vm3, %v4728_v61, -inf }
 0x2d7   : > { %v8028_v4 = vmax.f32 %v7852_v60, 0.0  ;;  %v7938_v3 = vadd.f32 %v13976_v39, %v7509_v46  ;;  %v7853_v43 = vadd.f32 %v13976_v39, %v6914_v16  ;;  %v6900_v40 = vmax.f32 %v13711_v6, %v6899_v0 }
 0x2d8   : > { %v8116_v14 = vmax.f32 %v7940_v42, 0.0  ;;  %v8026_v28 = vmax.f32 %v7850_v21, 0.0  ;;  %v7941_v13 = vadd.f32 %v13976_v39, %v7530_v11  ;;  %v7515_v1 = vsel %vm6564_vm3, %v6136_v12, -inf }
 0x2d9   : > { %8204 = vst.msk [vmem:[%s11688_s26 + $0x180] sm:$0xff] %vm6564_vm3, %v8028_v4  ;;  %v8114_v10 = vmax.f32 %v7938_v3, 0.0  ;;  %v8029_v63 = vmax.f32 %v7853_v43, 0.0  ;;  %v7851_v33 = vadd.f32 %v13976_v39, %v6900_v40  ;;  %v7516_v32 = vmax.f32 %v13718_v58, %v7515_v1  ;;  %v9712_v29 = vpop.f32.mrb[248].mxu0 }
 0x2da   : > { %8292 = vst.msk [vmem:[%s11688_s26 + $0x440] sm:$0xff] %vm6564_vm3, %v8116_v14  ;;  %8202 = vst.msk [vmem:[%s11688_s26 + $0x170] sm:$0xff] %vm6564_vm3, %v8026_v28  ;;  %v8117_v6 = vmax.f32 %v7941_v13, 0.0  ;;  %v6934_v2 = vsel %vm6564_vm3, %v9712_v29, -inf  ;;  %v10064_v51 = vpop.f32.mrb[248].mxu1  ;;  %v4741_v41 = vpop.f32.mrb[249].mxu0 }
 0x2db   : > { %8290 = vst.msk [vmem:[%s11688_s26 + $0x430] sm:$0xff] %vm6564_vm3, %v8114_v10  ;;  %8205 = vst.msk [vmem:[%s11688_s26 + $0x188] sm:$0xff] %vm6564_vm3, %v8029_v63  ;;  %v8027_v18 = vmax.f32 %v7851_v33, 0.0  ;;  %v7939_v54 = vadd.f32 %v13976_v39, %v7516_v32  ;;  %v6935_v58 = vmax.f32 %v13810_v55, %v6934_v2  ;;  %v7550_v48 = vsel %vm6564_vm3, %v10064_v51, -inf  ;;  %v6149_v61 = vpop.f32.mrb[249].mxu1  ;;  %v9713_v60 = vpop.f32.mrb[250].mxu0 }
 0x2dc   : > { %8293 = vst.msk [vmem:[%s11688_s26 + $0x448] sm:$0xff] %vm6564_vm3, %v8117_v6  ;;  %v7551_v46 = vmax.f32 %v13818_v30, %v7550_v48  ;;  %v6920_v16 = vsel %vm6564_vm3, %v4741_v41, -inf  ;;  %v7536_v62 = vsel %vm6564_vm3, %v6149_v61, -inf  ;;  %v6941_v12 = vsel %vm6564_vm3, %v9713_v60, -inf  ;;  %v10065_v42 = vpop.f32.mrb[250].mxu1  ;;  %v4744_v21 = vpop.f32.mrb[251].mxu0 }
 0x2dd   : > { %8203 = vst.msk [vmem:[%s11688_s26 + $0x178] sm:$0xff] %vm6564_vm3, %v8027_v18  ;;  %v8115_v55 = vmax.f32 %v7939_v54, 0.0  ;;  %v7856_v11 = vadd.f32 %v13976_v39, %v6935_v58  ;;  %v6921_v0 = vmax.f32 %v13740_v15, %v6920_v16  ;;  %v7537_v4 = vmax.f32 %v13749_v8, %v7536_v62  ;;  %v6152_v30 = vpop.f32.mrb[251].mxu1 }
 0x2de   : > { %v7944_v3 = vadd.f32 %v13976_v39, %v7551_v46  ;;  %v6942_v43 = vmax.f32 %v13835_v59, %v6941_v12  ;;  %v7557_v40 = vsel %vm6564_vm3, %v10065_v42, -inf  ;;  %v6927_v14 = vsel %vm6564_vm3, %v4744_v21, -inf }
 0x2df   : > { %8291 = vst.msk [vmem:[%s11688_s26 + $0x438] sm:$0xff] %vm6564_vm3, %v8115_v55  ;;  %v8032_v28 = vmax.f32 %v7856_v11, 0.0  ;;  %v7854_v13 = vadd.f32 %v13976_v39, %v6921_v0  ;;  %v7942_v15 = vadd.f32 %v13976_v39, %v7537_v4  ;;  %v7558_v1 = vmax.f32 %v13842_v7, %v7557_v40 }
 0x2e0   : > { %v8120_v8 = vmax.f32 %v7944_v3, 0.0  ;;  %v7857_v10 = vadd.f32 %v13976_v39, %v6942_v43  ;;  %v6928_v59 = vmax.f32 %v13767_v26, %v6927_v14  ;;  %v7543_v63 = vsel %vm6564_vm3, %v6152_v30, -inf }
 0x2e1   : > { %8208 = vst.msk [vmem:[%s11688_s26 + $0x1a0] sm:$0xff] %vm6564_vm3, %v8032_v28  ;;  %v8030_v33 = vmax.f32 %v7854_v13, 0.0  ;;  %v8118_v32 = vmax.f32 %v7942_v15, 0.0  ;;  %v7945_v29 = vadd.f32 %v13976_v39, %v7558_v1  ;;  %v7544_v6 = vmax.f32 %v13774_v37, %v7543_v63  ;;  %v9716_v2 = vpop.f32.mrb[252].mxu0 }
 0x2e2   : > { %8296 = vst.msk [vmem:[%s11688_s26 + $0x460] sm:$0xff] %vm6564_vm3, %v8120_v8  ;;  %v8033_v7 = vmax.f32 %v7857_v10, 0.0  ;;  %v7855_v51 = vadd.f32 %v13976_v39, %v6928_v59  ;;  %v6962_v41 = vsel %vm6564_vm3, %v9716_v2, -inf  ;;  %v10068_v26 = vpop.f32.mrb[252].mxu1  ;;  %v4757_v18 = vpop.f32.mrb[253].mxu0 }
 0x2e3   : > { %8206 = vst.msk [vmem:[%s11688_s26 + $0x190] sm:$0xff] %vm6564_vm3, %v8030_v33  ;;  %8294 = vst.msk [vmem:[%s11688_s26 + $0x450] sm:$0xff] %vm6564_vm3, %v8118_v32  ;;  %v8121_v54 = vmax.f32 %v7945_v29, 0.0  ;;  %v7943_v58 = vadd.f32 %v13976_v39, %v7544_v6  ;;  %v6963_v37 = vmax.f32 %v13866_v5, %v6962_v41  ;;  %v7578_v48 = vsel %vm6564_vm3, %v10068_v26, -inf  ;;  %v6165_v61 = vpop.f32.mrb[253].mxu1  ;;  %v9717_v60 = vpop.f32.mrb[254].mxu0 }
 0x2e4   : > { %8209 = vst.msk [vmem:[%s11688_s26 + $0x1a8] sm:$0xff] %vm6564_vm3, %v8033_v7  ;;  %v8031_v46 = vmax.f32 %v7855_v51, 0.0  ;;  %v7579_v16 = vmax.f32 %v13874_v56, %v7578_v48  ;;  %v6948_v62 = vsel %vm6564_vm3, %v4757_v18, -inf  ;;  %v7564_v12 = vsel %vm6564_vm3, %v6165_v61, -inf  ;;  %v10069_v42 = vpop.f32.mrb[254].mxu1  ;;  %v4760_v21 = vpop.f32.mrb[255].mxu0 }
 0x2e5   : > { %8297 = vst.msk [vmem:[%s11688_s26 + $0x468] sm:$0xff] %vm6564_vm3, %v8121_v54  ;;  %v8119_v5 = vmax.f32 %v7943_v58, 0.0  ;;  %v7860_v55 = vadd.f32 %v13976_v39, %v6963_v37  ;;  %v6949_v11 = vmax.f32 %v13796_v31, %v6948_v62  ;;  %v7565_v0 = vmax.f32 %v13805_v57, %v7564_v12  ;;  %v6168_v4 = vpop.f32.mrb[255].mxu1 }
 0x2e6   : > { %8207 = vst.msk [vmem:[%s11688_s26 + $0x198] sm:$0xff] %vm6564_vm3, %v8031_v46  ;;  %v7948_v56 = vadd.f32 %v13976_v39, %v7579_v16  ;;  %v6969_v30 = vsel %vm6564_vm3, %v9717_v60, -inf  ;;  %v7585_v3 = vsel %vm6564_vm3, %v10069_v42, -inf  ;;  %v6955_v43 = vsel %vm6564_vm3, %v4760_v21, -inf }
 0x2e7   : > { %8295 = vst.msk [vmem:[%s11688_s26 + $0x458] sm:$0xff] %vm6564_vm3, %v8119_v5  ;;  %v8036_v40 = vmax.f32 %v7860_v55, 0.0  ;;  %v7858_v31 = vadd.f32 %v13976_v39, %v6949_v11  ;;  %v7946_v57 = vadd.f32 %v13976_v39, %v7565_v0  ;;  %v6970_v14 = vmax.f32 %v13891_v25, %v6969_v30 }
 0x2e8   : > { %v8124_v28 = vmax.f32 %v7948_v56, 0.0  ;;  %v7586_v13 = vmax.f32 %v13898_v47, %v7585_v3  ;;  %v6956_v15 = vmax.f32 %v13823_v22, %v6955_v43  ;;  %v7571_v1 = vsel %vm6564_vm3, %v6168_v4, -inf }
 0x2e9   : > { %8212 = vst.msk [vmem:[%s11688_s26 + $0x1c0] sm:$0xff] %vm6564_vm3, %v8036_v40  ;;  %v8034_v8 = vmax.f32 %v7858_v31, 0.0  ;;  %v8122_v10 = vmax.f32 %v7946_v57, 0.0  ;;  %v7861_v59 = vadd.f32 %v13976_v39, %v6970_v14  ;;  %v7572_v63 = vmax.f32 %v13830_v44, %v7571_v1  ;;  %v9720_v33 = vpop.f32.mrb[0].mxu0 }
 0x2ea   : > { %8300 = vst.msk [vmem:[%s11688_s26 + $0x480] sm:$0xff] %vm6564_vm3, %v8124_v28  ;;  %v7949_v25 = vadd.f32 %v13976_v39, %v7586_v13  ;;  %v7859_v47 = vadd.f32 %v13976_v39, %v6956_v15  ;;  %v6990_v32 = vsel %vm6564_vm3, %v9720_v33, -inf  ;;  %v10072_v22 = vpop.f32.mrb[0].mxu1  ;;  %v4773_v29 = vpop.f32.mrb[1].mxu0 }
 0x2eb   : > { %8210 = vst.msk [vmem:[%s11688_s26 + $0x1b0] sm:$0xff] %vm6564_vm3, %v8034_v8  ;;  %8298 = vst.msk [vmem:[%s11688_s26 + $0x470] sm:$0xff] %vm6564_vm3, %v8122_v10  ;;  %v8037_v6 = vmax.f32 %v7861_v59, 0.0  ;;  %v7947_v2 = vadd.f32 %v13976_v39, %v7572_v63  ;;  %v6991_v44 = vmax.f32 %v13922_v27, %v6990_v32  ;;  %v7606_v7 = vsel %vm6564_vm3, %v10072_v22, -inf  ;;  %v6181_v51 = vpop.f32.mrb[1].mxu1  ;;  %v9721_v41 = vpop.f32.mrb[2].mxu0 }
 0x2ec   : > { %v8125_v26 = vmax.f32 %v7949_v25, 0.0  ;;  %v8035_v18 = vmax.f32 %v7859_v47, 0.0  ;;  %v7607_v54 = vmax.f32 %v13930_v50, %v7606_v7  ;;  %v6976_v58 = vsel %vm6564_vm3, %v4773_v29, -inf  ;;  %v10073_v37 = vpop.f32.mrb[2].mxu1  ;;  %v4776_v48 = vpop.f32.mrb[3].mxu0 }
 0x2ed   : > { %8213 = vst.msk [vmem:[%s11688_s26 + $0x1c8] sm:$0xff] %vm6564_vm3, %v8037_v6  ;;  %v8123_v61 = vmax.f32 %v7947_v2, 0.0  ;;  %v7864_v27 = vadd.f32 %v13976_v39, %v6991_v44  ;;  %v6977_v60 = vmax.f32 %v13852_v35, %v6976_v58  ;;  %v7592_v46 = vsel %vm6564_vm3, %v6181_v51, -inf  ;;  %v6184_v16 = vpop.f32.mrb[3].mxu1 }
 0x2ee   : > { %8301 = vst.msk [vmem:[%s11688_s26 + $0x488] sm:$0xff] %vm6564_vm3, %v8125_v26  ;;  %8211 = vst.msk [vmem:[%s11688_s26 + $0x1b8] sm:$0xff] %vm6564_vm3, %v8035_v18  ;;  %v7952_v50 = vadd.f32 %v13976_v39, %v7607_v54  ;;  %v7593_v62 = vmax.f32 %v13861_v24, %v7592_v46  ;;  %v6997_v12 = vsel %vm6564_vm3, %v9721_v41, -inf  ;;  %v7613_v42 = vsel %vm6564_vm3, %v10073_v37, -inf }
 0x2ef   : > { %8299 = vst.msk [vmem:[%s11688_s26 + $0x478] sm:$0xff] %vm6564_vm3, %v8123_v61  ;;  %v8040_v35 = vmax.f32 %v7864_v27, 0.0  ;;  %v7862_v21 = vadd.f32 %v13976_v39, %v6977_v60  ;;  %v6998_v5 = vmax.f32 %v13947_v45, %v6997_v12  ;;  %v7614_v55 = vmax.f32 %v13954_v20, %v7613_v42 }
 0x2f0   : > { %v8128_v11 = vmax.f32 %v7952_v50, 0.0  ;;  %v7950_v0 = vadd.f32 %v13976_v39, %v7593_v62  ;;  %v6983_v24 = vsel %vm6564_vm3, %v4776_v48, -inf  ;;  %v7599_v4 = vsel %vm6564_vm3, %v6184_v16, -inf }
 0x2f1   : > { %8216 = vst.msk [vmem:[%s11688_s26 + $0x1e0] sm:$0xff] %vm6564_vm3, %v8040_v35  ;;  %v8038_v56 = vmax.f32 %v7862_v21, 0.0  ;;  %v7865_v30 = vadd.f32 %v13976_v39, %v6998_v5  ;;  %v7953_v3 = vadd.f32 %v13976_v39, %v7614_v55  ;;  %v6984_v45 = vmax.f32 %v13879_v53, %v6983_v24  ;;  %v9724_v43 = vpop.f32.mrb[4].mxu0 }
 0x2f2   : > { %8304 = vst.msk [vmem:[%s11688_s26 + $0x4a0] sm:$0xff] %vm6564_vm3, %v8128_v11  ;;  %v8126_v20 = vmax.f32 %v7950_v0, 0.0  ;;  %v7600_v40 = vmax.f32 %v13886_v49, %v7599_v4  ;;  %v7018_v31 = vsel %vm6564_vm3, %v9724_v43, -inf  ;;  %v10076_v57 = vpop.f32.mrb[4].mxu1  ;;  %v4789_v14 = vpop.f32.mrb[5].mxu0 }
 0x2f3   : > { %8214 = vst.msk [vmem:[%s11688_s26 + $0x1d0] sm:$0xff] %vm6564_vm3, %v8038_v56  ;;  %v8041_v28 = vmax.f32 %v7865_v30, 0.0  ;;  %v8129_v13 = vmax.f32 %v7953_v3, 0.0  ;;  %v7863_v15 = vadd.f32 %v13976_v39, %v6984_v45  ;;  %v7019_v53 = vmax.f32 %v13969_v9, %v7018_v31  ;;  %v6197_v1 = vpop.f32.mrb[5].mxu1  ;;  %v9725_v8 = vpop.f32.mrb[6].mxu0 }
 0x2f4   : > { %8302 = vst.msk [vmem:[%s11688_s26 + $0x490] sm:$0xff] %vm6564_vm3, %v8126_v20  ;;  %v7951_v49 = vadd.f32 %v13976_v39, %v7600_v40  ;;  %v7634_v10 = vsel %vm6564_vm3, %v10076_v57, -inf  ;;  %v7004_v59 = vsel %vm6564_vm3, %v4789_v14, -inf  ;;  %v7620_v63 = vsel %vm6564_vm3, %v6197_v1, -inf  ;;  %v10077_v33 = vpop.f32.mrb[6].mxu1  ;;  %v4792_v25 = vpop.f32.mrb[7].mxu0 }
 0x2f5   : > { %8217 = vst.msk [vmem:[%s11688_s26 + $0x1e8] sm:$0xff] %vm6564_vm3, %v8041_v28  ;;  %8305 = vst.msk [vmem:[%s11688_s26 + $0x4a8] sm:$0xff] %vm6564_vm3, %v8129_v13  ;;  %v8039_v9 = vmax.f32 %v7863_v15, 0.0  ;;  %v7868_v47 = vadd.f32 %v13976_v39, %v7019_v53  ;;  %v7635_v32 = vmax.f32 %v13982_v52, %v7634_v10  ;;  %v7005_v22 = vmax.f32 %v13908_v38, %v7004_v59  ;;  %v6200_v29 = vpop.f32.mrb[7].mxu1 }
 0x2f6   : > { %v8127_v6 = vmax.f32 %v7951_v49, 0.0  ;;  %v7621_v2 = vmax.f32 %v13917_v17, %v7620_v63  ;;  %v7025_v44 = vsel %vm6564_vm3, %v9725_v8, -inf  ;;  %v7641_v7 = vsel %vm6564_vm3, %v10077_v33, -inf }
 0x2f7   : > { %8215 = vst.msk [vmem:[%s11688_s26 + $0x1d8] sm:$0xff] %vm6564_vm3, %v8039_v9  ;;  %v8044_v51 = vmax.f32 %v7868_v47, 0.0  ;;  %v7956_v41 = vadd.f32 %v13976_v39, %v7635_v32  ;;  %v7866_v26 = vadd.f32 %v13976_v39, %v7005_v22  ;;  %v7026_v52 = vmax.f32 %v13995_v19, %v7025_v44 }
 0x2f8   : > { %8303 = vst.msk [vmem:[%s11688_s26 + $0x498] sm:$0xff] %vm6564_vm3, %v8127_v6  ;;  %v7954_v38 = vadd.f32 %v13976_v39, %v7621_v2  ;;  %v7642_v17 = vmax.f32 %v14000_v36, %v7641_v7  ;;  %v7011_v18 = vsel %vm6564_vm3, %v4792_v25, -inf  ;;  %v7627_v54 = vsel %vm6564_vm3, %v6200_v29, -inf }
 0x2f9   : > { %8220 = vst.msk [vmem:[%s11688_s26 + $0x200] sm:$0xff] %vm6564_vm3, %v8044_v51  ;;  %v8132_v58 = vmax.f32 %v7956_v41, 0.0  ;;  %v8042_v37 = vmax.f32 %v7866_v26, 0.0  ;;  %v7869_v48 = vadd.f32 %v13976_v39, %v7026_v52  ;;  %v7012_v19 = vmax.f32 %v13935_v23, %v7011_v18  ;;  %v14194_v61 = vpop.f32.mrb[8].mxu0 }
 0x2fa   : > { %v8130_v27 = vmax.f32 %v7954_v38, 0.0  ;;  %v7957_v60 = vadd.f32 %v13976_v39, %v7642_v17  ;;  %v7628_v36 = vmax.f32 %v13942_v34, %v7627_v54  ;;  %v14198_v46 = vpop.f32.mrb[8].mxu1  ;;  %v4805_v16 = vpop.f32.mrb[9].mxu0 }
 0x2fb   : > { %8308 = vst.msk [vmem:[%s11688_s26 + $0x4c0] sm:$0xff] %vm6564_vm3, %v8132_v58  ;;  %8218 = vst.msk [vmem:[%s11688_s26 + $0x1f0] sm:$0xff] %vm6564_vm3, %v8042_v37  ;;  %v8045_v50 = vmax.f32 %v7869_v48, 0.0  ;;  %v7867_v23 = vadd.f32 %v13976_v39, %v7012_v19  ;;  %v6213_v62 = vpop.f32.mrb[9].mxu1  ;;  %v14205_v12 = vpop.f32.mrb[10].mxu0  ;;  %v14277_v44 = vsel %vm6564_vm3, %v4805_v16, -inf }
 0x2fc   : > { %8306 = vst.msk [vmem:[%s11688_s26 + $0x4b0] sm:$0xff] %vm6564_vm3, %v8130_v27  ;;  %v8133_v42 = vmax.f32 %v7957_v60, 0.0  ;;  %v7955_v34 = vadd.f32 %v13976_v39, %v7628_v36  ;;  %v14210_v35 = vpop.f32.mrb[10].mxu1  ;;  %v4808_v21 = vpop.f32.mrb[11].mxu0  ;;  %v14285_v26 = vsel %vm6564_vm3, %v6213_v62, -inf  ;;  %v14322_v62 = vsel %vm6564_vm3, %v14198_v46, -inf }
 0x2fd   : > { %8221 = vst.msk [vmem:[%s11688_s26 + $0x208] sm:$0xff] %vm6564_vm3, %v8045_v50  ;;  %v8043_v5 = vmax.f32 %v7867_v23, 0.0  ;;  %v6216_v55 = vpop.f32.mrb[11].mxu1  ;;  %v14295_v54 = vsel %vm6564_vm3, %v4808_v21, -inf  ;;  %v14318_v23 = vsel %vm6564_vm3, %v14194_v61, -inf }
 0x2fe   : > { %8309 = vst.msk [vmem:[%s11688_s26 + $0x4c8] sm:$0xff] %vm6564_vm3, %v8133_v42  ;;  %v8131_v11 = vmax.f32 %v7955_v34, 0.0  ;;  %v14305_v27 = vsel %vm6564_vm3, %v6216_v55, -inf  ;;  %v14326_v42 = vsel %vm6564_vm3, %v14205_v12, -inf }
 0x2ff   : > { %8219 = vst.msk [vmem:[%s11688_s26 + $0x1f8] sm:$0xff] %vm6564_vm3, %v8043_v5 }
 0x300   : > { %8307 = vst.msk [vmem:[%s11688_s26 + $0x4b8] sm:$0xff] %vm6564_vm3, %v8131_v11 }
 0x301   : > { %v14220_v0 = vpop.f32.mrb[12].mxu0 }
 0x302   : > { %v14222_v24 = vpop.f32.mrb[12].mxu1  ;;  %v4821_v4 = vpop.f32.mrb[13].mxu0 }
 0x303   : > { %v6229_v39 = vpop.f32.mrb[13].mxu1  ;;  %v14224_v56 = vpop.f32.mrb[14].mxu0  ;;  %v14329_v21 = vsel %vm6564_vm3, %v4821_v4, -inf }
 0x304   : > { %v14226_v30 = vpop.f32.mrb[14].mxu1  ;;  %v4824_v3 = vpop.f32.mrb[15].mxu0  ;;  %v14332_v5 = vsel %vm6564_vm3, %v6229_v39, -inf }
 0x305   : > { %v6232_v45 = vpop.f32.mrb[15].mxu1  ;;  %v14335_v55 = vsel %vm6564_vm3, %v4824_v3, -inf }
 0x306   : > { %15704 = vst [vmem:[#allocation9_spill] sm:$0xff] %v14335_v55 }
 0x309   : > { %v14228_v43 = vpop.f32.mrb[16].mxu0 }
 0x30a   : > { %v14230_v20 = vpop.f32.mrb[16].mxu1  ;;  %v14232_v40 = vpop.f32.mrb[17].mxu0 }
 0x30b   : > { %v14234_v31 = vpop.f32.mrb[17].mxu1  ;;  %v14236_v57 = vpop.f32.mrb[18].mxu0 }
 0x30c   : > { %v14238_v14 = vpop.f32.mrb[18].mxu1  ;;  %v14240_v28 = vpop.f32.mrb[19].mxu0 }
 0x30d   : > { %v14242_v13 = vpop.f32.mrb[19].mxu1 }
 0x311   : > { %v14244_v15 = vpop.f32.mrb[20].mxu0 }
 0x312   : > { %v14246_v53 = vpop.f32.mrb[20].mxu1  ;;  %v14248_v1 = vpop.f32.mrb[21].mxu0 }
 0x313   : > { %v14250_v8 = vpop.f32.mrb[21].mxu1  ;;  %v14252_v49 = vpop.f32.mrb[22].mxu0 }
 0x314   : > { %v14254_v10 = vpop.f32.mrb[22].mxu1  ;;  %v14256_v59 = vpop.f32.mrb[23].mxu0 }
 0x315   : > { %v14258_v63 = vpop.f32.mrb[23].mxu1 }
 0x319   : > { %v14260_v33 = vpop.f32.mrb[24].mxu0 }
 0x31a   : > { %v14262_v25 = vpop.f32.mrb[24].mxu1  ;;  %v14264_v9 = vpop.f32.mrb[25].mxu0 }
 0x31b   : > { %v14266_v47 = vpop.f32.mrb[25].mxu1  ;;  %v14268_v32 = vpop.f32.mrb[26].mxu0 }
 0x31c   : > { %v14270_v22 = vpop.f32.mrb[26].mxu1  ;;  %v14272_v29 = vpop.f32.mrb[27].mxu0 }
 0x31d   : > { %v14274_v6 = vpop.f32.mrb[27].mxu1 }
 0x321   : > { %v9748_v2 = vpop.f32.mrb[28].mxu0 }
 0x322   : > { %v14280_v7 = vsel %vm6564_vm3, %v9748_v2, -inf  ;;  %v10100_v51 = vpop.f32.mrb[28].mxu1  ;;  %v14282_v41 = vpop.f32.mrb[29].mxu0  ;;  %v14341_v2 = vsel %vm6564_vm3, %v6232_v45, -inf }
 0x323   : > { %v14290_v38 = vsel %vm6564_vm3, %v10100_v51, -inf  ;;  %v14292_v17 = vpop.f32.mrb[29].mxu1  ;;  %v9749_v18 = vpop.f32.mrb[30].mxu0  ;;  %15705 = vst [vmem:[#allocation2_spill] sm:$0xff] %v14341_v2 }
 0x324   : > { %v14300_v37 = vsel %vm6564_vm3, %v9749_v18, -inf  ;;  %v10101_v48 = vpop.f32.mrb[30].mxu1  ;;  %v14302_v19 = vpop.f32.mrb[31].mxu0 }
 0x325   : > { %v14310_v36 = vsel %vm6564_vm3, %v10101_v48, -inf  ;;  %v14312_v16 = vpop.f32.mrb[31].mxu1 }
 0x329   : > { %v9752_v34 = vpop.f32.mrb[32].mxu0 }
 0x32a   : > { %v14338_v61 = vsel %vm6564_vm3, %v9752_v34, -inf  ;;  %v10104_v11 = vpop.f32.mrb[32].mxu1  ;;  %v4901_v46 = vpop.f32.mrb[33].mxu0 }
 0x32b   : > { %v14346_v4 = vsel %vm6564_vm3, %v10104_v11, -inf  ;;  %v14349_v39 = vsel %vm6564_vm3, %v4901_v46, -inf  ;;  %v6309_v51 = vpop.f32.mrb[33].mxu1  ;;  %v9753_v3 = vpop.f32.mrb[34].mxu0 }
 0x32c   : > { %v14356_v45 = vsel %vm6564_vm3, %v6309_v51, -inf  ;;  %v14359_v34 = vsel %vm6564_vm3, %v9753_v3, -inf  ;;  %v10105_v12 = vpop.f32.mrb[34].mxu1  ;;  %v4904_v11 = vpop.f32.mrb[35].mxu0  ;;  %v14373_v51 = vsel %vm6564_vm3, %v14210_v35, -inf  ;;  %v14390_v35 = vsel %vm6564_vm3, %v14222_v24, -inf }
 0x32d   : > { %15706 = vst [vmem:[#allocation10_spill] sm:$0xff] %v14359_v34  ;;  %v14366_v60 = vsel %vm6564_vm3, %v10105_v12, -inf  ;;  %v14369_v18 = vsel %vm6564_vm3, %v4904_v11, -inf  ;;  %v6312_v58 = vpop.f32.mrb[35].mxu1  ;;  %v14386_v11 = vsel %vm6564_vm3, %v14220_v0, -inf  ;;  %v14394_v3 = vsel %vm6564_vm3, %v14224_v56, -inf }
 0x32e   : > { %15707 = vst [vmem:[#allocation8_spill] sm:$0xff] %v14366_v60  ;;  %v14380_v46 = vsel %vm6564_vm3, %v6312_v58, -inf  ;;  %v14398_v58 = vsel %vm6564_vm3, %v14232_v40, -inf  ;;  %v14402_v12 = vsel %vm6564_vm3, %v14234_v31, -inf  ;;  %v14406_v0 = vsel %vm6564_vm3, %v14240_v28, -inf }
 0x32f   : > { %15708 = vst [vmem:[#allocation4_spill] sm:$0xff] %v14398_v58  ;;  %15709 = vst [vmem:[#allocation3_spill] sm:$0xff] %v14402_v12  ;;  %v14413_v56 = vsel %vm6564_vm3, %v14242_v13, -inf }
 0x330   : > { %15710 = vst [vmem:[#allocation5_spill] sm:$0xff] %v14406_v0  ;;  %15712 = vst [vmem:[#allocation12_spill] sm:$0xff] %v14413_v56 }
 0x331   : > { %v9756_v50 = vpop.f32.mrb[36].mxu0 }
 0x332   : > { %v14409_v24 = vsel %vm6564_vm3, %v9756_v50, -inf  ;;  %v10108_v52 = vpop.f32.mrb[36].mxu1  ;;  %v4917_v48 = vpop.f32.mrb[37].mxu0 }
 0x333   : > { %15711 = vst [vmem:[#allocation11_spill] sm:$0xff] %v14409_v24  ;;  %v14418_v60 = vsel %vm6564_vm3, %v10108_v52, -inf  ;;  %v14421_v31 = vsel %vm6564_vm3, %v4917_v48, -inf  ;;  %v6325_v28 = vpop.f32.mrb[37].mxu1  ;;  %v9757_v2 = vpop.f32.mrb[38].mxu0 }
 0x334   : > { %15713 = vst [vmem:[#allocation7_spill] sm:$0xff] %v14418_v60  ;;  %v14428_v13 = vsel %vm6564_vm3, %v6325_v28, -inf  ;;  %v14431_v55 = vsel %vm6564_vm3, %v9757_v2, -inf  ;;  %v10109_v40 = vpop.f32.mrb[38].mxu1  ;;  %v4920_v52 = vpop.f32.mrb[39].mxu0  ;;  %v14445_v28 = vsel %vm6564_vm3, %v14226_v30, -inf }
 0x335   : > { %15714 = vst [vmem:[#allocation18_spill] sm:$0xff] %v14431_v55  ;;  %v14438_v58 = vsel %vm6564_vm3, %v10109_v40, -inf  ;;  %v14441_v50 = vsel %vm6564_vm3, %v4920_v52, -inf  ;;  %v6328_v34 = vpop.f32.mrb[39].mxu1  ;;  %v14458_v52 = vsel %vm6564_vm3, %v14228_v43, -inf  ;;  %v14462_v30 = vsel %vm6564_vm3, %v14230_v20, -inf }
 0x336   : > { %15715 = vst [vmem:[#allocation6_spill] sm:$0xff] %v14438_v58  ;;  %v14452_v60 = vsel %vm6564_vm3, %v6328_v34, -inf  ;;  %v14466_v2 = vsel %vm6564_vm3, %v14236_v57, -inf  ;;  %v14470_v34 = vsel %vm6564_vm3, %v14248_v1, -inf  ;;  %v14474_v40 = vsel %vm6564_vm3, %v14250_v8, -inf }
 0x337   : > { %15716 = vst [vmem:[#allocation17_spill] sm:$0xff] %v14470_v34  ;;  %15717 = vst [vmem:[#allocation16_spill] sm:$0xff] %v14474_v40  ;;  %v14478_v43 = vsel %vm6564_vm3, %v14256_v59, -inf  ;;  %v14485_v57 = vsel %vm6564_vm3, %v14258_v63, -inf }
 0x338   : > { %15718 = vst [vmem:[#allocation13_spill] sm:$0xff] %v14478_v43  ;;  %15720 = vst [vmem:[#allocation20_spill] sm:$0xff] %v14485_v57 }
 0x339   : > { %v9760_v24 = vpop.f32.mrb[40].mxu0 }
 0x33a   : > { %v14481_v20 = vsel %vm6564_vm3, %v9760_v24, -inf  ;;  %v10112_v48 = vpop.f32.mrb[40].mxu1  ;;  %v4933_v58 = vpop.f32.mrb[41].mxu0 }
 0x33b   : > { %15719 = vst [vmem:[#allocation19_spill] sm:$0xff] %v14481_v20  ;;  %v14490_v56 = vsel %vm6564_vm3, %v10112_v48, -inf  ;;  %v14493_v8 = vsel %vm6564_vm3, %v4933_v58, -inf  ;;  %v6341_v59 = vpop.f32.mrb[41].mxu1  ;;  %v9761_v55 = vpop.f32.mrb[42].mxu0 }
 0x33c   : > { %15721 = vst [vmem:[#allocation15_spill] sm:$0xff] %v14490_v56  ;;  %v14500_v63 = vsel %vm6564_vm3, %v6341_v59, -inf  ;;  %v14503_v12 = vsel %vm6564_vm3, %v9761_v55, -inf  ;;  %v10113_v1 = vpop.f32.mrb[42].mxu1  ;;  %v4936_v48 = vpop.f32.mrb[43].mxu0  ;;  %v14517_v59 = vsel %vm6564_vm3, %v14238_v14, -inf }
 0x33d   : > { %15722 = vst [vmem:[#allocation24_spill] sm:$0xff] %v14503_v12  ;;  %v14510_v34 = vsel %vm6564_vm3, %v10113_v1, -inf  ;;  %v14513_v24 = vsel %vm6564_vm3, %v4936_v48, -inf  ;;  %v6344_v0 = vpop.f32.mrb[43].mxu1  ;;  %v14530_v48 = vsel %vm6564_vm3, %v14244_v15, -inf  ;;  %v14534_v14 = vsel %vm6564_vm3, %v14246_v53, -inf }
 0x33e   : > { %15723 = vst [vmem:[#allocation14_spill] sm:$0xff] %v14510_v34  ;;  %v14524_v56 = vsel %vm6564_vm3, %v6344_v0, -inf  ;;  %v14538_v55 = vsel %vm6564_vm3, %v14252_v49, -inf  ;;  %v14542_v0 = vsel %vm6564_vm3, %v14264_v9, -inf  ;;  %v14546_v1 = vsel %vm6564_vm3, %v14266_v47, -inf }
 0x33f   : > { %15724 = vst [vmem:[#allocation23_spill] sm:$0xff] %v14542_v0  ;;  %15725 = vst [vmem:[#allocation22_spill] sm:$0xff] %v14546_v1  ;;  %v14550_v15 = vsel %vm6564_vm3, %v14272_v29, -inf  ;;  %v14557_v49 = vsel %vm6564_vm3, %v14274_v6, -inf }
 0x340   : > { %15726 = vst [vmem:[#allocation21_spill] sm:$0xff] %v14550_v15  ;;  %15728 = vst [vmem:[#allocation42_spill] sm:$0xff] %v14557_v49 }
 0x341   : > { %v9764_v20 = vpop.f32.mrb[44].mxu0 }
 0x342   : > { %v14553_v53 = vsel %vm6564_vm3, %v9764_v20, -inf  ;;  %v10116_v58 = vpop.f32.mrb[44].mxu1  ;;  %v4949_v34 = vpop.f32.mrb[45].mxu0 }
 0x343   : > { %15727 = vst [vmem:[#allocation25_spill] sm:$0xff] %v14553_v53  ;;  %v14562_v57 = vsel %vm6564_vm3, %v10116_v58, -inf  ;;  %v14565_v47 = vsel %vm6564_vm3, %v4949_v34, -inf  ;;  %v6357_v29 = vpop.f32.mrb[45].mxu1  ;;  %v9765_v12 = vpop.f32.mrb[46].mxu0 }
 0x344   : > { %15729 = vst [vmem:[#allocation27_spill] sm:$0xff] %v14562_v57  ;;  %v14572_v6 = vsel %vm6564_vm3, %v6357_v29, -inf  ;;  %v14575_v40 = vsel %vm6564_vm3, %v9765_v12, -inf  ;;  %v10117_v9 = vpop.f32.mrb[46].mxu1  ;;  %v4952_v58 = vpop.f32.mrb[47].mxu0  ;;  %v14589_v29 = vsel %vm6564_vm3, %v14254_v10, -inf }
 0x345   : > { %15730 = vst [vmem:[#allocation30_spill] sm:$0xff] %v14575_v40  ;;  %v14582_v0 = vsel %vm6564_vm3, %v10117_v9, -inf  ;;  %v14585_v20 = vsel %vm6564_vm3, %v4952_v58, -inf  ;;  %v6360_v43 = vpop.f32.mrb[47].mxu1  ;;  %v14602_v58 = vsel %vm6564_vm3, %v14260_v33, -inf  ;;  %v14606_v10 = vsel %vm6564_vm3, %v14262_v25, -inf }
 0x346   : > { %15731 = vst [vmem:[#allocation40_spill] sm:$0xff] %v14582_v0  ;;  %v14596_v57 = vsel %vm6564_vm3, %v6360_v43, -inf  ;;  %v14610_v12 = vsel %vm6564_vm3, %v14268_v32, -inf  ;;  %v14614_v43 = vsel %vm6564_vm3, %v14282_v41, -inf  ;;  %v14618_v9 = vsel %vm6564_vm3, %v14292_v17, -inf }
 0x347   : > { %15732 = vst [vmem:[#allocation26_spill] sm:$0xff] %v14614_v43  ;;  %15733 = vst [vmem:[#allocation28_spill] sm:$0xff] %v14618_v9  ;;  %v14622_v33 = vsel %vm6564_vm3, %v14302_v19, -inf  ;;  %v14629_v32 = vsel %vm6564_vm3, %v14312_v16, -inf }
 0x348   : > { %15734 = vst [vmem:[#allocation37_spill] sm:$0xff] %v14622_v33  ;;  %15736 = vst [vmem:[#allocation32_spill] sm:$0xff] %v14629_v32  ;;  %v15742_v32 = vmax.f32 %v14322_v62, %v14356_v45  ;;  %v15745_v62 = vmax.f32 %v14326_v42, %v14369_v18  ;;  %v15748_v42 = vmax.f32 %v14305_v27, %v14310_v36 }
 0x349   : > { %v9768_v53 = vpop.f32.mrb[48].mxu0  ;;  %v15750_v27 = vmax.f32 %v14390_v35, %v14428_v13  ;;  %v15753_v35 = vmax.f32 %v14394_v3, %v14441_v50  ;;  %v15758_v3 = vld [vmem:[#allocation2_spill] sm:$0xff]  ;;  %v15759_v50 = vld [vmem:[#allocation8_spill] sm:$0xff] }
 0x34a   : > { %v14625_v25 = vsel %vm6564_vm3, %v9768_v53, -inf  ;;  %v10120_v34 = vpop.f32.mrb[48].mxu1  ;;  %v4965_v0 = vpop.f32.mrb[49].mxu0 }
 0x34b   : > { %15735 = vst [vmem:[#allocation31_spill] sm:$0xff] %v14625_v25  ;;  %v14634_v49 = vsel %vm6564_vm3, %v10120_v34, -inf  ;;  %v14637_v17 = vsel %vm6564_vm3, %v4965_v0, -inf  ;;  %v6373_v19 = vpop.f32.mrb[49].mxu1  ;;  %v9769_v40 = vpop.f32.mrb[50].mxu0 }
 0x34c   : > { %15737 = vst [vmem:[#allocation33_spill] sm:$0xff] %v14634_v49  ;;  %v14644_v16 = vsel %vm6564_vm3, %v6373_v19, -inf  ;;  %v14647_v1 = vsel %vm6564_vm3, %v9769_v40, -inf  ;;  %v10121_v41 = vpop.f32.mrb[50].mxu1  ;;  %v4968_v34 = vpop.f32.mrb[51].mxu0  ;;  %v14661_v19 = vsel %vm6564_vm3, %v14270_v22, -inf  ;;  %v15741_v22 = vmax.f32 %v14318_v23, %v14349_v39 }
 0x34d   : > { %15738 = vst [vmem:[#allocation29_spill] sm:$0xff] %v14647_v1  ;;  %v14654_v43 = vsel %vm6564_vm3, %v10121_v41, -inf  ;;  %v14657_v53 = vsel %vm6564_vm3, %v4968_v34, -inf  ;;  %v6376_v15 = vpop.f32.mrb[51].mxu1 }
 0x34e   : > { %15739 = vst [vmem:[#allocation34_spill] sm:$0xff] %v14654_v43  ;;  %v14668_v49 = vsel %vm6564_vm3, %v6376_v15, -inf }
 0x34f   : > { %15740 = vst [vmem:[#allocation38_spill] sm:$0xff] %v14668_v49 }
 0x351   : > { %v9772_v25 = vpop.f32.mrb[52].mxu0 }
 0x352   : > { %v7044_v34 = vsel %vm6564_vm3, %v9772_v25, -inf  ;;  %v10124_v1 = vpop.f32.mrb[52].mxu1  ;;  %v4981_v33 = vpop.f32.mrb[53].mxu0  ;;  %v15743_v25 = vmax.f32 %v14277_v44, %v14280_v7 }
 0x353   : > { %v14676_v9 = vmax.f32 %v15741_v22, %v7044_v34  ;;  %v7660_v40 = vsel %vm6564_vm3, %v10124_v1, -inf  ;;  %v7030_v0 = vsel %vm6564_vm3, %v4981_v33, -inf  ;;  %v6389_v43 = vpop.f32.mrb[53].mxu1  ;;  %v9773_v15 = vpop.f32.mrb[54].mxu0  ;;  %v15744_v33 = vmax.f32 %v14285_v26, %v14290_v38 }
 0x354   : > { %v14683_v41 = vmax.f32 %v15742_v32, %v7660_v40  ;;  %v14688_v49 = vmax.f32 %v15743_v25, %v7030_v0  ;;  %v7646_v23 = vsel %vm6564_vm3, %v6389_v43, -inf  ;;  %v7051_v39 = vsel %vm6564_vm3, %v9773_v15, -inf  ;;  %v10125_v34 = vpop.f32.mrb[54].mxu1  ;;  %v4984_v1 = vpop.f32.mrb[55].mxu0 }
 0x355   : > { %v14695_v22 = vmax.f32 %v15744_v33, %v7646_v23  ;;  %v14700_v45 = vmax.f32 %v15745_v62, %v7051_v39  ;;  %v7667_v44 = vsel %vm6564_vm3, %v10125_v34, -inf  ;;  %v7037_v7 = vsel %vm6564_vm3, %v4984_v1, -inf  ;;  %v6392_v32 = vpop.f32.mrb[55].mxu1 }
 0x356   : > { %v15746_v43 = vmax.f32 %v14373_v51, %v14380_v46  ;;  %v15747_v26 = vmax.f32 %v14295_v54, %v14300_v37  ;;  %v7653_v40 = vsel %vm6564_vm3, %v6392_v32, -inf  ;;  %v15749_v46 = vmax.f32 %v14386_v11, %v14421_v31 }
 0x357   : > { %v14718_v18 = vmax.f32 %v15748_v42, %v7653_v40  ;;  %v15751_v33 = vmax.f32 %v14329_v21, %v14338_v61  ;;  %v15752_v32 = vmax.f32 %v14332_v5, %v14346_v4  ;;  %v15754_v40 = vmax.f32 %v14445_v28, %v14452_v60 }
 0x358   : > { %v14707_v0 = vmax.f32 %v15746_v43, %v7667_v44  ;;  %v14712_v38 = vmax.f32 %v15747_v26, %v7037_v7  ;;  %v15761_v60 = vmax.f32 %v14458_v52, %v14493_v8 }
 0x359   : > { %v9776_v15 = vpop.f32.mrb[56].mxu0 }
 0x35a   : > { %v7072_v25 = vsel %vm6564_vm3, %v9776_v15, -inf  ;;  %v10128_v23 = vpop.f32.mrb[56].mxu1  ;;  %v4997_v39 = vpop.f32.mrb[57].mxu0  ;;  %v15755_v15 = vld [vmem:[#allocation9_spill] sm:$0xff] }
 0x35b   : > { %v14724_v51 = vmax.f32 %v15749_v46, %v7072_v25  ;;  %v7688_v54 = vsel %vm6564_vm3, %v10128_v23, -inf  ;;  %v7058_v37 = vsel %vm6564_vm3, %v4997_v39, -inf  ;;  %v6405_v34 = vpop.f32.mrb[57].mxu1  ;;  %v9777_v1 = vpop.f32.mrb[58].mxu0  ;;  %v15756_v25 = vld [vmem:[#allocation10_spill] sm:$0xff]  ;;  %v15760_v39 = vmax.f32 %v15758_v3, %v15759_v50 }
 0x35c   : > { %v14731_v36 = vmax.f32 %v15750_v27, %v7688_v54  ;;  %v14736_v62 = vmax.f32 %v15751_v33, %v7058_v37  ;;  %v7674_v11 = vsel %vm6564_vm3, %v6405_v34, -inf  ;;  %v7079_v31 = vsel %vm6564_vm3, %v9777_v1, -inf  ;;  %v10129_v44 = vpop.f32.mrb[58].mxu1  ;;  %v5000_v7 = vpop.f32.mrb[59].mxu0 }
 0x35d   : > { %v14743_v43 = vmax.f32 %v15752_v32, %v7674_v11  ;;  %v14748_v13 = vmax.f32 %v15753_v35, %v7079_v31  ;;  %v7695_v21 = vsel %vm6564_vm3, %v10129_v44, -inf  ;;  %v7065_v61 = vsel %vm6564_vm3, %v5000_v7, -inf  ;;  %v6408_v26 = vpop.f32.mrb[59].mxu1  ;;  %v15763_v32 = vld [vmem:[#allocation4_spill] sm:$0xff]  ;;  %v15764_v35 = vld [vmem:[#allocation11_spill] sm:$0xff] }
 0x35e   : > { %v14755_v42 = vmax.f32 %v15754_v40, %v7695_v21  ;;  %v15757_v5 = vmax.f32 %v15755_v15, %v15756_v25  ;;  %v7681_v23 = vsel %vm6564_vm3, %v6408_v26, -inf  ;;  %v15762_v44 = vmax.f32 %v14462_v30, %v14500_v63  ;;  %v15766_v15 = vld [vmem:[#allocation3_spill] sm:$0xff] }
 0x35f   : > { %v14766_v46 = vmax.f32 %v15760_v39, %v7681_v23  ;;  %v15765_v21 = vmax.f32 %v15763_v32, %v15764_v35  ;;  %v15767_v25 = vld [vmem:[#allocation7_spill] sm:$0xff]  ;;  %v15769_v30 = vmax.f32 %v14466_v2, %v14513_v24  ;;  %v15774_v2 = vld [vmem:[#allocation12_spill] sm:$0xff]  ;;  %v15775_v24 = vld [vmem:[#allocation6_spill] sm:$0xff] }
 0x360   : > { %v14760_v4 = vmax.f32 %v15757_v5, %v7065_v61  ;;  %v15768_v5 = vmax.f32 %v15766_v15, %v15767_v25  ;;  %v15778_v15 = vmax.f32 %v14534_v14, %v14572_v6  ;;  %v15785_v14 = vmax.f32 %v14538_v55, %v14585_v20  ;;  %v15790_v55 = vld [vmem:[#allocation20_spill] sm:$0xff]  ;;  %v15791_v20 = vld [vmem:[#allocation14_spill] sm:$0xff] }
 0x361   : > { %v9780_v54 = vpop.f32.mrb[60].mxu0 }
 0x362   : > { %v7100_v37 = vsel %vm6564_vm3, %v9780_v54, -inf  ;;  %v10132_v34 = vpop.f32.mrb[60].mxu1  ;;  %v5013_v1 = vpop.f32.mrb[61].mxu0  ;;  %v15770_v54 = vmax.f32 %v14517_v59, %v14524_v56  ;;  %v15777_v56 = vmax.f32 %v14530_v48, %v14565_v47 }
 0x363   : > { %v14772_v28 = vmax.f32 %v15761_v60, %v7100_v37  ;;  %v7716_v27 = vsel %vm6564_vm3, %v10132_v34, -inf  ;;  %v7086_v33 = vsel %vm6564_vm3, %v5013_v1, -inf  ;;  %v6421_v11 = vpop.f32.mrb[61].mxu1  ;;  %v9781_v31 = vpop.f32.mrb[62].mxu0  ;;  %v15771_v34 = vld [vmem:[#allocation5_spill] sm:$0xff]  ;;  %v15772_v1 = vld [vmem:[#allocation18_spill] sm:$0xff] }
 0x364   : > { %v14779_v7 = vmax.f32 %v15762_v44, %v7716_v27  ;;  %v14784_v61 = vmax.f32 %v15765_v21, %v7086_v33  ;;  %v7702_v52 = vsel %vm6564_vm3, %v6421_v11, -inf  ;;  %v7107_v8 = vsel %vm6564_vm3, %v9781_v31, -inf  ;;  %v10133_v26 = vpop.f32.mrb[62].mxu1  ;;  %v5016_v40 = vpop.f32.mrb[63].mxu0 }
 0x365   : > { %v14791_v23 = vmax.f32 %v15768_v5, %v7702_v52  ;;  %v14796_v63 = vmax.f32 %v15769_v30, %v7107_v8  ;;  %v7723_v3 = vsel %vm6564_vm3, %v10133_v26, -inf  ;;  %v7093_v50 = vsel %vm6564_vm3, %v5016_v40, -inf  ;;  %v6424_v39 = vpop.f32.mrb[63].mxu1  ;;  %v15779_v5 = vld [vmem:[#allocation17_spill] sm:$0xff]  ;;  %v15780_v30 = vld [vmem:[#allocation19_spill] sm:$0xff] }
 0x366   : > { %v14803_v37 = vmax.f32 %v15770_v54, %v7723_v3  ;;  %v15773_v60 = vmax.f32 %v15771_v34, %v15772_v1  ;;  %v7709_v33 = vsel %vm6564_vm3, %v6424_v39, -inf  ;;  %v15776_v11 = vmax.f32 %v15774_v2, %v15775_v24  ;;  %v15782_v34 = vld [vmem:[#allocation16_spill] sm:$0xff]  ;;  %v15783_v1 = vld [vmem:[#allocation15_spill] sm:$0xff] }
 0x367   : > { %v15781_v3 = vmax.f32 %v15779_v5, %v15780_v30 }
 0x368   : > { %v14808_v27 = vmax.f32 %v15773_v60, %v7093_v50  ;;  %v14814_v31 = vmax.f32 %v15776_v11, %v7709_v33  ;;  %v15784_v60 = vmax.f32 %v15782_v34, %v15783_v1  ;;  %v15794_v34 = vmax.f32 %v14606_v10, %v14644_v16 }
 0x369   : > { %v9784_v44 = vpop.f32.mrb[64].mxu0  ;;  %v15801_v10 = vmax.f32 %v14610_v12, %v14657_v53  ;;  %v15807_v12 = vld [vmem:[#allocation42_spill] sm:$0xff]  ;;  %v15808_v53 = vld [vmem:[#allocation40_spill] sm:$0xff] }
 0x36a   : > { %v7128_v32 = vsel %vm6564_vm3, %v9784_v44, -inf  ;;  %v10136_v35 = vpop.f32.mrb[64].mxu1  ;;  %v5029_v21 = vpop.f32.mrb[65].mxu0  ;;  %v15786_v44 = vmax.f32 %v14589_v29, %v14596_v57  ;;  %v15793_v57 = vmax.f32 %v14602_v58, %v14637_v17 }
 0x36b   : > { %v14820_v59 = vmax.f32 %v15777_v56, %v7128_v32  ;;  %v7744_v52 = vsel %vm6564_vm3, %v10136_v35, -inf  ;;  %v7114_v8 = vsel %vm6564_vm3, %v5029_v21, -inf  ;;  %v6437_v26 = vpop.f32.mrb[65].mxu1  ;;  %v9785_v40 = vpop.f32.mrb[66].mxu0  ;;  %v15787_v35 = vld [vmem:[#allocation13_spill] sm:$0xff]  ;;  %v15788_v21 = vld [vmem:[#allocation24_spill] sm:$0xff] }
 0x36c   : > { %v14827_v25 = vmax.f32 %v15778_v15, %v7744_v52  ;;  %v14832_v50 = vmax.f32 %v15781_v3, %v7114_v8  ;;  %v7730_v48 = vsel %vm6564_vm3, %v6437_v26, -inf  ;;  %v7135_v47 = vsel %vm6564_vm3, %v9785_v40, -inf  ;;  %v10137_v39 = vpop.f32.mrb[66].mxu1  ;;  %v5032_v54 = vpop.f32.mrb[67].mxu0 }
 0x36d   : > { %v14839_v33 = vmax.f32 %v15784_v60, %v7730_v48  ;;  %v14844_v6 = vmax.f32 %v15785_v14, %v7135_v47  ;;  %v7751_v2 = vsel %vm6564_vm3, %v10137_v39, -inf  ;;  %v7121_v24 = vsel %vm6564_vm3, %v5032_v54, -inf  ;;  %v6440_v11 = vpop.f32.mrb[67].mxu1  ;;  %v15795_v60 = vld [vmem:[#allocation23_spill] sm:$0xff]  ;;  %v15796_v14 = vld [vmem:[#allocation25_spill] sm:$0xff] }
 0x36e   : > { %v14851_v32 = vmax.f32 %v15786_v44, %v7751_v2  ;;  %v15789_v56 = vmax.f32 %v15787_v35, %v15788_v21  ;;  %v7737_v8 = vsel %vm6564_vm3, %v6440_v11, -inf  ;;  %v15792_v26 = vmax.f32 %v15790_v55, %v15791_v20  ;;  %v15798_v35 = vld [vmem:[#allocation22_spill] sm:$0xff]  ;;  %v15799_v21 = vld [vmem:[#allocation27_spill] sm:$0xff] }
 0x36f   : > { %v15797_v2 = vmax.f32 %v15795_v60, %v15796_v14 }
 0x370   : > { %v14856_v52 = vmax.f32 %v15789_v56, %v7121_v24  ;;  %v14862_v40 = vmax.f32 %v15792_v26, %v7737_v8  ;;  %v15800_v56 = vmax.f32 %v15798_v35, %v15799_v21 }
 0x371   : > { %v9788_v15 = vpop.f32.mrb[68].mxu0 }
 0x372   : > { %v7156_v5 = vsel %vm6564_vm3, %v9788_v15, -inf  ;;  %v10140_v30 = vpop.f32.mrb[68].mxu1  ;;  %v5045_v3 = vpop.f32.mrb[69].mxu0  ;;  %v15802_v15 = vld [vmem:[#allocation38_spill] sm:$0xff] }
 0x373   : > { %v14868_v29 = vmax.f32 %v15793_v57, %v7156_v5  ;;  %v7772_v48 = vsel %vm6564_vm3, %v10140_v30, -inf  ;;  %v7142_v47 = vsel %vm6564_vm3, %v5045_v3, -inf  ;;  %v6453_v39 = vpop.f32.mrb[69].mxu1  ;;  %v9789_v54 = vpop.f32.mrb[70].mxu0  ;;  %v15803_v5 = vmax.f32 %v14661_v19, %v15802_v15  ;;  %v15804_v3 = vld [vmem:[#allocation21_spill] sm:$0xff]  ;;  %v15805_v57 = vld [vmem:[#allocation30_spill] sm:$0xff] }
 0x374   : > { %v14875_v1 = vmax.f32 %v15794_v34, %v7772_v48  ;;  %v14880_v24 = vmax.f32 %v15797_v2, %v7142_v47  ;;  %v7758_v58 = vsel %vm6564_vm3, %v6453_v39, -inf  ;;  %v7163_v17 = vsel %vm6564_vm3, %v9789_v54, -inf  ;;  %v10141_v11 = vpop.f32.mrb[70].mxu1  ;;  %v5048_v44 = vpop.f32.mrb[71].mxu0 }
 0x375   : > { %v14887_v8 = vmax.f32 %v15800_v56, %v7758_v58  ;;  %v14892_v16 = vmax.f32 %v15801_v10, %v7163_v17  ;;  %v7779_v55 = vsel %vm6564_vm3, %v10141_v11, -inf  ;;  %v7149_v20 = vsel %vm6564_vm3, %v5048_v44, -inf  ;;  %v6456_v26 = vpop.f32.mrb[71].mxu1  ;;  %v15810_v56 = vld [vmem:[#allocation26_spill] sm:$0xff]  ;;  %v15811_v10 = vld [vmem:[#allocation31_spill] sm:$0xff] }
 0x376   : > { %v14899_v30 = vmax.f32 %v15803_v5, %v7779_v55  ;;  %v15806_v48 = vmax.f32 %v15804_v3, %v15805_v57  ;;  %v7765_v39 = vsel %vm6564_vm3, %v6456_v26, -inf  ;;  %v15809_v54 = vmax.f32 %v15807_v12, %v15808_v53 }
 0x377   : > { %v15812_v55 = vmax.f32 %v15810_v56, %v15811_v10  ;;  %v15819_v10 = vld [vmem:[#allocation32_spill] sm:$0xff] }
 0x378   : > { %v14904_v47 = vmax.f32 %v15806_v48, %v7149_v20  ;;  %v14910_v34 = vmax.f32 %v15809_v54, %v7765_v39  ;;  %v15814_v48 = vld [vmem:[#allocation33_spill] sm:$0xff] }
 0x379   : > { %v9792_v60 = vpop.f32.mrb[72].mxu0 }
 0x37a   : > { %v7032_v14 = vsel %vm6564_vm3, %v9792_v60, -inf  ;;  %v10144_v2 = vpop.f32.mrb[72].mxu1  ;;  %v5061_v58 = vpop.f32.mrb[73].mxu0 }
 0x37b   : > { %v7033_v19 = vmax.f32 %v14688_v49, %v7032_v14  ;;  %v7648_v17 = vsel %vm6564_vm3, %v10144_v2, -inf  ;;  %v7170_v11 = vsel %vm6564_vm3, %v5061_v58, -inf  ;;  %v6469_v44 = vpop.f32.mrb[73].mxu1  ;;  %v9793_v35 = vpop.f32.mrb[74].mxu0  ;;  %v14927_v49 = vld [vmem:[%s15166_s2] ss:$0 sm:$0xff] }
 0x37c   : > { %v7649_v21 = vmax.f32 %v14695_v22, %v7648_v17  ;;  %v14920_v20 = vmax.f32 %v15812_v55, %v7170_v11  ;;  %v7786_v26 = vsel %vm6564_vm3, %v6469_v44, -inf  ;;  %v7039_v15 = vsel %vm6564_vm3, %v9793_v35, -inf  ;;  %v10145_v5 = vpop.f32.mrb[74].mxu1  ;;  %v5064_v3 = vpop.f32.mrb[75].mxu0  ;;  %v15813_v22 = vld [vmem:[#allocation28_spill] sm:$0xff]  ;;  %v15816_v44 = vld [vmem:[#allocation37_spill] sm:$0xff] }
 0x37d   : > { %v7870_v57 = vadd.f32 %v14927_v49, %v7033_v19  ;;  %v15815_v39 = vmax.f32 %v15813_v22, %v15814_v48  ;;  %v7040_v53 = vmax.f32 %v14712_v38, %v7039_v15  ;;  %v7655_v54 = vsel %vm6564_vm3, %v10145_v5, -inf  ;;  %v6472_v60 = vpop.f32.mrb[75].mxu1  ;;  %v15817_v35 = vld [vmem:[#allocation29_spill] sm:$0xff]  ;;  %v15820_v55 = vld [vmem:[#allocation34_spill] sm:$0xff] }
 0x37e   : > { %v7958_v14 = vadd.f32 %v14927_v49, %v7649_v21  ;;  %v7656_v2 = vmax.f32 %v14718_v18, %v7655_v54  ;;  %v7177_v58 = vsel %vm6564_vm3, %v5064_v3, -inf  ;;  %v7793_v19 = vsel %vm6564_vm3, %v6472_v60, -inf }
 0x37f   : > { %v14933_v12 = vmax.f32 %v15815_v39, %v7786_v26  ;;  %v8046_v17 = vmax.f32 %v7870_v57, 0.0  ;;  %v7871_v11 = vadd.f32 %v14927_v49, %v7040_v53  ;;  %v15818_v56 = vmax.f32 %v15816_v44, %v15817_v35 }
 0x380   : > { %v15821_v26 = vmax.f32 %v15819_v10, %v15820_v55  ;;  %v8134_v21 = vmax.f32 %v7958_v14, 0.0  ;;  %v7959_v18 = vadd.f32 %v14927_v49, %v7656_v2 }
 0x381   : > { %v14945_v38 = vmax.f32 %v15818_v56, %v7177_v58  ;;  %8222 = vst.msk [vmem:[%s11688_s26 + $0x210] sm:$0xff] %vm6564_vm3, %v8046_v17  ;;  %v8047_v5 = vmax.f32 %v7871_v11, 0.0  ;;  %v9796_v3 = vpop.f32.mrb[76].mxu0 }
 0x382   : > { %v14950_v15 = vmax.f32 %v15821_v26, %v7793_v19  ;;  %8310 = vst.msk [vmem:[%s11688_s26 + $0x4d0] sm:$0xff] %vm6564_vm3, %v8134_v21  ;;  %v8135_v57 = vmax.f32 %v7959_v18, 0.0  ;;  %v7060_v22 = vsel %vm6564_vm3, %v9796_v3, -inf  ;;  %v10148_v48 = vpop.f32.mrb[76].mxu1  ;;  %v5077_v39 = vpop.f32.mrb[77].mxu0 }
 0x383   : > { %8223 = vst.msk [vmem:[%s11688_s26 + $0x218] sm:$0xff] %vm6564_vm3, %v8047_v5  ;;  %v7061_v53 = vmax.f32 %v14736_v62, %v7060_v22  ;;  %v7676_v54 = vsel %vm6564_vm3, %v10148_v48, -inf  ;;  %v7046_v60 = vsel %vm6564_vm3, %v5077_v39, -inf  ;;  %v6485_v14 = vpop.f32.mrb[77].mxu1  ;;  %v9797_v2 = vpop.f32.mrb[78].mxu0 }
 0x384   : > { %8311 = vst.msk [vmem:[%s11688_s26 + $0x4d8] sm:$0xff] %vm6564_vm3, %v8135_v57  ;;  %v7677_v58 = vmax.f32 %v14743_v43, %v7676_v54  ;;  %v7047_v19 = vmax.f32 %v14676_v9, %v7046_v60  ;;  %v7662_v17 = vsel %vm6564_vm3, %v6485_v14, -inf  ;;  %v7067_v11 = vsel %vm6564_vm3, %v9797_v2, -inf  ;;  %v10149_v44 = vpop.f32.mrb[78].mxu1  ;;  %v5080_v35 = vpop.f32.mrb[79].mxu0 }
 0x385   : > { %v7874_v62 = vadd.f32 %v14927_v49, %v7061_v53  ;;  %v7663_v56 = vmax.f32 %v14683_v41, %v7662_v17  ;;  %v7068_v10 = vmax.f32 %v14760_v4, %v7067_v11  ;;  %v7683_v55 = vsel %vm6564_vm3, %v10149_v44, -inf  ;;  %v6488_v26 = vpop.f32.mrb[79].mxu1 }
 0x386   : > { %v7962_v43 = vadd.f32 %v14927_v49, %v7677_v58  ;;  %v7872_v9 = vadd.f32 %v14927_v49, %v7047_v19  ;;  %v7684_v21 = vmax.f32 %v14766_v46, %v7683_v55  ;;  %v7053_v18 = vsel %vm6564_vm3, %v5080_v35, -inf }
 0x387   : > { %v8050_v5 = vmax.f32 %v7874_v62, 0.0  ;;  %v7960_v3 = vadd.f32 %v14927_v49, %v7663_v56  ;;  %v7875_v41 = vadd.f32 %v14927_v49, %v7068_v10  ;;  %v7054_v4 = vmax.f32 %v14700_v45, %v7053_v18 }
 0x388   : > { %v8138_v57 = vmax.f32 %v7962_v43, 0.0  ;;  %v8048_v22 = vmax.f32 %v7872_v9, 0.0  ;;  %v7963_v48 = vadd.f32 %v14927_v49, %v7684_v21  ;;  %v7669_v39 = vsel %vm6564_vm3, %v6488_v26, -inf }
 0x389   : > { %8226 = vst.msk [vmem:[%s11688_s26 + $0x230] sm:$0xff] %vm6564_vm3, %v8050_v5  ;;  %v8136_v46 = vmax.f32 %v7960_v3, 0.0  ;;  %v8051_v53 = vmax.f32 %v7875_v41, 0.0  ;;  %v7873_v54 = vadd.f32 %v14927_v49, %v7054_v4  ;;  %v7670_v60 = vmax.f32 %v14707_v0, %v7669_v39  ;;  %v9800_v14 = vpop.f32.mrb[80].mxu0 }
 0x38a   : > { %8314 = vst.msk [vmem:[%s11688_s26 + $0x4f0] sm:$0xff] %vm6564_vm3, %v8138_v57  ;;  %8224 = vst.msk [vmem:[%s11688_s26 + $0x220] sm:$0xff] %vm6564_vm3, %v8048_v22  ;;  %v8139_v45 = vmax.f32 %v7963_v48, 0.0  ;;  %v7088_v2 = vsel %vm6564_vm3, %v9800_v14, -inf  ;;  %v10152_v58 = vpop.f32.mrb[80].mxu1  ;;  %v5093_v19 = vpop.f32.mrb[81].mxu0 }
 0x38b   : > { %8312 = vst.msk [vmem:[%s11688_s26 + $0x4e0] sm:$0xff] %vm6564_vm3, %v8136_v46  ;;  %8227 = vst.msk [vmem:[%s11688_s26 + $0x238] sm:$0xff] %vm6564_vm3, %v8051_v53  ;;  %v8049_v17 = vmax.f32 %v7873_v54, 0.0  ;;  %v7961_v11 = vadd.f32 %v14927_v49, %v7670_v60  ;;  %v7089_v0 = vmax.f32 %v14784_v61, %v7088_v2  ;;  %v7704_v44 = vsel %vm6564_vm3, %v10152_v58, -inf  ;;  %v6501_v35 = vpop.f32.mrb[81].mxu1  ;;  %v9801_v62 = vpop.f32.mrb[82].mxu0 }
 0x38c   : > { %8315 = vst.msk [vmem:[%s11688_s26 + $0x4f8] sm:$0xff] %vm6564_vm3, %v8139_v45  ;;  %v7705_v56 = vmax.f32 %v14791_v23, %v7704_v44  ;;  %v7074_v10 = vsel %vm6564_vm3, %v5093_v19, -inf  ;;  %v7690_v55 = vsel %vm6564_vm3, %v6501_v35, -inf  ;;  %v7095_v26 = vsel %vm6564_vm3, %v9801_v62, -inf  ;;  %v10153_v43 = vpop.f32.mrb[82].mxu1  ;;  %v5096_v9 = vpop.f32.mrb[83].mxu0 }
 0x38d   : > { %8225 = vst.msk [vmem:[%s11688_s26 + $0x228] sm:$0xff] %vm6564_vm3, %v8049_v17  ;;  %v8137_v61 = vmax.f32 %v7961_v11, 0.0  ;;  %v7878_v21 = vadd.f32 %v14927_v49, %v7089_v0  ;;  %v7075_v18 = vmax.f32 %v14724_v51, %v7074_v10  ;;  %v7691_v5 = vmax.f32 %v14731_v36, %v7690_v55  ;;  %v6504_v23 = vpop.f32.mrb[83].mxu1 }
 0x38e   : > { %v7966_v3 = vadd.f32 %v14927_v49, %v7705_v56  ;;  %v7096_v41 = vmax.f32 %v14808_v27, %v7095_v26  ;;  %v7711_v4 = vsel %vm6564_vm3, %v10153_v43, -inf  ;;  %v7081_v57 = vsel %vm6564_vm3, %v5096_v9, -inf }
 0x38f   : > { %8313 = vst.msk [vmem:[%s11688_s26 + $0x4e8] sm:$0xff] %vm6564_vm3, %v8137_v61  ;;  %v8054_v22 = vmax.f32 %v7878_v21, 0.0  ;;  %v7876_v48 = vadd.f32 %v14927_v49, %v7075_v18  ;;  %v7964_v51 = vadd.f32 %v14927_v49, %v7691_v5  ;;  %v7712_v39 = vmax.f32 %v14814_v31, %v7711_v4 }
 0x390   : > { %v8142_v36 = vmax.f32 %v7966_v3, 0.0  ;;  %v7879_v46 = vadd.f32 %v14927_v49, %v7096_v41  ;;  %v7082_v27 = vmax.f32 %v14748_v13, %v7081_v57  ;;  %v7697_v53 = vsel %vm6564_vm3, %v6504_v23, -inf }
 0x391   : > { %8230 = vst.msk [vmem:[%s11688_s26 + $0x250] sm:$0xff] %vm6564_vm3, %v8054_v22  ;;  %v8052_v54 = vmax.f32 %v7876_v48, 0.0  ;;  %v8140_v60 = vmax.f32 %v7964_v51, 0.0  ;;  %v7967_v14 = vadd.f32 %v14927_v49, %v7712_v39  ;;  %v7698_v45 = vmax.f32 %v14755_v42, %v7697_v53  ;;  %v9804_v2 = vpop.f32.mrb[84].mxu0 }
 0x392   : > { %8318 = vst.msk [vmem:[%s11688_s26 + $0x510] sm:$0xff] %vm6564_vm3, %v8142_v36  ;;  %v8055_v31 = vmax.f32 %v7879_v46, 0.0  ;;  %v7877_v58 = vadd.f32 %v14927_v49, %v7082_v27  ;;  %v7116_v19 = vsel %vm6564_vm3, %v9804_v2, -inf  ;;  %v10156_v13 = vpop.f32.mrb[84].mxu1  ;;  %v5109_v17 = vpop.f32.mrb[85].mxu0 }
 0x393   : > { %8228 = vst.msk [vmem:[%s11688_s26 + $0x240] sm:$0xff] %vm6564_vm3, %v8052_v54  ;;  %8316 = vst.msk [vmem:[%s11688_s26 + $0x500] sm:$0xff] %vm6564_vm3, %v8140_v60  ;;  %v8143_v11 = vmax.f32 %v7967_v14, 0.0  ;;  %v7965_v0 = vadd.f32 %v14927_v49, %v7698_v45  ;;  %v7117_v42 = vmax.f32 %v14832_v50, %v7116_v19  ;;  %v7732_v44 = vsel %vm6564_vm3, %v10156_v13, -inf  ;;  %v6517_v35 = vpop.f32.mrb[85].mxu1  ;;  %v9805_v62 = vpop.f32.mrb[86].mxu0 }
 0x394   : > { %8231 = vst.msk [vmem:[%s11688_s26 + $0x258] sm:$0xff] %vm6564_vm3, %v8055_v31  ;;  %v8053_v56 = vmax.f32 %v7877_v58, 0.0  ;;  %v7733_v10 = vmax.f32 %v14839_v33, %v7732_v44  ;;  %v7102_v55 = vsel %vm6564_vm3, %v5109_v17, -inf  ;;  %v7718_v26 = vsel %vm6564_vm3, %v6517_v35, -inf  ;;  %v10157_v43 = vpop.f32.mrb[86].mxu1  ;;  %v5112_v9 = vpop.f32.mrb[87].mxu0 }
 0x395   : > { %8319 = vst.msk [vmem:[%s11688_s26 + $0x518] sm:$0xff] %vm6564_vm3, %v8143_v11  ;;  %v8141_v50 = vmax.f32 %v7965_v0, 0.0  ;;  %v7882_v61 = vadd.f32 %v14927_v49, %v7117_v42  ;;  %v7103_v21 = vmax.f32 %v14772_v28, %v7102_v55  ;;  %v7719_v18 = vmax.f32 %v14779_v7, %v7718_v26  ;;  %v6520_v5 = vpop.f32.mrb[87].mxu1 }
 0x396   : > { %8229 = vst.msk [vmem:[%s11688_s26 + $0x248] sm:$0xff] %vm6564_vm3, %v8053_v56  ;;  %v7970_v33 = vadd.f32 %v14927_v49, %v7733_v10  ;;  %v7123_v23 = vsel %vm6564_vm3, %v9805_v62, -inf  ;;  %v7739_v3 = vsel %vm6564_vm3, %v10157_v43, -inf  ;;  %v7109_v41 = vsel %vm6564_vm3, %v5112_v9, -inf }
 0x397   : > { %8317 = vst.msk [vmem:[%s11688_s26 + $0x508] sm:$0xff] %vm6564_vm3, %v8141_v50  ;;  %v8058_v4 = vmax.f32 %v7882_v61, 0.0  ;;  %v7880_v28 = vadd.f32 %v14927_v49, %v7103_v21  ;;  %v7968_v7 = vadd.f32 %v14927_v49, %v7719_v18  ;;  %v7124_v57 = vmax.f32 %v14856_v52, %v7123_v23 }
 0x398   : > { %v8146_v22 = vmax.f32 %v7970_v33, 0.0  ;;  %v7740_v48 = vmax.f32 %v14862_v40, %v7739_v3  ;;  %v7110_v51 = vmax.f32 %v14796_v63, %v7109_v41  ;;  %v7725_v39 = vsel %vm6564_vm3, %v6520_v5, -inf }
 0x399   : > { %8234 = vst.msk [vmem:[%s11688_s26 + $0x270] sm:$0xff] %vm6564_vm3, %v8058_v4  ;;  %v8056_v36 = vmax.f32 %v7880_v28, 0.0  ;;  %v8144_v46 = vmax.f32 %v7968_v7, 0.0  ;;  %v7883_v27 = vadd.f32 %v14927_v49, %v7124_v57  ;;  %v7726_v53 = vmax.f32 %v14803_v37, %v7725_v39  ;;  %v9808_v54 = vpop.f32.mrb[88].mxu0 }
 0x39a   : > { %8322 = vst.msk [vmem:[%s11688_s26 + $0x530] sm:$0xff] %vm6564_vm3, %v8146_v22  ;;  %v7971_v52 = vadd.f32 %v14927_v49, %v7740_v48  ;;  %v7881_v40 = vadd.f32 %v14927_v49, %v7110_v51  ;;  %v7144_v60 = vsel %vm6564_vm3, %v9808_v54, -inf  ;;  %v10160_v63 = vpop.f32.mrb[88].mxu1  ;;  %v5125_v14 = vpop.f32.mrb[89].mxu0 }
 0x39b   : > { %8232 = vst.msk [vmem:[%s11688_s26 + $0x260] sm:$0xff] %vm6564_vm3, %v8056_v36  ;;  %8320 = vst.msk [vmem:[%s11688_s26 + $0x520] sm:$0xff] %vm6564_vm3, %v8144_v46  ;;  %v8059_v45 = vmax.f32 %v7883_v27, 0.0  ;;  %v7969_v2 = vadd.f32 %v14927_v49, %v7726_v53  ;;  %v7145_v37 = vmax.f32 %v14880_v24, %v7144_v60  ;;  %v7760_v31 = vsel %vm6564_vm3, %v10160_v63, -inf  ;;  %v6533_v58 = vpop.f32.mrb[89].mxu1  ;;  %v9809_v19 = vpop.f32.mrb[90].mxu0 }
 0x39c   : > { %v8147_v13 = vmax.f32 %v7971_v52, 0.0  ;;  %v8057_v17 = vmax.f32 %v7881_v40, 0.0  ;;  %v7761_v11 = vmax.f32 %v14887_v8, %v7760_v31  ;;  %v7130_v0 = vsel %vm6564_vm3, %v5125_v14, -inf  ;;  %v10161_v42 = vpop.f32.mrb[90].mxu1  ;;  %v5128_v44 = vpop.f32.mrb[91].mxu0 }
 0x39d   : > { %8235 = vst.msk [vmem:[%s11688_s26 + $0x278] sm:$0xff] %vm6564_vm3, %v8059_v45  ;;  %v8145_v35 = vmax.f32 %v7969_v2, 0.0  ;;  %v7886_v24 = vadd.f32 %v14927_v49, %v7145_v37  ;;  %v7131_v62 = vmax.f32 %v14820_v59, %v7130_v0  ;;  %v7746_v56 = vsel %vm6564_vm3, %v6533_v58, -inf  ;;  %v6536_v10 = vpop.f32.mrb[91].mxu1 }
 0x39e   : > { %8323 = vst.msk [vmem:[%s11688_s26 + $0x538] sm:$0xff] %vm6564_vm3, %v8147_v13  ;;  %8233 = vst.msk [vmem:[%s11688_s26 + $0x268] sm:$0xff] %vm6564_vm3, %v8057_v17  ;;  %v7974_v8 = vadd.f32 %v14927_v49, %v7761_v11  ;;  %v7747_v55 = vmax.f32 %v14827_v25, %v7746_v56  ;;  %v7151_v26 = vsel %vm6564_vm3, %v9809_v19, -inf  ;;  %v7767_v43 = vsel %vm6564_vm3, %v10161_v42, -inf }
 0x39f   : > { %8321 = vst.msk [vmem:[%s11688_s26 + $0x528] sm:$0xff] %vm6564_vm3, %v8145_v35  ;;  %v8062_v59 = vmax.f32 %v7886_v24, 0.0  ;;  %v7884_v9 = vadd.f32 %v14927_v49, %v7131_v62  ;;  %v7152_v50 = vmax.f32 %v14904_v47, %v7151_v26  ;;  %v7768_v61 = vmax.f32 %v14910_v34, %v7767_v43 }
 0x3a0   : > { %v8150_v21 = vmax.f32 %v7974_v8, 0.0  ;;  %v7972_v18 = vadd.f32 %v14927_v49, %v7747_v55  ;;  %v7137_v25 = vsel %vm6564_vm3, %v5128_v44, -inf  ;;  %v7753_v5 = vsel %vm6564_vm3, %v6536_v10, -inf }
 0x3a1   : > { %8238 = vst.msk [vmem:[%s11688_s26 + $0x290] sm:$0xff] %vm6564_vm3, %v8062_v59  ;;  %v8060_v33 = vmax.f32 %v7884_v9, 0.0  ;;  %v7887_v23 = vadd.f32 %v14927_v49, %v7152_v50  ;;  %v7975_v3 = vadd.f32 %v14927_v49, %v7768_v61  ;;  %v7138_v47 = vmax.f32 %v14844_v6, %v7137_v25  ;;  %v9812_v41 = vpop.f32.mrb[92].mxu0 }
 0x3a2   : > { %8326 = vst.msk [vmem:[%s11688_s26 + $0x550] sm:$0xff] %vm6564_vm3, %v8150_v21  ;;  %v8148_v34 = vmax.f32 %v7972_v18, 0.0  ;;  %v7754_v4 = vmax.f32 %v14851_v32, %v7753_v5  ;;  %v7172_v28 = vsel %vm6564_vm3, %v9812_v41, -inf  ;;  %v10164_v7 = vpop.f32.mrb[92].mxu1  ;;  %v5141_v57 = vpop.f32.mrb[93].mxu0 }
 0x3a3   : > { %8236 = vst.msk [vmem:[%s11688_s26 + $0x280] sm:$0xff] %vm6564_vm3, %v8060_v33  ;;  %v8063_v22 = vmax.f32 %v7887_v23, 0.0  ;;  %v8151_v48 = vmax.f32 %v7975_v3, 0.0  ;;  %v7885_v51 = vadd.f32 %v14927_v49, %v7138_v47  ;;  %v7173_v6 = vmax.f32 %v14920_v20, %v7172_v28  ;;  %v6549_v39 = vpop.f32.mrb[93].mxu1  ;;  %v9813_v36 = vpop.f32.mrb[94].mxu0 }
 0x3a4   : > { %8324 = vst.msk [vmem:[%s11688_s26 + $0x540] sm:$0xff] %vm6564_vm3, %v8148_v34  ;;  %v7973_v32 = vadd.f32 %v14927_v49, %v7754_v4  ;;  %v7788_v46 = vsel %vm6564_vm3, %v10164_v7, -inf  ;;  %v7158_v27 = vsel %vm6564_vm3, %v5141_v57, -inf  ;;  %v7774_v53 = vsel %vm6564_vm3, %v6549_v39, -inf  ;;  %v10165_v54 = vpop.f32.mrb[94].mxu1  ;;  %v5144_v52 = vpop.f32.mrb[95].mxu0 }
 0x3a5   : > { %8239 = vst.msk [vmem:[%s11688_s26 + $0x298] sm:$0xff] %vm6564_vm3, %v8063_v22  ;;  %8327 = vst.msk [vmem:[%s11688_s26 + $0x558] sm:$0xff] %vm6564_vm3, %v8151_v48  ;;  %v8061_v20 = vmax.f32 %v7885_v51, 0.0  ;;  %v7890_v40 = vadd.f32 %v14927_v49, %v7173_v6  ;;  %v7789_v60 = vmax.f32 %v14933_v12, %v7788_v46  ;;  %v7159_v63 = vmax.f32 %v14868_v29, %v7158_v27  ;;  %v6552_v14 = vpop.f32.mrb[95].mxu1 }
 0x3a6   : > { %v8149_v45 = vmax.f32 %v7973_v32, 0.0  ;;  %v7775_v2 = vmax.f32 %v14875_v1, %v7774_v53  ;;  %v7179_v37 = vsel %vm6564_vm3, %v9813_v36, -inf  ;;  %v7795_v31 = vsel %vm6564_vm3, %v10165_v54, -inf }
 0x3a7   : > { %8237 = vst.msk [vmem:[%s11688_s26 + $0x288] sm:$0xff] %vm6564_vm3, %v8061_v20  ;;  %v8066_v58 = vmax.f32 %v7890_v40, 0.0  ;;  %v7978_v19 = vadd.f32 %v14927_v49, %v7789_v60  ;;  %v7888_v13 = vadd.f32 %v14927_v49, %v7159_v63  ;;  %v7180_v29 = vmax.f32 %v14945_v38, %v7179_v37 }
 0x3a8   : > { %8325 = vst.msk [vmem:[%s11688_s26 + $0x548] sm:$0xff] %vm6564_vm3, %v8149_v45  ;;  %v7976_v12 = vadd.f32 %v14927_v49, %v7775_v2  ;;  %v7796_v1 = vmax.f32 %v14950_v15, %v7795_v31  ;;  %v7165_v17 = vsel %vm6564_vm3, %v5144_v52, -inf  ;;  %v7781_v11 = vsel %vm6564_vm3, %v6552_v14, -inf }
 0x3a9   : > { %8242 = vst.msk [vmem:[%s11688_s26 + $0x2b0] sm:$0xff] %vm6564_vm3, %v8066_v58  ;;  %v8154_v0 = vmax.f32 %v7978_v19, 0.0  ;;  %v8064_v42 = vmax.f32 %v7888_v13, 0.0  ;;  %v7891_v44 = vadd.f32 %v14927_v49, %v7180_v29  ;;  %v7166_v38 = vmax.f32 %v14892_v16, %v7165_v17 }
 0x3aa   : > { %v8152_v35 = vmax.f32 %v7976_v12, 0.0  ;;  %v7979_v24 = vadd.f32 %v14927_v49, %v7796_v1  ;;  %v7782_v15 = vmax.f32 %v14899_v30, %v7781_v11 }
 0x3ab   : > { %8330 = vst.msk [vmem:[%s11688_s26 + $0x570] sm:$0xff] %vm6564_vm3, %v8154_v0  ;;  %8240 = vst.msk [vmem:[%s11688_s26 + $0x2a0] sm:$0xff] %vm6564_vm3, %v8064_v42  ;;  %v8067_v62 = vmax.f32 %v7891_v44, 0.0  ;;  %v7889_v56 = vadd.f32 %v14927_v49, %v7166_v38 }
 0x3ac   : > { %8328 = vst.msk [vmem:[%s11688_s26 + $0x560] sm:$0xff] %vm6564_vm3, %v8152_v35  ;;  %v8155_v10 = vmax.f32 %v7979_v24, 0.0  ;;  %v7977_v8 = vadd.f32 %v14927_v49, %v7782_v15 }
 0x3ad   : > { %8243 = vst.msk [vmem:[%s11688_s26 + $0x2b8] sm:$0xff] %vm6564_vm3, %v8067_v62  ;;  %v8065_v16 = vmax.f32 %v7889_v56, 0.0 }
 0x3ae   : > { %8331 = vst.msk [vmem:[%s11688_s26 + $0x578] sm:$0xff] %vm6564_vm3, %v8155_v10  ;;  %v8153_v55 = vmax.f32 %v7977_v8, 0.0 }
 0x3af   : > { %8241 = vst.msk [vmem:[%s11688_s26 + $0x2a8] sm:$0xff] %vm6564_vm3, %v8065_v16 }
 0x3b0   : > { %8329 = vst.msk [vmem:[%s11688_s26 + $0x568] sm:$0xff] %vm6564_vm3, %v8153_v55 }
 0x3b1 PF: > { %s13_s12 = sadd.s32 1, %s10541_s12  }
 0x3b2   : > { %p10_p4 = scmp.ge.s32.totalorder %s13_s12, 4  }
 0x3b4   :  { %12 = sbr.rel (!%p10_p4) target bundleno = 1 (0x1), region = 62 }

// kernel: _lambda_.4
= control target key start
LH: loop header
LB: loop body
LE: loop exit
PB: predicated region body
PF: predicated region fallthrough
CT: control target
= control target key end

     0   :  { %s4041_s12 = smov 0   ;;  %s4987_s0 = inlined_call_operand.vmem [shape: bf16[16,4,32,288], index: 0, kind: input, shape index: {}]   ;;  %s4988_s1 = inlined_call_operand.vmem [shape: bf16[288,64], index: 1, kind: input, shape index: {}]   ;;  %s4989_s2 = inlined_call_operand.vmem [shape: f32[1,64], index: 2, kind: input, shape index: {}]   ;;  %s4990_s3 = inlined_call_operand.vmem [shape: f32[16,32,64], index: 3, kind: output, shape index: {}]  }
   0x1 LB: > { %s3209_s13 = sadd.s32 4294967295, %s4018_s12   ;;  %p3213_p0 = scmp.ge.s32.totalorder %s4018_s12, 1  ;;  %s4018_s12 = sphi %s4041_s12, %s13_s12  }
   0x2   : > { %p139_p1 = scmp.lt.s32.totalorder %s4018_s12, 3 }
   0x4   : > { %p140_p2 = pnand %p3213_p0, %p139_p1 }
   0x6   : > { %143 = sbr.rel (%p140_p2) target bundleno = 681 (0x2a9), region = 32 }
   0xd   : > { %v3737_v0 = vld [vmem:[%s4988_s1] sm:$0xff]   ;;  %v4020_v1 = vmov 0   ;;  %s3214_s16 = sshll.u32 %s3209_s13, 3  ;;  %v3738_v2 = vld [vmem:[%s4988_s1 + $0x8] sm:$0xff]   ;;  %v3739_v3 = vld [vmem:[%s4988_s1 + $0x10] sm:$0xff]   ;;  %vm1540_vm0 = vcmask 261120  }
   0xe   : > { %1733 = vmatprep.subr.bf16.mxu0 %v4020_v1  ;;  %3695 = vmatprep.subr.bf16.mxu1 %v4020_v1  ;;  %p166_p3 = scmp.lt.s32.totalorder %s3214_s16, 15  ;;  %v3740_v4 = vld [vmem:[%s4988_s1 + $0x18] sm:$0xff]   ;;  %v3741_v5 = vld [vmem:[%s4988_s1 + $0x20] sm:$0xff]   ;;  %v3742_v7 = vld [vmem:[%s4988_s1 + $0x28] sm:$0xff]   ;;  %vm2823_vm1 = vcmask 523264  }
   0xf   : > { %1734 = vmatpush1.bf16.msra.mxu0 %v3737_v0  ;;  %3711 = vmatpush1.bf16.msra.mxu1 %v3737_v0  ;;  %v3743_v9 = vld [vmem:[%s4988_s1 + $0x30] sm:$0xff]   ;;  %v3744_v10 = vld [vmem:[%s4988_s1 + $0x38] sm:$0xff]   ;;  %v3745_v11 = vld [vmem:[%s4988_s1 + $0x40] sm:$0xff]  }
  0x10   : > { %1735 = vmatprep.subr.bf16.mxu0 %v4020_v1  ;;  %3696 = vmatprep.subr.bf16.mxu1 %v4020_v1  ;;  %s5032_s16 = smov (!%p166_p3, %s3214_s16), 15  ;;  %v3746_v12 = vld [vmem:[%s4988_s1 + $0x48] sm:$0xff]   ;;  %v3747_v13 = vld [vmem:[%s4988_s1 + $0x50] sm:$0xff]   ;;  %v3748_v14 = vld [vmem:[%s4988_s1 + $0x58] sm:$0xff]  }
  0x11   : > { %s3727_s23 = smul.u32 192, %s5032_s16  ;;  %v3749_v15 = vld [vmem:[%s4988_s1 + $0x60] sm:$0xff]   ;;  %v3750_v16 = vld [vmem:[%s4988_s1 + $0x68] sm:$0xff]   ;;  %v3751_v17 = vld [vmem:[%s4988_s1 + $0x70] sm:$0xff]   ;;  %s3496_s6 = sshll.u32 %s5032_s16, 5 }
  0x12   : > { %v3752_v18 = vld [vmem:[%s4988_s1 + $0x78] sm:$0xff]   ;;  %v3759_v19 = vld [vmem:[%s4988_s1 + $0x80] sm:$0xff]   ;;  %v3808_v24 = vld [vmem:[%s4988_s1 + $0x88] sm:$0xff]   ;;  %s4582_s8 = scalar_lea.vmem %s4990_s3, %s3496_s6 }
  0x13   : > { %1736 = vmatpush1.bf16.msra.mxu0 %v3738_v2  ;;  %3712 = vmatpush1.bf16.msra.mxu1 %v3738_v2  ;;  %s4078_s28 = scalar_lea.vmem %s4987_s0, %s3727_s23 }
  0x14   : > { %1737 = vmatprep.subr.bf16.mxu0 %v4020_v1  ;;  %3697 = vmatprep.subr.bf16.mxu1 %v4020_v1  ;;  %v3755_v6 = vld [vmem:[%s4078_s28 + $0x4] ss:$12 sps:$4 sm:$0xff]   ;;  %v3753_v20 = vld [vmem:[%s4078_s28] ss:$12 sps:$4 sm:$0xff]   ;;  %v3760_v22 = vld [vmem:[%s4078_s28 + $0x1c] ss:$12 sps:$4 sm:$0xff]  }
  0x15   : > { %v3758_v8 = vld [vmem:[%s4078_s28 + $0x484] ss:$12 sps:$4 sm:$0xff]   ;;  %1765 = vmatprep.mubr.bf16.mxu0 %v3755_v6  ;;  %v3756_v21 = vld [vmem:[%s4078_s28 + $0x480] ss:$12 sps:$4 sm:$0xff]   ;;  %v3762_v23 = vld [vmem:[%s4078_s28 + $0x49c] ss:$12 sps:$4 sm:$0xff]  }
  0x16   : > { %2149 = vmatprep.mubr.bf16.mxu1 %v3758_v8  ;;  %v3764_v25 = vld [vmem:[%s4078_s28 + $0x18] ss:$12 sps:$4 sm:$0xff]   ;;  %v3766_v27 = vld [vmem:[%s4078_s28 + $0x34] ss:$12 sps:$4 sm:$0xff]   ;;  %v3770_v29 = vld [vmem:[%s4078_s28 + $0x30] ss:$12 sps:$4 sm:$0xff]  }
  0x17   : > { %1738 = vmatpush1.bf16.msra.mxu0 %v3739_v3  ;;  %3713 = vmatpush1.bf16.msra.mxu1 %v3739_v3  ;;  %v3765_v26 = vld [vmem:[%s4078_s28 + $0x498] ss:$12 sps:$4 sm:$0xff]   ;;  %v3768_v28 = vld [vmem:[%s4078_s28 + $0x4b4] ss:$12 sps:$4 sm:$0xff]   ;;  %v3771_v30 = vld [vmem:[%s4078_s28 + $0x4b0] ss:$12 sps:$4 sm:$0xff]  }
  0x18   : > { %1739 = vmatprep.subr.bf16.mxu0 %v4020_v1  ;;  %3698 = vmatprep.subr.bf16.mxu1 %v4020_v1  ;;  %v3772_v31 = vld [vmem:[%s4078_s28 + $0x4c] ss:$12 sps:$4 sm:$0xff]   ;;  %v3776_v33 = vld [vmem:[%s4078_s28 + $0x48] ss:$12 sps:$4 sm:$0xff]   ;;  %v3778_v35 = vld [vmem:[%s4078_s28 + $0x64] ss:$12 sps:$4 sm:$0xff]  }
  0x19   : > { %v3774_v32 = vld [vmem:[%s4078_s28 + $0x4cc] ss:$12 sps:$4 sm:$0xff]   ;;  %v3777_v34 = vld [vmem:[%s4078_s28 + $0x4c8] ss:$12 sps:$4 sm:$0xff]   ;;  %v3780_v36 = vld [vmem:[%s4078_s28 + $0x4e4] ss:$12 sps:$4 sm:$0xff]  }
  0x1a   : > { %v3782_v37 = vld [vmem:[%s4078_s28 + $0x60] ss:$12 sps:$4 sm:$0xff]   ;;  %v3784_v39 = vld [vmem:[%s4078_s28 + $0x7c] ss:$12 sps:$4 sm:$0xff]   ;;  %v3788_v41 = vld [vmem:[%s4078_s28 + $0x78] ss:$12 sps:$4 sm:$0xff]  }
  0x1b   : > { %1740 = vmatpush1.bf16.msra.mxu0 %v3740_v4  ;;  %3714 = vmatpush1.bf16.msra.mxu1 %v3740_v4  ;;  %v3783_v38 = vld [vmem:[%s4078_s28 + $0x4e0] ss:$12 sps:$4 sm:$0xff]   ;;  %v3786_v40 = vld [vmem:[%s4078_s28 + $0x4fc] ss:$12 sps:$4 sm:$0xff]   ;;  %v3789_v42 = vld [vmem:[%s4078_s28 + $0x4f8] ss:$12 sps:$4 sm:$0xff]  }
  0x1c   : > { %1741 = vmatprep.subr.bf16.mxu0 %v4020_v1  ;;  %3699 = vmatprep.subr.bf16.mxu1 %v4020_v1  ;;  %v3790_v43 = vld [vmem:[%s4078_s28 + $0x94] ss:$12 sps:$4 sm:$0xff]   ;;  %v3794_v45 = vld [vmem:[%s4078_s28 + $0x90] ss:$12 sps:$4 sm:$0xff]   ;;  %v3796_v47 = vld [vmem:[%s4078_s28 + $0xac] ss:$12 sps:$4 sm:$0xff]  }
  0x1d   : > { %v3792_v44 = vld [vmem:[%s4078_s28 + $0x514] ss:$12 sps:$4 sm:$0xff]   ;;  %v3795_v46 = vld [vmem:[%s4078_s28 + $0x510] ss:$12 sps:$4 sm:$0xff]   ;;  %v3798_v48 = vld [vmem:[%s4078_s28 + $0x52c] ss:$12 sps:$4 sm:$0xff]  }
  0x1e   : > { %v3800_v49 = vld [vmem:[%s4078_s28 + $0xa8] ss:$12 sps:$4 sm:$0xff]   ;;  %v3802_v51 = vld [vmem:[%s4078_s28 + $0xc4] ss:$12 sps:$4 sm:$0xff]   ;;  %v3806_v53 = vld [vmem:[%s4078_s28 + $0xc0] ss:$12 sps:$4 sm:$0xff]  }
  0x1f   : > { %1742 = vmatpush1.bf16.msra.mxu0 %v3741_v5  ;;  %3715 = vmatpush1.bf16.msra.mxu1 %v3741_v5  ;;  %v3801_v50 = vld [vmem:[%s4078_s28 + $0x528] ss:$12 sps:$4 sm:$0xff]   ;;  %v3804_v52 = vld [vmem:[%s4078_s28 + $0x544] ss:$12 sps:$4 sm:$0xff]   ;;  %v3807_v54 = vld [vmem:[%s4078_s28 + $0x540] ss:$12 sps:$4 sm:$0xff]  }
  0x20   : > { %1743 = vmatprep.subr.bf16.mxu0 %v4020_v1  ;;  %3700 = vmatprep.subr.bf16.mxu1 %v4020_v1  ;;  %v3809_v55 = vld [vmem:[%s4078_s28 + $0xdc] ss:$12 sps:$4 sm:$0xff]   ;;  %v3813_v57 = vld [vmem:[%s4078_s28 + $0xd8] ss:$12 sps:$4 sm:$0xff]   ;;  %v3815_v59 = vld [vmem:[%s4078_s28 + $0xf4] ss:$12 sps:$4 sm:$0xff]  }
  0x21   : > { %v3811_v56 = vld [vmem:[%s4078_s28 + $0x55c] ss:$12 sps:$4 sm:$0xff]   ;;  %v3814_v58 = vld [vmem:[%s4078_s28 + $0x558] ss:$12 sps:$4 sm:$0xff]   ;;  %v3817_v60 = vld [vmem:[%s4078_s28 + $0x574] ss:$12 sps:$4 sm:$0xff]  }
  0x22   : > { %v3819_v61 = vld [vmem:[%s4078_s28 + $0xf0] ss:$12 sps:$4 sm:$0xff]   ;;  %v3821_v63 = vld [vmem:[%s4078_s28 + $0x10c] ss:$12 sps:$4 sm:$0xff]   ;;  %v3826_v2 = vld [vmem:[%s4078_s28 + $0x588] ss:$12 sps:$4 sm:$0xff]  }
  0x23   : > { %1744 = vmatpush1.bf16.msra.mxu0 %v3742_v7  ;;  %3716 = vmatpush1.bf16.msra.mxu1 %v3742_v7  ;;  %v3820_v62 = vld [vmem:[%s4078_s28 + $0x570] ss:$12 sps:$4 sm:$0xff]   ;;  %v3823_v0 = vld [vmem:[%s4078_s28 + $0x58c] ss:$12 sps:$4 sm:$0xff]  }
  0x24   : > { %1745 = vmatprep.subr.bf16.mxu0 %v4020_v1  ;;  %3701 = vmatprep.subr.bf16.mxu1 %v4020_v1  ;;  %v3827_v3 = vld [vmem:[%s4078_s28 + $0x124] ss:$12 sps:$4 sm:$0xff]   ;;  %v3831_v5 = vld [vmem:[%s4078_s28 + $0x120] ss:$12 sps:$4 sm:$0xff]   ;;  %v3833_v7 = vld [vmem:[%s4078_s28 + $0x13c] ss:$12 sps:$4 sm:$0xff]  }
  0x25   : > { %v3829_v4 = vld [vmem:[%s4078_s28 + $0x5a4] ss:$12 sps:$4 sm:$0xff]   ;;  %v3832_v6 = vld [vmem:[%s4078_s28 + $0x5a0] ss:$12 sps:$4 sm:$0xff]   ;;  %v3835_v8 = vld [vmem:[%s4078_s28 + $0x5bc] ss:$12 sps:$4 sm:$0xff]  }
  0x27   : > { %1746 = vmatpush1.bf16.msra.mxu0 %v3743_v9  ;;  %3717 = vmatpush1.bf16.msra.mxu1 %v3743_v9  ;;  %v3837_v9 = vld [vmem:[%s4078_s28 + $0x138] ss:$12 sps:$4 sm:$0xff]  }
  0x28   : > { %1747 = vmatprep.subr.bf16.mxu0 %v4020_v1  ;;  %3702 = vmatprep.subr.bf16.mxu1 %v4020_v1 }
  0x2b   : > { %1748 = vmatpush1.bf16.msra.mxu0 %v3744_v10  ;;  %3718 = vmatpush1.bf16.msra.mxu1 %v3744_v10  ;;  %v3838_v10 = vld [vmem:[%s4078_s28 + $0x5b8] ss:$12 sps:$4 sm:$0xff]  }
  0x2c   : > { %1749 = vmatprep.subr.bf16.mxu0 %v4020_v1  ;;  %3703 = vmatprep.subr.bf16.mxu1 %v4020_v1 }
  0x2f   : > { %1750 = vmatpush1.bf16.msra.mxu0 %v3745_v11  ;;  %3719 = vmatpush1.bf16.msra.mxu1 %v3745_v11  ;;  %v3839_v11 = vld [vmem:[%s4078_s28 + $0x154] ss:$12 sps:$4 sm:$0xff]  }
  0x30   : > { %1751 = vmatprep.subr.bf16.mxu0 %v4020_v1  ;;  %3704 = vmatprep.subr.bf16.mxu1 %v4020_v1 }
  0x33   : > { %1752 = vmatpush1.bf16.msra.mxu0 %v3746_v12  ;;  %3720 = vmatpush1.bf16.msra.mxu1 %v3746_v12  ;;  %v3841_v12 = vld [vmem:[%s4078_s28 + $0x5d4] ss:$12 sps:$4 sm:$0xff]  }
  0x34   : > { %1753 = vmatprep.subr.bf16.mxu0 %v4020_v1  ;;  %3705 = vmatprep.subr.bf16.mxu1 %v4020_v1 }
  0x37   : > { %1754 = vmatpush1.bf16.msra.mxu0 %v3747_v13  ;;  %3721 = vmatpush1.bf16.msra.mxu1 %v3747_v13  ;;  %v3843_v13 = vld [vmem:[%s4078_s28 + $0x150] ss:$12 sps:$4 sm:$0xff]  }
  0x38   : > { %1755 = vmatprep.subr.bf16.mxu0 %v4020_v1  ;;  %3706 = vmatprep.subr.bf16.mxu1 %v4020_v1 }
  0x3b   : > { %1756 = vmatpush1.bf16.msra.mxu0 %v3748_v14  ;;  %3722 = vmatpush1.bf16.msra.mxu1 %v3748_v14  ;;  %v3844_v14 = vld [vmem:[%s4078_s28 + $0x5d0] ss:$12 sps:$4 sm:$0xff]  }
  0x3c   : > { %1757 = vmatprep.subr.bf16.mxu0 %v4020_v1  ;;  %3707 = vmatprep.subr.bf16.mxu1 %v4020_v1 }
  0x3f   : > { %1758 = vmatpush1.bf16.msra.mxu0 %v3749_v15  ;;  %3723 = vmatpush1.bf16.msra.mxu1 %v3749_v15  ;;  %v3845_v15 = vld [vmem:[%s4078_s28 + $0x16c] ss:$12 sps:$4 sm:$0xff]  }
  0x40   : > { %1759 = vmatprep.subr.bf16.mxu0 %v4020_v1  ;;  %3708 = vmatprep.subr.bf16.mxu1 %v4020_v1 }
  0x43   : > { %1760 = vmatpush1.bf16.msra.mxu0 %v3750_v16  ;;  %3724 = vmatpush1.bf16.msra.mxu1 %v3750_v16  ;;  %v3847_v16 = vld [vmem:[%s4078_s28 + $0x5ec] ss:$12 sps:$4 sm:$0xff]  }
  0x44   : > { %1761 = vmatprep.subr.bf16.mxu0 %v4020_v1  ;;  %3709 = vmatprep.subr.bf16.mxu1 %v4020_v1 }
  0x47   : > { %1762 = vmatpush1.bf16.msra.mxu0 %v3751_v17  ;;  %3725 = vmatpush1.bf16.msra.mxu1 %v3751_v17  ;;  %v3849_v17 = vld [vmem:[%s4078_s28 + $0x168] ss:$12 sps:$4 sm:$0xff]  }
  0x48   : > { %1763 = vmatprep.subr.bf16.mxu0 %v4020_v1  ;;  %3710 = vmatprep.subr.bf16.mxu1 %v4020_v1  ;;  %v3825_v1 = vld [vmem:[%s4078_s28 + $0x108] ss:$12 sps:$4 sm:$0xff]  }
  0x4b   : > { %1764 = vmatpush1.bf16.msra.mxu0 %v3752_v18  ;;  %3726 = vmatpush1.bf16.msra.mxu1 %v3752_v18  ;;  %v3850_v18 = vld [vmem:[%s4078_s28 + $0x5e8] ss:$12 sps:$4 sm:$0xff]  }
  0x4c   : > { %3563 = vmatprep.subr.bf16.mxu1 %v3759_v19 }
  0x4e   : > { %1766 = vmatmul.mubr.bf16.vlgmr.msra.gmra.mrb[0].mxu0 %v3753_v20  ;;  %2150 = vmatmul.mubr.bf16.vlgmr.msra.gmra.mrb[0].mxu1 %v3756_v21  ;;  %v3853_v20 = vld [vmem:[%s4078_s28 + $0x8] ss:$12 sps:$4 sm:$0xff]   ;;  %v3854_v21 = vld [vmem:[%s4078_s28 + $0x180] ss:$12 sps:$4 sm:$0xff]  }
  0x4f   : > { %3564 = vmatpush3.bf16.msra.mxu1 %v3759_v19  ;;  %1773 = vmatprep.mubr.bf16.mxu0 %v3760_v22  ;;  %v3851_v19 = vld [vmem:[%s4078_s28 + $0x184] ss:$12 sps:$4 sm:$0xff]   ;;  %v3855_v22 = vld [vmem:[%s4078_s28 + $0x20] ss:$12 sps:$4 sm:$0xff]  }
  0x50   : > { %2157 = vmatprep.mubr.bf16.mxu1 %v3762_v23  ;;  %3565 = vmatprep.subr.bf16.mxu1 %v3808_v24  ;;  %v3856_v23 = vld [vmem:[%s4078_s28 + $0x19c] ss:$12 sps:$4 sm:$0xff]  }
  0x53   : > { %3566 = vmatpush3.bf16.msra.mxu1 %v3808_v24  ;;  %v3858_v24 = vld [vmem:[%s4078_s28 + $0x38] ss:$12 sps:$4 sm:$0xff]  }
  0x56   : > { %1774 = vmatmul.mubr.bf16.gmra.mrb[4].mxu0 %v3764_v25  ;;  %2158 = vmatmul.mubr.bf16.gmra.mrb[4].mxu1 %v3765_v26  ;;  %v3859_v25 = vld [vmem:[%s4078_s28 + $0x198] ss:$12 sps:$4 sm:$0xff]   ;;  %v3860_v26 = vld [vmem:[%s4078_s28 + $0x50] ss:$12 sps:$4 sm:$0xff]  }
  0x57   : > { %1781 = vmatprep.mubr.bf16.mxu0 %v3766_v27  ;;  %2165 = vmatprep.mubr.bf16.mxu1 %v3768_v28  ;;  %v3861_v27 = vld [vmem:[%s4078_s28 + $0x1b4] ss:$12 sps:$4 sm:$0xff]  }
  0x58   : > { %v3863_v28 = vld [vmem:[%s4078_s28 + $0x68] ss:$12 sps:$4 sm:$0xff]  }
  0x5e   : > { %1782 = vmatmul.mubr.bf16.gmra.mrb[8].mxu0 %v3770_v29  ;;  %2166 = vmatmul.mubr.bf16.gmra.mrb[8].mxu1 %v3771_v30  ;;  %v3864_v29 = vld [vmem:[%s4078_s28 + $0x1b0] ss:$12 sps:$4 sm:$0xff]   ;;  %v3865_v30 = vld [vmem:[%s4078_s28 + $0x80] ss:$12 sps:$4 sm:$0xff]  }
  0x5f   : > { %1789 = vmatprep.mubr.bf16.mxu0 %v3772_v31  ;;  %2173 = vmatprep.mubr.bf16.mxu1 %v3774_v32  ;;  %v3866_v31 = vld [vmem:[%s4078_s28 + $0x1cc] ss:$12 sps:$4 sm:$0xff]  }
  0x60   : > { %v3868_v32 = vld [vmem:[%s4078_s28 + $0x98] ss:$12 sps:$4 sm:$0xff]  }
  0x66   : > { %1790 = vmatmul.mubr.bf16.gmra.mrb[12].mxu0 %v3776_v33  ;;  %2174 = vmatmul.mubr.bf16.gmra.mrb[12].mxu1 %v3777_v34  ;;  %v3869_v33 = vld [vmem:[%s4078_s28 + $0x1c8] ss:$12 sps:$4 sm:$0xff]   ;;  %v3870_v34 = vld [vmem:[%s4078_s28 + $0xb0] ss:$12 sps:$4 sm:$0xff]  }
  0x67   : > { %1797 = vmatprep.mubr.bf16.mxu0 %v3778_v35  ;;  %2181 = vmatprep.mubr.bf16.mxu1 %v3780_v36  ;;  %v3871_v35 = vld [vmem:[%s4078_s28 + $0x1e4] ss:$12 sps:$4 sm:$0xff]   ;;  %v3873_v36 = vld [vmem:[%s4078_s28 + $0xc8] ss:$12 sps:$4 sm:$0xff]  }
  0x6e   : > { %1798 = vmatmul.mubr.bf16.gmra.mrb[16].mxu0 %v3782_v37  ;;  %2182 = vmatmul.mubr.bf16.gmra.mrb[16].mxu1 %v3783_v38  ;;  %v3874_v37 = vld [vmem:[%s4078_s28 + $0x1e0] ss:$12 sps:$4 sm:$0xff]  }
  0x6f   : > { %1805 = vmatprep.mubr.bf16.mxu0 %v3784_v39  ;;  %2189 = vmatprep.mubr.bf16.mxu1 %v3786_v40  ;;  %v3875_v38 = vld [vmem:[%s4078_s28 + $0xe0] ss:$12 sps:$4 sm:$0xff]   ;;  %v3876_v39 = vld [vmem:[%s4078_s28 + $0x1fc] ss:$12 sps:$4 sm:$0xff]   ;;  %v3878_v40 = vld [vmem:[%s4078_s28 + $0xf8] ss:$12 sps:$4 sm:$0xff]  }
  0x76   : > { %1806 = vmatmul.mubr.bf16.gmra.mrb[20].mxu0 %v3788_v41  ;;  %2190 = vmatmul.mubr.bf16.gmra.mrb[20].mxu1 %v3789_v42  ;;  %v3879_v41 = vld [vmem:[%s4078_s28 + $0x1f8] ss:$12 sps:$4 sm:$0xff]   ;;  %v3880_v42 = vld [vmem:[%s4078_s28 + $0x110] ss:$12 sps:$4 sm:$0xff]  }
  0x77   : > { %1813 = vmatprep.mubr.bf16.mxu0 %v3790_v43  ;;  %2197 = vmatprep.mubr.bf16.mxu1 %v3792_v44  ;;  %v3881_v43 = vld [vmem:[%s4078_s28 + $0x214] ss:$12 sps:$4 sm:$0xff]  }
  0x78   : > { %v3883_v44 = vld [vmem:[%s4078_s28 + $0x128] ss:$12 sps:$4 sm:$0xff]  }
  0x7e   : > { %1814 = vmatmul.mubr.bf16.gmra.mrb[24].mxu0 %v3794_v45  ;;  %2198 = vmatmul.mubr.bf16.gmra.mrb[24].mxu1 %v3795_v46  ;;  %v3884_v45 = vld [vmem:[%s4078_s28 + $0x210] ss:$12 sps:$4 sm:$0xff]   ;;  %v3885_v46 = vld [vmem:[%s4078_s28 + $0x140] ss:$12 sps:$4 sm:$0xff]  }
  0x7f   : > { %1821 = vmatprep.mubr.bf16.mxu0 %v3796_v47  ;;  %2205 = vmatprep.mubr.bf16.mxu1 %v3798_v48  ;;  %v3886_v47 = vld [vmem:[%s4078_s28 + $0x22c] ss:$12 sps:$4 sm:$0xff]  }
  0x80   : > { %v3888_v48 = vld [vmem:[%s4078_s28 + $0x158] ss:$12 sps:$4 sm:$0xff]  }
  0x86   : > { %1822 = vmatmul.mubr.bf16.gmra.mrb[28].mxu0 %v3800_v49  ;;  %2206 = vmatmul.mubr.bf16.gmra.mrb[28].mxu1 %v3801_v50  ;;  %v3889_v49 = vld [vmem:[%s4078_s28 + $0x228] ss:$12 sps:$4 sm:$0xff]   ;;  %v3890_v50 = vld [vmem:[%s4078_s28 + $0x170] ss:$12 sps:$4 sm:$0xff]  }
  0x87   : > { %1829 = vmatprep.mubr.bf16.mxu0 %v3802_v51  ;;  %2213 = vmatprep.mubr.bf16.mxu1 %v3804_v52  ;;  %v3891_v51 = vld [vmem:[%s4078_s28 + $0x244] ss:$12 sps:$4 sm:$0xff]   ;;  %v3893_v52 = vld [vmem:[%s4078_s28 + $0x188] ss:$12 sps:$4 sm:$0xff]  }
  0x8e   : > { %1830 = vmatmul.mubr.bf16.gmra.mrb[32].mxu0 %v3806_v53  ;;  %2214 = vmatmul.mubr.bf16.gmra.mrb[32].mxu1 %v3807_v54  ;;  %v3894_v53 = vld [vmem:[%s4078_s28 + $0x240] ss:$12 sps:$4 sm:$0xff]  }
  0x8f   : > { %1837 = vmatprep.mubr.bf16.mxu0 %v3809_v55  ;;  %2221 = vmatprep.mubr.bf16.mxu1 %v3811_v56  ;;  %v3895_v54 = vld [vmem:[%s4078_s28 + $0x1a0] ss:$12 sps:$4 sm:$0xff]   ;;  %v3896_v55 = vld [vmem:[%s4078_s28 + $0x25c] ss:$12 sps:$4 sm:$0xff]   ;;  %v3898_v56 = vld [vmem:[%s4078_s28 + $0x1b8] ss:$12 sps:$4 sm:$0xff]  }
  0x96   : > { %1838 = vmatmul.mubr.bf16.gmra.mrb[36].mxu0 %v3813_v57  ;;  %2222 = vmatmul.mubr.bf16.gmra.mrb[36].mxu1 %v3814_v58  ;;  %v3899_v57 = vld [vmem:[%s4078_s28 + $0x258] ss:$12 sps:$4 sm:$0xff]   ;;  %v3900_v58 = vld [vmem:[%s4078_s28 + $0x1d0] ss:$12 sps:$4 sm:$0xff]  }
  0x97   : > { %1845 = vmatprep.mubr.bf16.mxu0 %v3815_v59  ;;  %2229 = vmatprep.mubr.bf16.mxu1 %v3817_v60  ;;  %v3901_v59 = vld [vmem:[%s4078_s28 + $0x274] ss:$12 sps:$4 sm:$0xff]  }
  0x98   : > { %v3903_v60 = vld [vmem:[%s4078_s28 + $0x1e8] ss:$12 sps:$4 sm:$0xff]  }
  0x9e   : > { %1846 = vmatmul.mubr.bf16.gmra.mrb[40].mxu0 %v3819_v61  ;;  %2230 = vmatmul.mubr.bf16.gmra.mrb[40].mxu1 %v3820_v62  ;;  %v3904_v61 = vld [vmem:[%s4078_s28 + $0x270] ss:$12 sps:$4 sm:$0xff]   ;;  %v3905_v62 = vld [vmem:[%s4078_s28 + $0x200] ss:$12 sps:$4 sm:$0xff]  }
  0x9f   : > { %1853 = vmatprep.mubr.bf16.mxu0 %v3821_v63  ;;  %2237 = vmatprep.mubr.bf16.mxu1 %v3823_v0  ;;  %v3906_v63 = vld [vmem:[%s4078_s28 + $0x28c] ss:$12 sps:$4 sm:$0xff]  }
  0xa0   : > { %v3908_v0 = vld [vmem:[%s4078_s28 + $0x218] ss:$12 sps:$4 sm:$0xff]  }
  0xa6   : > { %1854 = vmatmul.mubr.bf16.gmra.mrb[44].mxu0 %v3825_v1  ;;  %2238 = vmatmul.mubr.bf16.gmra.mrb[44].mxu1 %v3826_v2 }
  0xa7   : > { %1861 = vmatprep.mubr.bf16.mxu0 %v3827_v3  ;;  %2245 = vmatprep.mubr.bf16.mxu1 %v3829_v4 }
  0xae   : > { %1862 = vmatmul.mubr.bf16.gmra.mrb[48].mxu0 %v3831_v5  ;;  %2246 = vmatmul.mubr.bf16.gmra.mrb[48].mxu1 %v3832_v6  ;;  %v3909_v5 = vld [vmem:[%s4078_s28 + $0x288] ss:$12 sps:$4 sm:$0xff]   ;;  %v3910_v6 = vld [vmem:[%s4078_s28 + $0x230] ss:$12 sps:$4 sm:$0xff]  }
  0xaf   : > { %1869 = vmatprep.mubr.bf16.mxu0 %v3833_v7  ;;  %2253 = vmatprep.mubr.bf16.mxu1 %v3835_v8 }
  0xb6   : > { %1870 = vmatmul.mubr.bf16.gmra.mrb[52].mxu0 %v3837_v9  ;;  %2254 = vmatmul.mubr.bf16.gmra.mrb[52].mxu1 %v3838_v10  ;;  %v3911_v9 = vld [vmem:[%s4078_s28 + $0x2a4] ss:$12 sps:$4 sm:$0xff]   ;;  %v3913_v10 = vld [vmem:[%s4078_s28 + $0x248] ss:$12 sps:$4 sm:$0xff]  }
  0xb7   : > { %1877 = vmatprep.mubr.bf16.mxu0 %v3839_v11  ;;  %2261 = vmatprep.mubr.bf16.mxu1 %v3841_v12 }
  0xbe   : > { %1878 = vmatmul.mubr.bf16.gmra.mrb[56].mxu0 %v3843_v13  ;;  %2262 = vmatmul.mubr.bf16.gmra.mrb[56].mxu1 %v3844_v14 }
  0xbf   : > { %1885 = vmatprep.mubr.bf16.mxu0 %v3845_v15  ;;  %2269 = vmatprep.mubr.bf16.mxu1 %v3847_v16 }
  0xc6   : > { %1886 = vmatmul.mubr.bf16.gmra.mrb[60].mxu0 %v3849_v17  ;;  %2270 = vmatmul.mubr.bf16.gmra.mrb[60].mxu1 %v3850_v18  ;;  %v3914_v17 = vld [vmem:[%s4078_s28 + $0x2a0] ss:$12 sps:$4 sm:$0xff]  }
  0xc7   : > { %1893 = vmatprep.mubr.bf16.mxu0 %v3851_v19  ;;  %3567 = vmatprep.mubr.msk.bf16.mxu1 %vm1540_vm0, %v3853_v20  ;;  %v3915_v18 = vld [vmem:[%s4078_s28 + $0x260] ss:$12 sps:$4 sm:$0xff]  }
  0xce   : > { %1894 = vmatmul.mubr.bf16.gmra.mrb[64].mxu0 %v3854_v21  ;;  %3568 = vmatmul.mubr.msk.bf16.vlgmr.msra.gmra.mrb[64].mxu1 %vm1540_vm0, %v3855_v22  ;;  %v3916_v21 = vld [vmem:[%s4078_s28 + $0x2bc] ss:$12 sps:$4 sm:$0xff]   ;;  %v3918_v22 = vld [vmem:[%s4078_s28 + $0x278] ss:$12 sps:$4 sm:$0xff]  }
  0xcf   : > { %1901 = vmatprep.mubr.bf16.mxu0 %v3856_v23  ;;  %3571 = vmatprep.mubr.msk.bf16.mxu1 %vm1540_vm0, %v3858_v24 }
  0xd6   : > { %1902 = vmatmul.mubr.bf16.gmra.mrb[68].mxu0 %v3859_v25  ;;  %3572 = vmatmul.mubr.msk.bf16.gmra.mrb[68].mxu1 %vm1540_vm0, %v3860_v26 }
  0xd7   : > { %1909 = vmatprep.mubr.bf16.mxu0 %v3861_v27  ;;  %3575 = vmatprep.mubr.msk.bf16.mxu1 %vm1540_vm0, %v3863_v28 }
  0xde   : > { %1910 = vmatmul.mubr.bf16.gmra.mrb[72].mxu0 %v3864_v29  ;;  %3576 = vmatmul.mubr.msk.bf16.gmra.mrb[72].mxu1 %vm1540_vm0, %v3865_v30  ;;  %v3919_v29 = vld [vmem:[%s4078_s28 + $0x2b8] ss:$12 sps:$4 sm:$0xff]   ;;  %v3920_v30 = vld [vmem:[%s4078_s28 + $0x290] ss:$12 sps:$4 sm:$0xff]  }
  0xdf   : > { %1917 = vmatprep.mubr.bf16.mxu0 %v3866_v31  ;;  %3579 = vmatprep.mubr.msk.bf16.mxu1 %vm1540_vm0, %v3868_v32 }
  0xe6   : > { %1918 = vmatmul.mubr.bf16.gmra.mrb[76].mxu0 %v3869_v33  ;;  %3580 = vmatmul.mubr.msk.bf16.gmra.mrb[76].mxu1 %vm1540_vm0, %v3870_v34  ;;  %v3921_v33 = vld [vmem:[%s4078_s28 + $0x2d4] ss:$12 sps:$4 sm:$0xff]  }
  0xe7   : > { %1925 = vmatprep.mubr.bf16.mxu0 %v3871_v35  ;;  %3583 = vmatprep.mubr.msk.bf16.mxu1 %vm1540_vm0, %v3873_v36  ;;  %v3923_v34 = vld [vmem:[%s4078_s28 + $0x2a8] ss:$12 sps:$4 sm:$0xff]  }
  0xee   : > { %1926 = vmatmul.mubr.bf16.gmra.mrb[80].mxu0 %v3874_v37  ;;  %3584 = vmatmul.mubr.msk.bf16.gmra.mrb[80].mxu1 %vm1540_vm0, %v3875_v38 }
  0xef   : > { %1933 = vmatprep.mubr.bf16.mxu0 %v3876_v39  ;;  %3587 = vmatprep.mubr.msk.bf16.mxu1 %vm1540_vm0, %v3878_v40 }
  0xf6   : > { %1934 = vmatmul.mubr.bf16.gmra.mrb[84].mxu0 %v3879_v41  ;;  %3588 = vmatmul.mubr.msk.bf16.gmra.mrb[84].mxu1 %vm1540_vm0, %v3880_v42  ;;  %v3924_v41 = vld [vmem:[%s4078_s28 + $0x2d0] ss:$12 sps:$4 sm:$0xff]   ;;  %v3925_v42 = vld [vmem:[%s4078_s28 + $0x2c0] ss:$12 sps:$4 sm:$0xff]  }
  0xf7   : > { %1941 = vmatprep.mubr.bf16.mxu0 %v3881_v43  ;;  %3591 = vmatprep.mubr.msk.bf16.mxu1 %vm1540_vm0, %v3883_v44 }
  0xfe   : > { %1942 = vmatmul.mubr.bf16.gmra.mrb[88].mxu0 %v3884_v45  ;;  %3592 = vmatmul.mubr.msk.bf16.gmra.mrb[88].mxu1 %vm1540_vm0, %v3885_v46  ;;  %v3926_v45 = vld [vmem:[%s4078_s28 + $0x2ec] ss:$12 sps:$4 sm:$0xff]  }
  0xff   : > { %1949 = vmatprep.mubr.bf16.mxu0 %v3886_v47  ;;  %3595 = vmatprep.mubr.msk.bf16.mxu1 %vm1540_vm0, %v3888_v48  ;;  %v3928_v46 = vld [vmem:[%s4078_s28 + $0x2d8] ss:$12 sps:$4 sm:$0xff]  }
 0x106   : > { %1950 = vmatmul.mubr.bf16.gmra.mrb[92].mxu0 %v3889_v49  ;;  %3596 = vmatmul.mubr.msk.bf16.gmra.mrb[92].mxu1 %vm1540_vm0, %v3890_v50 }
 0x107   : > { %1957 = vmatprep.mubr.bf16.mxu0 %v3891_v51  ;;  %3599 = vmatprep.mubr.msk.bf16.mxu1 %vm1540_vm0, %v3893_v52 }
 0x10e   : > { %1958 = vmatmul.mubr.bf16.gmra.mrb[96].mxu0 %v3894_v53  ;;  %3600 = vmatmul.mubr.msk.bf16.gmra.mrb[96].mxu1 %vm1540_vm0, %v3895_v54  ;;  %v3929_v53 = vld [vmem:[%s4078_s28 + $0x2e8] ss:$12 sps:$4 sm:$0xff]   ;;  %v3930_v54 = vld [vmem:[%s4078_s28 + $0x2f0] ss:$12 sps:$4 sm:$0xff]  }
 0x10f   : > { %1965 = vmatprep.mubr.bf16.mxu0 %v3896_v55  ;;  %3603 = vmatprep.mubr.msk.bf16.mxu1 %vm1540_vm0, %v3898_v56 }
 0x116   : > { %1966 = vmatmul.mubr.bf16.gmra.mrb[100].mxu0 %v3899_v57  ;;  %3604 = vmatmul.mubr.msk.bf16.gmra.mrb[100].mxu1 %vm1540_vm0, %v3900_v58  ;;  %v3931_v57 = vld [vmem:[%s4078_s28 + $0x304] ss:$12 sps:$4 sm:$0xff]   ;;  %v3933_v58 = vld [vmem:[%s4078_s28 + $0x308] ss:$12 sps:$4 sm:$0xff]  }
 0x117   : > { %1973 = vmatprep.mubr.bf16.mxu0 %v3901_v59  ;;  %3607 = vmatprep.mubr.msk.bf16.mxu1 %vm1540_vm0, %v3903_v60 }
 0x11e   : > { %1974 = vmatmul.mubr.bf16.gmra.mrb[104].mxu0 %v3904_v61  ;;  %3608 = vmatmul.mubr.msk.bf16.gmra.mrb[104].mxu1 %vm1540_vm0, %v3905_v62 }
 0x11f   : > { %1981 = vmatprep.mubr.bf16.mxu0 %v3906_v63  ;;  %3611 = vmatprep.mubr.msk.bf16.mxu1 %vm1540_vm0, %v3908_v0 }
 0x121   : > { %v4276_v1 = vpop.f32.mrb[0].mxu0  ;;  %v4278_v2 = vpop.f32.mrb[0].mxu1 }
 0x122   : > { %v1769_v3 = vpop.f32.mrb[1].mxu0  ;;  %v2153_v4 = vpop.f32.mrb[1].mxu1 }
 0x123   : > { %v4282_v7 = vpop.f32.mrb[2].mxu0  ;;  %v4284_v8 = vpop.f32.mrb[2].mxu1  ;;  %v3934_v3 = vld [vmem:[%s4078_s28 + $0x300] ss:$12 sps:$4 sm:$0xff]  }
 0x124   : > { %v1772_v11 = vpop.f32.mrb[3].mxu0  ;;  %v2156_v12 = vpop.f32.mrb[3].mxu1  ;;  %v3935_v4 = vld [vmem:[%s4078_s28 + $0x320] ss:$12 sps:$4 sm:$0xff]  }
 0x126   : > { %1982 = vmatmul.mubr.bf16.gmra.mrb[108].mxu0 %v3909_v5  ;;  %3612 = vmatmul.mubr.msk.bf16.gmra.mrb[108].mxu1 %vm1540_vm0, %v3910_v6 }
 0x127   : > { %1989 = vmatprep.mubr.bf16.mxu0 %v3911_v9  ;;  %3615 = vmatprep.mubr.msk.bf16.mxu1 %vm1540_vm0, %v3913_v10  ;;  %v3936_v9 = vld [vmem:[%s4078_s28 + $0x31c] ss:$12 sps:$4 sm:$0xff]   ;;  %v3938_v10 = vld [vmem:[%s4078_s28 + $0x338] ss:$12 sps:$4 sm:$0xff]  }
 0x129   : > { %v4290_v13 = vpop.f32.mrb[4].mxu0  ;;  %v4292_v14 = vpop.f32.mrb[4].mxu1 }
 0x12a   : > { %v1777_v15 = vpop.f32.mrb[5].mxu0  ;;  %v2161_v16 = vpop.f32.mrb[5].mxu1 }
 0x12b   : > { %v4296_v19 = vpop.f32.mrb[6].mxu0  ;;  %v4298_v20 = vpop.f32.mrb[6].mxu1 }
 0x12c   : > { %v1780_v23 = vpop.f32.mrb[7].mxu0  ;;  %v2164_v24 = vpop.f32.mrb[7].mxu1 }
 0x12e   : > { %1990 = vmatmul.mubr.bf16.gmra.mrb[112].mxu0 %v3914_v17  ;;  %3616 = vmatmul.mubr.msk.bf16.gmra.mrb[112].mxu1 %vm1540_vm0, %v3915_v18 }
 0x12f   : > { %1997 = vmatprep.mubr.bf16.mxu0 %v3916_v21  ;;  %3619 = vmatprep.mubr.msk.bf16.mxu1 %vm1540_vm0, %v3918_v22  ;;  %v3939_v21 = vld [vmem:[%s4078_s28 + $0x318] ss:$12 sps:$4 sm:$0xff]   ;;  %v3940_v22 = vld [vmem:[%s4078_s28 + $0x350] ss:$12 sps:$4 sm:$0xff]  }
 0x131   : > { %v4304_v25 = vpop.f32.mrb[8].mxu0  ;;  %v4306_v26 = vpop.f32.mrb[8].mxu1 }
 0x132   : > { %v1785_v27 = vpop.f32.mrb[9].mxu0  ;;  %v2169_v28 = vpop.f32.mrb[9].mxu1 }
 0x133   : > { %v4310_v31 = vpop.f32.mrb[10].mxu0  ;;  %v4312_v32 = vpop.f32.mrb[10].mxu1  ;;  %v3941_v27 = vld [vmem:[%s4078_s28 + $0x334] ss:$12 sps:$4 sm:$0xff]  }
 0x134   : > { %v1788_v35 = vpop.f32.mrb[11].mxu0  ;;  %v2172_v36 = vpop.f32.mrb[11].mxu1  ;;  %v3943_v28 = vld [vmem:[%s4078_s28 + $0x368] ss:$12 sps:$4 sm:$0xff]  }
 0x136   : > { %1998 = vmatmul.mubr.bf16.gmra.mrb[116].mxu0 %v3919_v29  ;;  %3620 = vmatmul.mubr.msk.bf16.gmra.mrb[116].mxu1 %vm1540_vm0, %v3920_v30 }
 0x137   : > { %2005 = vmatprep.mubr.bf16.mxu0 %v3921_v33  ;;  %3623 = vmatprep.mubr.msk.bf16.mxu1 %vm1540_vm0, %v3923_v34 }
 0x139   : > { %v4318_v37 = vpop.f32.mrb[12].mxu0  ;;  %v4320_v38 = vpop.f32.mrb[12].mxu1 }
 0x13a   : > { %v1793_v39 = vpop.f32.mrb[13].mxu0  ;;  %v2177_v40 = vpop.f32.mrb[13].mxu1 }
 0x13b   : > { %v4324_v43 = vpop.f32.mrb[14].mxu0  ;;  %v4326_v44 = vpop.f32.mrb[14].mxu1  ;;  %v3944_v39 = vld [vmem:[%s4078_s28 + $0x330] ss:$12 sps:$4 sm:$0xff]   ;;  %v3945_v40 = vld [vmem:[%s4078_s28 + $0x380] ss:$12 sps:$4 sm:$0xff]  }
 0x13c   : > { %v1796_v47 = vpop.f32.mrb[15].mxu0  ;;  %v2180_v48 = vpop.f32.mrb[15].mxu1 }
 0x13e   : > { %2006 = vmatmul.mubr.bf16.gmra.mrb[120].mxu0 %v3924_v41  ;;  %3624 = vmatmul.mubr.msk.bf16.gmra.mrb[120].mxu1 %vm1540_vm0, %v3925_v42 }
 0x13f   : > { %2013 = vmatprep.mubr.bf16.mxu0 %v3926_v45  ;;  %3627 = vmatprep.mubr.msk.bf16.mxu1 %vm1540_vm0, %v3928_v46  ;;  %v3946_v45 = vld [vmem:[%s4078_s28 + $0x34c] ss:$12 sps:$4 sm:$0xff]  }
 0x140   : > { %v3948_v46 = vld [vmem:[%s4078_s28 + $0x398] ss:$12 sps:$4 sm:$0xff]  }
 0x141   : > { %v4332_v49 = vpop.f32.mrb[16].mxu0  ;;  %v4334_v50 = vpop.f32.mrb[16].mxu1 }
 0x142   : > { %v1801_v51 = vpop.f32.mrb[17].mxu0  ;;  %v2185_v52 = vpop.f32.mrb[17].mxu1 }
 0x143   : > { %v4338_v55 = vpop.f32.mrb[18].mxu0  ;;  %v4340_v56 = vpop.f32.mrb[18].mxu1 }
 0x144   : > { %v1804_v59 = vpop.f32.mrb[19].mxu0  ;;  %v2188_v60 = vpop.f32.mrb[19].mxu1 }
 0x146   : > { %2014 = vmatmul.mubr.bf16.gmra.mrb[124].mxu0 %v3929_v53  ;;  %3628 = vmatmul.mubr.msk.bf16.gmra.mrb[124].mxu1 %vm1540_vm0, %v3930_v54 }
 0x147   : > { %2021 = vmatprep.mubr.bf16.mxu0 %v3931_v57  ;;  %3631 = vmatprep.mubr.msk.bf16.mxu1 %vm1540_vm0, %v3933_v58  ;;  %v3949_v57 = vld [vmem:[%s4078_s28 + $0x348] ss:$12 sps:$4 sm:$0xff]   ;;  %v3950_v58 = vld [vmem:[%s4078_s28 + $0x3b0] ss:$12 sps:$4 sm:$0xff]  }
 0x149   : > { %v4346_v61 = vpop.f32.mrb[20].mxu0  ;;  %v4348_v62 = vpop.f32.mrb[20].mxu1 }
 0x14a   : > { %v1809_v63 = vpop.f32.mrb[21].mxu0  ;;  %v2193_v0 = vpop.f32.mrb[21].mxu1 }
 0x14b   : > { %v4352_v5 = vpop.f32.mrb[22].mxu0  ;;  %v4354_v6 = vpop.f32.mrb[22].mxu1  ;;  %v3951_v63 = vld [vmem:[%s4078_s28 + $0x364] ss:$12 sps:$4 sm:$0xff]   ;;  %v3953_v0 = vld [vmem:[%s4078_s28 + $0x3c8] ss:$12 sps:$4 sm:$0xff]  }
 0x14c   : > { %v1812_v11 = vpop.f32.mrb[23].mxu0  ;;  %v2196_v12 = vpop.f32.mrb[23].mxu1 }
 0x14e   : > { %2022 = vmatmul.mubr.bf16.gmra.mrb[128].mxu0 %v3934_v3  ;;  %3632 = vmatmul.mubr.msk.bf16.gmra.mrb[128].mxu1 %vm1540_vm0, %v3935_v4 }
 0x14f   : > { %2029 = vmatprep.mubr.bf16.mxu0 %v3936_v9  ;;  %3635 = vmatprep.mubr.msk.bf16.mxu1 %vm1540_vm0, %v3938_v10 }
 0x151   : > { %v4360_v15 = vpop.f32.mrb[24].mxu0  ;;  %v4362_v16 = vpop.f32.mrb[24].mxu1 }
 0x152   : > { %4991 = vst [vmem:[#allocation2_spill] sm:$0xff] %v4362_v16  ;;  %v1817_v17 = vpop.f32.mrb[25].mxu0  ;;  %v2201_v18 = vpop.f32.mrb[25].mxu1 }
 0x153   : > { %v4366_v23 = vpop.f32.mrb[26].mxu0  ;;  %v4368_v24 = vpop.f32.mrb[26].mxu1  ;;  %v3954_v17 = vld [vmem:[%s4078_s28 + $0x360] ss:$12 sps:$4 sm:$0xff]  }
 0x154   : > { %4992 = vst [vmem:[#allocation3_spill] sm:$0xff] %v4368_v24  ;;  %v1820_v29 = vpop.f32.mrb[27].mxu0  ;;  %v2204_v30 = vpop.f32.mrb[27].mxu1  ;;  %v3955_v18 = vld [vmem:[%s4078_s28 + $0x3e0] ss:$12 sps:$4 sm:$0xff]  }
 0x156   : > { %2030 = vmatmul.mubr.bf16.gmra.mrb[132].mxu0 %v3939_v21  ;;  %3636 = vmatmul.mubr.msk.bf16.gmra.mrb[132].mxu1 %vm1540_vm0, %v3940_v22 }
 0x157   : > { %2037 = vmatprep.mubr.bf16.mxu0 %v3941_v27  ;;  %3639 = vmatprep.mubr.msk.bf16.mxu1 %vm1540_vm0, %v3943_v28  ;;  %v3956_v27 = vld [vmem:[%s4078_s28 + $0x37c] ss:$12 sps:$4 sm:$0xff]   ;;  %v3958_v28 = vld [vmem:[%s4078_s28 + $0x3f8] ss:$12 sps:$4 sm:$0xff]  }
 0x159   : > { %v4374_v33 = vpop.f32.mrb[28].mxu0  ;;  %v4376_v34 = vpop.f32.mrb[28].mxu1 }
 0x15a   : > { %4993 = vst [vmem:[#allocation4_spill] sm:$0xff] %v4376_v34  ;;  %v1825_v35 = vpop.f32.mrb[29].mxu0  ;;  %v2209_v36 = vpop.f32.mrb[29].mxu1 }
 0x15b   : > { %v4380_v41 = vpop.f32.mrb[30].mxu0  ;;  %v4382_v42 = vpop.f32.mrb[30].mxu1 }
 0x15c   : > { %4994 = vst [vmem:[#allocation5_spill] sm:$0xff] %v4382_v42  ;;  %v1828_v47 = vpop.f32.mrb[31].mxu0  ;;  %v2212_v48 = vpop.f32.mrb[31].mxu1 }
 0x15e   : > { %2038 = vmatmul.mubr.bf16.gmra.mrb[136].mxu0 %v3944_v39  ;;  %3640 = vmatmul.mubr.msk.bf16.gmra.mrb[136].mxu1 %vm1540_vm0, %v3945_v40 }
 0x15f   : > { %2045 = vmatprep.mubr.bf16.mxu0 %v3946_v45  ;;  %3643 = vmatprep.mubr.msk.bf16.mxu1 %vm1540_vm0, %v3948_v46  ;;  %v3959_v45 = vld [vmem:[%s4078_s28 + $0x378] ss:$12 sps:$4 sm:$0xff]   ;;  %v3960_v46 = vld [vmem:[%s4078_s28 + $0x410] ss:$12 sps:$4 sm:$0xff]  }
 0x161   : > { %v4388_v51 = vpop.f32.mrb[32].mxu0  ;;  %v4390_v52 = vpop.f32.mrb[32].mxu1 }
 0x162   : > { %4995 = vst [vmem:[#allocation6_spill] sm:$0xff] %v4390_v52  ;;  %v1833_v53 = vpop.f32.mrb[33].mxu0  ;;  %v2217_v54 = vpop.f32.mrb[33].mxu1 }
 0x163   : > { %v4394_v59 = vpop.f32.mrb[34].mxu0  ;;  %v4396_v60 = vpop.f32.mrb[34].mxu1  ;;  %v3961_v53 = vld [vmem:[%s4078_s28 + $0x394] ss:$12 sps:$4 sm:$0xff]  }
 0x164   : > { %4996 = vst [vmem:[#allocation7_spill] sm:$0xff] %v4396_v60  ;;  %v1836_v3 = vpop.f32.mrb[35].mxu0  ;;  %v2220_v4 = vpop.f32.mrb[35].mxu1  ;;  %v3963_v54 = vld [vmem:[%s4078_s28 + $0x428] ss:$12 sps:$4 sm:$0xff]  }
 0x165   : > { %v3990_v60 = vld [vmem:[%s4078_s28 + $0x530] ss:$12 sps:$4 sm:$0xff]  }
 0x166   : > { %2046 = vmatmul.mubr.bf16.gmra.mrb[140].mxu0 %v3949_v57  ;;  %3644 = vmatmul.mubr.msk.bf16.gmra.mrb[140].mxu1 %vm1540_vm0, %v3950_v58 }
 0x167   : > { %2053 = vmatprep.mubr.bf16.mxu0 %v3951_v63  ;;  %3647 = vmatprep.mubr.msk.bf16.mxu1 %vm1540_vm0, %v3953_v0 }
 0x169   : > { %v4402_v9 = vpop.f32.mrb[36].mxu0  ;;  %v4404_v10 = vpop.f32.mrb[36].mxu1 }
 0x16a   : > { %4997 = vst [vmem:[#allocation8_spill] sm:$0xff] %v4404_v10  ;;  %v1841_v11 = vpop.f32.mrb[37].mxu0  ;;  %v2225_v12 = vpop.f32.mrb[37].mxu1 }
 0x16b   : > { %v4408_v21 = vpop.f32.mrb[38].mxu0  ;;  %v4410_v22 = vpop.f32.mrb[38].mxu1  ;;  %v3964_v11 = vld [vmem:[%s4078_s28 + $0x390] ss:$12 sps:$4 sm:$0xff]   ;;  %v3965_v12 = vld [vmem:[%s4078_s28 + $0x440] ss:$12 sps:$4 sm:$0xff]  }
 0x16c   : > { %4998 = vst [vmem:[#allocation9_spill] sm:$0xff] %v4410_v22  ;;  %v1844_v29 = vpop.f32.mrb[39].mxu0  ;;  %v2228_v30 = vpop.f32.mrb[39].mxu1 }
 0x16e   : > { %2054 = vmatmul.mubr.bf16.gmra.mrb[144].mxu0 %v3954_v17  ;;  %3648 = vmatmul.mubr.msk.bf16.gmra.mrb[144].mxu1 %vm1540_vm0, %v3955_v18 }
 0x16f   : > { %2061 = vmatprep.mubr.bf16.mxu0 %v3956_v27  ;;  %3651 = vmatprep.mubr.msk.bf16.mxu1 %vm1540_vm0, %v3958_v28  ;;  %v3966_v27 = vld [vmem:[%s4078_s28 + $0x3ac] ss:$12 sps:$4 sm:$0xff]  }
 0x170   : > { %v3968_v28 = vld [vmem:[%s4078_s28 + $0x458] ss:$12 sps:$4 sm:$0xff]  }
 0x171   : > { %v4416_v35 = vpop.f32.mrb[40].mxu0  ;;  %v4418_v36 = vpop.f32.mrb[40].mxu1 }
 0x172   : > { %4999 = vst [vmem:[#allocation10_spill] sm:$0xff] %v4418_v36  ;;  %v1849_v39 = vpop.f32.mrb[41].mxu0  ;;  %v2233_v40 = vpop.f32.mrb[41].mxu1 }
 0x173   : > { %v4422_v47 = vpop.f32.mrb[42].mxu0  ;;  %v4424_v48 = vpop.f32.mrb[42].mxu1 }
 0x174   : > { %5000 = vst [vmem:[#allocation11_spill] sm:$0xff] %v4424_v48  ;;  %v1852_v57 = vpop.f32.mrb[43].mxu0  ;;  %v2236_v58 = vpop.f32.mrb[43].mxu1 }
 0x176   : > { %2062 = vmatmul.mubr.bf16.gmra.mrb[148].mxu0 %v3959_v45  ;;  %3652 = vmatmul.mubr.msk.bf16.gmra.mrb[148].mxu1 %vm1540_vm0, %v3960_v46 }
 0x177   : > { %2069 = vmatprep.mubr.bf16.mxu0 %v3961_v53  ;;  %3655 = vmatprep.mubr.msk.bf16.mxu1 %vm1540_vm0, %v3963_v54  ;;  %v3969_v53 = vld [vmem:[%s4078_s28 + $0x3a8] ss:$12 sps:$4 sm:$0xff]   ;;  %v3970_v54 = vld [vmem:[%s4078_s28 + $0x470] ss:$12 sps:$4 sm:$0xff]  }
 0x179   : > { %v4430_v63 = vpop.f32.mrb[44].mxu0  ;;  %v4432_v0 = vpop.f32.mrb[44].mxu1 }
 0x17a   : > { %5001 = vst [vmem:[#allocation12_spill] sm:$0xff] %v4432_v0  ;;  %v1857_v3 = vpop.f32.mrb[45].mxu0  ;;  %v2241_v4 = vpop.f32.mrb[45].mxu1 }
 0x17b   : > { %v4436_v17 = vpop.f32.mrb[46].mxu0  ;;  %v4438_v18 = vpop.f32.mrb[46].mxu1  ;;  %v3971_v3 = vld [vmem:[%s4078_s28 + $0x3c4] ss:$12 sps:$4 sm:$0xff]   ;;  %v3973_v4 = vld [vmem:[%s4078_s28 + $0x488] ss:$12 sps:$4 sm:$0xff]  }
 0x17c   : > { %5002 = vst [vmem:[#allocation13_spill] sm:$0xff] %v4438_v18  ;;  %v1860_v29 = vpop.f32.mrb[47].mxu0  ;;  %v2244_v30 = vpop.f32.mrb[47].mxu1  ;;  %v3984_v18 = vld [vmem:[%s4078_s28 + $0x3f0] ss:$12 sps:$4 sm:$0xff]  }
 0x17e   : > { %2070 = vmatmul.mubr.bf16.gmra.mrb[152].mxu0 %v3964_v11  ;;  %3656 = vmatmul.mubr.msk.bf16.gmra.mrb[152].mxu1 %vm1540_vm0, %v3965_v12 }
 0x17f   : > { %2077 = vmatprep.mubr.bf16.mxu0 %v3966_v27  ;;  %3659 = vmatprep.mubr.msk.bf16.mxu1 %vm1540_vm0, %v3968_v28 }
 0x181   : > { %v4444_v39 = vpop.f32.mrb[48].mxu0  ;;  %v4446_v40 = vpop.f32.mrb[48].mxu1 }
 0x182   : > { %5003 = vst [vmem:[#allocation14_spill] sm:$0xff] %v4446_v40  ;;  %v1865_v45 = vpop.f32.mrb[49].mxu0  ;;  %v2249_v46 = vpop.f32.mrb[49].mxu1 }
 0x183   : > { %v4450_v57 = vpop.f32.mrb[50].mxu0  ;;  %v4452_v58 = vpop.f32.mrb[50].mxu1  ;;  %v3974_v45 = vld [vmem:[%s4078_s28 + $0x3c0] ss:$12 sps:$4 sm:$0xff]  }
 0x184   : > { %5004 = vst [vmem:[#allocation15_spill] sm:$0xff] %v4452_v58  ;;  %v1868_v11 = vpop.f32.mrb[51].mxu0  ;;  %v2252_v12 = vpop.f32.mrb[51].mxu1  ;;  %v3975_v46 = vld [vmem:[%s4078_s28 + $0x4a0] ss:$12 sps:$4 sm:$0xff]  }
 0x186   : > { %2078 = vmatmul.mubr.bf16.gmra.mrb[156].mxu0 %v3969_v53  ;;  %3660 = vmatmul.mubr.msk.bf16.gmra.mrb[156].mxu1 %vm1540_vm0, %v3970_v54  ;;  %v3976_v53 = vld [vmem:[%s4078_s28 + $0x3dc] ss:$12 sps:$4 sm:$0xff]   ;;  %v3978_v54 = vld [vmem:[%s4078_s28 + $0x4b8] ss:$12 sps:$4 sm:$0xff]  }
 0x187   : > { %2085 = vmatprep.mubr.bf16.mxu0 %v3971_v3  ;;  %3663 = vmatprep.mubr.msk.bf16.mxu1 %vm1540_vm0, %v3973_v4 }
 0x189   : > { %v4458_v27 = vpop.f32.mrb[52].mxu0  ;;  %v4460_v28 = vpop.f32.mrb[52].mxu1 }
 0x18a   : > { %5005 = vst [vmem:[#allocation16_spill] sm:$0xff] %v4460_v28  ;;  %v1873_v29 = vpop.f32.mrb[53].mxu0  ;;  %v2257_v30 = vpop.f32.mrb[53].mxu1  ;;  %v3979_v28 = vld [vmem:[%s4078_s28 + $0x3d8] ss:$12 sps:$4 sm:$0xff]  }
 0x18b   : > { %v4464_v58 = vpop.f32.mrb[54].mxu0  ;;  %v4466_v11 = vpop.f32.mrb[54].mxu1 }
 0x18c   : > { %5006 = vst [vmem:[#allocation17_spill] sm:$0xff] %v4466_v11  ;;  %v1876_v3 = vpop.f32.mrb[55].mxu0  ;;  %v2260_v4 = vpop.f32.mrb[55].mxu1  ;;  %v3980_v11 = vld [vmem:[%s4078_s28 + $0x4d0] ss:$12 sps:$4 sm:$0xff]  }
 0x18e   : > { %2086 = vmatmul.mubr.bf16.gmra.mrb[160].mxu0 %v3974_v45  ;;  %3664 = vmatmul.mubr.msk.bf16.gmra.mrb[160].mxu1 %vm1540_vm0, %v3975_v46  ;;  %v3981_v45 = vld [vmem:[%s4078_s28 + $0x3f4] ss:$12 sps:$4 sm:$0xff]  }
 0x18f   : > { %2093 = vmatprep.mubr.bf16.mxu0 %v3976_v53  ;;  %3667 = vmatprep.mubr.msk.bf16.mxu1 %vm1540_vm0, %v3978_v54  ;;  %v3983_v46 = vld [vmem:[%s4078_s28 + $0x4e8] ss:$12 sps:$4 sm:$0xff]  }
 0x191   : > { %v4472_v12 = vpop.f32.mrb[56].mxu0  ;;  %v4474_v29 = vpop.f32.mrb[56].mxu1 }
 0x192   : > { %5007 = vst [vmem:[#allocation18_spill] sm:$0xff] %v4474_v29  ;;  %v1881_v30 = vpop.f32.mrb[57].mxu0  ;;  %v2265_v40 = vpop.f32.mrb[57].mxu1 }
 0x193   : > { %v4478_v48 = vpop.f32.mrb[58].mxu0  ;;  %v4480_v3 = vpop.f32.mrb[58].mxu1 }
 0x194   : > { %5008 = vst [vmem:[#allocation19_spill] sm:$0xff] %v4480_v3  ;;  %v1884_v53 = vpop.f32.mrb[59].mxu0  ;;  %v2268_v54 = vpop.f32.mrb[59].mxu1  ;;  %v3985_v3 = vld [vmem:[%s4078_s28 + $0x500] ss:$12 sps:$4 sm:$0xff]  }
 0x195   : > { %v3988_v54 = vld [vmem:[%s4078_s28 + $0x518] ss:$12 sps:$4 sm:$0xff]  }
 0x196   : > { %2094 = vmatmul.mubr.bf16.gmra.mrb[164].mxu0 %v3979_v28  ;;  %3668 = vmatmul.mubr.msk.bf16.gmra.mrb[164].mxu1 %vm1540_vm0, %v3980_v11  ;;  %v3986_v28 = vld [vmem:[%s4078_s28 + $0x40c] ss:$12 sps:$4 sm:$0xff]  }
 0x197   : > { %2101 = vmatprep.mubr.bf16.mxu0 %v3981_v45  ;;  %3671 = vmatprep.mubr.msk.bf16.mxu1 %vm1540_vm0, %v3983_v46 }
 0x199   : > { %v4486_v40 = vpop.f32.mrb[60].mxu0  ;;  %v4488_v4 = vpop.f32.mrb[60].mxu1 }
 0x19a   : > { %5009 = vst [vmem:[#allocation20_spill] sm:$0xff] %v4488_v4  ;;  %v1889_v30 = vpop.f32.mrb[61].mxu0  ;;  %v2273_v29 = vpop.f32.mrb[61].mxu1 }
 0x19b   : > { %v4492_v36 = vpop.f32.mrb[62].mxu0  ;;  %v4494_v53 = vpop.f32.mrb[62].mxu1 }
 0x19c   : > { %5010 = vst [vmem:[#allocation21_spill] sm:$0xff] %v4494_v53  ;;  %v1892_v11 = vpop.f32.mrb[63].mxu0  ;;  %v2276_v45 = vpop.f32.mrb[63].mxu1  ;;  %v3989_v53 = vld [vmem:[%s4078_s28 + $0x408] ss:$12 sps:$4 sm:$0xff]  }
 0x19e   : > { %2102 = vmatmul.mubr.bf16.gmra.mrb[168].mxu0 %v3984_v18  ;;  %3672 = vmatmul.mubr.msk.bf16.gmra.mrb[168].mxu1 %vm1540_vm0, %v3985_v3  ;;  %v3991_v18 = vld [vmem:[%s4078_s28 + $0x424] ss:$12 sps:$4 sm:$0xff]   ;;  %v3993_v3 = vld [vmem:[%s4078_s28 + $0x548] ss:$12 sps:$4 sm:$0xff]  }
 0x19f   : > { %2109 = vmatprep.mubr.bf16.mxu0 %v3986_v28  ;;  %3675 = vmatprep.mubr.msk.bf16.mxu1 %vm1540_vm0, %v3988_v54 }
 0x1a1   : > { %v4500_v29 = vpop.f32.mrb[64].mxu0  ;;  %v3569_v46 = vpop.f32.mrb[64].mxu1 }
 0x1a2   : > { %v2321_v30 = vadd.f32 %v3569_v46, %v4290_v13  ;;  %v1897_v4 = vpop.f32.mrb[65].mxu0  ;;  %v2312_v0 = vpop.f32.mrb[65].mxu1  ;;  %v3994_v46 = vld [vmem:[%s4078_s28 + $0x420] ss:$12 sps:$4 sm:$0xff]  }
 0x1a3   : > { %v2313_v11 = vadd.f32 %v2312_v0, %v4276_v1  ;;  %v4506_v22 = vpop.f32.mrb[66].mxu0  ;;  %v3570_v45 = vpop.f32.mrb[66].mxu1 }
 0x1a4   : > { %v2324_v28 = vadd.f32 %v3570_v45, %v4296_v19  ;;  %v1900_v54 = vpop.f32.mrb[67].mxu0  ;;  %v2315_v52 = vpop.f32.mrb[67].mxu1  ;;  %v3995_v45 = vld [vmem:[%s4078_s28 + $0x560] ss:$12 sps:$4 sm:$0xff]  }
 0x1a5   : > { %v2316_v10 = vadd.f32 %v2315_v52, %v4282_v7  ;;  %v3996_v54 = vld [vmem:[%s4078_s28 + $0x43c] ss:$12 sps:$4 sm:$0xff]  }
 0x1a6   : > { %2110 = vmatmul.mubr.bf16.gmra.mrb[172].mxu0 %v3989_v53  ;;  %3676 = vmatmul.mubr.msk.bf16.gmra.mrb[172].mxu1 %vm1540_vm0, %v3990_v60  ;;  %v3998_v60 = vld [vmem:[%s4078_s28 + $0x578] ss:$12 sps:$4 sm:$0xff]  }
 0x1a7   : > { %2117 = vmatprep.mubr.bf16.mxu0 %v3991_v18  ;;  %3679 = vmatprep.mubr.msk.bf16.mxu1 %vm1540_vm0, %v3993_v3  ;;  %v2838_v18 = vsel %vm2823_vm1, %v2321_v30, -inf }
 0x1a9   : > { %v4514_v1 = vpop.f32.mrb[68].mxu0  ;;  %v3573_v13 = vpop.f32.mrb[68].mxu1 }
 0x1aa   : > { %v2337_v0 = vadd.f32 %v3573_v13, %v4318_v37  ;;  %v1905_v4 = vpop.f32.mrb[69].mxu0  ;;  %v2328_v19 = vpop.f32.mrb[69].mxu1  ;;  %v2824_v37 = vsel %vm2823_vm1, %v2313_v11, -inf }
 0x1ab   : > { %v2329_v7 = vadd.f32 %v2328_v19, %v4304_v25  ;;  %v4520_v52 = vpop.f32.mrb[70].mxu0  ;;  %v3574_v53 = vpop.f32.mrb[70].mxu1  ;;  %v2845_v19 = vsel %vm2823_vm1, %v2324_v28, -inf }
 0x1ac   : > { %v2839_v3 = vsel %vm2823_vm1, %v2337_v0, -inf  ;;  %v2340_v24 = vadd.f32 %v3574_v53, %v4324_v43  ;;  %v1908_v42 = vpop.f32.mrb[71].mxu0  ;;  %v2331_v16 = vpop.f32.mrb[71].mxu1  ;;  %v2831_v43 = vsel %vm2823_vm1, %v2316_v10, -inf }
 0x1ad   : > { %v2840_v13 = vmax.f32 %v2838_v18, %v2839_v3  ;;  %v2825_v4 = vsel %vm2823_vm1, %v2329_v7, -inf  ;;  %v2332_v25 = vadd.f32 %v2331_v16, %v4310_v31  ;;  %v3999_v7 = vld [vmem:[%s4078_s28 + $0x438] ss:$12 sps:$4 sm:$0xff]   ;;  %v4001_v3 = vld [vmem:[%s4078_s28 + $0x454] ss:$12 sps:$4 sm:$0xff]  }
 0x1ae   : > { %v2826_v34 = vmax.f32 %v2824_v37, %v2825_v4  ;;  %v2846_v30 = vsel %vm2823_vm1, %v2340_v24, -inf  ;;  %2118 = vmatmul.mubr.bf16.gmra.mrb[176].mxu0 %v3994_v46  ;;  %3680 = vmatmul.mubr.msk.bf16.gmra.mrb[176].mxu1 %vm1540_vm0, %v3995_v45  ;;  %v4000_v45 = vld [vmem:[%s4078_s28 + $0x590] ss:$12 sps:$4 sm:$0xff]   ;;  %v4003_v37 = vld [vmem:[%s4078_s28 + $0x5a8] ss:$12 sps:$4 sm:$0xff]  }
 0x1af   : > { %v2847_v42 = vmax.f32 %v2845_v19, %v2846_v30  ;;  %v2832_v11 = vsel %vm2823_vm1, %v2332_v25, -inf  ;;  %2125 = vmatprep.mubr.bf16.mxu0 %v3996_v54  ;;  %3683 = vmatprep.mubr.msk.bf16.mxu1 %vm1540_vm0, %v3998_v60 }
 0x1b0   : > { %v2833_v31 = vmax.f32 %v2831_v43, %v2832_v11 }
 0x1b1   : > { %v4536_v16 = vpop.f32.mrb[72].mxu0  ;;  %v3577_v28 = vpop.f32.mrb[72].mxu1 }
 0x1b2   : > { %v2353_v0 = vadd.f32 %v3577_v28, %v4346_v61  ;;  %v1913_v24 = vpop.f32.mrb[73].mxu0  ;;  %v2344_v46 = vpop.f32.mrb[73].mxu1 }
 0x1b3   : > { %v2345_v10 = vadd.f32 %v2344_v46, %v4332_v49  ;;  %v4542_v53 = vpop.f32.mrb[74].mxu0  ;;  %v3578_v18 = vpop.f32.mrb[74].mxu1  ;;  %v4004_v46 = vld [vmem:[%s4078_s28 + $0x450] ss:$12 sps:$4 sm:$0xff]  }
 0x1b4   : > { %v2841_v54 = vsel %vm2823_vm1, %v2353_v0, -inf  ;;  %v2356_v60 = vadd.f32 %v3578_v18, %v4352_v5  ;;  %v1916_v4 = vpop.f32.mrb[75].mxu0  ;;  %v2347_v25 = vpop.f32.mrb[75].mxu1  ;;  %v4006_v18 = vld [vmem:[%s4078_s28 + $0x46c] ss:$12 sps:$4 sm:$0xff]  }
 0x1b5   : > { %v2842_v19 = vmax.f32 %v2840_v13, %v2841_v54  ;;  %v2827_v61 = vsel %vm2823_vm1, %v2345_v10, -inf  ;;  %v2348_v30 = vadd.f32 %v2347_v25, %v4338_v55 }
 0x1b6   : > { %v2828_v43 = vmax.f32 %v2826_v34, %v2827_v61  ;;  %v2848_v49 = vsel %vm2823_vm1, %v2356_v60, -inf  ;;  %2126 = vmatmul.mubr.bf16.gmra.mrb[180].mxu0 %v3999_v7  ;;  %3684 = vmatmul.mubr.msk.bf16.gmra.mrb[180].mxu1 %vm1540_vm0, %v4000_v45  ;;  %v4005_v7 = vld [vmem:[%s4078_s28 + $0x5c0] ss:$12 sps:$4 sm:$0xff]  }
 0x1b7   : > { %v2849_v11 = vmax.f32 %v2847_v42, %v2848_v49  ;;  %v2834_v5 = vsel %vm2823_vm1, %v2348_v30, -inf  ;;  %2133 = vmatprep.mubr.bf16.mxu0 %v4001_v3  ;;  %3687 = vmatprep.mubr.msk.bf16.mxu1 %vm1540_vm0, %v4003_v37  ;;  %v4008_v3 = vld [vmem:[%s4078_s28 + $0x5d8] ss:$12 sps:$4 sm:$0xff]  }
 0x1b8   : > { %v2835_v13 = vmax.f32 %v2833_v31, %v2834_v5  ;;  %v4568_v31 = vld [vmem:[%s4989_s2] ss:$0 sm:$0xff] }
 0x1b9   : > { %v4554_v28 = vpop.f32.mrb[76].mxu0  ;;  %v3581_v0 = vpop.f32.mrb[76].mxu1 }
 0x1ba   : > { %v2369_v55 = vadd.f32 %v3581_v0, %v4374_v33  ;;  %v1921_v34 = vpop.f32.mrb[77].mxu0  ;;  %v2360_v24 = vpop.f32.mrb[77].mxu1 }
 0x1bb   : > { %v2361_v45 = vadd.f32 %v2360_v24, %v4360_v15  ;;  %v4560_v42 = vpop.f32.mrb[78].mxu0  ;;  %v3582_v10 = vpop.f32.mrb[78].mxu1  ;;  %v4009_v34 = vld [vmem:[%s4078_s28 + $0x468] ss:$12 sps:$4 sm:$0xff]  }
 0x1bc   : > { %v2843_v37 = vsel %vm2823_vm1, %v2369_v55, -inf  ;;  %v2372_v33 = vadd.f32 %v3582_v10, %v4380_v41  ;;  %v1924_v54 = vpop.f32.mrb[79].mxu0  ;;  %v2363_v60 = vpop.f32.mrb[79].mxu1 }
 0x1bd   : > { %v2844_v4 = vmax.f32 %v2842_v19, %v2843_v37  ;;  %v2829_v15 = vsel %vm2823_vm1, %v2361_v45, -inf  ;;  %v2364_v25 = vadd.f32 %v2363_v60, %v4366_v23 }
 0x1be   : > { %v2830_v61 = vmax.f32 %v2828_v43, %v2829_v15  ;;  %v2850_v30 = vsel %vm2823_vm1, %v2372_v33, -inf  ;;  %2134 = vmatmul.mubr.bf16.gmra.mrb[184].mxu0 %v4004_v46  ;;  %3688 = vmatmul.mubr.msk.bf16.gmra.mrb[184].mxu1 %vm1540_vm0, %v4005_v7 }
 0x1bf   : > { %v3057_v49 = vadd.f32 %v4568_v31, %v2844_v4  ;;  %v2851_v5 = vmax.f32 %v2849_v11, %v2850_v30  ;;  %v2836_v41 = vsel %vm2823_vm1, %v2364_v25, -inf  ;;  %2141 = vmatprep.mubr.bf16.mxu0 %v4006_v18  ;;  %3691 = vmatprep.mubr.msk.bf16.mxu1 %vm1540_vm0, %v4008_v3  ;;  %v4010_v18 = vld [vmem:[%s4078_s28 + $0x5f0] ss:$12 sps:$4 sm:$0xff]  }
 0x1c0   : > { %v3055_v23 = vadd.f32 %v4568_v31, %v2830_v61  ;;  %v2837_v19 = vmax.f32 %v2835_v13, %v2836_v41 }
 0x1c1   : > { %v3089_v43 = vmax.f32 %v3057_v49, 0.0  ;;  %v3058_v0 = vadd.f32 %v4568_v31, %v2851_v5  ;;  %v4586_v11 = vpop.f32.mrb[80].mxu0  ;;  %v3585_v55 = vpop.f32.mrb[80].mxu1 }
 0x1c2   : > { %v3087_v24 = vmax.f32 %v3055_v23, 0.0  ;;  %v3056_v46 = vadd.f32 %v4568_v31, %v2837_v19  ;;  %v2385_v7 = vadd.f32 %v3585_v55, %v4402_v9  ;;  %v1929_v45 = vpop.f32.mrb[81].mxu0  ;;  %v2376_v10 = vpop.f32.mrb[81].mxu1 }
 0x1c3   : > { %3121 = vst.msk [vmem:[%s4582_s8 + $0x10] sm:$0xff] %vm2823_vm1, %v3089_v43  ;;  %v3090_v13 = vmax.f32 %v3058_v0, 0.0  ;;  %v2377_v3 = vadd.f32 %v2376_v10, %v4388_v51  ;;  %v4595_v37 = vpop.f32.mrb[82].mxu0  ;;  %v3586_v33 = vpop.f32.mrb[82].mxu1 }
 0x1c4   : > { %3119 = vst.msk [vmem:[%s4582_s8] sm:$0xff] %vm2823_vm1, %v3087_v24  ;;  %v3088_v54 = vmax.f32 %v3056_v46, 0.0  ;;  %v2388_v60 = vadd.f32 %v3586_v33, %v4408_v21  ;;  %v1932_v4 = vpop.f32.mrb[83].mxu0  ;;  %v2379_v15 = vpop.f32.mrb[83].mxu1  ;;  %v2866_v23 = vsel %vm2823_vm1, %v2385_v7, -inf }
 0x1c5   : > { %3122 = vst.msk [vmem:[%s4582_s8 + $0x18] sm:$0xff] %vm2823_vm1, %v3090_v13  ;;  %v2380_v9 = vadd.f32 %v2379_v15, %v4394_v59  ;;  %v2852_v55 = vsel %vm2823_vm1, %v2377_v3, -inf }
 0x1c6   : > { %3120 = vst.msk [vmem:[%s4582_s8 + $0x8] sm:$0xff] %vm2823_vm1, %v3088_v54  ;;  %2142 = vmatmul.mubr.bf16.gmra.mrb[188].mxu0 %v4009_v34  ;;  %3692 = vmatmul.mubr.msk.bf16.gmra.mrb[188].mxu1 %vm1540_vm0, %v4010_v18 }
 0x1c7   : > { %v2859_v7 = vsel %vm2823_vm1, %v2380_v9, -inf }
 0x1c9   : > { %v4606_v51 = vpop.f32.mrb[84].mxu0  ;;  %v3589_v25 = vpop.f32.mrb[84].mxu1 }
 0x1ca   : > { %v2401_v61 = vadd.f32 %v3589_v25, %v4430_v63  ;;  %v1937_v30 = vpop.f32.mrb[85].mxu0  ;;  %v2392_v49 = vpop.f32.mrb[85].mxu1 }
 0x1cb   : > { %v2393_v21 = vadd.f32 %v2392_v49, %v4416_v35  ;;  %v4610_v5 = vpop.f32.mrb[86].mxu0  ;;  %v3590_v41 = vpop.f32.mrb[86].mxu1  ;;  %v2873_v35 = vsel %vm2823_vm1, %v2388_v60, -inf }
 0x1cc   : > { %v2867_v59 = vsel %vm2823_vm1, %v2401_v61, -inf  ;;  %v2404_v19 = vadd.f32 %v3590_v41, %v4436_v17  ;;  %v1940_v43 = vpop.f32.mrb[87].mxu0  ;;  %v2395_v0 = vpop.f32.mrb[87].mxu1 }
 0x1cd   : > { %v2868_v34 = vmax.f32 %v2866_v23, %v2867_v59  ;;  %v2853_v63 = vsel %vm2823_vm1, %v2393_v21, -inf  ;;  %v2396_v24 = vadd.f32 %v2395_v0, %v4422_v47 }
 0x1ce   : > { %v2854_v46 = vmax.f32 %v2852_v55, %v2853_v63  ;;  %v2874_v45 = vsel %vm2823_vm1, %v2404_v19, -inf }
 0x1cf   : > { %v2875_v10 = vmax.f32 %v2873_v35, %v2874_v45  ;;  %v2860_v18 = vsel %vm2823_vm1, %v2396_v24, -inf }
 0x1d0   : > { %v2861_v17 = vmax.f32 %v2859_v7, %v2860_v18 }
 0x1d1   : > { %v4622_v13 = vpop.f32.mrb[88].mxu0  ;;  %v3593_v33 = vpop.f32.mrb[88].mxu1 }
 0x1d2   : > { %v2417_v3 = vadd.f32 %v3593_v33, %v4458_v27  ;;  %v1945_v54 = vpop.f32.mrb[89].mxu0  ;;  %v2408_v4 = vpop.f32.mrb[89].mxu1 }
 0x1d3   : > { %v2409_v47 = vadd.f32 %v2408_v4, %v4444_v39  ;;  %v4626_v15 = vpop.f32.mrb[90].mxu0  ;;  %v3594_v60 = vpop.f32.mrb[90].mxu1 }
 0x1d4   : > { %v2869_v25 = vsel %vm2823_vm1, %v2417_v3, -inf  ;;  %v2420_v9 = vadd.f32 %v3594_v60, %v4464_v58  ;;  %v1948_v61 = vpop.f32.mrb[91].mxu0  ;;  %v2411_v30 = vpop.f32.mrb[91].mxu1 }
 0x1d5   : > { %v2870_v49 = vmax.f32 %v2868_v34, %v2869_v25  ;;  %v2855_v21 = vsel %vm2823_vm1, %v2409_v47, -inf  ;;  %v2412_v41 = vadd.f32 %v2411_v30, %v4450_v57 }
 0x1d6   : > { %v2856_v23 = vmax.f32 %v2854_v46, %v2855_v21  ;;  %v2876_v27 = vsel %vm2823_vm1, %v2420_v9, -inf }
 0x1d7   : > { %v2877_v59 = vmax.f32 %v2875_v10, %v2876_v27  ;;  %v2862_v39 = vsel %vm2823_vm1, %v2412_v41, -inf }
 0x1d8   : > { %v2863_v19 = vmax.f32 %v2861_v17, %v2862_v39 }
 0x1d9   : > { %v4634_v43 = vpop.f32.mrb[92].mxu0  ;;  %v3597_v0 = vpop.f32.mrb[92].mxu1 }
 0x1da   : > { %v2433_v55 = vadd.f32 %v3597_v0, %v4486_v40  ;;  %v1953_v58 = vpop.f32.mrb[93].mxu0  ;;  %v2424_v63 = vpop.f32.mrb[93].mxu1 }
 0x1db   : > { %v2425_v34 = vadd.f32 %v2424_v63, %v4472_v12  ;;  %v4638_v24 = vpop.f32.mrb[94].mxu0  ;;  %v3598_v35 = vpop.f32.mrb[94].mxu1 }
 0x1dc   : > { %v2871_v57 = vsel %vm2823_vm1, %v2433_v55, -inf  ;;  %v2436_v46 = vadd.f32 %v3598_v35, %v4492_v36  ;;  %v1956_v45 = vpop.f32.mrb[95].mxu0  ;;  %v2427_v7 = vpop.f32.mrb[95].mxu1 }
 0x1dd   : > { %v2872_v10 = vmax.f32 %v2870_v49, %v2871_v57  ;;  %v2857_v18 = vsel %vm2823_vm1, %v2425_v34, -inf  ;;  %v2428_v17 = vadd.f32 %v2427_v7, %v4478_v48 }
 0x1de   : > { %v2858_v33 = vmax.f32 %v2856_v23, %v2857_v18  ;;  %v2878_v40 = vsel %vm2823_vm1, %v2436_v46, -inf }
 0x1df   : > { %v3061_v12 = vadd.f32 %v4568_v31, %v2872_v10  ;;  %v2879_v3 = vmax.f32 %v2877_v59, %v2878_v40  ;;  %v2864_v54 = vsel %vm2823_vm1, %v2428_v17, -inf }
 0x1e0   : > { %v3059_v4 = vadd.f32 %v4568_v31, %v2858_v33  ;;  %v2865_v36 = vmax.f32 %v2863_v19, %v2864_v54 }
 0x1e1   : > { %v3093_v47 = vmax.f32 %v3061_v12, 0.0  ;;  %v3062_v60 = vadd.f32 %v4568_v31, %v2879_v3  ;;  %v4649_v25 = vpop.f32.mrb[96].mxu0  ;;  %v3601_v9 = vpop.f32.mrb[96].mxu1 }
 0x1e2   : > { %v3091_v48 = vmax.f32 %v3059_v4, 0.0  ;;  %v3060_v61 = vadd.f32 %v4568_v31, %v2865_v36  ;;  %v2449_v30 = vadd.f32 %v3601_v9, %v4514_v1  ;;  %v1961_v49 = vpop.f32.mrb[97].mxu0  ;;  %v2440_v21 = vpop.f32.mrb[97].mxu1 }
 0x1e3   : > { %3125 = vst.msk [vmem:[%s4582_s8 + $0x30] sm:$0xff] %vm2823_vm1, %v3093_v47  ;;  %v3094_v41 = vmax.f32 %v3062_v60, 0.0  ;;  %v2441_v23 = vadd.f32 %v2440_v21, %v4500_v29  ;;  %v4656_v27 = vpop.f32.mrb[98].mxu0  ;;  %v3602_v59 = vpop.f32.mrb[98].mxu1 }
 0x1e4   : > { %3123 = vst.msk [vmem:[%s4582_s8 + $0x20] sm:$0xff] %vm2823_vm1, %v3091_v48  ;;  %v3092_v39 = vmax.f32 %v3060_v61, 0.0  ;;  %v2452_v19 = vadd.f32 %v3602_v59, %v4520_v52  ;;  %v1964_v0 = vpop.f32.mrb[99].mxu0  ;;  %v2443_v55 = vpop.f32.mrb[99].mxu1  ;;  %v2894_v45 = vsel %vm2823_vm1, %v2449_v30, -inf }
 0x1e5   : > { %3126 = vst.msk [vmem:[%s4582_s8 + $0x38] sm:$0xff] %vm2823_vm1, %v3094_v41  ;;  %v2444_v1 = vadd.f32 %v2443_v55, %v4506_v22  ;;  %v2880_v17 = vsel %vm2823_vm1, %v2441_v23, -inf }
 0x1e6   : > { %3124 = vst.msk [vmem:[%s4582_s8 + $0x28] sm:$0xff] %vm2823_vm1, %v3092_v39 }
 0x1e7   : > { %v2887_v54 = vsel %vm2823_vm1, %v2444_v1, -inf }
 0x1e9   : > { %v4666_v58 = vpop.f32.mrb[100].mxu0  ;;  %v3605_v63 = vpop.f32.mrb[100].mxu1 }
 0x1ea   : > { %v2465_v29 = vadd.f32 %v3605_v63, %v4554_v28  ;;  %v1969_v34 = vpop.f32.mrb[101].mxu0  ;;  %v2456_v35 = vpop.f32.mrb[101].mxu1 }
 0x1eb   : > { %v2457_v57 = vadd.f32 %v2456_v35, %v4536_v16  ;;  %v4670_v46 = vpop.f32.mrb[102].mxu0  ;;  %v3606_v52 = vpop.f32.mrb[102].mxu1  ;;  %v2901_v16 = vsel %vm2823_vm1, %v2452_v19, -inf }
 0x1ec   : > { %v2895_v7 = vsel %vm2823_vm1, %v2465_v29, -inf  ;;  %v2468_v22 = vadd.f32 %v3606_v52, %v4560_v42  ;;  %v1972_v10 = vpop.f32.mrb[103].mxu0  ;;  %v2459_v18 = vpop.f32.mrb[103].mxu1 }
 0x1ed   : > { %v2896_v33 = vmax.f32 %v2894_v45, %v2895_v7  ;;  %v2881_v28 = vsel %vm2823_vm1, %v2457_v57, -inf  ;;  %v2460_v40 = vadd.f32 %v2459_v18, %v4542_v53 }
 0x1ee   : > { %v2882_v12 = vmax.f32 %v2880_v17, %v2881_v28  ;;  %v2902_v3 = vsel %vm2823_vm1, %v2468_v22, -inf }
 0x1ef   : > { %v2903_v4 = vmax.f32 %v2901_v16, %v2902_v3  ;;  %v2888_v36 = vsel %vm2823_vm1, %v2460_v40, -inf }
 0x1f0   : > { %v2889_v42 = vmax.f32 %v2887_v54, %v2888_v36 }
 0x1f1   : > { %v4682_v47 = vpop.f32.mrb[104].mxu0  ;;  %v3609_v60 = vpop.f32.mrb[104].mxu1 }
 0x1f2   : > { %v2481_v9 = vadd.f32 %v3609_v60, %v4606_v51  ;;  %v1977_v48 = vpop.f32.mrb[105].mxu0  ;;  %v2472_v61 = vpop.f32.mrb[105].mxu1 }
 0x1f3   : > { %v2473_v53 = vadd.f32 %v2472_v61, %v4586_v11  ;;  %v4686_v30 = vpop.f32.mrb[106].mxu0  ;;  %v3610_v49 = vpop.f32.mrb[106].mxu1 }
 0x1f4   : > { %v2897_v21 = vsel %vm2823_vm1, %v2481_v9, -inf  ;;  %v2484_v41 = vadd.f32 %v3610_v49, %v4610_v5  ;;  %v1980_v23 = vpop.f32.mrb[107].mxu0  ;;  %v2475_v59 = vpop.f32.mrb[107].mxu1 }
 0x1f5   : > { %v2898_v39 = vmax.f32 %v2896_v33, %v2897_v21  ;;  %v2883_v19 = vsel %vm2823_vm1, %v2473_v53, -inf  ;;  %v2476_v0 = vadd.f32 %v2475_v59, %v4595_v37 }
 0x1f6   : > { %v2884_v55 = vmax.f32 %v2882_v12, %v2883_v19  ;;  %v2904_v51 = vsel %vm2823_vm1, %v2484_v41, -inf }
 0x1f7   : > { %v2905_v1 = vmax.f32 %v2903_v4, %v2904_v51  ;;  %v2890_v11 = vsel %vm2823_vm1, %v2476_v0, -inf }
 0x1f8   : > { %v2891_v63 = vmax.f32 %v2889_v42, %v2890_v11 }
 0x1f9   : > { %v1983_v29 = vpop.f32.mrb[108].mxu0  ;;  %v3613_v34 = vpop.f32.mrb[108].mxu1 }
 0x1fa   : > { %v2497_v35 = vadd.f32 %v3613_v34, %v4634_v43  ;;  %v1985_v57 = vpop.f32.mrb[109].mxu0  ;;  %v2488_v5 = vpop.f32.mrb[109].mxu1 }
 0x1fb   : > { %v2489_v52 = vadd.f32 %v2488_v5, %v4622_v13  ;;  %v1986_v45 = vpop.f32.mrb[110].mxu0  ;;  %v3614_v7 = vpop.f32.mrb[110].mxu1 }
 0x1fc   : > { %v2899_v22 = vsel %vm2823_vm1, %v2497_v35, -inf  ;;  %v2500_v37 = vadd.f32 %v3614_v7, %v4638_v24  ;;  %v1988_v10 = vpop.f32.mrb[111].mxu0  ;;  %v2491_v18 = vpop.f32.mrb[111].mxu1 }
 0x1fd   : > { %v2900_v17 = vmax.f32 %v2898_v39, %v2899_v22  ;;  %v2885_v33 = vsel %vm2823_vm1, %v2489_v52, -inf  ;;  %v2492_v28 = vadd.f32 %v2491_v18, %v4626_v15 }
 0x1fe   : > { %v2886_v40 = vmax.f32 %v2884_v55, %v2885_v33  ;;  %v2906_v43 = vsel %vm2823_vm1, %v2500_v37, -inf }
 0x1ff   : > { %v3065_v16 = vadd.f32 %v4568_v31, %v2900_v17  ;;  %v2907_v13 = vmax.f32 %v2905_v1, %v2906_v43  ;;  %v2892_v12 = vsel %vm2823_vm1, %v2492_v28, -inf }
 0x200   : > { %v3063_v3 = vadd.f32 %v4568_v31, %v2886_v40  ;;  %v2893_v24 = vmax.f32 %v2891_v63, %v2892_v12 }
 0x201   : > { %v3097_v54 = vmax.f32 %v3065_v16, 0.0  ;;  %v3066_v4 = vadd.f32 %v4568_v31, %v2907_v13  ;;  %v1991_v36 = vpop.f32.mrb[112].mxu0  ;;  %v3617_v42 = vpop.f32.mrb[112].mxu1 }
 0x202   : > { %v3095_v15 = vmax.f32 %v3063_v3, 0.0  ;;  %v3064_v60 = vadd.f32 %v4568_v31, %v2893_v24  ;;  %v2513_v9 = vadd.f32 %v3617_v42, %v4666_v58  ;;  %v1993_v48 = vpop.f32.mrb[113].mxu0  ;;  %v2504_v61 = vpop.f32.mrb[113].mxu1 }
 0x203   : > { %3129 = vst.msk [vmem:[%s4582_s8 + $0x50] sm:$0xff] %vm2823_vm1, %v3097_v54  ;;  %v3098_v53 = vmax.f32 %v3066_v4, 0.0  ;;  %v2505_v49 = vadd.f32 %v2504_v61, %v4649_v25  ;;  %v1994_v21 = vpop.f32.mrb[114].mxu0  ;;  %v3618_v41 = vpop.f32.mrb[114].mxu1 }
 0x204   : > { %3127 = vst.msk [vmem:[%s4582_s8 + $0x40] sm:$0xff] %vm2823_vm1, %v3095_v15  ;;  %v3096_v23 = vmax.f32 %v3064_v60, 0.0  ;;  %v2516_v59 = vadd.f32 %v3618_v41, %v4670_v46  ;;  %v1996_v39 = vpop.f32.mrb[115].mxu0  ;;  %v2507_v19 = vpop.f32.mrb[115].mxu1  ;;  %v2922_v35 = vsel %vm2823_vm1, %v2513_v9, -inf }
 0x205   : > { %3130 = vst.msk [vmem:[%s4582_s8 + $0x58] sm:$0xff] %vm2823_vm1, %v3098_v53  ;;  %v2508_v58 = vadd.f32 %v2507_v19, %v4656_v27  ;;  %v2908_v27 = vsel %vm2823_vm1, %v2505_v49, -inf }
 0x206   : > { %3128 = vst.msk [vmem:[%s4582_s8 + $0x48] sm:$0xff] %vm2823_vm1, %v3096_v23  ;;  %v2929_v37 = vsel %vm2823_vm1, %v2516_v59, -inf }
 0x207   : > { %v2915_v18 = vsel %vm2823_vm1, %v2508_v58, -inf }
 0x209   : > { %v1999_v0 = vpop.f32.mrb[116].mxu0  ;;  %v3621_v55 = vpop.f32.mrb[116].mxu1 }
 0x20a   : > { %v2529_v51 = vadd.f32 %v3621_v55, %v1983_v29  ;;  %v2001_v1 = vpop.f32.mrb[117].mxu0  ;;  %v2520_v25 = vpop.f32.mrb[117].mxu1 }
 0x20b   : > { %v2521_v11 = vadd.f32 %v2520_v25, %v4682_v47  ;;  %v2002_v63 = vpop.f32.mrb[118].mxu0  ;;  %v3622_v34 = vpop.f32.mrb[118].mxu1 }
 0x20c   : > { %v2923_v46 = vsel %vm2823_vm1, %v2529_v51, -inf  ;;  %v2532_v57 = vadd.f32 %v3622_v34, %v1986_v45  ;;  %v2004_v5 = vpop.f32.mrb[119].mxu0  ;;  %v2523_v52 = vpop.f32.mrb[119].mxu1 }
 0x20d   : > { %v2924_v7 = vmax.f32 %v2922_v35, %v2923_v46  ;;  %v2909_v22 = vsel %vm2823_vm1, %v2521_v11, -inf  ;;  %v2524_v29 = vadd.f32 %v2523_v52, %v4686_v30 }
 0x20e   : > { %v2910_v10 = vmax.f32 %v2908_v27, %v2909_v22  ;;  %v2930_v47 = vsel %vm2823_vm1, %v2532_v57, -inf }
 0x20f   : > { %v2931_v17 = vmax.f32 %v2929_v37, %v2930_v47  ;;  %v2916_v33 = vsel %vm2823_vm1, %v2524_v29, -inf }
 0x210   : > { %v2917_v45 = vmax.f32 %v2915_v18, %v2916_v33 }
 0x211   : > { %v2007_v28 = vpop.f32.mrb[120].mxu0  ;;  %v3625_v40 = vpop.f32.mrb[120].mxu1 }
 0x212   : > { %v2545_v43 = vadd.f32 %v3625_v40, %v1999_v0  ;;  %v2009_v16 = vpop.f32.mrb[121].mxu0  ;;  %v2536_v13 = vpop.f32.mrb[121].mxu1 }
 0x213   : > { %v2537_v12 = vadd.f32 %v2536_v13, %v1991_v36  ;;  %v2010_v3 = vpop.f32.mrb[122].mxu0  ;;  %v3626_v24 = vpop.f32.mrb[122].mxu1 }
 0x214   : > { %v2925_v30 = vsel %vm2823_vm1, %v2545_v43, -inf  ;;  %v2548_v54 = vadd.f32 %v3626_v24, %v2002_v63  ;;  %v2012_v4 = vpop.f32.mrb[123].mxu0  ;;  %v2539_v42 = vpop.f32.mrb[123].mxu1 }
 0x215   : > { %v2926_v15 = vmax.f32 %v2924_v7, %v2925_v30  ;;  %v2911_v60 = vsel %vm2823_vm1, %v2537_v12, -inf  ;;  %v2540_v9 = vadd.f32 %v2539_v42, %v1994_v21 }
 0x216   : > { %v2912_v48 = vmax.f32 %v2910_v10, %v2911_v60  ;;  %v2932_v61 = vsel %vm2823_vm1, %v2548_v54, -inf }
 0x217   : > { %v2933_v53 = vmax.f32 %v2931_v17, %v2932_v61  ;;  %v2918_v49 = vsel %vm2823_vm1, %v2540_v9, -inf }
 0x218   : > { %v2919_v41 = vmax.f32 %v2917_v45, %v2918_v49 }
 0x219   : > { %v2015_v23 = vpop.f32.mrb[124].mxu0  ;;  %v3629_v36 = vpop.f32.mrb[124].mxu1 }
 0x21a   : > { %v2561_v59 = vadd.f32 %v3629_v36, %v2015_v23  ;;  %v2017_v39 = vpop.f32.mrb[125].mxu0  ;;  %v2552_v19 = vpop.f32.mrb[125].mxu1 }
 0x21b   : > { %v2553_v58 = vadd.f32 %v2552_v19, %v2007_v28  ;;  %v2018_v0 = vpop.f32.mrb[126].mxu0  ;;  %v3630_v55 = vpop.f32.mrb[126].mxu1 }
 0x21c   : > { %v2927_v51 = vsel %vm2823_vm1, %v2561_v59, -inf  ;;  %v2564_v1 = vadd.f32 %v3630_v55, %v2018_v0  ;;  %v2020_v25 = vpop.f32.mrb[127].mxu0  ;;  %v2555_v21 = vpop.f32.mrb[127].mxu1 }
 0x21d   : > { %v2928_v11 = vmax.f32 %v2926_v15, %v2927_v51  ;;  %v2913_v63 = vsel %vm2823_vm1, %v2553_v58, -inf  ;;  %v2556_v34 = vadd.f32 %v2555_v21, %v2010_v3 }
 0x21e   : > { %v2914_v35 = vmax.f32 %v2912_v48, %v2913_v63  ;;  %v2934_v46 = vsel %vm2823_vm1, %v2564_v1, -inf }
 0x21f   : > { %v3069_v57 = vadd.f32 %v4568_v31, %v2928_v11  ;;  %v2935_v5 = vmax.f32 %v2933_v53, %v2934_v46  ;;  %v2920_v52 = vsel %vm2823_vm1, %v2556_v34, -inf }
 0x220   : > { %v3067_v27 = vadd.f32 %v4568_v31, %v2914_v35  ;;  %v2921_v7 = vmax.f32 %v2919_v41, %v2920_v52 }
 0x221   : > { %v3101_v22 = vmax.f32 %v3069_v57, 0.0  ;;  %v3070_v29 = vadd.f32 %v4568_v31, %v2935_v5  ;;  %v2023_v37 = vpop.f32.mrb[128].mxu0  ;;  %v3633_v10 = vpop.f32.mrb[128].mxu1 }
 0x222   : > { %v3099_v47 = vmax.f32 %v3067_v27, 0.0  ;;  %v3068_v18 = vadd.f32 %v4568_v31, %v2921_v7  ;;  %v2025_v17 = vpop.f32.mrb[129].mxu0  ;;  %v2568_v33 = vpop.f32.mrb[129].mxu1 }
 0x223   : > { %3133 = vst.msk [vmem:[%s4582_s8 + $0x70] sm:$0xff] %vm2823_vm1, %v3101_v22  ;;  %v3102_v45 = vmax.f32 %v3070_v29, 0.0  ;;  %v2569_v28 = vadd.f32 %v2568_v33, %v2023_v37  ;;  %v2026_v40 = vpop.f32.mrb[130].mxu0  ;;  %v3634_v43 = vpop.f32.mrb[130].mxu1 }
 0x224   : > { %3131 = vst.msk [vmem:[%s4582_s8 + $0x60] sm:$0xff] %vm2823_vm1, %v3099_v47  ;;  %v3100_v16 = vmax.f32 %v3068_v18, 0.0  ;;  %v2028_v13 = vpop.f32.mrb[131].mxu0  ;;  %v2571_v12 = vpop.f32.mrb[131].mxu1 }
 0x225   : > { %3134 = vst.msk [vmem:[%s4582_s8 + $0x78] sm:$0xff] %vm2823_vm1, %v3102_v45  ;;  %v2572_v3 = vadd.f32 %v2571_v12, %v2026_v40  ;;  %v2936_v19 = vsel %vm2823_vm1, %v2569_v28, -inf }
 0x226   : > { %3132 = vst.msk [vmem:[%s4582_s8 + $0x68] sm:$0xff] %vm2823_vm1, %v3100_v16 }
 0x227   : > { %v2943_v25 = vsel %vm2823_vm1, %v2572_v3, -inf }
 0x229   : > { %v2031_v24 = vpop.f32.mrb[132].mxu0  ;;  %v3637_v30 = vpop.f32.mrb[132].mxu1 }
 0x22a   : > { %v2577_v54 = vadd.f32 %v3633_v10, %v2031_v24  ;;  %v2033_v4 = vpop.f32.mrb[133].mxu0  ;;  %v2584_v42 = vpop.f32.mrb[133].mxu1 }
 0x22b   : > { %v2034_v15 = vpop.f32.mrb[134].mxu0  ;;  %v3638_v60 = vpop.f32.mrb[134].mxu1 }
 0x22c   : > { %v2580_v9 = vadd.f32 %v3634_v43, %v2034_v15  ;;  %v2036_v48 = vpop.f32.mrb[135].mxu0  ;;  %v2587_v61 = vpop.f32.mrb[135].mxu1  ;;  %v2950_v27 = vsel %vm2823_vm1, %v2577_v54, -inf }
 0x22e   : > { %v2957_v47 = vsel %vm2823_vm1, %v2580_v9, -inf }
 0x231   : > { %v2039_v53 = vpop.f32.mrb[136].mxu0  ;;  %v3641_v49 = vpop.f32.mrb[136].mxu1 }
 0x232   : > { %v2585_v41 = vadd.f32 %v2584_v42, %v2039_v53  ;;  %v2041_v23 = vpop.f32.mrb[137].mxu0  ;;  %v2600_v36 = vpop.f32.mrb[137].mxu1 }
 0x233   : > { %v2042_v59 = vpop.f32.mrb[138].mxu0  ;;  %v3642_v39 = vpop.f32.mrb[138].mxu1 }
 0x234   : > { %v2937_v58 = vsel %vm2823_vm1, %v2585_v41, -inf  ;;  %v2588_v0 = vadd.f32 %v2587_v61, %v2042_v59  ;;  %v2044_v55 = vpop.f32.mrb[139].mxu0  ;;  %v2603_v51 = vpop.f32.mrb[139].mxu1 }
 0x235   : > { %v2938_v1 = vmax.f32 %v2936_v19, %v2937_v58 }
 0x236   : > { %v2944_v21 = vsel %vm2823_vm1, %v2588_v0, -inf }
 0x237   : > { %v2945_v11 = vmax.f32 %v2943_v25, %v2944_v21 }
 0x239   : > { %v2047_v63 = vpop.f32.mrb[140].mxu0  ;;  %v3645_v34 = vpop.f32.mrb[140].mxu1 }
 0x23a   : > { %v2593_v35 = vadd.f32 %v3637_v30, %v2047_v63  ;;  %v2049_v46 = vpop.f32.mrb[141].mxu0  ;;  %v2616_v57 = vpop.f32.mrb[141].mxu1 }
 0x23b   : > { %v2050_v5 = vpop.f32.mrb[142].mxu0  ;;  %v4752_v52 = vpop.f32.mrb[142].mxu1 }
 0x23c   : > { %v2951_v7 = vsel %vm2823_vm1, %v2593_v35, -inf  ;;  %v2596_v22 = vadd.f32 %v3638_v60, %v2050_v5  ;;  %v2052_v29 = vpop.f32.mrb[143].mxu0  ;;  %v2619_v37 = vpop.f32.mrb[143].mxu1 }
 0x23d   : > { %v2952_v10 = vmax.f32 %v2950_v27, %v2951_v7 }
 0x23e   : > { %v2958_v18 = vsel %vm2823_vm1, %v2596_v22, -inf }
 0x23f   : > { %v2959_v17 = vmax.f32 %v2957_v47, %v2958_v18 }
 0x241   : > { %v2055_v33 = vpop.f32.mrb[144].mxu0  ;;  %v4758_v45 = vpop.f32.mrb[144].mxu1 }
 0x242   : > { %v2601_v28 = vadd.f32 %v2600_v36, %v2055_v33  ;;  %v2057_v40 = vpop.f32.mrb[145].mxu0  ;;  %v4760_v43 = vpop.f32.mrb[145].mxu1 }
 0x243   : > { %v2058_v16 = vpop.f32.mrb[146].mxu0  ;;  %v4762_v13 = vpop.f32.mrb[146].mxu1 }
 0x244   : > { %v2939_v12 = vsel %vm2823_vm1, %v2601_v28, -inf  ;;  %v2604_v3 = vadd.f32 %v2603_v51, %v2058_v16  ;;  %v2060_v24 = vpop.f32.mrb[147].mxu0  ;;  %v4765_v30 = vpop.f32.mrb[147].mxu1 }
 0x245   : > { %v2940_v54 = vmax.f32 %v2938_v1, %v2939_v12 }
 0x246   : > { %v2946_v4 = vsel %vm2823_vm1, %v2604_v3, -inf }
 0x247   : > { %v2947_v42 = vmax.f32 %v2945_v11, %v2946_v4 }
 0x249   : > { %v2063_v15 = vpop.f32.mrb[148].mxu0  ;;  %v4768_v60 = vpop.f32.mrb[148].mxu1 }
 0x24a   : > { %v2609_v9 = vadd.f32 %v3641_v49, %v2063_v15  ;;  %v2065_v48 = vpop.f32.mrb[149].mxu0  ;;  %v4770_v61 = vpop.f32.mrb[149].mxu1 }
 0x24b   : > { %v2066_v53 = vpop.f32.mrb[150].mxu0  ;;  %v4772_v41 = vpop.f32.mrb[150].mxu1 }
 0x24c   : > { %v2953_v23 = vsel %vm2823_vm1, %v2609_v9, -inf  ;;  %v2612_v36 = vadd.f32 %v3642_v39, %v2066_v53  ;;  %v2068_v59 = vpop.f32.mrb[151].mxu0  ;;  %v4775_v19 = vpop.f32.mrb[151].mxu1 }
 0x24d   : > { %v2954_v58 = vmax.f32 %v2952_v10, %v2953_v23 }
 0x24e   : > { %v2960_v0 = vsel %vm2823_vm1, %v2612_v36, -inf }
 0x24f   : > { %v2961_v55 = vmax.f32 %v2959_v17, %v2960_v0 }
 0x251   : > { %v2071_v51 = vpop.f32.mrb[152].mxu0  ;;  %v4778_v1 = vpop.f32.mrb[152].mxu1 }
 0x252   : > { %v2617_v49 = vadd.f32 %v2616_v57, %v2071_v51  ;;  %v2073_v25 = vpop.f32.mrb[153].mxu0  ;;  %v4780_v21 = vpop.f32.mrb[153].mxu1 }
 0x253   : > { %v2074_v11 = vpop.f32.mrb[154].mxu0  ;;  %v4782_v63 = vpop.f32.mrb[154].mxu1 }
 0x254   : > { %v2941_v39 = vsel %vm2823_vm1, %v2617_v49, -inf  ;;  %v2620_v35 = vadd.f32 %v2619_v37, %v2074_v11  ;;  %v2076_v46 = vpop.f32.mrb[155].mxu0  ;;  %v4785_v5 = vpop.f32.mrb[155].mxu1 }
 0x255   : > { %v2942_v27 = vmax.f32 %v2940_v54, %v2941_v39 }
 0x256   : > { %v2948_v7 = vsel %vm2823_vm1, %v2620_v35, -inf }
 0x257   : > { %v3071_v22 = vadd.f32 %v4568_v31, %v2942_v27  ;;  %v2949_v29 = vmax.f32 %v2947_v42, %v2948_v7 }
 0x259   : > { %v3103_v57 = vmax.f32 %v3071_v22, 0.0  ;;  %v3072_v10 = vadd.f32 %v4568_v31, %v2949_v29  ;;  %v2079_v47 = vpop.f32.mrb[156].mxu0  ;;  %v4790_v18 = vpop.f32.mrb[156].mxu1 }
 0x25a   : > { %v2625_v17 = vadd.f32 %v3645_v34, %v2079_v47  ;;  %v2081_v33 = vpop.f32.mrb[157].mxu0  ;;  %v4792_v28 = vpop.f32.mrb[157].mxu1 }
 0x25b   : > { %3135 = vst.msk [vmem:[%s4582_s8 + $0x80] sm:$0xff] %vm2823_vm1, %v3103_v57  ;;  %v3104_v37 = vmax.f32 %v3072_v10, 0.0  ;;  %v2082_v40 = vpop.f32.mrb[158].mxu0  ;;  %v4796_v16 = vpop.f32.mrb[158].mxu1 }
 0x25c   : > { %v2955_v12 = vsel %vm2823_vm1, %v2625_v17, -inf  ;;  %v2628_v3 = vadd.f32 %v4752_v52, %v2082_v40  ;;  %v2084_v24 = vpop.f32.mrb[159].mxu0  ;;  %v4800_v54 = vpop.f32.mrb[159].mxu1 }
 0x25d   : > { %3136 = vst.msk [vmem:[%s4582_s8 + $0x88] sm:$0xff] %vm2823_vm1, %v3104_v37  ;;  %v2956_v34 = vmax.f32 %v2954_v58, %v2955_v12 }
 0x25e   : > { %v2962_v4 = vsel %vm2823_vm1, %v2628_v3, -inf }
 0x25f   : > { %v3073_v42 = vadd.f32 %v4568_v31, %v2956_v34  ;;  %v2963_v15 = vmax.f32 %v2961_v55, %v2962_v4 }
 0x261   : > { %v3105_v9 = vmax.f32 %v3073_v42, 0.0  ;;  %v3074_v48 = vadd.f32 %v4568_v31, %v2963_v15  ;;  %v2087_v53 = vpop.f32.mrb[160].mxu0  ;;  %v3665_v23 = vpop.f32.mrb[160].mxu1 }
 0x262   : > { %v2633_v52 = vadd.f32 %v4760_v43, %v2087_v53  ;;  %v2705_v36 = vadd.f32 %v3665_v23, %v4292_v14  ;;  %v2089_v59 = vpop.f32.mrb[161].mxu0  ;;  %v2696_v0 = vpop.f32.mrb[161].mxu1 }
 0x263   : > { %3137 = vst.msk [vmem:[%s4582_s8 + $0x90] sm:$0xff] %vm2823_vm1, %v3105_v9  ;;  %v3106_v58 = vmax.f32 %v3074_v48, 0.0  ;;  %v2697_v51 = vadd.f32 %v2696_v0, %v4278_v2  ;;  %v2090_v49 = vpop.f32.mrb[162].mxu0  ;;  %v3666_v25 = vpop.f32.mrb[162].mxu1 }
 0x264   : > { %v2636_v55 = vadd.f32 %v4765_v30, %v2090_v49  ;;  %v2708_v11 = vadd.f32 %v3666_v25, %v4298_v20  ;;  %v2092_v39 = vpop.f32.mrb[163].mxu0  ;;  %v2699_v35 = vpop.f32.mrb[163].mxu1  ;;  %v3006_v20 = vsel %vm2823_vm1, %v2705_v36, -inf }
 0x265   : > { %3138 = vst.msk [vmem:[%s4582_s8 + $0x98] sm:$0xff] %vm2823_vm1, %v3106_v58  ;;  %v2700_v43 = vadd.f32 %v2699_v35, %v4284_v8 }
 0x266   : > { %v3013_v40 = vsel %vm2823_vm1, %v2708_v11, -inf  ;;  %v4850_v39 = vsel %vm2823_vm1, %v2636_v55, -inf }
 0x267   : > { %v2999_v24 = vsel %vm2823_vm1, %v2700_v43, -inf }
 0x269   : > { %v2095_v14 = vpop.f32.mrb[164].mxu0  ;;  %v3669_v46 = vpop.f32.mrb[164].mxu1 }
 0x26a   : > { %v2641_v27 = vadd.f32 %v4758_v45, %v2095_v14  ;;  %v2721_v7 = vadd.f32 %v3669_v46, %v4320_v38  ;;  %v2097_v22 = vpop.f32.mrb[165].mxu0  ;;  %v2712_v2 = vpop.f32.mrb[165].mxu1  ;;  %v2992_v45 = vsel %vm2823_vm1, %v2697_v51, -inf }
 0x26b   : > { %v2713_v29 = vadd.f32 %v2712_v2, %v4306_v26  ;;  %v2098_v57 = vpop.f32.mrb[166].mxu0  ;;  %v3670_v30 = vpop.f32.mrb[166].mxu1 }
 0x26c   : > { %v3007_v10 = vsel %vm2823_vm1, %v2721_v7, -inf  ;;  %v4823_v47 = vadd.f32 %v4762_v13, %v2098_v57  ;;  %v2724_v8 = vadd.f32 %v3670_v30, %v4326_v44  ;;  %v2100_v17 = vpop.f32.mrb[167].mxu0  ;;  %v2715_v33 = vpop.f32.mrb[167].mxu1 }
 0x26d   : > { %v3008_v38 = vmax.f32 %v3006_v20, %v3007_v10  ;;  %v2993_v37 = vsel %vm2823_vm1, %v2713_v29, -inf  ;;  %v2716_v26 = vadd.f32 %v2715_v33, %v4312_v32  ;;  %v4836_v32 = vsel %vm2823_vm1, %v2633_v52, -inf  ;;  %v5011_v29 = vld [vmem:[#allocation4_spill] sm:$0xff]  ;;  %v5012_v10 = vld [vmem:[#allocation2_spill] sm:$0xff] }
 0x26e   : > { %v2994_v12 = vmax.f32 %v2992_v45, %v2993_v37  ;;  %v3014_v3 = vsel %vm2823_vm1, %v2724_v8, -inf  ;;  %v4862_v20 = vsel %vm2823_vm1, %v2641_v27, -inf }
 0x26f   : > { %v3015_v13 = vmax.f32 %v3013_v40, %v3014_v3  ;;  %v3000_v34 = vsel %vm2823_vm1, %v2716_v26, -inf  ;;  %v5013_v26 = vld [vmem:[#allocation5_spill] sm:$0xff] }
 0x270   : > { %v3001_v44 = vmax.f32 %v2999_v24, %v3000_v34 }
 0x271   : > { %v2103_v4 = vpop.f32.mrb[168].mxu0  ;;  %v3673_v42 = vpop.f32.mrb[168].mxu1 }
 0x272   : > { %v2649_v15 = vadd.f32 %v4770_v61, %v2103_v4  ;;  %v2737_v9 = vadd.f32 %v3673_v42, %v4348_v62  ;;  %v2105_v48 = vpop.f32.mrb[169].mxu0  ;;  %v2728_v53 = vpop.f32.mrb[169].mxu1 }
 0x273   : > { %v2729_v23 = vadd.f32 %v2728_v53, %v4334_v50  ;;  %v2106_v36 = vpop.f32.mrb[170].mxu0  ;;  %v3674_v59 = vpop.f32.mrb[170].mxu1 }
 0x274   : > { %v4840_v0 = vsel %vm2823_vm1, %v2649_v15, -inf  ;;  %v3009_v58 = vsel %vm2823_vm1, %v2737_v9, -inf  ;;  %v2652_v51 = vadd.f32 %v4775_v19, %v2106_v36  ;;  %v2740_v61 = vadd.f32 %v3674_v59, %v4354_v6  ;;  %v2108_v49 = vpop.f32.mrb[171].mxu0  ;;  %v2731_v62 = vpop.f32.mrb[171].mxu1 }
 0x275   : > { %v2966_v25 = vmax.f32 %v4836_v32, %v4840_v0  ;;  %v3010_v52 = vmax.f32 %v3008_v38, %v3009_v58  ;;  %v2995_v11 = vsel %vm2823_vm1, %v2729_v23, -inf  ;;  %v2732_v50 = vadd.f32 %v2731_v62, %v4340_v56 }
 0x276   : > { %v2996_v35 = vmax.f32 %v2994_v12, %v2995_v11  ;;  %v4853_v43 = vsel %vm2823_vm1, %v2652_v51, -inf  ;;  %v3016_v19 = vsel %vm2823_vm1, %v2740_v61, -inf }
 0x277   : > { %v2973_v6 = vmax.f32 %v4850_v39, %v4853_v43  ;;  %v3017_v14 = vmax.f32 %v3015_v13, %v3016_v19  ;;  %v3002_v46 = vsel %vm2823_vm1, %v2732_v50, -inf  ;;  %v5014_v13 = vld [vmem:[#allocation3_spill] sm:$0xff]  ;;  %v5016_v43 = vld [vmem:[#allocation6_spill] sm:$0xff] }
 0x278   : > { %v3003_v7 = vmax.f32 %v3001_v44, %v3002_v46  ;;  %v4877_v44 = vsel %vm2823_vm1, %v4823_v47, -inf  ;;  %v4890_v47 = vld [vmem:[%s4989_s2] ss:$0 sm:$0xff] }
 0x279   : > { %v2111_v22 = vpop.f32.mrb[172].mxu0  ;;  %v3677_v2 = vpop.f32.mrb[172].mxu1 }
 0x27a   : > { %v2657_v56 = vadd.f32 %v4768_v60, %v2111_v22  ;;  %v2753_v55 = vadd.f32 %v3677_v2, %v5011_v29  ;;  %v2113_v57 = vpop.f32.mrb[173].mxu0  ;;  %v2744_v30 = vpop.f32.mrb[173].mxu1 }
 0x27b   : > { %v2745_v8 = vadd.f32 %v2744_v30, %v5012_v10  ;;  %v2114_v17 = vpop.f32.mrb[174].mxu0  ;;  %v3678_v33 = vpop.f32.mrb[174].mxu1  ;;  %v5018_v30 = vld [vmem:[#allocation7_spill] sm:$0xff] }
 0x27c   : > { %v4866_v45 = vsel %vm2823_vm1, %v2657_v56, -inf  ;;  %v3011_v38 = vsel %vm2823_vm1, %v2753_v55, -inf  ;;  %v2660_v37 = vadd.f32 %v4772_v41, %v2114_v17  ;;  %v2756_v60 = vadd.f32 %v3678_v33, %v5013_v26  ;;  %v2116_v40 = vpop.f32.mrb[175].mxu0  ;;  %v2747_v12 = vpop.f32.mrb[175].mxu1  ;;  %v5017_v55 = vld [vmem:[#allocation9_spill] sm:$0xff] }
 0x27d   : > { %v2980_v3 = vmax.f32 %v4862_v20, %v4866_v45  ;;  %v3012_v27 = vmax.f32 %v3010_v52, %v3011_v38  ;;  %v2997_v24 = vsel %vm2823_vm1, %v2745_v8, -inf  ;;  %v2748_v34 = vadd.f32 %v2747_v12, %v5014_v13  ;;  %v5015_v52 = vld [vmem:[#allocation8_spill] sm:$0xff]  ;;  %v5021_v13 = vld [vmem:[#allocation13_spill] sm:$0xff] }
 0x27e   : > { %v2998_v4 = vmax.f32 %v2996_v35, %v2997_v24  ;;  %v4880_v42 = vsel %vm2823_vm1, %v2660_v37, -inf  ;;  %v3018_v41 = vsel %vm2823_vm1, %v2756_v60, -inf  ;;  %v5019_v45 = vld [vmem:[#allocation12_spill] sm:$0xff] }
 0x27f   : > { %v3081_v15 = vadd.f32 %v4568_v31, %v3012_v27  ;;  %v2987_v9 = vmax.f32 %v4877_v44, %v4880_v42  ;;  %v3019_v48 = vmax.f32 %v3017_v14, %v3018_v41  ;;  %v3004_v53 = vsel %vm2823_vm1, %v2748_v34, -inf }
 0x280   : > { %v3079_v23 = vadd.f32 %v4890_v47, %v2998_v4  ;;  %v3005_v36 = vmax.f32 %v3003_v7, %v3004_v53 }
 0x281   : > { %v3113_v59 = vmax.f32 %v3081_v15, 0.0  ;;  %v3082_v58 = vadd.f32 %v4890_v47, %v3019_v48  ;;  %v2119_v31 = vpop.f32.mrb[176].mxu0  ;;  %v3681_v51 = vpop.f32.mrb[176].mxu1  ;;  %v5022_v15 = vld [vmem:[#allocation11_spill] sm:$0xff] }
 0x282   : > { %v3111_v61 = vmax.f32 %v3079_v23, 0.0  ;;  %v3080_v49 = vadd.f32 %v4890_v47, %v3005_v36  ;;  %v2665_v62 = vadd.f32 %v4780_v21, %v2119_v31  ;;  %v2769_v11 = vadd.f32 %v3681_v51, %v5015_v52  ;;  %v2121_v50 = vpop.f32.mrb[177].mxu0  ;;  %v2760_v39 = vpop.f32.mrb[177].mxu1  ;;  %v5023_v52 = vld [vmem:[#allocation16_spill] sm:$0xff] }
 0x283   : > { %3145 = vst.msk [vmem:[%s4582_s8 + $0xd0] sm:$0xff] %vm2823_vm1, %v3113_v59  ;;  %v3114_v35 = vmax.f32 %v3082_v58, 0.0  ;;  %v2761_v19 = vadd.f32 %v2760_v39, %v5016_v43  ;;  %v2122_v14 = vpop.f32.mrb[178].mxu0  ;;  %v3682_v46 = vpop.f32.mrb[178].mxu1 }
 0x284   : > { %3143 = vst.msk [vmem:[%s4582_s8 + $0xc0] sm:$0xff] %vm2823_vm1, %v3111_v61  ;;  %v3112_v7 = vmax.f32 %v3080_v49, 0.0  ;;  %v2967_v22 = vsel %vm2823_vm1, %v2665_v62, -inf  ;;  %v2668_v2 = vadd.f32 %v4785_v5, %v2122_v14  ;;  %v2124_v21 = vpop.f32.mrb[179].mxu0  ;;  %v2763_v56 = vpop.f32.mrb[179].mxu1  ;;  %v2772_v57 = vadd.f32 %v3682_v46, %v5017_v55 }
 0x285   : > { %3146 = vst.msk [vmem:[%s4582_s8 + $0xd8] sm:$0xff] %vm2823_vm1, %v3114_v35  ;;  %v2968_v29 = vmax.f32 %v2966_v25, %v2967_v22  ;;  %v2764_v20 = vadd.f32 %v2763_v56, %v5018_v30  ;;  %v3034_v32 = vsel %vm2823_vm1, %v2769_v11, -inf  ;;  %v3020_v0 = vsel %vm2823_vm1, %v2761_v19, -inf  ;;  %v5020_v25 = vld [vmem:[#allocation10_spill] sm:$0xff]  ;;  %v5025_v22 = vld [vmem:[#allocation17_spill] sm:$0xff]  ;;  %v5026_v30 = vld [vmem:[#allocation15_spill] sm:$0xff] }
 0x286   : > { %3144 = vst.msk [vmem:[%s4582_s8 + $0xc8] sm:$0xff] %vm2823_vm1, %v3112_v7  ;;  %v2974_v10 = vsel %vm2823_vm1, %v2668_v2, -inf  ;;  %v3041_v53 = vsel %vm2823_vm1, %v2772_v57, -inf  ;;  %v5024_v35 = vld [vmem:[#allocation14_spill] sm:$0xff] }
 0x287   : > { %v2975_v8 = vmax.f32 %v2973_v6, %v2974_v10 }
 0x289   : > { %v2127_v17 = vpop.f32.mrb[180].mxu0  ;;  %v3685_v33 = vpop.f32.mrb[180].mxu1 }
 0x28a   : > { %v2673_v5 = vadd.f32 %v4778_v1, %v2127_v17  ;;  %v2785_v38 = vadd.f32 %v3685_v33, %v5019_v45  ;;  %v2129_v37 = vpop.f32.mrb[181].mxu0  ;;  %v2776_v26 = vpop.f32.mrb[181].mxu1 }
 0x28b   : > { %v2777_v60 = vadd.f32 %v2776_v26, %v5020_v25  ;;  %v2130_v40 = vpop.f32.mrb[182].mxu0  ;;  %v3686_v12 = vpop.f32.mrb[182].mxu1 }
 0x28c   : > { %v2981_v27 = vsel %vm2823_vm1, %v2673_v5, -inf  ;;  %v3035_v6 = vsel %vm2823_vm1, %v2785_v38, -inf  ;;  %v2676_v24 = vadd.f32 %v4782_v63, %v2130_v40  ;;  %v2788_v1 = vadd.f32 %v3686_v12, %v5021_v13  ;;  %v2132_v34 = vpop.f32.mrb[183].mxu0  ;;  %v2779_v44 = vpop.f32.mrb[183].mxu1 }
 0x28d   : > { %v4923_v4 = vmax.f32 %v2980_v3, %v2981_v27  ;;  %v3036_v42 = vmax.f32 %v3034_v32, %v3035_v6  ;;  %v3021_v41 = vsel %vm2823_vm1, %v2777_v60, -inf  ;;  %v2780_v48 = vadd.f32 %v2779_v44, %v5022_v15  ;;  %v5027_v60 = vld [vmem:[#allocation20_spill] sm:$0xff] }
 0x28e   : > { %v3022_v23 = vmax.f32 %v3020_v0, %v3021_v41  ;;  %v2988_v36 = vsel %vm2823_vm1, %v2676_v24, -inf  ;;  %v3042_v59 = vsel %vm2823_vm1, %v2788_v1, -inf  ;;  %v3027_v63 = vsel %vm2823_vm1, %v2764_v20, -inf  ;;  %v5029_v41 = vld [vmem:[#allocation21_spill] sm:$0xff] }
 0x28f   : > { %v4931_v58 = vmax.f32 %v2987_v9, %v2988_v36  ;;  %v3043_v31 = vmax.f32 %v3041_v53, %v3042_v59  ;;  %v3028_v3 = vsel %vm2823_vm1, %v2780_v48, -inf  ;;  %v5030_v59 = vld [vmem:[#allocation19_spill] sm:$0xff] }
 0x290   : > { %v3029_v51 = vmax.f32 %v3027_v63, %v3028_v3 }
 0x291   : > { %v2135_v61 = vpop.f32.mrb[184].mxu0  ;;  %v3689_v49 = vpop.f32.mrb[184].mxu1 }
 0x292   : > { %v2681_v62 = vadd.f32 %v4792_v28, %v2135_v61  ;;  %v2801_v11 = vadd.f32 %v3689_v49, %v5023_v52  ;;  %v2137_v50 = vpop.f32.mrb[185].mxu0  ;;  %v2792_v39 = vpop.f32.mrb[185].mxu1 }
 0x293   : > { %v2793_v43 = vadd.f32 %v2792_v39, %v5024_v35  ;;  %v2138_v19 = vpop.f32.mrb[186].mxu0  ;;  %v3690_v14 = vpop.f32.mrb[186].mxu1 }
 0x294   : > { %v2969_v46 = vsel %vm2823_vm1, %v2681_v62, -inf  ;;  %v3037_v9 = vsel %vm2823_vm1, %v2801_v11, -inf  ;;  %v2684_v7 = vadd.f32 %v4800_v54, %v2138_v19  ;;  %v2804_v2 = vadd.f32 %v3690_v14, %v5025_v22  ;;  %v2140_v21 = vpop.f32.mrb[187].mxu0  ;;  %v2795_v56 = vpop.f32.mrb[187].mxu1 }
 0x295   : > { %v2970_v55 = vmax.f32 %v2968_v29, %v2969_v46  ;;  %v3038_v28 = vmax.f32 %v3036_v42, %v3037_v9  ;;  %v3023_v57 = vsel %vm2823_vm1, %v2793_v43, -inf  ;;  %v2796_v20 = vadd.f32 %v2795_v56, %v5026_v30 }
 0x296   : > { %v3024_v10 = vmax.f32 %v3022_v23, %v3023_v57  ;;  %v2976_v17 = vsel %vm2823_vm1, %v2684_v7, -inf  ;;  %v3044_v33 = vsel %vm2823_vm1, %v2804_v2, -inf }
 0x297   : > { %v3075_v5 = vadd.f32 %v4890_v47, %v2970_v55  ;;  %v2977_v45 = vmax.f32 %v2975_v8, %v2976_v17  ;;  %v3045_v54 = vmax.f32 %v3043_v31, %v3044_v33  ;;  %v3030_v38 = vsel %vm2823_vm1, %v2796_v20, -inf  ;;  %v5028_v8 = vld [vmem:[#allocation18_spill] sm:$0xff] }
 0x298   : > { %v3031_v37 = vmax.f32 %v3029_v51, %v3030_v38 }
 0x299   : > { %v3107_v26 = vmax.f32 %v3075_v5, 0.0  ;;  %v3076_v29 = vadd.f32 %v4890_v47, %v2977_v45  ;;  %v2143_v32 = vpop.f32.mrb[188].mxu0  ;;  %v3693_v0 = vpop.f32.mrb[188].mxu1 }
 0x29a   : > { %v2689_v25 = vadd.f32 %v4790_v18, %v2143_v32  ;;  %v2817_v40 = vadd.f32 %v3693_v0, %v5027_v60  ;;  %v2145_v12 = vpop.f32.mrb[189].mxu0  ;;  %v2808_v27 = vpop.f32.mrb[189].mxu1 }
 0x29b   : > { %3139 = vst.msk [vmem:[%s4582_s8 + $0xa0] sm:$0xff] %vm2823_vm1, %v3107_v26  ;;  %v3108_v6 = vmax.f32 %v3076_v29, 0.0  ;;  %v2809_v24 = vadd.f32 %v2808_v27, %v5028_v8  ;;  %v2146_v13 = vpop.f32.mrb[190].mxu0  ;;  %v3694_v1 = vpop.f32.mrb[190].mxu1 }
 0x29c   : > { %v2983_v34 = vsel %vm2823_vm1, %v2689_v25, -inf  ;;  %v3039_v44 = vsel %vm2823_vm1, %v2817_v40, -inf  ;;  %v2692_v42 = vadd.f32 %v4796_v16, %v2146_v13  ;;  %v2820_v15 = vadd.f32 %v3694_v1, %v5029_v41  ;;  %v2148_v18 = vpop.f32.mrb[191].mxu0  ;;  %v2811_v48 = vpop.f32.mrb[191].mxu1 }
 0x29d   : > { %3140 = vst.msk [vmem:[%s4582_s8 + $0xa8] sm:$0xff] %vm2823_vm1, %v3108_v6  ;;  %v2984_v53 = vmax.f32 %v4923_v4, %v2983_v34  ;;  %v3040_v23 = vmax.f32 %v3038_v28, %v3039_v44  ;;  %v3025_v36 = vsel %vm2823_vm1, %v2809_v24, -inf  ;;  %v2812_v63 = vadd.f32 %v2811_v48, %v5030_v59 }
 0x29e   : > { %v3026_v31 = vmax.f32 %v3024_v10, %v3025_v36  ;;  %v2990_v3 = vsel %vm2823_vm1, %v2692_v42, -inf  ;;  %v3046_v16 = vsel %vm2823_vm1, %v2820_v15, -inf }
 0x29f   : > { %v3077_v51 = vadd.f32 %v4890_v47, %v2984_v53  ;;  %v3085_v61 = vadd.f32 %v4890_v47, %v3040_v23  ;;  %v2991_v49 = vmax.f32 %v4931_v58, %v2990_v3  ;;  %v3047_v4 = vmax.f32 %v3045_v54, %v3046_v16 }
 0x2a0   : > { %v3083_v62 = vadd.f32 %v4890_v47, %v3026_v31  ;;  %v3032_v52 = vsel %vm2823_vm1, %v2812_v63, -inf }
 0x2a1   : > { %v3109_v11 = vmax.f32 %v3077_v51, 0.0  ;;  %v3117_v50 = vmax.f32 %v3085_v61, 0.0  ;;  %v3078_v39 = vadd.f32 %v4890_v47, %v2991_v49  ;;  %v3086_v35 = vadd.f32 %v4890_v47, %v3047_v4 }
 0x2a2   : > { %v3115_v43 = vmax.f32 %v3083_v62, 0.0  ;;  %v3033_v19 = vmax.f32 %v3031_v37, %v3032_v52 }
 0x2a3   : > { %3141 = vst.msk [vmem:[%s4582_s8 + $0xb0] sm:$0xff] %vm2823_vm1, %v3109_v11  ;;  %3149 = vst.msk [vmem:[%s4582_s8 + $0xf0] sm:$0xff] %vm2823_vm1, %v3117_v50  ;;  %v3110_v58 = vmax.f32 %v3078_v39, 0.0  ;;  %v3118_v14 = vmax.f32 %v3086_v35, 0.0 }
 0x2a4   : > { %3147 = vst.msk [vmem:[%s4582_s8 + $0xe0] sm:$0xff] %vm2823_vm1, %v3115_v43  ;;  %v3084_v46 = vadd.f32 %v4890_v47, %v3033_v19 }
 0x2a5   : > { %3142 = vst.msk [vmem:[%s4582_s8 + $0xb8] sm:$0xff] %vm2823_vm1, %v3110_v58  ;;  %3150 = vst.msk [vmem:[%s4582_s8 + $0xf8] sm:$0xff] %vm2823_vm1, %v3118_v14 }
 0x2a6   : > { %v3116_v9 = vmax.f32 %v3084_v46, 0.0 }
 0x2a8   : > { %3148 = vst.msk [vmem:[%s4582_s8 + $0xe8] sm:$0xff] %vm2823_vm1, %v3116_v9 }
 0x2a9 PF: > { %s13_s12 = sadd.s32 1, %s4018_s12  }
 0x2aa   : > { %p10_p4 = scmp.ge.s32.totalorder %s13_s12, 4  }
 0x2ac   :  { %12 = sbr.rel (!%p10_p4) target bundleno = 1 (0x1), region = 62 }

// kernel: _lambda_.5
= control target key start
LH: loop header
LB: loop body
LE: loop exit
PB: predicated region body
PF: predicated region fallthrough
CT: control target
= control target key end

     0   :  { %10 = vsyncpa [#allocation3], 0  ;;  %s3586_s0 = inlined_call_operand.vmem [shape: bf16[16,1600], index: 0, kind: input, shape index: {}]   ;;  %s3587_s1 = inlined_call_operand.vmem [shape: bf16[1600,256], index: 1, kind: input, shape index: {}]   ;;  %s3588_s2 = inlined_call_operand.vmem [shape: f32[1,256], index: 2, kind: input, shape index: {}]   ;;  %s3589_s3 = inlined_call_operand.vmem [shape: f32[256,10], index: 3, kind: input, shape index: {}]   ;;  %s3590_s4 = inlined_call_operand.vmem [shape: f32[1,10], index: 4, kind: input, shape index: {}]   ;;  %s3591_s5 = inlined_call_operand.hbm [shape: f32[16,10], index: 5, kind: output, shape index: {}]  }
   0x1   :  { %12 = vsyncpa [#allocation3 + $0x1], 0  ;;  %s2748_s18 = smov 0   ;;  %s2750_s19 = smov 0  }
   0x2   :  { %s2752_s20 = smov 0   ;;  %s2754_s21 = smov 0  }
   0x3 LB: > { %s2769_s22 = sadd.s32 4294967295, %s2714_s21   ;;  %s1978_s23 = sadd.s32 4294967294, %s2714_s21   ;;  %s2714_s21 = sphi %s2754_s21, %s3597_s21   ;;  %s2710_s20 = sphi %s2752_s20, %s3596_s20   ;;  %s2706_s19 = sphi %s2750_s19, %s3595_s19   ;;  %s2702_s18 = sphi %s2748_s18, %s3594_s18  }
   0x4   : > { %s2773_s24 = sadd.s32 1, %s2714_s21   ;;  %s135_s25 = sadd.s32 1, %s2710_s20 }
   0x5   : > { %s132_s26 = ssub.s32 %s2714_s21, %s2773_s24  ;;  %p145_p0 = scmp.ne.s32.totalorder %s2710_s20, %s2706_s19 }
   0x6   : > { %p133_p1 = scmp.eq.s32.totalorder %s132_s26, 0  ;;  %p146_p2 = scmp.eq.s32.totalorder %s2769_s22, 1 }
   0x7   : > { %p151_p3 = scmp.ne.s32.totalorder %s2706_s19, %s2702_s18  ;;  %p152_p4 = scmp.eq.s32.totalorder %s1978_s23, 1 }
   0x8   : > { %s2784_s27 = scalar_select %p133_p1, %s2710_s20, %s135_s25  }
   0x9   : > { %p2786_p5 = por %p146_p2, %p145_p0  ;;  %p2790_p6 = por %p152_p4, %p151_p3 }
   0xa   : > { %p1981_p7 = scmp.ge.s32.totalorder %s2714_s21, 1  ;;  %p190_p8 = scmp.lt.s32.totalorder %s2714_s21, 3 }
   0xc   : > { %p191_p9 = pnand %p1981_p7, %p190_p8 }
   0xd   : > { %v2335_v0 = vld [vmem:[%s3587_s1 + $0x4] ss:$8 sps:$4 sm:$0xff] (!%p191_p9)   ;;  %v2339_v2 = vld [vmem:[%s3587_s1] ss:$8 sps:$4 sm:$0xff] (!%p191_p9)   ;;  %v2341_v4 = vld [vmem:[%s3587_s1 + $0x14] ss:$8 sps:$4 sm:$0xff] (!%p191_p9)  }
   0xe   : > { %194 = sbr.rel (%p191_p9) target bundleno = 990 (0x3de), region = 40  ;;  %v2337_v1 = vld [vmem:[%s3587_s1 + $0x304] ss:$8 sps:$4 sm:$0xff] (!%p191_p9)   ;;  %1492 = vmatprep.subr.bf16.mxu1 (!%p191_p9), %v2335_v0  ;;  %v2340_v3 = vld [vmem:[%s3587_s1 + $0x300] ss:$8 sps:$4 sm:$0xff] (!%p191_p9)   ;;  %p218_p10 = scmp.lt.s32.totalorder (!%p191_p9), %s2769_s22, 1 }
   0xf   : > { %1615 = vmatprep.subr.bf16.mxu0 (!%p191_p9), %v2337_v1  ;;  %1493 = vmatpush1.bf16.msra.mxu1 (!%p191_p9), %v2339_v2  ;;  %v2343_v5 = vld [vmem:[%s3587_s1 + $0x314] ss:$8 sps:$4 sm:$0xff] (!%p191_p9)   ;;  %v2345_v6 = vld [vmem:[%s3587_s1 + $0x10] ss:$8 sps:$4 sm:$0xff] (!%p191_p9)   ;;  %v2347_v8 = vld [vmem:[%s3587_s1 + $0x24] ss:$8 sps:$4 sm:$0xff] (!%p191_p9)  }
  0x10   : > { %1616 = vmatpush1.bf16.msra.mxu0 (!%p191_p9), %v2340_v3  ;;  %1494 = vmatprep.subr.bf16.mxu1 (!%p191_p9), %v2341_v4  ;;  %v2346_v7 = vld [vmem:[%s3587_s1 + $0x310] ss:$8 sps:$4 sm:$0xff] (!%p191_p9)   ;;  %v2349_v9 = vld [vmem:[%s3587_s1 + $0x324] ss:$8 sps:$4 sm:$0xff] (!%p191_p9)   ;;  %v2351_v10 = vld [vmem:[%s3587_s1 + $0x20] ss:$8 sps:$4 sm:$0xff] (!%p191_p9)  }
  0x11   : > { %1617 = vmatprep.subr.bf16.mxu0 (!%p191_p9), %v2343_v5  ;;  %v2352_v11 = vld [vmem:[%s3587_s1 + $0x320] ss:$8 sps:$4 sm:$0xff] (!%p191_p9)   ;;  %v2353_v12 = vld [vmem:[%s3587_s1 + $0x34] ss:$8 sps:$4 sm:$0xff] (!%p191_p9)   ;;  %v2357_v14 = vld [vmem:[%s3587_s1 + $0x30] ss:$8 sps:$4 sm:$0xff] (!%p191_p9)  }
  0x12   : > { %v2355_v13 = vld [vmem:[%s3587_s1 + $0x334] ss:$8 sps:$4 sm:$0xff] (!%p191_p9)   ;;  %v2358_v15 = vld [vmem:[%s3587_s1 + $0x330] ss:$8 sps:$4 sm:$0xff] (!%p191_p9)   ;;  %v2359_v16 = vld [vmem:[%s3587_s1 + $0x44] ss:$8 sps:$4 sm:$0xff] (!%p191_p9)  }
  0x13   : > { %1495 = vmatpush1.bf16.msra.mxu1 (!%p191_p9), %v2345_v6  ;;  %v2361_v17 = vld [vmem:[%s3587_s1 + $0x344] ss:$8 sps:$4 sm:$0xff] (!%p191_p9)   ;;  %v2363_v18 = vld [vmem:[%s3587_s1 + $0x40] ss:$8 sps:$4 sm:$0xff] (!%p191_p9)   ;;  %v2365_v20 = vld [vmem:[%s3587_s1 + $0x54] ss:$8 sps:$4 sm:$0xff] (!%p191_p9)  }
  0x14   : > { %1618 = vmatpush1.bf16.msra.mxu0 (!%p191_p9), %v2346_v7  ;;  %1496 = vmatprep.subr.bf16.mxu1 (!%p191_p9), %v2347_v8  ;;  %v2364_v19 = vld [vmem:[%s3587_s1 + $0x340] ss:$8 sps:$4 sm:$0xff] (!%p191_p9)   ;;  %v2367_v21 = vld [vmem:[%s3587_s1 + $0x354] ss:$8 sps:$4 sm:$0xff] (!%p191_p9)   ;;  %v2369_v22 = vld [vmem:[%s3587_s1 + $0x50] ss:$8 sps:$4 sm:$0xff] (!%p191_p9)  }
  0x15   : > { %1619 = vmatprep.subr.bf16.mxu0 %v2349_v9  ;;  %v2370_v23 = vld [vmem:[%s3587_s1 + $0x350] ss:$8 sps:$4 sm:$0xff]   ;;  %v2371_v24 = vld [vmem:[%s3587_s1 + $0x64] ss:$8 sps:$4 sm:$0xff]   ;;  %v2375_v26 = vld [vmem:[%s3587_s1 + $0x60] ss:$8 sps:$4 sm:$0xff]  }
  0x16   : > { %v2373_v25 = vld [vmem:[%s3587_s1 + $0x364] ss:$8 sps:$4 sm:$0xff]   ;;  %v2376_v27 = vld [vmem:[%s3587_s1 + $0x360] ss:$8 sps:$4 sm:$0xff]   ;;  %v2377_v28 = vld [vmem:[%s3587_s1 + $0x74] ss:$8 sps:$4 sm:$0xff]  }
  0x17   : > { %1497 = vmatpush1.bf16.msra.mxu1 %v2351_v10  ;;  %v2379_v29 = vld [vmem:[%s3587_s1 + $0x374] ss:$8 sps:$4 sm:$0xff]   ;;  %v2381_v30 = vld [vmem:[%s3587_s1 + $0x70] ss:$8 sps:$4 sm:$0xff]   ;;  %v2383_v32 = vld [vmem:[%s3587_s1 + $0x84] ss:$8 sps:$4 sm:$0xff]  }
  0x18   : > { %1620 = vmatpush1.bf16.msra.mxu0 %v2352_v11  ;;  %1498 = vmatprep.subr.bf16.mxu1 %v2353_v12  ;;  %v2382_v31 = vld [vmem:[%s3587_s1 + $0x370] ss:$8 sps:$4 sm:$0xff]   ;;  %v2385_v33 = vld [vmem:[%s3587_s1 + $0x384] ss:$8 sps:$4 sm:$0xff]   ;;  %v2387_v34 = vld [vmem:[%s3587_s1 + $0x80] ss:$8 sps:$4 sm:$0xff]  }
  0x19   : > { %1621 = vmatprep.subr.bf16.mxu0 %v2355_v13  ;;  %v2388_v35 = vld [vmem:[%s3587_s1 + $0x380] ss:$8 sps:$4 sm:$0xff]   ;;  %s219_s13 = scalar_select %p218_p10, %s2769_s22, 1  ;;  %v2389_v36 = vld [vmem:[%s3587_s1 + $0x94] ss:$8 sps:$4 sm:$0xff]   ;;  %vm1488_vm0 = vcmask 523264  }
  0x1a   : > { %v2391_v37 = vld [vmem:[%s3587_s1 + $0x394] ss:$8 sps:$4 sm:$0xff]   ;;  %v2393_v38 = vld [vmem:[%s3587_s1 + $0x90] ss:$8 sps:$4 sm:$0xff]   ;;  %v2395_v40 = vld [vmem:[%s3587_s1 + $0xa4] ss:$8 sps:$4 sm:$0xff]  }
  0x1b   : > { %1499 = vmatpush1.bf16.msra.mxu1 %v2357_v14  ;;  %s2294_s26 = smul.u32 52, %s219_s13  ;;  %v2394_v39 = vld [vmem:[%s3587_s1 + $0x390] ss:$8 sps:$4 sm:$0xff]   ;;  %v2397_v41 = vld [vmem:[%s3587_s1 + $0x3a4] ss:$8 sps:$4 sm:$0xff]   ;;  %vm1890_vm1 = vcmask 80896  }
  0x1c   : > { %1622 = vmatpush1.bf16.msra.mxu0 %v2358_v15  ;;  %1500 = vmatprep.subr.bf16.mxu1 %v2359_v16  ;;  %v2399_v42 = vld [vmem:[%s3587_s1 + $0xa0] ss:$8 sps:$4 sm:$0xff]   ;;  %v2401_v44 = vld [vmem:[%s3587_s1 + $0xb4] ss:$8 sps:$4 sm:$0xff]   ;;  %v2405_v47 = vld [vmem:[%s3587_s1 + $0xb0] ss:$8 sps:$4 sm:$0xff]  }
  0x1d   : > { %1623 = vmatprep.subr.bf16.mxu0 %v2361_v17  ;;  %v2400_v43 = vld [vmem:[%s3587_s1 + $0x3a0] ss:$8 sps:$4 sm:$0xff]   ;;  %s2933_s17 = scalar_lea.vmem %s3586_s0, %s2294_s26  ;;  %v2403_v45 = vld [vmem:[%s3587_s1 + $0x3b4] ss:$8 sps:$4 sm:$0xff]   ;;  %v2406_v49 = vld [vmem:[%s3587_s1 + $0x3b0] ss:$8 sps:$4 sm:$0xff]  }
  0x1e   : > { %v224_v46 = vld [vmem:[%s2933_s17] sm:$0xff]  ;;  %v227_v50 = vld [vmem:[%s2933_s17 + $0x18] sm:$0xff]  ;;  %s215_s30 = sand.u32 1, %s2706_s19   ;;  %s2200_s7 = sshll.u32 %s2769_s22, 7 }
  0x1f   : > { %1501 = vmatpush1.bf16.msra.mxu1 %v2363_v18  ;;  %v1985_v48 = vcombine.high %v224_v46, %v224_v46  ;;  %v2407_v51 = vld [vmem:[%s3587_s1 + $0xc4] ss:$8 sps:$4 sm:$0xff]   ;;  %v1991_v53 = vcombine.high %v227_v50, %v227_v50  ;;  %v2411_v54 = vld [vmem:[%s3587_s1 + $0xc0] ss:$8 sps:$4 sm:$0xff]   ;;  %v2413_v56 = vld [vmem:[%s3587_s1 + $0xd4] ss:$8 sps:$4 sm:$0xff]   ;;  %v1984_v6 = vcombine.low %v224_v46, %v224_v46  ;;  %v1990_v7 = vcombine.low %v227_v50, %v227_v50  ;;  %s3543_s11 = scalar_lea.hbm %s3591_s5, %s2200_s7 }
  0x20   : > { %1624 = vmatpush1.bf16.msra.mxu0 %v2364_v19  ;;  %1502 = vmatprep.subr.bf16.mxu1 %v2365_v20  ;;  %v2409_v52 = vld [vmem:[%s3587_s1 + $0x3c4] ss:$8 sps:$4 sm:$0xff]   ;;  %v2412_v55 = vld [vmem:[%s3587_s1 + $0x3c0] ss:$8 sps:$4 sm:$0xff]   ;;  %v2415_v57 = vld [vmem:[%s3587_s1 + $0x3d4] ss:$8 sps:$4 sm:$0xff]  }
  0x21   : > { %1625 = vmatprep.subr.bf16.mxu0 %v2367_v21  ;;  %1524 = vmatprep.mubr.bf16.mxu1 %v1985_v48  ;;  %v2417_v58 = vld [vmem:[%s3587_s1 + $0xd0] ss:$8 sps:$4 sm:$0xff]   ;;  %v2419_v60 = vld [vmem:[%s3587_s1 + $0xe4] ss:$8 sps:$4 sm:$0xff]   ;;  %v2423_v62 = vld [vmem:[%s3587_s1 + $0xe0] ss:$8 sps:$4 sm:$0xff]  }
  0x22   : > { %1647 = vmatprep.mubr.bf16.mxu0 %v1991_v53  ;;  %v2418_v59 = vld [vmem:[%s3587_s1 + $0x3d0] ss:$8 sps:$4 sm:$0xff]   ;;  %v2421_v61 = vld [vmem:[%s3587_s1 + $0x3e4] ss:$8 sps:$4 sm:$0xff]   ;;  %v2424_v63 = vld [vmem:[%s3587_s1 + $0x3e0] ss:$8 sps:$4 sm:$0xff]  }
  0x23   : > { %1503 = vmatpush1.bf16.msra.mxu1 %v2369_v22  ;;  %v2425_v0 = vld [vmem:[%s3587_s1 + $0xf4] ss:$8 sps:$4 sm:$0xff]   ;;  %v2429_v2 = vld [vmem:[%s3587_s1 + $0xf0] ss:$8 sps:$4 sm:$0xff]   ;;  %v2435_v4 = vld [vmem:[%s3587_s1 + $0x104] ss:$8 sps:$4 sm:$0xff]  }
  0x24   : > { %1626 = vmatpush1.bf16.msra.mxu0 %v2370_v23  ;;  %1504 = vmatprep.subr.bf16.mxu1 %v2371_v24  ;;  %v2427_v1 = vld [vmem:[%s3587_s1 + $0x3f4] ss:$8 sps:$4 sm:$0xff]   ;;  %v2430_v3 = vld [vmem:[%s3587_s1 + $0x3f0] ss:$8 sps:$4 sm:$0xff]   ;;  %v2440_v5 = vld [vmem:[%s3587_s1 + $0x404] ss:$8 sps:$4 sm:$0xff]  }
  0x25   : > { %1627 = vmatprep.subr.bf16.mxu0 %v2373_v25  ;;  %v2433_v8 = vld [vmem:[%s3587_s1 + $0x100] ss:$8 sps:$4 sm:$0xff]   ;;  %v2443_v10 = vld [vmem:[%s3587_s1 + $0x114] ss:$8 sps:$4 sm:$0xff]   ;;  %v2441_v12 = vld [vmem:[%s3587_s1 + $0x110] ss:$8 sps:$4 sm:$0xff]  }
  0x26   : > { %v2438_v9 = vld [vmem:[%s3587_s1 + $0x400] ss:$8 sps:$4 sm:$0xff]   ;;  %v2446_v11 = vld [vmem:[%s3587_s1 + $0x414] ss:$8 sps:$4 sm:$0xff]   ;;  %v2444_v13 = vld [vmem:[%s3587_s1 + $0x410] ss:$8 sps:$4 sm:$0xff]  }
  0x27   : > { %1505 = vmatpush1.bf16.msra.mxu1 %v2375_v26  ;;  %v2449_v14 = vld [vmem:[%s3587_s1 + $0x124] ss:$8 sps:$4 sm:$0xff]   ;;  %v2447_v16 = vld [vmem:[%s3587_s1 + $0x120] ss:$8 sps:$4 sm:$0xff]   ;;  %v2455_v18 = vld [vmem:[%s3587_s1 + $0x134] ss:$8 sps:$4 sm:$0xff]  }
  0x28   : > { %1628 = vmatpush1.bf16.msra.mxu0 %v2376_v27  ;;  %1506 = vmatprep.subr.bf16.mxu1 %v2377_v28  ;;  %v2452_v15 = vld [vmem:[%s3587_s1 + $0x424] ss:$8 sps:$4 sm:$0xff]   ;;  %v2450_v17 = vld [vmem:[%s3587_s1 + $0x420] ss:$8 sps:$4 sm:$0xff]   ;;  %v2458_v19 = vld [vmem:[%s3587_s1 + $0x434] ss:$8 sps:$4 sm:$0xff]  }
  0x29   : > { %1629 = vmatprep.subr.bf16.mxu0 %v2379_v29  ;;  %v2453_v20 = vld [vmem:[%s3587_s1 + $0x130] ss:$8 sps:$4 sm:$0xff]   ;;  %v2461_v22 = vld [vmem:[%s3587_s1 + $0x144] ss:$8 sps:$4 sm:$0xff]   ;;  %v2459_v24 = vld [vmem:[%s3587_s1 + $0x140] ss:$8 sps:$4 sm:$0xff]  }
  0x2a   : > { %v2456_v21 = vld [vmem:[%s3587_s1 + $0x430] ss:$8 sps:$4 sm:$0xff]   ;;  %v2464_v23 = vld [vmem:[%s3587_s1 + $0x444] ss:$8 sps:$4 sm:$0xff]   ;;  %v2462_v25 = vld [vmem:[%s3587_s1 + $0x440] ss:$8 sps:$4 sm:$0xff]  }
  0x2b   : > { %1507 = vmatpush1.bf16.msra.mxu1 %v2381_v30  ;;  %v2467_v26 = vld [vmem:[%s3587_s1 + $0x154] ss:$8 sps:$4 sm:$0xff]   ;;  %v2465_v28 = vld [vmem:[%s3587_s1 + $0x150] ss:$8 sps:$4 sm:$0xff]   ;;  %v2473_v30 = vld [vmem:[%s3587_s1 + $0x164] ss:$8 sps:$4 sm:$0xff]  }
  0x2c   : > { %1630 = vmatpush1.bf16.msra.mxu0 %v2382_v31  ;;  %1508 = vmatprep.subr.bf16.mxu1 %v2383_v32  ;;  %v2470_v27 = vld [vmem:[%s3587_s1 + $0x454] ss:$8 sps:$4 sm:$0xff]   ;;  %v2468_v29 = vld [vmem:[%s3587_s1 + $0x450] ss:$8 sps:$4 sm:$0xff]   ;;  %v2476_v31 = vld [vmem:[%s3587_s1 + $0x464] ss:$8 sps:$4 sm:$0xff]  }
  0x2d   : > { %1631 = vmatprep.subr.bf16.mxu0 %v2385_v33  ;;  %v3076_v32 = vld [vmem:[%s2933_s17 + $0x8] sm:$0xff]  ;;  %v2491_v46 = vld [vmem:[%s3587_s1 + $0x194] ss:$8 sps:$4 sm:$0xff]   ;;  %v2489_v48 = vld [vmem:[%s3587_s1 + $0x190] ss:$8 sps:$4 sm:$0xff]   ;;  %s1982_s6 = sshll.u32 %s215_s30, 3 }
  0x2e   : > { %v2471_v33 = vld [vmem:[%s3587_s1 + $0x160] ss:$8 sps:$4 sm:$0xff]   ;;  %v2497_v50 = vld [vmem:[%s3587_s1 + $0x1a4] ss:$8 sps:$4 sm:$0xff]   ;;  %s217_s8 = scalar_lea.vmem [#allocation2], %s1982_s6  ;;  %s2717_s22 = smov [#allocation2]  }
  0x2f   : > { %1509 = vmatpush1.bf16.msra.mxu1 %v2387_v34  ;;  %v2474_v34 = vld [vmem:[%s3587_s1 + $0x460] ss:$8 sps:$4 sm:$0xff]   ;;  %s1919_s26 = sshll.u32 %s217_s8, 4  ;;  %s2656_s13 = sshll.u32 %s2717_s22, 4  ;;  %s3545_s26 = int_to_ptr.vmem [resolvable:$true] %s1919_s26  ;;  %s2657_s13 = int_to_ptr.vmem [resolvable:$false] %s2656_s13 }
  0x30   : > { %1632 = vmatpush1.bf16.msra.mxu0 %v2388_v35  ;;  %1510 = vmatprep.subr.bf16.mxu1 %v2389_v36  ;;  %v1987_v35 = vcombine.high %v3076_v32, %v3076_v32  ;;  %v3087_v36 = vld [vmem:[%s2933_s17 + $0x20] sm:$0xff]  ;;  %s2652_s12 = scalar_lea.vmem %s3545_s26, 128  ;;  %s2658_s14 = scalar_lea.vmem %s2657_s13, 256 }
  0x31   : > { %1633 = vmatprep.subr.bf16.mxu0 %v2391_v37  ;;  %v2479_v37 = vld [vmem:[%s3587_s1 + $0x174] ss:$8 sps:$4 sm:$0xff]   ;;  %v2498_v53 = vld [vmem:[%s3587_s1 + $0x4a0] ss:$8 sps:$4 sm:$0xff]   ;;  %p2653_p11 = scmp.ne.s32.totalorder %s3545_s26, %s2652_s12  ;;  %p2659_p0 = scmp.lt.s32.totalorder %s3545_s26, %s2657_s13 }
  0x32   : > { %p2660_p1 = scmp.lt.s32.totalorder %s2658_s14, %s2652_s12 }
  0x33   : > { %1511 = vmatpush1.bf16.msra.mxu1 %v2393_v38  ;;  %v1993_v38 = vcombine.high %v3087_v36, %v3087_v36  ;;  %p2654_p12 = pnand %p2653_p11, %p2786_p5 }
  0x34   : > { %1634 = vmatpush1.bf16.msra.mxu0 %v2394_v39  ;;  %1512 = vmatprep.subr.bf16.mxu1 %v2395_v40  ;;  %v2482_v39 = vld [vmem:[%s3587_s1 + $0x474] ss:$8 sps:$4 sm:$0xff]   ;;  %v2477_v40 = vld [vmem:[%s3587_s1 + $0x170] ss:$8 sps:$4 sm:$0xff]   ;;  %p2661_p2 = por %p2660_p1, %p2659_p0 }
  0x35   : > { %1635 = vmatprep.subr.bf16.mxu0 %v2397_v41  ;;  %v2480_v41 = vld [vmem:[%s3587_s1 + $0x470] ss:$8 sps:$4 sm:$0xff]   ;;  %p2655_p13 = pneg %p2654_p12 }
  0x37   : > { %1513 = vmatpush1.bf16.msra.mxu1 %v2399_v42  ;;  %v2485_v42 = vld [vmem:[%s3587_s1 + $0x184] ss:$8 sps:$4 sm:$0xff]   ;;  %p2662_p3 = pnand %p2661_p2, %p2655_p13 }
  0x38   : > { %1636 = vmatpush1.bf16.msra.mxu0 %v2400_v43  ;;  %1514 = vmatprep.subr.bf16.mxu1 %v2401_v44  ;;  %v2488_v43 = vld [vmem:[%s3587_s1 + $0x484] ss:$8 sps:$4 sm:$0xff]   ;;  %v2483_v44 = vld [vmem:[%s3587_s1 + $0x180] ss:$8 sps:$4 sm:$0xff]  }
  0x39   : > { %1637 = vmatprep.subr.bf16.mxu0 %v2403_v45  ;;  %v2486_v45 = vld [vmem:[%s3587_s1 + $0x480] ss:$8 sps:$4 sm:$0xff]  }
  0x3b   : > { %1515 = vmatpush1.bf16.msra.mxu1 %v2405_v47  ;;  %v2494_v47 = vld [vmem:[%s3587_s1 + $0x494] ss:$8 sps:$4 sm:$0xff]  }
  0x3c   : > { %1638 = vmatpush1.bf16.msra.mxu0 %v2406_v49  ;;  %1516 = vmatprep.subr.bf16.mxu1 %v2407_v51  ;;  %v2492_v49 = vld [vmem:[%s3587_s1 + $0x490] ss:$8 sps:$4 sm:$0xff]   ;;  %v2500_v51 = vld [vmem:[%s3587_s1 + $0x4a4] ss:$8 sps:$4 sm:$0xff]  }
  0x3d   : > { %1639 = vmatprep.subr.bf16.mxu0 %v2409_v52  ;;  %v2495_v52 = vld [vmem:[%s3587_s1 + $0x1a0] ss:$8 sps:$4 sm:$0xff]  }
  0x3f   : > { %1517 = vmatpush1.bf16.msra.mxu1 %v2411_v54  ;;  %v2503_v54 = vld [vmem:[%s3587_s1 + $0x1b4] ss:$8 sps:$4 sm:$0xff]  }
  0x40   : > { %1640 = vmatpush1.bf16.msra.mxu0 %v2412_v55  ;;  %1518 = vmatprep.subr.bf16.mxu1 %v2413_v56  ;;  %v2506_v55 = vld [vmem:[%s3587_s1 + $0x4b4] ss:$8 sps:$4 sm:$0xff]   ;;  %v2501_v56 = vld [vmem:[%s3587_s1 + $0x1b0] ss:$8 sps:$4 sm:$0xff]  }
  0x41   : > { %1641 = vmatprep.subr.bf16.mxu0 %v2415_v57  ;;  %v2504_v57 = vld [vmem:[%s3587_s1 + $0x4b0] ss:$8 sps:$4 sm:$0xff]  }
  0x43   : > { %1519 = vmatpush1.bf16.msra.mxu1 %v2417_v58  ;;  %v2509_v58 = vld [vmem:[%s3587_s1 + $0x1c4] ss:$8 sps:$4 sm:$0xff]  }
  0x44   : > { %1642 = vmatpush1.bf16.msra.mxu0 %v2418_v59  ;;  %1520 = vmatprep.subr.bf16.mxu1 %v2419_v60  ;;  %v2512_v59 = vld [vmem:[%s3587_s1 + $0x4c4] ss:$8 sps:$4 sm:$0xff]   ;;  %v2507_v60 = vld [vmem:[%s3587_s1 + $0x1c0] ss:$8 sps:$4 sm:$0xff]  }
  0x45   : > { %1643 = vmatprep.subr.bf16.mxu0 %v2421_v61  ;;  %v2510_v61 = vld [vmem:[%s3587_s1 + $0x4c0] ss:$8 sps:$4 sm:$0xff]  }
  0x47   : > { %1521 = vmatpush1.bf16.msra.mxu1 %v2423_v62  ;;  %v2515_v62 = vld [vmem:[%s3587_s1 + $0x1d4] ss:$8 sps:$4 sm:$0xff]  }
  0x48   : > { %1644 = vmatpush1.bf16.msra.mxu0 %v2424_v63  ;;  %1522 = vmatprep.subr.bf16.mxu1 %v2425_v0  ;;  %v2518_v63 = vld [vmem:[%s3587_s1 + $0x4d4] ss:$8 sps:$4 sm:$0xff]   ;;  %v2513_v0 = vld [vmem:[%s3587_s1 + $0x1d0] ss:$8 sps:$4 sm:$0xff]  }
  0x49   : > { %1645 = vmatprep.subr.bf16.mxu0 %v2427_v1  ;;  %v2516_v1 = vld [vmem:[%s3587_s1 + $0x4d0] ss:$8 sps:$4 sm:$0xff]  }
  0x4b   : > { %1523 = vmatpush1.bf16.msra.mxu1 %v2429_v2  ;;  %v2521_v2 = vld [vmem:[%s3587_s1 + $0x1e4] ss:$8 sps:$4 sm:$0xff]  }
  0x4c   : > { %1646 = vmatpush1.bf16.msra.mxu0 %v2430_v3  ;;  %1533 = vmatprep.subr.bf16.mxu1 %v2435_v4  ;;  %v2524_v3 = vld [vmem:[%s3587_s1 + $0x4e4] ss:$8 sps:$4 sm:$0xff]   ;;  %v2519_v4 = vld [vmem:[%s3587_s1 + $0x1e0] ss:$8 sps:$4 sm:$0xff]  }
  0x4d   : > { %1656 = vmatprep.subr.bf16.mxu0 %v2440_v5  ;;  %v2522_v5 = vld [vmem:[%s3587_s1 + $0x4e0] ss:$8 sps:$4 sm:$0xff]  }
  0x4e   : > { %1525 = vmatmul.mubr.bf16.vlgmr.msra.gmra.mrb[0].mxu1 %v1984_v6  ;;  %v2527_v6 = vld [vmem:[%s3587_s1 + $0x1f4] ss:$8 sps:$4 sm:$0xff]  }
  0x4f   : > { %1648 = vmatmul.mubr.bf16.vlgmr.msra.gmra.mrb[0].mxu0 %v1990_v7  ;;  %1534 = vmatpush1.bf16.msra.mxu1 %v2433_v8  ;;  %v2530_v7 = vld [vmem:[%s3587_s1 + $0x4f4] ss:$8 sps:$4 sm:$0xff]   ;;  %v2525_v8 = vld [vmem:[%s3587_s1 + $0x1f0] ss:$8 sps:$4 sm:$0xff]  }
  0x50   : > { %1657 = vmatpush1.bf16.msra.mxu0 %v2438_v9  ;;  %1535 = vmatprep.subr.bf16.mxu1 %v2443_v10  ;;  %v2528_v9 = vld [vmem:[%s3587_s1 + $0x4f0] ss:$8 sps:$4 sm:$0xff]   ;;  %v2535_v10 = vld [vmem:[%s3587_s1 + $0x204] ss:$8 sps:$4 sm:$0xff]  }
  0x51   : > { %1658 = vmatprep.subr.bf16.mxu0 %v2446_v11  ;;  %1565 = vmatprep.mubr.bf16.mxu1 %v1987_v35  ;;  %v2540_v11 = vld [vmem:[%s3587_s1 + $0x504] ss:$8 sps:$4 sm:$0xff]   ;;  %v2562_v35 = vld [vmem:[%s3587_s1 + $0x540] ss:$8 sps:$4 sm:$0xff]  }
  0x52   : > { %1688 = vmatprep.mubr.bf16.mxu0 %v1993_v38  ;;  %v2565_v38 = vld [vmem:[%s3587_s1 + $0x250] ss:$8 sps:$4 sm:$0xff]  }
  0x53   : > { %1536 = vmatpush1.bf16.msra.mxu1 %v2441_v12  ;;  %v1986_v12 = vcombine.low %v3076_v32, %v3076_v32  ;;  %v2561_v32 = vld [vmem:[%s3587_s1 + $0x244] ss:$8 sps:$4 sm:$0xff]  }
  0x54   : > { %1659 = vmatpush1.bf16.msra.mxu0 %v2444_v13  ;;  %1537 = vmatprep.subr.bf16.mxu1 %v2449_v14  ;;  %v2533_v13 = vld [vmem:[%s3587_s1 + $0x200] ss:$8 sps:$4 sm:$0xff]   ;;  %v1992_v14 = vcombine.low %v3087_v36, %v3087_v36  ;;  %v2567_v36 = vld [vmem:[%s3587_s1 + $0x254] ss:$8 sps:$4 sm:$0xff]  }
  0x55   : > { %1660 = vmatprep.subr.bf16.mxu0 %v2452_v15  ;;  %v2538_v15 = vld [vmem:[%s3587_s1 + $0x500] ss:$8 sps:$4 sm:$0xff]  }
  0x57   : > { %1538 = vmatpush1.bf16.msra.mxu1 %v2447_v16  ;;  %v2543_v16 = vld [vmem:[%s3587_s1 + $0x214] ss:$8 sps:$4 sm:$0xff]  }
  0x58   : > { %1661 = vmatpush1.bf16.msra.mxu0 %v2450_v17  ;;  %1539 = vmatprep.subr.bf16.mxu1 %v2455_v18  ;;  %v2546_v17 = vld [vmem:[%s3587_s1 + $0x514] ss:$8 sps:$4 sm:$0xff]  }
  0x59   : > { %1662 = vmatprep.subr.bf16.mxu0 %v2458_v19  ;;  %v3222_v18 = vld [vmem:[%s2933_s17 + $0x10] sm:$0xff]  ;;  %v3225_v19 = vld [vmem:[%s2933_s17 + $0x28] sm:$0xff] }
  0x5b   : > { %1540 = vmatpush1.bf16.msra.mxu1 %v2453_v20  ;;  %v1989_v20 = vcombine.high %v3222_v18, %v3222_v18 }
  0x5c   : > { %1663 = vmatpush1.bf16.msra.mxu0 %v2456_v21  ;;  %1541 = vmatprep.subr.bf16.mxu1 %v2461_v22  ;;  %v1995_v21 = vcombine.high %v3225_v19, %v3225_v19  ;;  %v2541_v22 = vld [vmem:[%s3587_s1 + $0x210] ss:$8 sps:$4 sm:$0xff]  }
  0x5d   : > { %1664 = vmatprep.subr.bf16.mxu0 %v2464_v23  ;;  %v2544_v23 = vld [vmem:[%s3587_s1 + $0x510] ss:$8 sps:$4 sm:$0xff]  }
  0x5f   : > { %1542 = vmatpush1.bf16.msra.mxu1 %v2459_v24  ;;  %v2549_v24 = vld [vmem:[%s3587_s1 + $0x224] ss:$8 sps:$4 sm:$0xff]  }
  0x60   : > { %1665 = vmatpush1.bf16.msra.mxu0 %v2462_v25  ;;  %1543 = vmatprep.subr.bf16.mxu1 %v2467_v26  ;;  %v2552_v25 = vld [vmem:[%s3587_s1 + $0x524] ss:$8 sps:$4 sm:$0xff]   ;;  %v2547_v26 = vld [vmem:[%s3587_s1 + $0x220] ss:$8 sps:$4 sm:$0xff]  }
  0x61   : > { %1666 = vmatprep.subr.bf16.mxu0 %v2470_v27  ;;  %v2550_v27 = vld [vmem:[%s3587_s1 + $0x520] ss:$8 sps:$4 sm:$0xff]  }
  0x63   : > { %1544 = vmatpush1.bf16.msra.mxu1 %v2465_v28  ;;  %v2555_v28 = vld [vmem:[%s3587_s1 + $0x234] ss:$8 sps:$4 sm:$0xff]  }
  0x64   : > { %1667 = vmatpush1.bf16.msra.mxu0 %v2468_v29  ;;  %1545 = vmatprep.subr.bf16.mxu1 %v2473_v30  ;;  %v2558_v29 = vld [vmem:[%s3587_s1 + $0x534] ss:$8 sps:$4 sm:$0xff]   ;;  %v2553_v30 = vld [vmem:[%s3587_s1 + $0x230] ss:$8 sps:$4 sm:$0xff]  }
  0x65   : > { %1668 = vmatprep.subr.bf16.mxu0 %v2476_v31  ;;  %v2556_v31 = vld [vmem:[%s3587_s1 + $0x530] ss:$8 sps:$4 sm:$0xff]  }
  0x67   : > { %1546 = vmatpush1.bf16.msra.mxu1 %v2471_v33  ;;  %v2564_v33 = vld [vmem:[%s3587_s1 + $0x544] ss:$8 sps:$4 sm:$0xff]  }
  0x68   : > { %1669 = vmatpush1.bf16.msra.mxu0 %v2474_v34  ;;  %1547 = vmatprep.subr.bf16.mxu1 %v2479_v37  ;;  %v2559_v34 = vld [vmem:[%s3587_s1 + $0x240] ss:$8 sps:$4 sm:$0xff]   ;;  %v2570_v37 = vld [vmem:[%s3587_s1 + $0x554] ss:$8 sps:$4 sm:$0xff]  }
  0x69   : > { %1670 = vmatprep.subr.bf16.mxu0 %v2482_v39  ;;  %v2568_v39 = vld [vmem:[%s3587_s1 + $0x550] ss:$8 sps:$4 sm:$0xff]  }
  0x6b   : > { %1548 = vmatpush1.bf16.msra.mxu1 %v2477_v40  ;;  %v2573_v40 = vld [vmem:[%s3587_s1 + $0x264] ss:$8 sps:$4 sm:$0xff]  }
  0x6c   : > { %1671 = vmatpush1.bf16.msra.mxu0 %v2480_v41  ;;  %1549 = vmatprep.subr.bf16.mxu1 %v2485_v42  ;;  %v2576_v41 = vld [vmem:[%s3587_s1 + $0x564] ss:$8 sps:$4 sm:$0xff]   ;;  %v2571_v42 = vld [vmem:[%s3587_s1 + $0x260] ss:$8 sps:$4 sm:$0xff]  }
  0x6d   : > { %1672 = vmatprep.subr.bf16.mxu0 %v2488_v43  ;;  %v2574_v43 = vld [vmem:[%s3587_s1 + $0x560] ss:$8 sps:$4 sm:$0xff]  }
  0x6f   : > { %1550 = vmatpush1.bf16.msra.mxu1 %v2483_v44  ;;  %v2579_v44 = vld [vmem:[%s3587_s1 + $0x274] ss:$8 sps:$4 sm:$0xff]  }
  0x70   : > { %1673 = vmatpush1.bf16.msra.mxu0 %v2486_v45  ;;  %1551 = vmatprep.subr.bf16.mxu1 %v2491_v46  ;;  %v2582_v45 = vld [vmem:[%s3587_s1 + $0x574] ss:$8 sps:$4 sm:$0xff]   ;;  %v2577_v46 = vld [vmem:[%s3587_s1 + $0x270] ss:$8 sps:$4 sm:$0xff]  }
  0x71   : > { %1674 = vmatprep.subr.bf16.mxu0 %v2494_v47  ;;  %v2580_v47 = vld [vmem:[%s3587_s1 + $0x570] ss:$8 sps:$4 sm:$0xff]  }
  0x73   : > { %1552 = vmatpush1.bf16.msra.mxu1 %v2489_v48  ;;  %v2585_v48 = vld [vmem:[%s3587_s1 + $0x284] ss:$8 sps:$4 sm:$0xff]  }
  0x74   : > { %1675 = vmatpush1.bf16.msra.mxu0 %v2492_v49  ;;  %1553 = vmatprep.subr.bf16.mxu1 %v2497_v50  ;;  %v2588_v49 = vld [vmem:[%s3587_s1 + $0x584] ss:$8 sps:$4 sm:$0xff]   ;;  %v2583_v50 = vld [vmem:[%s3587_s1 + $0x280] ss:$8 sps:$4 sm:$0xff]  }
  0x75   : > { %1676 = vmatprep.subr.bf16.mxu0 %v2500_v51  ;;  %v2586_v51 = vld [vmem:[%s3587_s1 + $0x580] ss:$8 sps:$4 sm:$0xff]  }
  0x77   : > { %1554 = vmatpush1.bf16.msra.mxu1 %v2495_v52  ;;  %v2591_v52 = vld [vmem:[%s3587_s1 + $0x294] ss:$8 sps:$4 sm:$0xff]  }
  0x78   : > { %1677 = vmatpush1.bf16.msra.mxu0 %v2498_v53  ;;  %1555 = vmatprep.subr.bf16.mxu1 %v2503_v54  ;;  %v2594_v53 = vld [vmem:[%s3587_s1 + $0x594] ss:$8 sps:$4 sm:$0xff]   ;;  %v2589_v54 = vld [vmem:[%s3587_s1 + $0x290] ss:$8 sps:$4 sm:$0xff]  }
  0x79   : > { %1678 = vmatprep.subr.bf16.mxu0 %v2506_v55  ;;  %v2592_v55 = vld [vmem:[%s3587_s1 + $0x590] ss:$8 sps:$4 sm:$0xff]  }
  0x7b   : > { %1556 = vmatpush1.bf16.msra.mxu1 %v2501_v56  ;;  %v2597_v56 = vld [vmem:[%s3587_s1 + $0x2a4] ss:$8 sps:$4 sm:$0xff]  }
  0x7c   : > { %1679 = vmatpush1.bf16.msra.mxu0 %v2504_v57  ;;  %1557 = vmatprep.subr.bf16.mxu1 %v2509_v58  ;;  %v2600_v57 = vld [vmem:[%s3587_s1 + $0x5a4] ss:$8 sps:$4 sm:$0xff]   ;;  %v2595_v58 = vld [vmem:[%s3587_s1 + $0x2a0] ss:$8 sps:$4 sm:$0xff]  }
  0x7d   : > { %1680 = vmatprep.subr.bf16.mxu0 %v2512_v59  ;;  %v2598_v59 = vld [vmem:[%s3587_s1 + $0x5a0] ss:$8 sps:$4 sm:$0xff]  }
  0x7f   : > { %1558 = vmatpush1.bf16.msra.mxu1 %v2507_v60  ;;  %v2603_v60 = vld [vmem:[%s3587_s1 + $0x2b4] ss:$8 sps:$4 sm:$0xff]  }
  0x80   : > { %1681 = vmatpush1.bf16.msra.mxu0 %v2510_v61  ;;  %1559 = vmatprep.subr.bf16.mxu1 %v2515_v62  ;;  %v2606_v61 = vld [vmem:[%s3587_s1 + $0x5b4] ss:$8 sps:$4 sm:$0xff]   ;;  %v2601_v62 = vld [vmem:[%s3587_s1 + $0x2b0] ss:$8 sps:$4 sm:$0xff]  }
  0x81   : > { %1682 = vmatprep.subr.bf16.mxu0 %v2518_v63  ;;  %v2604_v63 = vld [vmem:[%s3587_s1 + $0x5b0] ss:$8 sps:$4 sm:$0xff]  }
  0x83   : > { %1560 = vmatpush1.bf16.msra.mxu1 %v2513_v0  ;;  %v2609_v0 = vld [vmem:[%s3587_s1 + $0x2c4] ss:$8 sps:$4 sm:$0xff]  }
  0x84   : > { %1683 = vmatpush1.bf16.msra.mxu0 %v2516_v1  ;;  %1561 = vmatprep.subr.bf16.mxu1 %v2521_v2  ;;  %v2612_v1 = vld [vmem:[%s3587_s1 + $0x5c4] ss:$8 sps:$4 sm:$0xff]   ;;  %v2607_v2 = vld [vmem:[%s3587_s1 + $0x2c0] ss:$8 sps:$4 sm:$0xff]  }
  0x85   : > { %1684 = vmatprep.subr.bf16.mxu0 %v2524_v3  ;;  %v2610_v3 = vld [vmem:[%s3587_s1 + $0x5c0] ss:$8 sps:$4 sm:$0xff]  }
  0x87   : > { %1562 = vmatpush1.bf16.msra.mxu1 %v2519_v4  ;;  %v2615_v4 = vld [vmem:[%s3587_s1 + $0x2d4] ss:$8 sps:$4 sm:$0xff]  }
  0x88   : > { %1685 = vmatpush1.bf16.msra.mxu0 %v2522_v5  ;;  %1563 = vmatprep.subr.bf16.mxu1 %v2527_v6  ;;  %v2618_v5 = vld [vmem:[%s3587_s1 + $0x5d4] ss:$8 sps:$4 sm:$0xff]   ;;  %v2613_v6 = vld [vmem:[%s3587_s1 + $0x2d0] ss:$8 sps:$4 sm:$0xff]  }
  0x89   : > { %1686 = vmatprep.subr.bf16.mxu0 %v2530_v7  ;;  %v2616_v7 = vld [vmem:[%s3587_s1 + $0x5d0] ss:$8 sps:$4 sm:$0xff]  }
  0x8b   : > { %1564 = vmatpush1.bf16.msra.mxu1 %v2525_v8  ;;  %v2621_v8 = vld [vmem:[%s3587_s1 + $0x2e4] ss:$8 sps:$4 sm:$0xff]  }
  0x8c   : > { %1687 = vmatpush1.bf16.msra.mxu0 %v2528_v9  ;;  %1574 = vmatprep.subr.bf16.mxu1 %v2535_v10  ;;  %v2624_v9 = vld [vmem:[%s3587_s1 + $0x5e4] ss:$8 sps:$4 sm:$0xff]   ;;  %v2619_v10 = vld [vmem:[%s3587_s1 + $0x2e0] ss:$8 sps:$4 sm:$0xff]  }
  0x8d   : > { %1697 = vmatprep.subr.bf16.mxu0 %v2540_v11  ;;  %v2622_v11 = vld [vmem:[%s3587_s1 + $0x5e0] ss:$8 sps:$4 sm:$0xff]  }
  0x8e   : > { %1566 = vmatmul.mubr.bf16.vlgmr.msra.gmra.mrb[0].mxu1 %v1986_v12  ;;  %v2627_v12 = vld [vmem:[%s3587_s1 + $0x2f4] ss:$8 sps:$4 sm:$0xff]  }
  0x8f   : > { %1689 = vmatmul.mubr.bf16.vlgmr.msra.gmra.mrb[0].mxu0 %v1992_v14  ;;  %1575 = vmatpush1.bf16.msra.mxu1 %v2533_v13  ;;  %v2630_v13 = vld [vmem:[%s3587_s1 + $0x5f4] ss:$8 sps:$4 sm:$0xff]   ;;  %v1797_v14 = vld [vmem:[%s3589_s3 + $0x80] sm:$0xff] }
  0x90   : > { %1698 = vmatpush1.bf16.msra.mxu0 %v2538_v15  ;;  %1576 = vmatprep.subr.bf16.mxu1 %v2543_v16  ;;  %v1798_v15 = vld [vmem:[%s3589_s3 + $0x88] sm:$0xff]  ;;  %v2625_v16 = vld [vmem:[%s3587_s1 + $0x2f0] ss:$8 sps:$4 sm:$0xff]  }
  0x91   : > { %1699 = vmatprep.subr.bf16.mxu0 %v2546_v17  ;;  %1606 = vmatprep.mubr.bf16.mxu1 %v1989_v20  ;;  %v2628_v17 = vld [vmem:[%s3587_s1 + $0x5f0] ss:$8 sps:$4 sm:$0xff]   ;;  %v2637_v20 = vld [vmem:[%s3587_s1 + $0x604] ss:$8 sps:$4 sm:$0xff]  }
  0x92   : > { %1729 = vmatprep.mubr.bf16.mxu0 %v1995_v21  ;;  %v2238_v21 = vpack.c.bf16 %v1798_v15, %v1797_v14 }
  0x93   : > { %1577 = vmatpush1.bf16.msra.mxu1 %v2541_v22  ;;  %v1781_v22 = vld [vmem:[%s3589_s3] sm:$0xff] }
  0x94   : > { %1700 = vmatpush1.bf16.msra.mxu0 %v2544_v23  ;;  %1578 = vmatprep.subr.bf16.mxu1 %v2549_v24  ;;  %v1782_v23 = vld [vmem:[%s3589_s3 + $0x8] sm:$0xff]  ;;  %v1988_v24 = vcombine.low %v3222_v18, %v3222_v18  ;;  %v2640_v18 = vld [vmem:[%s3587_s1 + $0x614] ss:$8 sps:$4 sm:$0xff]  }
  0x95   : > { %1701 = vmatprep.subr.bf16.mxu0 %v2552_v25  ;;  %v1994_v25 = vcombine.low %v3225_v19, %v3225_v19  ;;  %v2240_v19 = vpack.c.bf16 %v1782_v23, %v1781_v22 }
  0x97   : > { %1579 = vmatpush1.bf16.msra.mxu1 %v2547_v26  ;;  %v1799_v26 = vld [vmem:[%s3589_s3 + $0x90] sm:$0xff] }
  0x98   : > { %1702 = vmatpush1.bf16.msra.mxu0 %v2550_v27  ;;  %1580 = vmatprep.subr.bf16.mxu1 %v2555_v28  ;;  %v1800_v27 = vld [vmem:[%s3589_s3 + $0x98] sm:$0xff]  ;;  %v2635_v28 = vld [vmem:[%s3587_s1 + $0x600] ss:$8 sps:$4 sm:$0xff]  }
  0x99   : > { %1703 = vmatprep.subr.bf16.mxu0 %v2558_v29  ;;  %v2242_v29 = vpack.c.bf16 %v1800_v27, %v1799_v26 }
  0x9b   : > { %1581 = vmatpush1.bf16.msra.mxu1 %v2553_v30  ;;  %v1783_v30 = vld [vmem:[%s3589_s3 + $0x10] sm:$0xff] }
  0x9c   : > { %1704 = vmatpush1.bf16.msra.mxu0 %v2556_v31  ;;  %1582 = vmatprep.subr.bf16.mxu1 %v2561_v32  ;;  %v1784_v31 = vld [vmem:[%s3589_s3 + $0x18] sm:$0xff]  ;;  %v1801_v32 = vld [vmem:[%s3589_s3 + $0xa0] sm:$0xff] }
  0x9d   : > { %1705 = vmatprep.subr.bf16.mxu0 %v2564_v33  ;;  %v1802_v33 = vld [vmem:[%s3589_s3 + $0xa8] sm:$0xff] }
  0x9f   : > { %1583 = vmatpush1.bf16.msra.mxu1 %v2559_v34  ;;  %v2638_v34 = vld [vmem:[%s3587_s1 + $0x610] ss:$8 sps:$4 sm:$0xff]  }
  0xa0   : > { %1706 = vmatpush1.bf16.msra.mxu0 %v2562_v35  ;;  %1584 = vmatprep.subr.bf16.mxu1 %v2567_v36  ;;  %v2716_v35 = vmov 0   ;;  %v2643_v36 = vld [vmem:[%s3587_s1 + $0x624] ss:$8 sps:$4 sm:$0xff]  }
  0xa1   : > { %1707 = vmatprep.subr.bf16.mxu0 %v2570_v37  ;;  %v2244_v37 = vpack.c.bf16 %v1784_v31, %v1783_v30 }
  0xa3   : > { %1585 = vmatpush1.bf16.msra.mxu1 %v2565_v38  ;;  %v2246_v38 = vpack.c.bf16 %v1802_v33, %v1801_v32 }
  0xa4   : > { %1708 = vmatpush1.bf16.msra.mxu0 %v2568_v39  ;;  %1586 = vmatprep.subr.bf16.mxu1 %v2573_v40  ;;  %v2641_v39 = vld [vmem:[%s3587_s1 + $0x620] ss:$8 sps:$4 sm:$0xff]   ;;  %v2646_v40 = vld [vmem:[%s3587_s1 + $0x634] ss:$8 sps:$4 sm:$0xff]  }
  0xa5   : > { %1709 = vmatprep.subr.bf16.mxu0 %v2576_v41  ;;  %v2644_v41 = vld [vmem:[%s3587_s1 + $0x630] ss:$8 sps:$4 sm:$0xff]  }
  0xa7   : > { %1587 = vmatpush1.bf16.msra.mxu1 %v2571_v42  ;;  %v2647_v42 = vld [vmem:[%s2933_s17 + $0x30] ss:$0 sps:$4 sm:$0xff]   ;;  %s1906_s17 = scalar_lea.sflag [#allocation3], %s215_s30 }
  0xa8   : > { %1710 = vmatpush1.bf16.msra.mxu0 %v2574_v43  ;;  %1588 = vmatprep.subr.bf16.mxu1 %v2579_v44  ;;  %v1785_v43 = vld [vmem:[%s3589_s3 + $0x20] sm:$0xff]  ;;  %v1786_v44 = vld [vmem:[%s3589_s3 + $0x28] sm:$0xff] }
  0xa9   : > { %1711 = vmatprep.subr.bf16.mxu0 %v2582_v45  ;;  %v2248_v45 = vpack.c.bf16 %v1786_v44, %v1785_v43 }
  0xab   : > { %1589 = vmatpush1.bf16.msra.mxu1 %v2577_v46  ;;  %v1803_v46 = vld [vmem:[%s3589_s3 + $0xb0] sm:$0xff] }
  0xac   : > { %1712 = vmatpush1.bf16.msra.mxu0 %v2580_v47  ;;  %1590 = vmatprep.subr.bf16.mxu1 %v2585_v48  ;;  %v1804_v47 = vld [vmem:[%s3589_s3 + $0xb8] sm:$0xff] }
  0xad   : > { %1713 = vmatprep.subr.bf16.mxu0 %v2588_v49  ;;  %v2250_v48 = vpack.c.bf16 %v1804_v47, %v1803_v46  ;;  %v1787_v49 = vld [vmem:[%s3589_s3 + $0x30] sm:$0xff] }
  0xaf   : > { %1591 = vmatpush1.bf16.msra.mxu1 %v2583_v50  ;;  %v1788_v50 = vld [vmem:[%s3589_s3 + $0x38] sm:$0xff] }
  0xb0   : > { %1714 = vmatpush1.bf16.msra.mxu0 %v2586_v51  ;;  %1592 = vmatprep.subr.bf16.mxu1 %v2591_v52  ;;  %v2252_v51 = vpack.c.bf16 %v1788_v50, %v1787_v49  ;;  %v1805_v52 = vld [vmem:[%s3589_s3 + $0xc0] sm:$0xff] }
  0xb1   : > { %1715 = vmatprep.subr.bf16.mxu0 %v2594_v53  ;;  %v1806_v53 = vld [vmem:[%s3589_s3 + $0xc8] sm:$0xff] }
  0xb3   : > { %1593 = vmatpush1.bf16.msra.mxu1 %v2589_v54  ;;  %v1789_v54 = vld [vmem:[%s3589_s3 + $0x40] sm:$0xff] }
  0xb4   : > { %1716 = vmatpush1.bf16.msra.mxu0 %v2592_v55  ;;  %1594 = vmatprep.subr.bf16.mxu1 %v2597_v56  ;;  %v2254_v55 = vpack.c.bf16 %v1806_v53, %v1805_v52  ;;  %v1790_v56 = vld [vmem:[%s3589_s3 + $0x48] sm:$0xff] }
  0xb5   : > { %1717 = vmatprep.subr.bf16.mxu0 %v2600_v57  ;;  %v1807_v57 = vld [vmem:[%s3589_s3 + $0xd0] sm:$0xff] }
  0xb7   : > { %1595 = vmatpush1.bf16.msra.mxu1 %v2595_v58  ;;  %v1808_v58 = vld [vmem:[%s3589_s3 + $0xd8] sm:$0xff] }
  0xb8   : > { %1718 = vmatpush1.bf16.msra.mxu0 %v2598_v59  ;;  %1596 = vmatprep.subr.bf16.mxu1 %v2603_v60  ;;  %v2256_v59 = vpack.c.bf16 %v1790_v56, %v1789_v54  ;;  %v2258_v60 = vpack.c.bf16 %v1808_v58, %v1807_v57 }
  0xb9   : > { %1719 = vmatprep.subr.bf16.mxu0 %v2606_v61  ;;  %v1791_v61 = vld [vmem:[%s3589_s3 + $0x50] sm:$0xff] }
  0xbb   : > { %1597 = vmatpush1.bf16.msra.mxu1 %v2601_v62  ;;  %v1792_v62 = vld [vmem:[%s3589_s3 + $0x58] sm:$0xff] }
  0xbc   : > { %1720 = vmatpush1.bf16.msra.mxu0 %v2604_v63  ;;  %1598 = vmatprep.subr.bf16.mxu1 %v2609_v0  ;;  %v1809_v63 = vld [vmem:[%s3589_s3 + $0xe0] sm:$0xff]  ;;  %v1810_v0 = vld [vmem:[%s3589_s3 + $0xe8] sm:$0xff] }
  0xbd   : > { %1721 = vmatprep.subr.bf16.mxu0 %v2612_v1  ;;  %v2260_v1 = vpack.c.bf16 %v1792_v62, %v1791_v61 }
  0xbf   : > { %1599 = vmatpush1.bf16.msra.mxu1 %v2607_v2  ;;  %v2262_v2 = vpack.c.bf16 %v1810_v0, %v1809_v63 }
  0xc0   : > { %1722 = vmatpush1.bf16.msra.mxu0 %v2610_v3  ;;  %1600 = vmatprep.subr.bf16.mxu1 %v2615_v4  ;;  %v1793_v3 = vld [vmem:[%s3589_s3 + $0x60] sm:$0xff]  ;;  %v1794_v4 = vld [vmem:[%s3589_s3 + $0x68] sm:$0xff] }
  0xc1   : > { %1723 = vmatprep.subr.bf16.mxu0 %v2618_v5  ;;  %v2264_v5 = vpack.c.bf16 %v1794_v4, %v1793_v3 }
  0xc3   : > { %1601 = vmatpush1.bf16.msra.mxu1 %v2613_v6  ;;  %v1811_v6 = vld [vmem:[%s3589_s3 + $0xf0] sm:$0xff] }
  0xc4   : > { %1724 = vmatpush1.bf16.msra.mxu0 %v2616_v7  ;;  %1602 = vmatprep.subr.bf16.mxu1 %v2621_v8  ;;  %v1812_v7 = vld [vmem:[%s3589_s3 + $0xf8] sm:$0xff] }
  0xc5   : > { %1725 = vmatprep.subr.bf16.mxu0 %v2624_v9  ;;  %v2266_v8 = vpack.c.bf16 %v1812_v7, %v1811_v6  ;;  %v1795_v9 = vld [vmem:[%s3589_s3 + $0x70] sm:$0xff] }
  0xc7   : > { %1603 = vmatpush1.bf16.msra.mxu1 %v2619_v10  ;;  %v1796_v10 = vld [vmem:[%s3589_s3 + $0x78] sm:$0xff] }
  0xc8   : > { %1726 = vmatpush1.bf16.msra.mxu0 %v2622_v11  ;;  %1604 = vmatprep.subr.bf16.mxu1 %v2627_v12  ;;  %v2268_v11 = vpack.c.bf16 %v1796_v10, %v1795_v9  ;;  %v433_v12 = vlaneseq }
  0xc9   : > { %1727 = vmatprep.subr.bf16.mxu0 %v2630_v13 }
  0xcb   : > { %1605 = vmatpush1.bf16.msra.mxu1 %v2625_v16  ;;  %v434_v16 = vshrl.u32 %v433_v12, 7 }
  0xcc   : > { %1728 = vmatpush1.bf16.msra.mxu0 %v2628_v17  ;;  %2239 = vmatprep.subr.bf16.mxu1 %v2238_v21  ;;  %v431_v21 = vld [vmem:[%s3588_s2] sm:$0x3] }
  0xcd   : > { %1738 = vmatprep.subr.bf16.mxu0 %v2637_v20  ;;  %v435_v20 = vsub.s32 0, %v434_v16  ;;  %v439_v22 = vsub.s32 1, %v434_v16 }
  0xce   : > { %1607 = vmatmul.mubr.bf16.vlgmr.msra.gmra.mrb[0].mxu1 %v1988_v24 }
  0xcf   : > { %1730 = vmatmul.mubr.bf16.vlgmr.msra.gmra.mrb[0].mxu0 %v1994_v25  ;;  %2241 = vmatpush3.bf16.msra.mxu1 %v2240_v19  ;;  %v436_v23 = vrot.slane %v431_v21, %v435_v20  ;;  %v440_v24 = vrot.slane %v431_v21, %v439_v22 }
  0xd0   : > { %1739 = vmatpush1.bf16.msra.mxu0 %v2635_v28  ;;  %1770 = vmatprep.mubr.bf16.mxu0 %v2716_v35 }
  0xd1   : > { %1740 = vmatprep.subr.bf16.mxu0 %v2640_v18  ;;  %2243 = vmatprep.subr.bf16.mxu1 %v2242_v29 }
  0xd3   : > { %2245 = vmatpush3.bf16.msra.mxu1 %v2244_v37 }
  0xd4   : > { %1741 = vmatpush1.bf16.msra.mxu0 %v2638_v34  ;;  %2247 = vmatprep.subr.bf16.mxu1 %v2246_v38  ;;  %v2198_v34 = vld [vmem:[%s3590_s4] ss:$0 sm:$0xff] }
  0xd5   : > { %1742 = vmatprep.subr.bf16.mxu0 %v2643_v36 }
  0xd7   : > { %2249 = vmatpush3.bf16.msra.mxu1 %v2248_v45 }
  0xd8   : > { %1743 = vmatpush1.bf16.msra.mxu0 %v2641_v39  ;;  %2251 = vmatprep.subr.bf16.mxu1 %v2250_v48 }
  0xd9   : > { %1744 = vmatprep.subr.bf16.mxu0 %v2646_v40 }
  0xdb   : > { %2253 = vmatpush3.bf16.msra.mxu1 %v2252_v51 }
  0xdc   : > { %1745 = vmatpush1.bf16.msra.mxu0 %v2644_v41  ;;  %2255 = vmatprep.subr.bf16.mxu1 %v2254_v55 }
  0xdf   : > { %2197 = vmatmul.mubr.msk.bf16.vlgmr.msra.gmra.mrb[0].mxu0 %vm1488_vm0, %v2647_v42  ;;  %2257 = vmatpush3.bf16.msra.mxu1 %v2256_v59 }
  0xe0   : > { %2259 = vmatprep.subr.bf16.mxu1 %v2258_v60 }
  0xe3   : > { %2261 = vmatpush3.bf16.msra.mxu1 %v2260_v1 }
  0xe4   : > { %2263 = vmatprep.subr.bf16.mxu1 %v2262_v2 }
  0xe7   : > { %2265 = vmatpush3.bf16.msra.mxu1 %v2264_v5 }
  0xe8   : > { %2267 = vmatprep.subr.bf16.mxu1 %v2266_v8 }
  0xeb   : > { %2269 = vmatpush3.bf16.msra.mxu1 %v2268_v11 }
 0x1a1   : > { %v1608_v13 = vpop.f32.mrb[0].mxu1 }
 0x1a2   : > { %v1610_v14 = vpop.f32.mrb[1].mxu1  ;;  %v2270_v25 = vadd.f32 %v1608_v13, %v436_v23 }
 0x1a3   : > { %v1612_v15 = vpop.f32.mrb[2].mxu1  ;;  %v2272_v26 = vadd.f32 %v1610_v14, %v440_v24 }
 0x1a4   : > { %v1613_v17 = vpop.f32.mrb[3].mxu1 }
 0x1b2   : > { %v1772_v27 = vpop.f32.mrb[0].mxu0 }
 0x1b3   : > { %v2271_v28 = vadd.f32 %v2270_v25, %v1772_v27  ;;  %v1774_v18 = vpop.f32.mrb[1].mxu0 }
 0x1b4   : > { %v2273_v19 = vadd.f32 %v2272_v26, %v1774_v18  ;;  %v1776_v29 = vpop.f32.mrb[2].mxu0 }
 0x1b5   : > { %v1777_v30 = vpop.f32.mrb[3].mxu0  ;;  %v1779_v32 = vmax.f32 %v2271_v28, 0.0 }
 0x1b6   : > { %v1780_v31 = vmax.f32 %v2273_v19, 0.0 }
 0x1b8   : > { %1884 = vmatprep.mubr.f32.mxu1 %v1780_v31 }
 0x1b9   : > { %1885 = vmatmul.mubr.f32.vlgmr.msra.gmra.mrb[4].mxu1 %v1779_v32 }
 0x28c   : > { %v2235_v33 = vpop.f32.mrb[4].mxu1 }
 0x28d   : > { %v2236_v35 = vpop.f32.mrb[5].mxu1 }
 0x28e   : > { %v2237_v36 = vadd.f32 %v2236_v35, %v2235_v33 }
 0x290   : > { %v1887_v37 = vadd.f32 %v2237_v36, %v2198_v34 }
 0x292   : > { %v1891_v38 = vsel %vm1890_vm1, %v1887_v37, -inf }
 0x293   : > { %1892 = vmax.xlane.f32.xlu0 %v1891_v38 }
 0x320   : > { %v1893_v39 = vpop.xlane.xlu0 %1892 }
 0x321   : > { %v1894_v40 = vsub.f32 %v1887_v37, %v1893_v39 }
 0x323   : > { %v1895_v41 = vmul.f32 1.442695, %v1894_v40 }
 0x325   : > { %2648 = vpow2.f32 %v1895_v41 }
 0x32f   : > { %v2649_v42 = vpop.eup %2648 }
 0x330   : > { %v1897_v43 = vsel %vm1890_vm1, %v2649_v42, 0.0 }
 0x331   : > { %1898 = vadd.xlane.f32.xlu0 %v1897_v43 }
 0x3be   : > { %v1899_v44 = vpop.xlane.xlu0 %1898 }
 0x3bf   : > { %2650 = vlog2.f32 %v1899_v44 }
 0x3c9   : > { %v2651_v45 = vpop.eup %2650 }
 0x3ca   : > { %v1901_v46 = vmul.f32 0.6931472, %v2651_v45 }
 0x3cc   : > { %v1902_v47 = vadd.f32 %v1901_v46, %v1893_v39 }
 0x3ce   : > { %v1903_v48 = vsub.f32 %v1887_v37, %v1902_v47 }
 0x3d0   : > { %1904 = vst.msk [vmem:[%s217_s8] sm:$0xff] %vm1890_vm1, %v1903_v48 }
 0x3d1   : > { %2665 = shalt.err (!%p2662_p3)
}
 0x3d2   : > { %s2666_s15 = scalar_lea.hbm %s3543_s11, 128  ;;  %s2670_s25 = scalar_lea.hbm %s3591_s5, 256 }
 0x3d3   : > { %p2667_p4 = scmp.ne.s32.totalorder %s3543_s11, %s2666_s15  ;;  %p2671_p9 = scmp.lt.u32.totalorder %s3543_s11, %s3591_s5 }
 0x3d4   : > { %p2672_p10 = scmp.lt.u32.totalorder %s2670_s25, %s2666_s15  ;;  %p2674_p12 = scmp.lt.u32.totalorder %s2666_s15, %s3543_s11 }
 0x3d5   : > { %p2668_p7 = pnand %p2667_p4, %p2786_p5 }
 0x3d6   : > { %p2673_p11 = por %p2672_p10, %p2671_p9 }
 0x3d7   : > { %p2669_p8 = pneg %p2668_p7 }
 0x3d8   : > { %p2675_p13 = por %p2674_p12, %p2673_p11 }
 0x3da   : > { %p2676_p0 = pnand %p2675_p13, %p2669_p8 }
 0x3dc   : > { %2679 = shalt.err (!%p2676_p0)
}
 0x3dd   : > { %2295 = dma.vmem_to_hbm [thread:$0]  (%p2786_p5), %s3545_s26, 128, %s3543_s11, %s1906_s17  }
 0x3de PF: > { %p2301_p1 = scmp.ge.s32.totalorder %s2714_s21, 2  ;;  %s1931_s7 = sand.u32 1, %s2702_s18  }
 0x3df   : > { %s1932_s8 = scalar_lea.sflag [#allocation3], %s1931_s7 }
 0x3e0   : > { %p2298_p2 = pnand %p2301_p1, %p2790_p6 }
 0x3e2   : > { %2697 = dma.done.wait (!%p2298_p2), %s1932_s8, 128  }
 0x3e3   : > { %2699 = vsyncadd (!%p2298_p2), %s1932_s8, 4294967168  ;;  %p15_p3 = scmp.ge.s32.totalorder %s2773_s24, 4   ;;  %s3594_s18 = smov %s2706_s19 }
 0x3e4   : > { %s3595_s19 = smov %s2710_s20  ;;  %s3596_s20 = smov %s2784_s27 }
 0x3e5   : > { %s3597_s21 = smov %s2773_s24  ;;  %17 = sbr.rel (!%p15_p3) target bundleno = 3 (0x3), region = 75 }
 0x3ec   :  { %1937 = vsyncpa [#allocation3], 1 }
 0x3ed   :  { %1939 = vsyncpa [#allocation3 + $0x1], 1 }

</bundles_post_ra>
